<compile_context>
chip_gen: v7x
topology: tpu7x:2x2x1
jax: 0.10.0
libtpu: 0.0.40
codegen_flags: <defaults>
</compile_context>

<pallas_src>
import functools
import math

import jax
import jax.numpy as jnp
from jax.experimental import pallas as pl
from jax.experimental.pallas import tpu as pltpu


VMEM_LIMIT = 32 * 1024 * 1024  # conservative scoped-VMEM budget (fits v5e/v6e/v7x)


def _round_up(x, m):
    return (x + m - 1) // m * m


def _pad2(x, m0, m1):
    p0 = _round_up(x.shape[0], m0) - x.shape[0]
    p1 = _round_up(x.shape[1], m1) - x.shape[1]
    if p0 or p1:
        x = jnp.pad(x, ((0, p0), (0, p1)))
    return x


# ---------------------------------------------------------------------------
# Pallas kernels
# ---------------------------------------------------------------------------

def _mm_affine_kernel(a_ref, b_ref, s_ref, t_ref, o_ref, acc_ref, *, relu):
    """C = A@B with fused epilogue: y = acc*scale + shift (+ReLU)."""
    @pl.when(pl.program_id(2) == 0)
    def _():
        acc_ref[...] = jnp.zeros_like(acc_ref)

    acc_ref[...] += jnp.dot(a_ref[...], b_ref[...],
                            preferred_element_type=jnp.float32)

    @pl.when(pl.program_id(2) == pl.num_programs(2) - 1)
    def _():
        y = acc_ref[...] * s_ref[...] + t_ref[...]
        if relu:
            y = jnp.maximum(y, 0.0)
        o_ref[...] = y.astype(o_ref.dtype)


def _mm_affine_res_kernel(a_ref, b_ref, s_ref, t_ref, r_ref, o_ref, acc_ref,
                          *, relu):
    """Same as above but with a fused residual add before the ReLU."""
    @pl.when(pl.program_id(2) == 0)
    def _():
        acc_ref[...] = jnp.zeros_like(acc_ref)

    acc_ref[...] += jnp.dot(a_ref[...], b_ref[...],
                            preferred_element_type=jnp.float32)

    @pl.when(pl.program_id(2) == pl.num_programs(2) - 1)
    def _():
        y = acc_ref[...] * s_ref[...] + t_ref[...] + r_ref[...].astype(jnp.float32)
        if relu:
            y = jnp.maximum(y, 0.0)
        o_ref[...] = y.astype(o_ref.dtype)


def _max_tree_kernel(*refs):
    """Elementwise max of all input refs (9 maxpool taps), written to out ref."""
    o_ref = refs[-1]
    m = refs[0][...]
    for r in refs[1:-1]:
        m = jnp.maximum(m, r[...])
    o_ref[...] = m


def _gap_kernel(x_ref, o_ref, acc_ref, *, inv_hw):
    """Streaming global-average-pool: accumulate partial sums over HW tiles."""
    @pl.when(pl.program_id(0) == 0)
    def _():
        acc_ref[...] = jnp.zeros_like(acc_ref)

    acc_ref[...] += jnp.sum(x_ref[...].astype(jnp.float32), axis=1)

    @pl.when(pl.program_id(0) == pl.num_programs(0) - 1)
    def _():
        o_ref[...] = acc_ref[...] * inv_hw


def _head_kernel(*refs, n_hidden):
    """Fused MLP head: [Linear -> BN -> ReLU]*n_hidden -> Linear + bias."""
    x_ref = refs[0]
    o_ref = refs[-1]
    idx = 1
    h = x_ref[...]                                   # bf16
    for _ in range(n_hidden):
        w_ref, s_ref, t_ref = refs[idx], refs[idx + 1], refs[idx + 2]
        idx += 3
        y = jnp.dot(h, w_ref[...], preferred_element_type=jnp.float32)
        h = jnp.maximum(y * s_ref[...] + t_ref[...], 0.0).astype(jnp.bfloat16)
    w_ref, b_ref = refs[idx], refs[idx + 1]
    y = jnp.dot(h, w_ref[...], preferred_element_type=jnp.float32)
    o_ref[...] = y + b_ref[...]


# ---------------------------------------------------------------------------
# Pallas wrappers
# ---------------------------------------------------------------------------

def pallas_matmul_affine(a, b, scale, shift, residual=None, relu=False,
                         out_dtype=jnp.bfloat16):
    """out = relu? ((A @ B) * scale + shift (+residual)) — single fused kernel.

    A:(M,K), B:(K,N) are cast to bf16 (MXU-native); accumulation is f32.
    """
    M, K = a.shape
    K2, N = b.shape
    assert K == K2
    Np = _round_up(N, 128)
    Kp = _round_up(K, 128)

    # Tile selection: large K/N tiles fill the 256x256 MXU on v6e/v7x; ensure
    # at least two blocks on a parallel axis so both v7x TensorCores get work.
    tn = 256 if (Np % 256 == 0 and Np >= 512) else 128
    if Kp % 512 == 0:
        tk = 512
    elif Kp % 256 == 0:
        tk = 256
    else:
        tk = 128
    tm = min(256, _round_up(M, 8))
    Mp = _round_up(M, tm)
    if (Mp // tm) * (Np // tn) < 2 and M >= 32:
        tm = _round_up(tm // 2, 8)
        Mp = _round_up(M, tm)

    a_p = _pad2(a.astype(jnp.bfloat16), tm, tk)
    b_p = _pad2(b.astype(jnp.bfloat16), tk, tn)
    Mp, Kp = a_p.shape
    _, Np = b_p.shape
    s_p = jnp.pad(scale.astype(jnp.float32), (0, Np - N)).reshape(1, Np)
    t_p = jnp.pad(shift.astype(jnp.float32), (0, Np - N)).reshape(1, Np)

    in_specs = [pl.BlockSpec((tm, tk), lambda i, j, k: (i, k)),
                pl.BlockSpec((tk, tn), lambda i, j, k: (k, j)),
                pl.BlockSpec((1, tn), lambda i, j, k: (0, j)),
                pl.BlockSpec((1, tn), lambda i, j, k: (0, j))]
    args = [a_p, b_p, s_p, t_p]
    if residual is None:
        kernel = functools.partial(_mm_affine_kernel, relu=relu)
    else:
        r_p = _pad2(residual.astype(jnp.bfloat16), tm, tn)
        in_specs.append(pl.BlockSpec((tm, tn), lambda i, j, k: (i, j)))
        args.append(r_p)
        kernel = functools.partial(_mm_affine_res_kernel, relu=relu)

    out = pl.pallas_call(
        kernel,
        out_shape=jax.ShapeDtypeStruct((Mp, Np), out_dtype),
        grid_spec=pltpu.PrefetchScalarGridSpec(
            num_scalar_prefetch=0,
            grid=(Mp // tm, Np // tn, Kp // tk),
            in_specs=in_specs,
            out_specs=pl.BlockSpec((tm, tn), lambda i, j, k: (i, j)),
            scratch_shapes=[pltpu.VMEM((tm, tn), jnp.float32)]),
        compiler_params=pltpu.CompilerParams(
            dimension_semantics=("parallel", "parallel", "arbitrary"),
            vmem_limit_bytes=VMEM_LIMIT),
    )(*args)
    return out[:M, :N]


def maxpool_3x3_s2(x):
    """3x3 / stride-2 / pad-1 max pool (NHWC) via a tiled 9-way max-tree kernel."""
    N, H, W, C = x.shape
    Ho = (H + 2 - 3) // 2 + 1
    Wo = (W + 2 - 3) // 2 + 1
    xp = jnp.pad(x, ((0, 0), (1, 1), (1, 1), (0, 0)),
                 constant_values=float("-inf"))
    taps = []
    for i in range(3):
        for j in range(3):
            taps.append(
                xp[:, i:i + 2 * (Ho - 1) + 1:2,
                      j:j + 2 * (Wo - 1) + 1:2, :].reshape(N * Ho * Wo, C))
    M = N * Ho * Wo
    Cp = _round_up(C, 128)
    tm = min(512, _round_up(M, 8))
    Mp = _round_up(M, tm)
    taps_p = [_pad2(t, tm, 128) for t in taps]
    out = pl.pallas_call(
        _max_tree_kernel,
        out_shape=jax.ShapeDtypeStruct((Mp, Cp), x.dtype),
        grid=(Mp // tm,),
        in_specs=[pl.BlockSpec((tm, Cp), lambda i: (i, 0))] * len(taps_p),
        out_specs=pl.BlockSpec((tm, Cp), lambda i: (i, 0)),
        compiler_params=pltpu.CompilerParams(
            dimension_semantics=("parallel",),
            vmem_limit_bytes=VMEM_LIMIT),
    )(*taps_p)
    return out[:M, :C].reshape(N, Ho, Wo, C)


def pallas_global_avg_pool(x):
    """x: (N, HW, C) -> mean over HW -> (N, C) float32, streamed over HW tiles."""
    N, HW, C = x.shape
    Cp = _round_up(C, 128)
    thw = min(512, _round_up(HW, 8))
    HWp = _round_up(HW, thw)
    x_p = jnp.pad(x, ((0, 0), (0, HWp - HW), (0, Cp - C)))
    out = pl.pallas_call(
        functools.partial(_gap_kernel, inv_hw=1.0 / HW),
        out_shape=jax.ShapeDtypeStruct((N, Cp), jnp.float32),
        grid=(HWp // thw,),
        in_specs=[pl.BlockSpec((N, thw, Cp), lambda t: (0, t, 0))],
        out_specs=pl.BlockSpec((N, Cp), lambda t: (0, 0)),
        scratch_shapes=[pltpu.VMEM((N, Cp), jnp.float32)],
        compiler_params=pltpu.CompilerParams(
            dimension_semantics=("arbitrary",),
            vmem_limit_bytes=VMEM_LIMIT),
    )(x_p)
    return out[:, :C]


def pallas_mlp_head(feats, hidden, out_wb, num_classes):
    """Entire head fused into one kernel: [Linear+BN(eval)+ReLU]* -> Linear+bias."""
    N, F = feats.shape
    rows = _round_up(N, 8)
    Fp = _round_up(F, 128)
    x_p = jnp.pad(feats, ((0, rows - N), (0, Fp - F))).astype(jnp.bfloat16)
    args = [x_p]
    in_specs = [pl.BlockSpec((rows, Fp), lambda i: (0, 0))]

    in_dim, in_dim_p = F, Fp
    for (w, b, s, t) in hidden:
        size = w.shape[0]
        size_p = _round_up(size, 128)
        w_p = jnp.pad(w.T.astype(jnp.bfloat16),
                      ((0, in_dim_p - in_dim), (0, size_p - size)))
        # fold the Linear bias into the BN shift: (y+b)*s + t = y*s + (b*s + t)
        t_fold = b * s + t
        s_p = jnp.pad(s.astype(jnp.float32), (0, size_p - size)).reshape(1, size_p)
        t_p = jnp.pad(t_fold.astype(jnp.float32),
                      (0, size_p - size)).reshape(1, size_p)
        args += [w_p, s_p, t_p]
        in_specs += [pl.BlockSpec((in_dim_p, size_p), lambda i: (0, 0)),
                     pl.BlockSpec((1, size_p), lambda i: (0, 0)),
                     pl.BlockSpec((1, size_p), lambda i: (0, 0))]
        in_dim, in_dim_p = size, size_p

    w_out, b_out = out_wb
    nc = w_out.shape[0]
    nc_p = _round_up(nc, 128)
    w_p = jnp.pad(w_out.T.astype(jnp.bfloat16),
                  ((0, in_dim_p - in_dim), (0, nc_p - nc)))
    b_p = jnp.pad(b_out.astype(jnp.float32), (0, nc_p - nc)).reshape(1, nc_p)
    args += [w_p, b_p]
    in_specs += [pl.BlockSpec((in_dim_p, nc_p), lambda i: (0, 0)),
                 pl.BlockSpec((1, nc_p), lambda i: (0, 0))]

    out = pl.pallas_call(
        functools.partial(_head_kernel, n_hidden=len(hidden)),
        out_shape=jax.ShapeDtypeStruct((rows, nc_p), jnp.float32),
        grid=(1,),
        in_specs=in_specs,
        out_specs=pl.BlockSpec((rows, nc_p), lambda i: (0, 0)),
        compiler_params=pltpu.CompilerParams(
            dimension_semantics=("arbitrary",),
            vmem_limit_bytes=VMEM_LIMIT),
    )(*args)
    return out[:N, :nc]


# ---------------------------------------------------------------------------
# Conv building block (im2col glue in JAX, fused GEMM+BN+ReLU in Pallas)
# ---------------------------------------------------------------------------

def conv_bn(x, w, scale, shift, stride, padding, relu=True, residual=None):
    """Conv (no bias) + folded BatchNorm (+residual) (+ReLU) — one Pallas kernel.

    x: (N,H,W,Cin) NHWC bf16; w: (Cout,Cin,kh,kw) (PyTorch layout).
    """
    N, H, W, Cin = x.shape
    Cout, _, kh, kw = w.shape
    Ho = (H + 2 * padding - kh) // stride + 1
    Wo = (W + 2 * padding - kw) // stride + 1

    if kh == 1 and kw == 1 and padding == 0:
        xs = x[:, ::stride, ::stride, :] if stride > 1 else x
        a = xs.reshape(N * Ho * Wo, Cin)
    else:
        # TODO(synk): patches are still materialized by XLA; in-kernel window
        # fetch (manual DMA per tap on the K grid axis) would remove the
        # kh*kw x HBM blow-up here.
        xp = jnp.pad(x, ((0, 0), (padding, padding), (padding, padding), (0, 0)))
        patches = []
        for i in range(kh):
            for j in range(kw):
                patches.append(
                    xp[:, i:i + stride * (Ho - 1) + 1:stride,
                          j:j + stride * (Wo - 1) + 1:stride, :])
        a = jnp.concatenate(patches, axis=-1).reshape(N * Ho * Wo, kh * kw * Cin)

    w_mat = jnp.transpose(w, (2, 3, 1, 0)).reshape(kh * kw * Cin, Cout)
    r = residual.reshape(N * Ho * Wo, Cout) if residual is not None else None
    y = pallas_matmul_affine(a, w_mat, scale, shift, residual=r, relu=relu,
                             out_dtype=jnp.bfloat16)
    return y.reshape(N, Ho, Wo, Cout)


# ---------------------------------------------------------------------------
# Deterministic parameter construction
# ---------------------------------------------------------------------------

EXPANSION = 4
BLOCKS = (1, 1, 1, 1)            # TODO(synk): ResNet-101 is (3, 4, 23, 3)
PLANES = (32, 64, 128, 256)      # TODO(synk): ResNet-101 is (64, 128, 256, 512)
HIDDEN_LAYER_SIZES = (32, 16)
NUM_CLASSES = 10
BN_EPS = 1e-5


def _make_conv(key, cout, cin, k):
    fan_in = cin * k * k
    std = math.sqrt(2.0 / fan_in)
    return std * jax.random.normal(key, (cout, cin, k, k), jnp.float32)


def _make_bn(key, c):
    k1, k2, k3, k4 = jax.random.split(key, 4)
    gamma = 1.0 + 0.1 * jax.random.normal(k1, (c,), jnp.float32)
    beta = 0.1 * jax.random.normal(k2, (c,), jnp.float32)
    mean = 0.1 * jax.random.normal(k3, (c,), jnp.float32)
    var = 0.5 + jax.random.uniform(k4, (c,), jnp.float32)
    scale = gamma / jnp.sqrt(var + BN_EPS)
    shift = beta - mean * scale
    return scale, shift


def _make_stage(key, inplanes, planes, nblocks, stride):
    keys = jax.random.split(key, nblocks)
    outp = planes * EXPANSION
    blocks = []
    for b in range(nblocks):
        k = jax.random.split(keys[b], 8)
        s = stride if b == 0 else 1
        inp = inplanes if b == 0 else outp
        blk = {
            "stride": s,
            "w1": _make_conv(k[0], planes, inp, 1), "bn1": _make_bn(k[1], planes),
            "w2": _make_conv(k[2], planes, planes, 3), "bn2": _make_bn(k[3], planes),
            "w3": _make_conv(k[4], outp, planes, 1), "bn3": _make_bn(k[5], outp),
        }
        if b == 0 and (s != 1 or inp != outp):
            blk["wd"] = _make_conv(k[6], outp, inp, 1)
            blk["bnd"] = _make_bn(k[7], outp)
        blocks.append(blk)
    return blocks, outp


def make_params(key):
    keys = jax.random.split(key, 8)
    params = {
        "stem_w": _make_conv(keys[0], PLANES[0], 3, 7),
        "stem_bn": _make_bn(keys[1], PLANES[0]),
        "stages": [],
    }
    inplanes = PLANES[0]
    stage_strides = (1, 2, 2, 2)
    for i in range(4):
        blocks, inplanes = _make_stage(keys[2 + i], inplanes, PLANES[i],
                                       BLOCKS[i], stage_strides[i])
        params["stages"].append(blocks)
    num_features = inplanes

    # custom head: [Linear -> BN1d -> ReLU -> Dropout]* -> Linear (eval mode)
    head_key = keys[6]
    hidden = []
    in_size = num_features
    for size in HIDDEN_LAYER_SIZES:
        head_key, k1 = jax.random.split(head_key)
        bound = math.sqrt(2.0) * math.sqrt(3.0 / in_size)   # kaiming_uniform, relu
        w = jax.random.uniform(k1, (size, in_size), jnp.float32, -bound, bound)
        b = jnp.zeros((size,), jnp.float32)
        bn_scale = jnp.ones((size,), jnp.float32) / math.sqrt(1.0 + BN_EPS)
        bn_shift = jnp.zeros((size,), jnp.float32)
        hidden.append((w, b, bn_scale, bn_shift))
        in_size = size
    head_key, k1 = jax.random.split(head_key)
    bound = math.sqrt(3.0 / in_size)                        # kaiming_uniform, linear
    w_out = jax.random.uniform(k1, (NUM_CLASSES, in_size), jnp.float32,
                               -bound, bound)
    b_out = jnp.zeros((NUM_CLASSES,), jnp.float32)
    params["head"] = {"hidden": hidden, "out": (w_out, b_out)}
    params["num_features"] = num_features
    return params


# ---------------------------------------------------------------------------
# Forward pass
# ---------------------------------------------------------------------------

def bottleneck_forward(x, blk):
    s = blk["stride"]
    identity = x
    out = conv_bn(x, blk["w1"], *blk["bn1"], stride=1, padding=0, relu=True)
    out = conv_bn(out, blk["w2"], *blk["bn2"], stride=s, padding=1, relu=True)
    if "wd" in blk:
        identity = conv_bn(x, blk["wd"], *blk["bnd"], stride=s, padding=0,
                           relu=False)
    # conv3 + BN + residual add + ReLU — all in one fused kernel epilogue
    out = conv_bn(out, blk["w3"], *blk["bn3"], stride=1, padding=0, relu=True,
                  residual=identity)
    return out


def resnet_with_head_forward(x_nchw, params):
    # NCHW (PyTorch convention) -> NHWC bf16 for kernel compute
    x = jnp.transpose(x_nchw, (0, 2, 3, 1)).astype(jnp.bfloat16)
    # stem: conv7x7/s2 + BN + ReLU (fused) + maxpool3x3/s2
    x = conv_bn(x, params["stem_w"], *params["stem_bn"], stride=2, padding=3,
                relu=True)
    x = maxpool_3x3_s2(x)
    # bottleneck stages
    for stage in params["stages"]:
        for blk in stage:
            x = bottleneck_forward(x, blk)
    # global average pool + fc=Identity -> features
    N, H, W, C = x.shape
    feats = pallas_global_avg_pool(x.reshape(N, H * W, C))   # (N, num_features) f32
    # custom head (eval mode: Dropout = identity), single fused kernel
    logits = pallas_mlp_head(feats, params["head"]["hidden"],
                             params["head"]["out"], NUM_CLASSES)
    return logits


# ---------------------------------------------------------------------------
# Main
# ---------------------------------------------------------------------------

if __name__ == "__main__":
    key = jax.random.PRNGKey(0)
    kp, kx = jax.random.split(key)
    params = make_params(kp)

    # small input consistent with the module: NCHW image batch
    x = jax.random.normal(kx, (2, 3, 32, 32), jnp.float32)

    fwd = jax.jit(lambda inp: resnet_with_head_forward(inp, params))
    out = fwd(x)
    out = jax.block_until_ready(out)

    assert out.shape == (2, NUM_CLASSES), out.shape
    assert out.dtype == jnp.float32
    assert bool(jnp.all(jnp.isfinite(out)))
    print("KERNEL_OK")
</pallas_src>

<mosaic_0001>
module attributes {stable_mosaic.version = 11 : i64} {
  func.func @_mm_affine_kernel(%arg0: i32, %arg1: i32, %arg2: i32, %arg3: memref<256x256xbf16, #tpu.memory_space<vmem>>, %arg4: memref<256x128xbf16, #tpu.memory_space<vmem>>, %arg5: memref<1x128xf32, #tpu.memory_space<vmem>>, %arg6: memref<1x128xf32, #tpu.memory_space<vmem>>, %arg7: memref<256x128xbf16, #tpu.memory_space<vmem>>, %arg8: memref<256x128xf32, #tpu.memory_space<vmem>>) attributes {dimension_semantics = [#tpu.dimension_semantics<parallel>, #tpu.dimension_semantics<parallel>, #tpu.dimension_semantics<arbitrary>], iteration_bounds = array<i64: 2, 1, 1>, scalar_prefetch = 0 : i64, scratch_operands = 1 : i64, tpu.core_type = #tpu.core_type<tc>, window_params = [{transform_indices = @transform_0, window_bounds = array<i64: 256, 256>}, {transform_indices = @transform_1, window_bounds = array<i64: 256, 128>}, {transform_indices = @transform_2, window_bounds = array<i64: 1, 128>}, {transform_indices = @transform_3, window_bounds = array<i64: 1, 128>}, {transform_indices = @transform_4, window_bounds = array<i64: 256, 128>}]} {
    %c0_i32 = arith.constant 0 : i32
    %0 = arith.cmpi eq, %arg2, %c0_i32 : i32
    %1 = arith.extui %0 : i1 to i32
    %c0_i32_0 = arith.constant 0 : i32
    %2 = arith.cmpi ne, %1, %c0_i32_0 : i32
    scf.if %2 {
      %cst_10 = arith.constant 0.000000e+00 : f32
      %12 = vector.broadcast %cst_10 : f32 to vector<256x128xf32>
      %c0_11 = arith.constant 0 : index
      %c0_12 = arith.constant 0 : index
      %13 = vector.load %arg8[%c0_11, %c0_12] : memref<256x128xf32, #tpu.memory_space<vmem>>, vector<256x128xf32>
      tpu.vector_store %arg8[%c0_11, %c0_12], %12 {strides = array<i32>} : memref<256x128xf32, #tpu.memory_space<vmem>>, vector<256x128xf32>,
    } else {
    }
    %c0 = arith.constant 0 : index
    %c0_1 = arith.constant 0 : index
    %3 = vector.load %arg8[%c0, %c0_1] : memref<256x128xf32, #tpu.memory_space<vmem>>, vector<256x128xf32>
    %c0_2 = arith.constant 0 : index
    %c0_3 = arith.constant 0 : index
    %4 = vector.load %arg3[%c0_2, %c0_3] : memref<256x256xbf16, #tpu.memory_space<vmem>>, vector<256x256xbf16>
    %c0_4 = arith.constant 0 : index
    %c0_5 = arith.constant 0 : index
    %5 = vector.load %arg4[%c0_4, %c0_5] : memref<256x128xbf16, #tpu.memory_space<vmem>>, vector<256x128xbf16>
    %cst = arith.constant dense<0.000000e+00> : vector<256x128xf32>
    %6 = tpu.matmul %4, %5, %cst {dimension_numbers = #tpu.dot_dimension_numbers<[1], [0], [0], [1], [0, 0, 1, 1], [], []>} : vector<256x256xbf16>, vector<256x128xbf16>, vector<256x128xf32> -> vector<256x128xf32>
    %7 = arith.addf %3, %6 : vector<256x128xf32>
    %c0_6 = arith.constant 0 : index
    %c0_7 = arith.constant 0 : index
    %8 = vector.load %arg8[%c0_6, %c0_7] : memref<256x128xf32, #tpu.memory_space<vmem>>, vector<256x128xf32>
    tpu.vector_store %arg8[%c0_6, %c0_7], %7 {strides = array<i32>} : memref<256x128xf32, #tpu.memory_space<vmem>>, vector<256x128xf32>,
    %c0_i32_8 = arith.constant 0 : i32
    %9 = arith.cmpi eq, %arg2, %c0_i32_8 : i32
    %10 = arith.extui %9 : i1 to i32
    %c0_i32_9 = arith.constant 0 : i32
    %11 = arith.cmpi ne, %10, %c0_i32_9 : i32
    scf.if %11 {
      %c0_10 = arith.constant 0 : index
      %c0_11 = arith.constant 0 : index
      %12 = vector.load %arg8[%c0_10, %c0_11] : memref<256x128xf32, #tpu.memory_space<vmem>>, vector<256x128xf32>
      %c0_12 = arith.constant 0 : index
      %c0_13 = arith.constant 0 : index
      %13 = vector.load %arg5[%c0_12, %c0_13] : memref<1x128xf32, #tpu.memory_space<vmem>>, vector<1x128xf32>
      %14 = vector.broadcast %13 : vector<1x128xf32> to vector<256x128xf32>
      %15 = arith.mulf %12, %14 : vector<256x128xf32>
      %c0_14 = arith.constant 0 : index
      %c0_15 = arith.constant 0 : index
      %16 = vector.load %arg6[%c0_14, %c0_15] : memref<1x128xf32, #tpu.memory_space<vmem>>, vector<1x128xf32>
      %17 = vector.broadcast %16 : vector<1x128xf32> to vector<256x128xf32>
      %18 = arith.addf %15, %17 : vector<256x128xf32>
      %cst_16 = arith.constant 0.000000e+00 : f32
      %19 = vector.broadcast %cst_16 : f32 to vector<256x128xf32>
      %20 = arith.maximumf %18, %19 : vector<256x128xf32>
      %21 = arith.truncf %20 : vector<256x128xf32> to vector<256x128xbf16>
      %c0_17 = arith.constant 0 : index
      %c0_18 = arith.constant 0 : index
      %22 = vector.load %arg7[%c0_17, %c0_18] : memref<256x128xbf16, #tpu.memory_space<vmem>>, vector<256x128xbf16>
      tpu.vector_store %arg7[%c0_17, %c0_18], %21 {strides = array<i32>} : memref<256x128xbf16, #tpu.memory_space<vmem>>, vector<256x128xbf16>,
    } else {
    }
    return
  }
  func.func @transform_0(%arg0: i32, %arg1: i32, %arg2: i32) -> (i32, i32) {
    %c0_i32 = arith.constant 0 : i32
    return %arg0, %arg2 : i32, i32
  }
  func.func @transform_1(%arg0: i32, %arg1: i32, %arg2: i32) -> (i32, i32) {
    %c0_i32 = arith.constant 0 : i32
    return %arg2, %arg1 : i32, i32
  }
  func.func @transform_2(%arg0: i32, %arg1: i32, %arg2: i32) -> (i32, i32) {
    %c0_i32 = arith.constant 0 : i32
    %c0_i32_0 = arith.constant 0 : i32
    return %c0_i32, %arg1 : i32, i32
  }
  func.func @transform_3(%arg0: i32, %arg1: i32, %arg2: i32) -> (i32, i32) {
    %c0_i32 = arith.constant 0 : i32
    %c0_i32_0 = arith.constant 0 : i32
    return %c0_i32, %arg1 : i32, i32
  }
  func.func @transform_4(%arg0: i32, %arg1: i32, %arg2: i32) -> (i32, i32) {
    %c0_i32 = arith.constant 0 : i32
    return %arg0, %arg1 : i32, i32
  }
}

module attributes {stable_mosaic.version = 11 : i64} {
  func.func @_max_tree_kernel(%arg0: i32, %arg1: memref<128x128xbf16, #tpu.memory_space<vmem>>, %arg2: memref<128x128xbf16, #tpu.memory_space<vmem>>, %arg3: memref<128x128xbf16, #tpu.memory_space<vmem>>, %arg4: memref<128x128xbf16, #tpu.memory_space<vmem>>, %arg5: memref<128x128xbf16, #tpu.memory_space<vmem>>, %arg6: memref<128x128xbf16, #tpu.memory_space<vmem>>, %arg7: memref<128x128xbf16, #tpu.memory_space<vmem>>, %arg8: memref<128x128xbf16, #tpu.memory_space<vmem>>, %arg9: memref<128x128xbf16, #tpu.memory_space<vmem>>, %arg10: memref<128x128xbf16, #tpu.memory_space<vmem>>) attributes {dimension_semantics = [#tpu.dimension_semantics<parallel>], iteration_bounds = array<i64: 1>, scalar_prefetch = 0 : i64, scratch_operands = 0 : i64, tpu.core_type = #tpu.core_type<tc>, window_params = [{transform_indices = @transform_0, window_bounds = array<i64: 128, 128>}, {transform_indices = @transform_1, window_bounds = array<i64: 128, 128>}, {transform_indices = @transform_2, window_bounds = array<i64: 128, 128>}, {transform_indices = @transform_3, window_bounds = array<i64: 128, 128>}, {transform_indices = @transform_4, window_bounds = array<i64: 128, 128>}, {transform_indices = @transform_5, window_bounds = array<i64: 128, 128>}, {transform_indices = @transform_6, window_bounds = array<i64: 128, 128>}, {transform_indices = @transform_7, window_bounds = array<i64: 128, 128>}, {transform_indices = @transform_8, window_bounds = array<i64: 128, 128>}, {transform_indices = @transform_9, window_bounds = array<i64: 128, 128>}]} {
    %c0 = arith.constant 0 : index
    %c0_0 = arith.constant 0 : index
    %0 = vector.load %arg1[%c0, %c0_0] : memref<128x128xbf16, #tpu.memory_space<vmem>>, vector<128x128xbf16>
    %c0_1 = arith.constant 0 : index
    %c0_2 = arith.constant 0 : index
    %1 = vector.load %arg2[%c0_1, %c0_2] : memref<128x128xbf16, #tpu.memory_space<vmem>>, vector<128x128xbf16>
    %2 = arith.maximumf %0, %1 : vector<128x128xbf16>
    %c0_3 = arith.constant 0 : index
    %c0_4 = arith.constant 0 : index
    %3 = vector.load %arg3[%c0_3, %c0_4] : memref<128x128xbf16, #tpu.memory_space<vmem>>, vector<128x128xbf16>
    %4 = arith.maximumf %2, %3 : vector<128x128xbf16>
    %c0_5 = arith.constant 0 : index
    %c0_6 = arith.constant 0 : index
    %5 = vector.load %arg4[%c0_5, %c0_6] : memref<128x128xbf16, #tpu.memory_space<vmem>>, vector<128x128xbf16>
    %6 = arith.maximumf %4, %5 : vector<128x128xbf16>
    %c0_7 = arith.constant 0 : index
    %c0_8 = arith.constant 0 : index
    %7 = vector.load %arg5[%c0_7, %c0_8] : memref<128x128xbf16, #tpu.memory_space<vmem>>, vector<128x128xbf16>
    %8 = arith.maximumf %6, %7 : vector<128x128xbf16>
    %c0_9 = arith.constant 0 : index
    %c0_10 = arith.constant 0 : index
    %9 = vector.load %arg6[%c0_9, %c0_10] : memref<128x128xbf16, #tpu.memory_space<vmem>>, vector<128x128xbf16>
    %10 = arith.maximumf %8, %9 : vector<128x128xbf16>
    %c0_11 = arith.constant 0 : index
    %c0_12 = arith.constant 0 : index
    %11 = vector.load %arg7[%c0_11, %c0_12] : memref<128x128xbf16, #tpu.memory_space<vmem>>, vector<128x128xbf16>
    %12 = arith.maximumf %10, %11 : vector<128x128xbf16>
    %c0_13 = arith.constant 0 : index
    %c0_14 = arith.constant 0 : index
    %13 = vector.load %arg8[%c0_13, %c0_14] : memref<128x128xbf16, #tpu.memory_space<vmem>>, vector<128x128xbf16>
    %14 = arith.maximumf %12, %13 : vector<128x128xbf16>
    %c0_15 = arith.constant 0 : index
    %c0_16 = arith.constant 0 : index
    %15 = vector.load %arg9[%c0_15, %c0_16] : memref<128x128xbf16, #tpu.memory_space<vmem>>, vector<128x128xbf16>
    %16 = arith.maximumf %14, %15 : vector<128x128xbf16>
    %c0_17 = arith.constant 0 : index
    %c0_18 = arith.constant 0 : index
    %17 = vector.load %arg10[%c0_17, %c0_18] : memref<128x128xbf16, #tpu.memory_space<vmem>>, vector<128x128xbf16>
    tpu.vector_store %arg10[%c0_17, %c0_18], %16 {strides = array<i32>} : memref<128x128xbf16, #tpu.memory_space<vmem>>, vector<128x128xbf16>,
    return
  }
  func.func @transform_0(%arg0: i32) -> (i32, i32) {
    %c0_i32 = arith.constant 0 : i32
    %c0_i32_0 = arith.constant 0 : i32
    return %arg0, %c0_i32 : i32, i32
  }
  func.func @transform_1(%arg0: i32) -> (i32, i32) {
    %c0_i32 = arith.constant 0 : i32
    %c0_i32_0 = arith.constant 0 : i32
    return %arg0, %c0_i32 : i32, i32
  }
  func.func @transform_2(%arg0: i32) -> (i32, i32) {
    %c0_i32 = arith.constant 0 : i32
    %c0_i32_0 = arith.constant 0 : i32
    return %arg0, %c0_i32 : i32, i32
  }
  func.func @transform_3(%arg0: i32) -> (i32, i32) {
    %c0_i32 = arith.constant 0 : i32
    %c0_i32_0 = arith.constant 0 : i32
    return %arg0, %c0_i32 : i32, i32
  }
  func.func @transform_4(%arg0: i32) -> (i32, i32) {
    %c0_i32 = arith.constant 0 : i32
    %c0_i32_0 = arith.constant 0 : i32
    return %arg0, %c0_i32 : i32, i32
  }
  func.func @transform_5(%arg0: i32) -> (i32, i32) {
    %c0_i32 = arith.constant 0 : i32
    %c0_i32_0 = arith.constant 0 : i32
    return %arg0, %c0_i32 : i32, i32
  }
  func.func @transform_6(%arg0: i32) -> (i32, i32) {
    %c0_i32 = arith.constant 0 : i32
    %c0_i32_0 = arith.constant 0 : i32
    return %arg0, %c0_i32 : i32, i32
  }
  func.func @transform_7(%arg0: i32) -> (i32, i32) {
    %c0_i32 = arith.constant 0 : i32
    %c0_i32_0 = arith.constant 0 : i32
    return %arg0, %c0_i32 : i32, i32
  }
  func.func @transform_8(%arg0: i32) -> (i32, i32) {
    %c0_i32 = arith.constant 0 : i32
    %c0_i32_0 = arith.constant 0 : i32
    return %arg0, %c0_i32 : i32, i32
  }
  func.func @transform_9(%arg0: i32) -> (i32, i32) {
    %c0_i32 = arith.constant 0 : i32
    %c0_i32_0 = arith.constant 0 : i32
    return %arg0, %c0_i32 : i32, i32
  }
}

module attributes {stable_mosaic.version = 11 : i64} {
  func.func @_mm_affine_kernel(%arg0: i32, %arg1: i32, %arg2: i32, %arg3: memref<64x128xbf16, #tpu.memory_space<vmem>>, %arg4: memref<128x128xbf16, #tpu.memory_space<vmem>>, %arg5: memref<1x128xf32, #tpu.memory_space<vmem>>, %arg6: memref<1x128xf32, #tpu.memory_space<vmem>>, %arg7: memref<64x128xbf16, #tpu.memory_space<vmem>>, %arg8: memref<64x128xf32, #tpu.memory_space<vmem>>) attributes {dimension_semantics = [#tpu.dimension_semantics<parallel>, #tpu.dimension_semantics<parallel>, #tpu.dimension_semantics<arbitrary>], iteration_bounds = array<i64: 2, 1, 1>, scalar_prefetch = 0 : i64, scratch_operands = 1 : i64, tpu.core_type = #tpu.core_type<tc>, window_params = [{transform_indices = @transform_0, window_bounds = array<i64: 64, 128>}, {transform_indices = @transform_1, window_bounds = array<i64: 128, 128>}, {transform_indices = @transform_2, window_bounds = array<i64: 1, 128>}, {transform_indices = @transform_3, window_bounds = array<i64: 1, 128>}, {transform_indices = @transform_4, window_bounds = array<i64: 64, 128>}]} {
    %c0_i32 = arith.constant 0 : i32
    %0 = arith.cmpi eq, %arg2, %c0_i32 : i32
    %1 = arith.extui %0 : i1 to i32
    %c0_i32_0 = arith.constant 0 : i32
    %2 = arith.cmpi ne, %1, %c0_i32_0 : i32
    scf.if %2 {
      %cst_10 = arith.constant 0.000000e+00 : f32
      %12 = vector.broadcast %cst_10 : f32 to vector<64x128xf32>
      %c0_11 = arith.constant 0 : index
      %c0_12 = arith.constant 0 : index
      %13 = vector.load %arg8[%c0_11, %c0_12] : memref<64x128xf32, #tpu.memory_space<vmem>>, vector<64x128xf32>
      tpu.vector_store %arg8[%c0_11, %c0_12], %12 {strides = array<i32>} : memref<64x128xf32, #tpu.memory_space<vmem>>, vector<64x128xf32>,
    } else {
    }
    %c0 = arith.constant 0 : index
    %c0_1 = arith.constant 0 : index
    %3 = vector.load %arg8[%c0, %c0_1] : memref<64x128xf32, #tpu.memory_space<vmem>>, vector<64x128xf32>
    %c0_2 = arith.constant 0 : index
    %c0_3 = arith.constant 0 : index
    %4 = vector.load %arg3[%c0_2, %c0_3] : memref<64x128xbf16, #tpu.memory_space<vmem>>, vector<64x128xbf16>
    %c0_4 = arith.constant 0 : index
    %c0_5 = arith.constant 0 : index
    %5 = vector.load %arg4[%c0_4, %c0_5] : memref<128x128xbf16, #tpu.memory_space<vmem>>, vector<128x128xbf16>
    %cst = arith.constant dense<0.000000e+00> : vector<64x128xf32>
    %6 = tpu.matmul %4, %5, %cst {dimension_numbers = #tpu.dot_dimension_numbers<[1], [0], [0], [1], [0, 0, 1, 1], [], []>} : vector<64x128xbf16>, vector<128x128xbf16>, vector<64x128xf32> -> vector<64x128xf32>
    %7 = arith.addf %3, %6 : vector<64x128xf32>
    %c0_6 = arith.constant 0 : index
    %c0_7 = arith.constant 0 : index
    %8 = vector.load %arg8[%c0_6, %c0_7] : memref<64x128xf32, #tpu.memory_space<vmem>>, vector<64x128xf32>
    tpu.vector_store %arg8[%c0_6, %c0_7], %7 {strides = array<i32>} : memref<64x128xf32, #tpu.memory_space<vmem>>, vector<64x128xf32>,
    %c0_i32_8 = arith.constant 0 : i32
    %9 = arith.cmpi eq, %arg2, %c0_i32_8 : i32
    %10 = arith.extui %9 : i1 to i32
    %c0_i32_9 = arith.constant 0 : i32
    %11 = arith.cmpi ne, %10, %c0_i32_9 : i32
    scf.if %11 {
      %c0_10 = arith.constant 0 : index
      %c0_11 = arith.constant 0 : index
      %12 = vector.load %arg8[%c0_10, %c0_11] : memref<64x128xf32, #tpu.memory_space<vmem>>, vector<64x128xf32>
      %c0_12 = arith.constant 0 : index
      %c0_13 = arith.constant 0 : index
      %13 = vector.load %arg5[%c0_12, %c0_13] : memref<1x128xf32, #tpu.memory_space<vmem>>, vector<1x128xf32>
      %14 = vector.broadcast %13 : vector<1x128xf32> to vector<64x128xf32>
      %15 = arith.mulf %12, %14 : vector<64x128xf32>
      %c0_14 = arith.constant 0 : index
      %c0_15 = arith.constant 0 : index
      %16 = vector.load %arg6[%c0_14, %c0_15] : memref<1x128xf32, #tpu.memory_space<vmem>>, vector<1x128xf32>
      %17 = vector.broadcast %16 : vector<1x128xf32> to vector<64x128xf32>
      %18 = arith.addf %15, %17 : vector<64x128xf32>
      %cst_16 = arith.constant 0.000000e+00 : f32
      %19 = vector.broadcast %cst_16 : f32 to vector<64x128xf32>
      %20 = arith.maximumf %18, %19 : vector<64x128xf32>
      %21 = arith.truncf %20 : vector<64x128xf32> to vector<64x128xbf16>
      %c0_17 = arith.constant 0 : index
      %c0_18 = arith.constant 0 : index
      %22 = vector.load %arg7[%c0_17, %c0_18] : memref<64x128xbf16, #tpu.memory_space<vmem>>, vector<64x128xbf16>
      tpu.vector_store %arg7[%c0_17, %c0_18], %21 {strides = array<i32>} : memref<64x128xbf16, #tpu.memory_space<vmem>>, vector<64x128xbf16>,
    } else {
    }
    return
  }
  func.func @transform_0(%arg0: i32, %arg1: i32, %arg2: i32) -> (i32, i32) {
    %c0_i32 = arith.constant 0 : i32
    return %arg0, %arg2 : i32, i32
  }
  func.func @transform_1(%arg0: i32, %arg1: i32, %arg2: i32) -> (i32, i32) {
    %c0_i32 = arith.constant 0 : i32
    return %arg2, %arg1 : i32, i32
  }
  func.func @transform_2(%arg0: i32, %arg1: i32, %arg2: i32) -> (i32, i32) {
    %c0_i32 = arith.constant 0 : i32
    %c0_i32_0 = arith.constant 0 : i32
    return %c0_i32, %arg1 : i32, i32
  }
  func.func @transform_3(%arg0: i32, %arg1: i32, %arg2: i32) -> (i32, i32) {
    %c0_i32 = arith.constant 0 : i32
    %c0_i32_0 = arith.constant 0 : i32
    return %c0_i32, %arg1 : i32, i32
  }
  func.func @transform_4(%arg0: i32, %arg1: i32, %arg2: i32) -> (i32, i32) {
    %c0_i32 = arith.constant 0 : i32
    return %arg0, %arg1 : i32, i32
  }
}

module attributes {stable_mosaic.version = 11 : i64} {
  func.func @_mm_affine_kernel(%arg0: i32, %arg1: i32, %arg2: i32, %arg3: memref<64x128xbf16, #tpu.memory_space<vmem>>, %arg4: memref<128x128xbf16, #tpu.memory_space<vmem>>, %arg5: memref<1x128xf32, #tpu.memory_space<vmem>>, %arg6: memref<1x128xf32, #tpu.memory_space<vmem>>, %arg7: memref<64x128xbf16, #tpu.memory_space<vmem>>, %arg8: memref<64x128xf32, #tpu.memory_space<vmem>>) attributes {dimension_semantics = [#tpu.dimension_semantics<parallel>, #tpu.dimension_semantics<parallel>, #tpu.dimension_semantics<arbitrary>], iteration_bounds = array<i64: 2, 1, 3>, scalar_prefetch = 0 : i64, scratch_operands = 1 : i64, tpu.core_type = #tpu.core_type<tc>, window_params = [{transform_indices = @transform_0, window_bounds = array<i64: 64, 128>}, {transform_indices = @transform_1, window_bounds = array<i64: 128, 128>}, {transform_indices = @transform_2, window_bounds = array<i64: 1, 128>}, {transform_indices = @transform_3, window_bounds = array<i64: 1, 128>}, {transform_indices = @transform_4, window_bounds = array<i64: 64, 128>}]} {
    %c0_i32 = arith.constant 0 : i32
    %0 = arith.cmpi eq, %arg2, %c0_i32 : i32
    %1 = arith.extui %0 : i1 to i32
    %c0_i32_0 = arith.constant 0 : i32
    %2 = arith.cmpi ne, %1, %c0_i32_0 : i32
    scf.if %2 {
      %cst_9 = arith.constant 0.000000e+00 : f32
      %12 = vector.broadcast %cst_9 : f32 to vector<64x128xf32>
      %c0_10 = arith.constant 0 : index
      %c0_11 = arith.constant 0 : index
      %13 = vector.load %arg8[%c0_10, %c0_11] : memref<64x128xf32, #tpu.memory_space<vmem>>, vector<64x128xf32>
      tpu.vector_store %arg8[%c0_10, %c0_11], %12 {strides = array<i32>} : memref<64x128xf32, #tpu.memory_space<vmem>>, vector<64x128xf32>,
    } else {
    }
    %c0 = arith.constant 0 : index
    %c0_1 = arith.constant 0 : index
    %3 = vector.load %arg8[%c0, %c0_1] : memref<64x128xf32, #tpu.memory_space<vmem>>, vector<64x128xf32>
    %c0_2 = arith.constant 0 : index
    %c0_3 = arith.constant 0 : index
    %4 = vector.load %arg3[%c0_2, %c0_3] : memref<64x128xbf16, #tpu.memory_space<vmem>>, vector<64x128xbf16>
    %c0_4 = arith.constant 0 : index
    %c0_5 = arith.constant 0 : index
    %5 = vector.load %arg4[%c0_4, %c0_5] : memref<128x128xbf16, #tpu.memory_space<vmem>>, vector<128x128xbf16>
    %cst = arith.constant dense<0.000000e+00> : vector<64x128xf32>
    %6 = tpu.matmul %4, %5, %cst {dimension_numbers = #tpu.dot_dimension_numbers<[1], [0], [0], [1], [0, 0, 1, 1], [], []>} : vector<64x128xbf16>, vector<128x128xbf16>, vector<64x128xf32> -> vector<64x128xf32>
    %7 = arith.addf %3, %6 : vector<64x128xf32>
    %c0_6 = arith.constant 0 : index
    %c0_7 = arith.constant 0 : index
    %8 = vector.load %arg8[%c0_6, %c0_7] : memref<64x128xf32, #tpu.memory_space<vmem>>, vector<64x128xf32>
    tpu.vector_store %arg8[%c0_6, %c0_7], %7 {strides = array<i32>} : memref<64x128xf32, #tpu.memory_space<vmem>>, vector<64x128xf32>,
    %c2_i32 = arith.constant 2 : i32
    %9 = arith.cmpi eq, %arg2, %c2_i32 : i32
    %10 = arith.extui %9 : i1 to i32
    %c0_i32_8 = arith.constant 0 : i32
    %11 = arith.cmpi ne, %10, %c0_i32_8 : i32
    scf.if %11 {
      %c0_9 = arith.constant 0 : index
      %c0_10 = arith.constant 0 : index
      %12 = vector.load %arg8[%c0_9, %c0_10] : memref<64x128xf32, #tpu.memory_space<vmem>>, vector<64x128xf32>
      %c0_11 = arith.constant 0 : index
      %c0_12 = arith.constant 0 : index
      %13 = vector.load %arg5[%c0_11, %c0_12] : memref<1x128xf32, #tpu.memory_space<vmem>>, vector<1x128xf32>
      %14 = vector.broadcast %13 : vector<1x128xf32> to vector<64x128xf32>
      %15 = arith.mulf %12, %14 : vector<64x128xf32>
      %c0_13 = arith.constant 0 : index
      %c0_14 = arith.constant 0 : index
      %16 = vector.load %arg6[%c0_13, %c0_14] : memref<1x128xf32, #tpu.memory_space<vmem>>, vector<1x128xf32>
      %17 = vector.broadcast %16 : vector<1x128xf32> to vector<64x128xf32>
      %18 = arith.addf %15, %17 : vector<64x128xf32>
      %cst_15 = arith.constant 0.000000e+00 : f32
      %19 = vector.broadcast %cst_15 : f32 to vector<64x128xf32>
      %20 = arith.maximumf %18, %19 : vector<64x128xf32>
      %21 = arith.truncf %20 : vector<64x128xf32> to vector<64x128xbf16>
      %c0_16 = arith.constant 0 : index
      %c0_17 = arith.constant 0 : index
      %22 = vector.load %arg7[%c0_16, %c0_17] : memref<64x128xbf16, #tpu.memory_space<vmem>>, vector<64x128xbf16>
      tpu.vector_store %arg7[%c0_16, %c0_17], %21 {strides = array<i32>} : memref<64x128xbf16, #tpu.memory_space<vmem>>, vector<64x128xbf16>,
    } else {
    }
    return
  }
  func.func @transform_0(%arg0: i32, %arg1: i32, %arg2: i32) -> (i32, i32) {
    %c0_i32 = arith.constant 0 : i32
    return %arg0, %arg2 : i32, i32
  }
  func.func @transform_1(%arg0: i32, %arg1: i32, %arg2: i32) -> (i32, i32) {
    %c0_i32 = arith.constant 0 : i32
    return %arg2, %arg1 : i32, i32
  }
  func.func @transform_2(%arg0: i32, %arg1: i32, %arg2: i32) -> (i32, i32) {
    %c0_i32 = arith.constant 0 : i32
    %c0_i32_0 = arith.constant 0 : i32
    return %c0_i32, %arg1 : i32, i32
  }
  func.func @transform_3(%arg0: i32, %arg1: i32, %arg2: i32) -> (i32, i32) {
    %c0_i32 = arith.constant 0 : i32
    %c0_i32_0 = arith.constant 0 : i32
    return %c0_i32, %arg1 : i32, i32
  }
  func.func @transform_4(%arg0: i32, %arg1: i32, %arg2: i32) -> (i32, i32) {
    %c0_i32 = arith.constant 0 : i32
    return %arg0, %arg1 : i32, i32
  }
}

module attributes {stable_mosaic.version = 11 : i64} {
  func.func @_mm_affine_kernel(%arg0: i32, %arg1: i32, %arg2: i32, %arg3: memref<64x128xbf16, #tpu.memory_space<vmem>>, %arg4: memref<128x128xbf16, #tpu.memory_space<vmem>>, %arg5: memref<1x128xf32, #tpu.memory_space<vmem>>, %arg6: memref<1x128xf32, #tpu.memory_space<vmem>>, %arg7: memref<64x128xbf16, #tpu.memory_space<vmem>>, %arg8: memref<64x128xf32, #tpu.memory_space<vmem>>) attributes {dimension_semantics = [#tpu.dimension_semantics<parallel>, #tpu.dimension_semantics<parallel>, #tpu.dimension_semantics<arbitrary>], iteration_bounds = array<i64: 2, 1, 1>, scalar_prefetch = 0 : i64, scratch_operands = 1 : i64, tpu.core_type = #tpu.core_type<tc>, window_params = [{transform_indices = @transform_0, window_bounds = array<i64: 64, 128>}, {transform_indices = @transform_1, window_bounds = array<i64: 128, 128>}, {transform_indices = @transform_2, window_bounds = array<i64: 1, 128>}, {transform_indices = @transform_3, window_bounds = array<i64: 1, 128>}, {transform_indices = @transform_4, window_bounds = array<i64: 64, 128>}]} {
    %c0_i32 = arith.constant 0 : i32
    %0 = arith.cmpi eq, %arg2, %c0_i32 : i32
    %1 = arith.extui %0 : i1 to i32
    %c0_i32_0 = arith.constant 0 : i32
    %2 = arith.cmpi ne, %1, %c0_i32_0 : i32
    scf.if %2 {
      %cst_10 = arith.constant 0.000000e+00 : f32
      %12 = vector.broadcast %cst_10 : f32 to vector<64x128xf32>
      %c0_11 = arith.constant 0 : index
      %c0_12 = arith.constant 0 : index
      %13 = vector.load %arg8[%c0_11, %c0_12] : memref<64x128xf32, #tpu.memory_space<vmem>>, vector<64x128xf32>
      tpu.vector_store %arg8[%c0_11, %c0_12], %12 {strides = array<i32>} : memref<64x128xf32, #tpu.memory_space<vmem>>, vector<64x128xf32>,
    } else {
    }
    %c0 = arith.constant 0 : index
    %c0_1 = arith.constant 0 : index
    %3 = vector.load %arg8[%c0, %c0_1] : memref<64x128xf32, #tpu.memory_space<vmem>>, vector<64x128xf32>
    %c0_2 = arith.constant 0 : index
    %c0_3 = arith.constant 0 : index
    %4 = vector.load %arg3[%c0_2, %c0_3] : memref<64x128xbf16, #tpu.memory_space<vmem>>, vector<64x128xbf16>
    %c0_4 = arith.constant 0 : index
    %c0_5 = arith.constant 0 : index
    %5 = vector.load %arg4[%c0_4, %c0_5] : memref<128x128xbf16, #tpu.memory_space<vmem>>, vector<128x128xbf16>
    %cst = arith.constant dense<0.000000e+00> : vector<64x128xf32>
    %6 = tpu.matmul %4, %5, %cst {dimension_numbers = #tpu.dot_dimension_numbers<[1], [0], [0], [1], [0, 0, 1, 1], [], []>} : vector<64x128xbf16>, vector<128x128xbf16>, vector<64x128xf32> -> vector<64x128xf32>
    %7 = arith.addf %3, %6 : vector<64x128xf32>
    %c0_6 = arith.constant 0 : index
    %c0_7 = arith.constant 0 : index
    %8 = vector.load %arg8[%c0_6, %c0_7] : memref<64x128xf32, #tpu.memory_space<vmem>>, vector<64x128xf32>
    tpu.vector_store %arg8[%c0_6, %c0_7], %7 {strides = array<i32>} : memref<64x128xf32, #tpu.memory_space<vmem>>, vector<64x128xf32>,
    %c0_i32_8 = arith.constant 0 : i32
    %9 = arith.cmpi eq, %arg2, %c0_i32_8 : i32
    %10 = arith.extui %9 : i1 to i32
    %c0_i32_9 = arith.constant 0 : i32
    %11 = arith.cmpi ne, %10, %c0_i32_9 : i32
    scf.if %11 {
      %c0_10 = arith.constant 0 : index
      %c0_11 = arith.constant 0 : index
      %12 = vector.load %arg8[%c0_10, %c0_11] : memref<64x128xf32, #tpu.memory_space<vmem>>, vector<64x128xf32>
      %c0_12 = arith.constant 0 : index
      %c0_13 = arith.constant 0 : index
      %13 = vector.load %arg5[%c0_12, %c0_13] : memref<1x128xf32, #tpu.memory_space<vmem>>, vector<1x128xf32>
      %14 = vector.broadcast %13 : vector<1x128xf32> to vector<64x128xf32>
      %15 = arith.mulf %12, %14 : vector<64x128xf32>
      %c0_14 = arith.constant 0 : index
      %c0_15 = arith.constant 0 : index
      %16 = vector.load %arg6[%c0_14, %c0_15] : memref<1x128xf32, #tpu.memory_space<vmem>>, vector<1x128xf32>
      %17 = vector.broadcast %16 : vector<1x128xf32> to vector<64x128xf32>
      %18 = arith.addf %15, %17 : vector<64x128xf32>
      %19 = arith.truncf %18 : vector<64x128xf32> to vector<64x128xbf16>
      %c0_16 = arith.constant 0 : index
      %c0_17 = arith.constant 0 : index
      %20 = vector.load %arg7[%c0_16, %c0_17] : memref<64x128xbf16, #tpu.memory_space<vmem>>, vector<64x128xbf16>
      tpu.vector_store %arg7[%c0_16, %c0_17], %19 {strides = array<i32>} : memref<64x128xbf16, #tpu.memory_space<vmem>>, vector<64x128xbf16>,
    } else {
    }
    return
  }
  func.func @transform_0(%arg0: i32, %arg1: i32, %arg2: i32) -> (i32, i32) {
    %c0_i32 = arith.constant 0 : i32
    return %arg0, %arg2 : i32, i32
  }
  func.func @transform_1(%arg0: i32, %arg1: i32, %arg2: i32) -> (i32, i32) {
    %c0_i32 = arith.constant 0 : i32
    return %arg2, %arg1 : i32, i32
  }
  func.func @transform_2(%arg0: i32, %arg1: i32, %arg2: i32) -> (i32, i32) {
    %c0_i32 = arith.constant 0 : i32
    %c0_i32_0 = arith.constant 0 : i32
    return %c0_i32, %arg1 : i32, i32
  }
  func.func @transform_3(%arg0: i32, %arg1: i32, %arg2: i32) -> (i32, i32) {
    %c0_i32 = arith.constant 0 : i32
    %c0_i32_0 = arith.constant 0 : i32
    return %c0_i32, %arg1 : i32, i32
  }
  func.func @transform_4(%arg0: i32, %arg1: i32, %arg2: i32) -> (i32, i32) {
    %c0_i32 = arith.constant 0 : i32
    return %arg0, %arg1 : i32, i32
  }
}

module attributes {stable_mosaic.version = 11 : i64} {
  func.func @_mm_affine_res_kernel(%arg0: i32, %arg1: i32, %arg2: i32, %arg3: memref<64x128xbf16, #tpu.memory_space<vmem>>, %arg4: memref<128x128xbf16, #tpu.memory_space<vmem>>, %arg5: memref<1x128xf32, #tpu.memory_space<vmem>>, %arg6: memref<1x128xf32, #tpu.memory_space<vmem>>, %arg7: memref<64x128xbf16, #tpu.memory_space<vmem>>, %arg8: memref<64x128xbf16, #tpu.memory_space<vmem>>, %arg9: memref<64x128xf32, #tpu.memory_space<vmem>>) attributes {dimension_semantics = [#tpu.dimension_semantics<parallel>, #tpu.dimension_semantics<parallel>, #tpu.dimension_semantics<arbitrary>], iteration_bounds = array<i64: 2, 1, 1>, scalar_prefetch = 0 : i64, scratch_operands = 1 : i64, tpu.core_type = #tpu.core_type<tc>, window_params = [{transform_indices = @transform_0, window_bounds = array<i64: 64, 128>}, {transform_indices = @transform_1, window_bounds = array<i64: 128, 128>}, {transform_indices = @transform_2, window_bounds = array<i64: 1, 128>}, {transform_indices = @transform_3, window_bounds = array<i64: 1, 128>}, {transform_indices = @transform_4, window_bounds = array<i64: 64, 128>}, {transform_indices = @transform_5, window_bounds = array<i64: 64, 128>}]} {
    %c0_i32 = arith.constant 0 : i32
    %0 = arith.cmpi eq, %arg2, %c0_i32 : i32
    %1 = arith.extui %0 : i1 to i32
    %c0_i32_0 = arith.constant 0 : i32
    %2 = arith.cmpi ne, %1, %c0_i32_0 : i32
    scf.if %2 {
      %cst_10 = arith.constant 0.000000e+00 : f32
      %12 = vector.broadcast %cst_10 : f32 to vector<64x128xf32>
      %c0_11 = arith.constant 0 : index
      %c0_12 = arith.constant 0 : index
      %13 = vector.load %arg9[%c0_11, %c0_12] : memref<64x128xf32, #tpu.memory_space<vmem>>, vector<64x128xf32>
      tpu.vector_store %arg9[%c0_11, %c0_12], %12 {strides = array<i32>} : memref<64x128xf32, #tpu.memory_space<vmem>>, vector<64x128xf32>,
    } else {
    }
    %c0 = arith.constant 0 : index
    %c0_1 = arith.constant 0 : index
    %3 = vector.load %arg9[%c0, %c0_1] : memref<64x128xf32, #tpu.memory_space<vmem>>, vector<64x128xf32>
    %c0_2 = arith.constant 0 : index
    %c0_3 = arith.constant 0 : index
    %4 = vector.load %arg3[%c0_2, %c0_3] : memref<64x128xbf16, #tpu.memory_space<vmem>>, vector<64x128xbf16>
    %c0_4 = arith.constant 0 : index
    %c0_5 = arith.constant 0 : index
    %5 = vector.load %arg4[%c0_4, %c0_5] : memref<128x128xbf16, #tpu.memory_space<vmem>>, vector<128x128xbf16>
    %cst = arith.constant dense<0.000000e+00> : vector<64x128xf32>
    %6 = tpu.matmul %4, %5, %cst {dimension_numbers = #tpu.dot_dimension_numbers<[1], [0], [0], [1], [0, 0, 1, 1], [], []>} : vector<64x128xbf16>, vector<128x128xbf16>, vector<64x128xf32> -> vector<64x128xf32>
    %7 = arith.addf %3, %6 : vector<64x128xf32>
    %c0_6 = arith.constant 0 : index
    %c0_7 = arith.constant 0 : index
    %8 = vector.load %arg9[%c0_6, %c0_7] : memref<64x128xf32, #tpu.memory_space<vmem>>, vector<64x128xf32>
    tpu.vector_store %arg9[%c0_6, %c0_7], %7 {strides = array<i32>} : memref<64x128xf32, #tpu.memory_space<vmem>>, vector<64x128xf32>,
    %c0_i32_8 = arith.constant 0 : i32
    %9 = arith.cmpi eq, %arg2, %c0_i32_8 : i32
    %10 = arith.extui %9 : i1 to i32
    %c0_i32_9 = arith.constant 0 : i32
    %11 = arith.cmpi ne, %10, %c0_i32_9 : i32
    scf.if %11 {
      %c0_10 = arith.constant 0 : index
      %c0_11 = arith.constant 0 : index
      %12 = vector.load %arg9[%c0_10, %c0_11] : memref<64x128xf32, #tpu.memory_space<vmem>>, vector<64x128xf32>
      %c0_12 = arith.constant 0 : index
      %c0_13 = arith.constant 0 : index
      %13 = vector.load %arg5[%c0_12, %c0_13] : memref<1x128xf32, #tpu.memory_space<vmem>>, vector<1x128xf32>
      %14 = vector.broadcast %13 : vector<1x128xf32> to vector<64x128xf32>
      %15 = arith.mulf %12, %14 : vector<64x128xf32>
      %c0_14 = arith.constant 0 : index
      %c0_15 = arith.constant 0 : index
      %16 = vector.load %arg6[%c0_14, %c0_15] : memref<1x128xf32, #tpu.memory_space<vmem>>, vector<1x128xf32>
      %17 = vector.broadcast %16 : vector<1x128xf32> to vector<64x128xf32>
      %18 = arith.addf %15, %17 : vector<64x128xf32>
      %c0_16 = arith.constant 0 : index
      %c0_17 = arith.constant 0 : index
      %19 = vector.load %arg7[%c0_16, %c0_17] : memref<64x128xbf16, #tpu.memory_space<vmem>>, vector<64x128xbf16>
      %20 = arith.extf %19 : vector<64x128xbf16> to vector<64x128xf32>
      %21 = arith.addf %18, %20 : vector<64x128xf32>
      %cst_18 = arith.constant 0.000000e+00 : f32
      %22 = vector.broadcast %cst_18 : f32 to vector<64x128xf32>
      %23 = arith.maximumf %21, %22 : vector<64x128xf32>
      %24 = arith.truncf %23 : vector<64x128xf32> to vector<64x128xbf16>
      %c0_19 = arith.constant 0 : index
      %c0_20 = arith.constant 0 : index
      %25 = vector.load %arg8[%c0_19, %c0_20] : memref<64x128xbf16, #tpu.memory_space<vmem>>, vector<64x128xbf16>
      tpu.vector_store %arg8[%c0_19, %c0_20], %24 {strides = array<i32>} : memref<64x128xbf16, #tpu.memory_space<vmem>>, vector<64x128xbf16>,
    } else {
    }
    return
  }
  func.func @transform_0(%arg0: i32, %arg1: i32, %arg2: i32) -> (i32, i32) {
    %c0_i32 = arith.constant 0 : i32
    return %arg0, %arg2 : i32, i32
  }
  func.func @transform_1(%arg0: i32, %arg1: i32, %arg2: i32) -> (i32, i32) {
    %c0_i32 = arith.constant 0 : i32
    return %arg2, %arg1 : i32, i32
  }
  func.func @transform_2(%arg0: i32, %arg1: i32, %arg2: i32) -> (i32, i32) {
    %c0_i32 = arith.constant 0 : i32
    %c0_i32_0 = arith.constant 0 : i32
    return %c0_i32, %arg1 : i32, i32
  }
  func.func @transform_3(%arg0: i32, %arg1: i32, %arg2: i32) -> (i32, i32) {
    %c0_i32 = arith.constant 0 : i32
    %c0_i32_0 = arith.constant 0 : i32
    return %c0_i32, %arg1 : i32, i32
  }
  func.func @transform_4(%arg0: i32, %arg1: i32, %arg2: i32) -> (i32, i32) {
    %c0_i32 = arith.constant 0 : i32
    return %arg0, %arg1 : i32, i32
  }
  func.func @transform_5(%arg0: i32, %arg1: i32, %arg2: i32) -> (i32, i32) {
    %c0_i32 = arith.constant 0 : i32
    return %arg0, %arg1 : i32, i32
  }
}

module attributes {stable_mosaic.version = 11 : i64} {
  func.func @_mm_affine_kernel(%arg0: i32, %arg1: i32, %arg2: i32, %arg3: memref<16x128xbf16, #tpu.memory_space<vmem>>, %arg4: memref<128x128xbf16, #tpu.memory_space<vmem>>, %arg5: memref<1x128xf32, #tpu.memory_space<vmem>>, %arg6: memref<1x128xf32, #tpu.memory_space<vmem>>, %arg7: memref<16x128xbf16, #tpu.memory_space<vmem>>, %arg8: memref<16x128xf32, #tpu.memory_space<vmem>>) attributes {dimension_semantics = [#tpu.dimension_semantics<parallel>, #tpu.dimension_semantics<parallel>, #tpu.dimension_semantics<arbitrary>], iteration_bounds = array<i64: 2, 1, 5>, scalar_prefetch = 0 : i64, scratch_operands = 1 : i64, tpu.core_type = #tpu.core_type<tc>, window_params = [{transform_indices = @transform_0, window_bounds = array<i64: 16, 128>}, {transform_indices = @transform_1, window_bounds = array<i64: 128, 128>}, {transform_indices = @transform_2, window_bounds = array<i64: 1, 128>}, {transform_indices = @transform_3, window_bounds = array<i64: 1, 128>}, {transform_indices = @transform_4, window_bounds = array<i64: 16, 128>}]} {
    %c0_i32 = arith.constant 0 : i32
    %0 = arith.cmpi eq, %arg2, %c0_i32 : i32
    %1 = arith.extui %0 : i1 to i32
    %c0_i32_0 = arith.constant 0 : i32
    %2 = arith.cmpi ne, %1, %c0_i32_0 : i32
    scf.if %2 {
      %cst_9 = arith.constant 0.000000e+00 : f32
      %12 = vector.broadcast %cst_9 : f32 to vector<16x128xf32>
      %c0_10 = arith.constant 0 : index
      %c0_11 = arith.constant 0 : index
      %13 = vector.load %arg8[%c0_10, %c0_11] : memref<16x128xf32, #tpu.memory_space<vmem>>, vector<16x128xf32>
      tpu.vector_store %arg8[%c0_10, %c0_11], %12 {strides = array<i32>} : memref<16x128xf32, #tpu.memory_space<vmem>>, vector<16x128xf32>,
    } else {
    }
    %c0 = arith.constant 0 : index
    %c0_1 = arith.constant 0 : index
    %3 = vector.load %arg8[%c0, %c0_1] : memref<16x128xf32, #tpu.memory_space<vmem>>, vector<16x128xf32>
    %c0_2 = arith.constant 0 : index
    %c0_3 = arith.constant 0 : index
    %4 = vector.load %arg3[%c0_2, %c0_3] : memref<16x128xbf16, #tpu.memory_space<vmem>>, vector<16x128xbf16>
    %c0_4 = arith.constant 0 : index
    %c0_5 = arith.constant 0 : index
    %5 = vector.load %arg4[%c0_4, %c0_5] : memref<128x128xbf16, #tpu.memory_space<vmem>>, vector<128x128xbf16>
    %cst = arith.constant dense<0.000000e+00> : vector<16x128xf32>
    %6 = tpu.matmul %4, %5, %cst {dimension_numbers = #tpu.dot_dimension_numbers<[1], [0], [0], [1], [0, 0, 1, 1], [], []>} : vector<16x128xbf16>, vector<128x128xbf16>, vector<16x128xf32> -> vector<16x128xf32>
    %7 = arith.addf %3, %6 : vector<16x128xf32>
    %c0_6 = arith.constant 0 : index
    %c0_7 = arith.constant 0 : index
    %8 = vector.load %arg8[%c0_6, %c0_7] : memref<16x128xf32, #tpu.memory_space<vmem>>, vector<16x128xf32>
    tpu.vector_store %arg8[%c0_6, %c0_7], %7 {strides = array<i32>} : memref<16x128xf32, #tpu.memory_space<vmem>>, vector<16x128xf32>,
    %c4_i32 = arith.constant 4 : i32
    %9 = arith.cmpi eq, %arg2, %c4_i32 : i32
    %10 = arith.extui %9 : i1 to i32
    %c0_i32_8 = arith.constant 0 : i32
    %11 = arith.cmpi ne, %10, %c0_i32_8 : i32
    scf.if %11 {
      %c0_9 = arith.constant 0 : index
      %c0_10 = arith.constant 0 : index
      %12 = vector.load %arg8[%c0_9, %c0_10] : memref<16x128xf32, #tpu.memory_space<vmem>>, vector<16x128xf32>
      %c0_11 = arith.constant 0 : index
      %c0_12 = arith.constant 0 : index
      %13 = vector.load %arg5[%c0_11, %c0_12] : memref<1x128xf32, #tpu.memory_space<vmem>>, vector<1x128xf32>
      %14 = vector.broadcast %13 : vector<1x128xf32> to vector<16x128xf32>
      %15 = arith.mulf %12, %14 : vector<16x128xf32>
      %c0_13 = arith.constant 0 : index
      %c0_14 = arith.constant 0 : index
      %16 = vector.load %arg6[%c0_13, %c0_14] : memref<1x128xf32, #tpu.memory_space<vmem>>, vector<1x128xf32>
      %17 = vector.broadcast %16 : vector<1x128xf32> to vector<16x128xf32>
      %18 = arith.addf %15, %17 : vector<16x128xf32>
      %cst_15 = arith.constant 0.000000e+00 : f32
      %19 = vector.broadcast %cst_15 : f32 to vector<16x128xf32>
      %20 = arith.maximumf %18, %19 : vector<16x128xf32>
      %21 = arith.truncf %20 : vector<16x128xf32> to vector<16x128xbf16>
      %c0_16 = arith.constant 0 : index
      %c0_17 = arith.constant 0 : index
      %22 = vector.load %arg7[%c0_16, %c0_17] : memref<16x128xbf16, #tpu.memory_space<vmem>>, vector<16x128xbf16>
      tpu.vector_store %arg7[%c0_16, %c0_17], %21 {strides = array<i32>} : memref<16x128xbf16, #tpu.memory_space<vmem>>, vector<16x128xbf16>,
    } else {
    }
    return
  }
  func.func @transform_0(%arg0: i32, %arg1: i32, %arg2: i32) -> (i32, i32) {
    %c0_i32 = arith.constant 0 : i32
    return %arg0, %arg2 : i32, i32
  }
  func.func @transform_1(%arg0: i32, %arg1: i32, %arg2: i32) -> (i32, i32) {
    %c0_i32 = arith.constant 0 : i32
    return %arg2, %arg1 : i32, i32
  }
  func.func @transform_2(%arg0: i32, %arg1: i32, %arg2: i32) -> (i32, i32) {
    %c0_i32 = arith.constant 0 : i32
    %c0_i32_0 = arith.constant 0 : i32
    return %c0_i32, %arg1 : i32, i32
  }
  func.func @transform_3(%arg0: i32, %arg1: i32, %arg2: i32) -> (i32, i32) {
    %c0_i32 = arith.constant 0 : i32
    %c0_i32_0 = arith.constant 0 : i32
    return %c0_i32, %arg1 : i32, i32
  }
  func.func @transform_4(%arg0: i32, %arg1: i32, %arg2: i32) -> (i32, i32) {
    %c0_i32 = arith.constant 0 : i32
    return %arg0, %arg1 : i32, i32
  }
}

module attributes {stable_mosaic.version = 11 : i64} {
  func.func @_mm_affine_res_kernel(%arg0: i32, %arg1: i32, %arg2: i32, %arg3: memref<32x128xbf16, #tpu.memory_space<vmem>>, %arg4: memref<128x128xbf16, #tpu.memory_space<vmem>>, %arg5: memref<1x128xf32, #tpu.memory_space<vmem>>, %arg6: memref<1x128xf32, #tpu.memory_space<vmem>>, %arg7: memref<32x128xbf16, #tpu.memory_space<vmem>>, %arg8: memref<32x128xbf16, #tpu.memory_space<vmem>>, %arg9: memref<32x128xf32, #tpu.memory_space<vmem>>) attributes {dimension_semantics = [#tpu.dimension_semantics<parallel>, #tpu.dimension_semantics<parallel>, #tpu.dimension_semantics<arbitrary>], iteration_bounds = array<i64: 1, 2, 1>, scalar_prefetch = 0 : i64, scratch_operands = 1 : i64, tpu.core_type = #tpu.core_type<tc>, window_params = [{transform_indices = @transform_0, window_bounds = array<i64: 32, 128>}, {transform_indices = @transform_1, window_bounds = array<i64: 128, 128>}, {transform_indices = @transform_2, window_bounds = array<i64: 1, 128>}, {transform_indices = @transform_3, window_bounds = array<i64: 1, 128>}, {transform_indices = @transform_4, window_bounds = array<i64: 32, 128>}, {transform_indices = @transform_5, window_bounds = array<i64: 32, 128>}]} {
    %c0_i32 = arith.constant 0 : i32
    %0 = arith.cmpi eq, %arg2, %c0_i32 : i32
    %1 = arith.extui %0 : i1 to i32
    %c0_i32_0 = arith.constant 0 : i32
    %2 = arith.cmpi ne, %1, %c0_i32_0 : i32
    scf.if %2 {
      %cst_10 = arith.constant 0.000000e+00 : f32
      %12 = vector.broadcast %cst_10 : f32 to vector<32x128xf32>
      %c0_11 = arith.constant 0 : index
      %c0_12 = arith.constant 0 : index
      %13 = vector.load %arg9[%c0_11, %c0_12] : memref<32x128xf32, #tpu.memory_space<vmem>>, vector<32x128xf32>
      tpu.vector_store %arg9[%c0_11, %c0_12], %12 {strides = array<i32>} : memref<32x128xf32, #tpu.memory_space<vmem>>, vector<32x128xf32>,
    } else {
    }
    %c0 = arith.constant 0 : index
    %c0_1 = arith.constant 0 : index
    %3 = vector.load %arg9[%c0, %c0_1] : memref<32x128xf32, #tpu.memory_space<vmem>>, vector<32x128xf32>
    %c0_2 = arith.constant 0 : index
    %c0_3 = arith.constant 0 : index
    %4 = vector.load %arg3[%c0_2, %c0_3] : memref<32x128xbf16, #tpu.memory_space<vmem>>, vector<32x128xbf16>
    %c0_4 = arith.constant 0 : index
    %c0_5 = arith.constant 0 : index
    %5 = vector.load %arg4[%c0_4, %c0_5] : memref<128x128xbf16, #tpu.memory_space<vmem>>, vector<128x128xbf16>
    %cst = arith.constant dense<0.000000e+00> : vector<32x128xf32>
    %6 = tpu.matmul %4, %5, %cst {dimension_numbers = #tpu.dot_dimension_numbers<[1], [0], [0], [1], [0, 0, 1, 1], [], []>} : vector<32x128xbf16>, vector<128x128xbf16>, vector<32x128xf32> -> vector<32x128xf32>
    %7 = arith.addf %3, %6 : vector<32x128xf32>
    %c0_6 = arith.constant 0 : index
    %c0_7 = arith.constant 0 : index
    %8 = vector.load %arg9[%c0_6, %c0_7] : memref<32x128xf32, #tpu.memory_space<vmem>>, vector<32x128xf32>
    tpu.vector_store %arg9[%c0_6, %c0_7], %7 {strides = array<i32>} : memref<32x128xf32, #tpu.memory_space<vmem>>, vector<32x128xf32>,
    %c0_i32_8 = arith.constant 0 : i32
    %9 = arith.cmpi eq, %arg2, %c0_i32_8 : i32
    %10 = arith.extui %9 : i1 to i32
    %c0_i32_9 = arith.constant 0 : i32
    %11 = arith.cmpi ne, %10, %c0_i32_9 : i32
    scf.if %11 {
      %c0_10 = arith.constant 0 : index
      %c0_11 = arith.constant 0 : index
      %12 = vector.load %arg9[%c0_10, %c0_11] : memref<32x128xf32, #tpu.memory_space<vmem>>, vector<32x128xf32>
      %c0_12 = arith.constant 0 : index
      %c0_13 = arith.constant 0 : index
      %13 = vector.load %arg5[%c0_12, %c0_13] : memref<1x128xf32, #tpu.memory_space<vmem>>, vector<1x128xf32>
      %14 = vector.broadcast %13 : vector<1x128xf32> to vector<32x128xf32>
      %15 = arith.mulf %12, %14 : vector<32x128xf32>
      %c0_14 = arith.constant 0 : index
      %c0_15 = arith.constant 0 : index
      %16 = vector.load %arg6[%c0_14, %c0_15] : memref<1x128xf32, #tpu.memory_space<vmem>>, vector<1x128xf32>
      %17 = vector.broadcast %16 : vector<1x128xf32> to vector<32x128xf32>
      %18 = arith.addf %15, %17 : vector<32x128xf32>
      %c0_16 = arith.constant 0 : index
      %c0_17 = arith.constant 0 : index
      %19 = vector.load %arg7[%c0_16, %c0_17] : memref<32x128xbf16, #tpu.memory_space<vmem>>, vector<32x128xbf16>
      %20 = arith.extf %19 : vector<32x128xbf16> to vector<32x128xf32>
      %21 = arith.addf %18, %20 : vector<32x128xf32>
      %cst_18 = arith.constant 0.000000e+00 : f32
      %22 = vector.broadcast %cst_18 : f32 to vector<32x128xf32>
      %23 = arith.maximumf %21, %22 : vector<32x128xf32>
      %24 = arith.truncf %23 : vector<32x128xf32> to vector<32x128xbf16>
      %c0_19 = arith.constant 0 : index
      %c0_20 = arith.constant 0 : index
      %25 = vector.load %arg8[%c0_19, %c0_20] : memref<32x128xbf16, #tpu.memory_space<vmem>>, vector<32x128xbf16>
      tpu.vector_store %arg8[%c0_19, %c0_20], %24 {strides = array<i32>} : memref<32x128xbf16, #tpu.memory_space<vmem>>, vector<32x128xbf16>,
    } else {
    }
    return
  }
  func.func @transform_0(%arg0: i32, %arg1: i32, %arg2: i32) -> (i32, i32) {
    %c0_i32 = arith.constant 0 : i32
    return %arg0, %arg2 : i32, i32
  }
  func.func @transform_1(%arg0: i32, %arg1: i32, %arg2: i32) -> (i32, i32) {
    %c0_i32 = arith.constant 0 : i32
    return %arg2, %arg1 : i32, i32
  }
  func.func @transform_2(%arg0: i32, %arg1: i32, %arg2: i32) -> (i32, i32) {
    %c0_i32 = arith.constant 0 : i32
    %c0_i32_0 = arith.constant 0 : i32
    return %c0_i32, %arg1 : i32, i32
  }
  func.func @transform_3(%arg0: i32, %arg1: i32, %arg2: i32) -> (i32, i32) {
    %c0_i32 = arith.constant 0 : i32
    %c0_i32_0 = arith.constant 0 : i32
    return %c0_i32, %arg1 : i32, i32
  }
  func.func @transform_4(%arg0: i32, %arg1: i32, %arg2: i32) -> (i32, i32) {
    %c0_i32 = arith.constant 0 : i32
    return %arg0, %arg1 : i32, i32
  }
  func.func @transform_5(%arg0: i32, %arg1: i32, %arg2: i32) -> (i32, i32) {
    %c0_i32 = arith.constant 0 : i32
    return %arg0, %arg1 : i32, i32
  }
}

module attributes {stable_mosaic.version = 11 : i64} {
  func.func @_mm_affine_kernel(%arg0: i32, %arg1: i32, %arg2: i32, %arg3: memref<32x128xbf16, #tpu.memory_space<vmem>>, %arg4: memref<128x128xbf16, #tpu.memory_space<vmem>>, %arg5: memref<1x128xf32, #tpu.memory_space<vmem>>, %arg6: memref<1x128xf32, #tpu.memory_space<vmem>>, %arg7: memref<32x128xbf16, #tpu.memory_space<vmem>>, %arg8: memref<32x128xf32, #tpu.memory_space<vmem>>) attributes {dimension_semantics = [#tpu.dimension_semantics<parallel>, #tpu.dimension_semantics<parallel>, #tpu.dimension_semantics<arbitrary>], iteration_bounds = array<i64: 1, 2, 1>, scalar_prefetch = 0 : i64, scratch_operands = 1 : i64, tpu.core_type = #tpu.core_type<tc>, window_params = [{transform_indices = @transform_0, window_bounds = array<i64: 32, 128>}, {transform_indices = @transform_1, window_bounds = array<i64: 128, 128>}, {transform_indices = @transform_2, window_bounds = array<i64: 1, 128>}, {transform_indices = @transform_3, window_bounds = array<i64: 1, 128>}, {transform_indices = @transform_4, window_bounds = array<i64: 32, 128>}]} {
    %c0_i32 = arith.constant 0 : i32
    %0 = arith.cmpi eq, %arg2, %c0_i32 : i32
    %1 = arith.extui %0 : i1 to i32
    %c0_i32_0 = arith.constant 0 : i32
    %2 = arith.cmpi ne, %1, %c0_i32_0 : i32
    scf.if %2 {
      %cst_10 = arith.constant 0.000000e+00 : f32
      %12 = vector.broadcast %cst_10 : f32 to vector<32x128xf32>
      %c0_11 = arith.constant 0 : index
      %c0_12 = arith.constant 0 : index
      %13 = vector.load %arg8[%c0_11, %c0_12] : memref<32x128xf32, #tpu.memory_space<vmem>>, vector<32x128xf32>
      tpu.vector_store %arg8[%c0_11, %c0_12], %12 {strides = array<i32>} : memref<32x128xf32, #tpu.memory_space<vmem>>, vector<32x128xf32>,
    } else {
    }
    %c0 = arith.constant 0 : index
    %c0_1 = arith.constant 0 : index
    %3 = vector.load %arg8[%c0, %c0_1] : memref<32x128xf32, #tpu.memory_space<vmem>>, vector<32x128xf32>
    %c0_2 = arith.constant 0 : index
    %c0_3 = arith.constant 0 : index
    %4 = vector.load %arg3[%c0_2, %c0_3] : memref<32x128xbf16, #tpu.memory_space<vmem>>, vector<32x128xbf16>
    %c0_4 = arith.constant 0 : index
    %c0_5 = arith.constant 0 : index
    %5 = vector.load %arg4[%c0_4, %c0_5] : memref<128x128xbf16, #tpu.memory_space<vmem>>, vector<128x128xbf16>
    %cst = arith.constant dense<0.000000e+00> : vector<32x128xf32>
    %6 = tpu.matmul %4, %5, %cst {dimension_numbers = #tpu.dot_dimension_numbers<[1], [0], [0], [1], [0, 0, 1, 1], [], []>} : vector<32x128xbf16>, vector<128x128xbf16>, vector<32x128xf32> -> vector<32x128xf32>
    %7 = arith.addf %3, %6 : vector<32x128xf32>
    %c0_6 = arith.constant 0 : index
    %c0_7 = arith.constant 0 : index
    %8 = vector.load %arg8[%c0_6, %c0_7] : memref<32x128xf32, #tpu.memory_space<vmem>>, vector<32x128xf32>
    tpu.vector_store %arg8[%c0_6, %c0_7], %7 {strides = array<i32>} : memref<32x128xf32, #tpu.memory_space<vmem>>, vector<32x128xf32>,
    %c0_i32_8 = arith.constant 0 : i32
    %9 = arith.cmpi eq, %arg2, %c0_i32_8 : i32
    %10 = arith.extui %9 : i1 to i32
    %c0_i32_9 = arith.constant 0 : i32
    %11 = arith.cmpi ne, %10, %c0_i32_9 : i32
    scf.if %11 {
      %c0_10 = arith.constant 0 : index
      %c0_11 = arith.constant 0 : index
      %12 = vector.load %arg8[%c0_10, %c0_11] : memref<32x128xf32, #tpu.memory_space<vmem>>, vector<32x128xf32>
      %c0_12 = arith.constant 0 : index
      %c0_13 = arith.constant 0 : index
      %13 = vector.load %arg5[%c0_12, %c0_13] : memref<1x128xf32, #tpu.memory_space<vmem>>, vector<1x128xf32>
      %14 = vector.broadcast %13 : vector<1x128xf32> to vector<32x128xf32>
      %15 = arith.mulf %12, %14 : vector<32x128xf32>
      %c0_14 = arith.constant 0 : index
      %c0_15 = arith.constant 0 : index
      %16 = vector.load %arg6[%c0_14, %c0_15] : memref<1x128xf32, #tpu.memory_space<vmem>>, vector<1x128xf32>
      %17 = vector.broadcast %16 : vector<1x128xf32> to vector<32x128xf32>
      %18 = arith.addf %15, %17 : vector<32x128xf32>
      %19 = arith.truncf %18 : vector<32x128xf32> to vector<32x128xbf16>
      %c0_16 = arith.constant 0 : index
      %c0_17 = arith.constant 0 : index
      %20 = vector.load %arg7[%c0_16, %c0_17] : memref<32x128xbf16, #tpu.memory_space<vmem>>, vector<32x128xbf16>
      tpu.vector_store %arg7[%c0_16, %c0_17], %19 {strides = array<i32>} : memref<32x128xbf16, #tpu.memory_space<vmem>>, vector<32x128xbf16>,
    } else {
    }
    return
  }
  func.func @transform_0(%arg0: i32, %arg1: i32, %arg2: i32) -> (i32, i32) {
    %c0_i32 = arith.constant 0 : i32
    return %arg0, %arg2 : i32, i32
  }
  func.func @transform_1(%arg0: i32, %arg1: i32, %arg2: i32) -> (i32, i32) {
    %c0_i32 = arith.constant 0 : i32
    return %arg2, %arg1 : i32, i32
  }
  func.func @transform_2(%arg0: i32, %arg1: i32, %arg2: i32) -> (i32, i32) {
    %c0_i32 = arith.constant 0 : i32
    %c0_i32_0 = arith.constant 0 : i32
    return %c0_i32, %arg1 : i32, i32
  }
  func.func @transform_3(%arg0: i32, %arg1: i32, %arg2: i32) -> (i32, i32) {
    %c0_i32 = arith.constant 0 : i32
    %c0_i32_0 = arith.constant 0 : i32
    return %c0_i32, %arg1 : i32, i32
  }
  func.func @transform_4(%arg0: i32, %arg1: i32, %arg2: i32) -> (i32, i32) {
    %c0_i32 = arith.constant 0 : i32
    return %arg0, %arg1 : i32, i32
  }
}

module attributes {stable_mosaic.version = 11 : i64} {
  func.func @_mm_affine_kernel(%arg0: i32, %arg1: i32, %arg2: i32, %arg3: memref<8x256xbf16, #tpu.memory_space<vmem>>, %arg4: memref<256x256xbf16, #tpu.memory_space<vmem>>, %arg5: memref<1x256xf32, #tpu.memory_space<vmem>>, %arg6: memref<1x256xf32, #tpu.memory_space<vmem>>, %arg7: memref<8x256xbf16, #tpu.memory_space<vmem>>, %arg8: memref<8x256xf32, #tpu.memory_space<vmem>>) attributes {dimension_semantics = [#tpu.dimension_semantics<parallel>, #tpu.dimension_semantics<parallel>, #tpu.dimension_semantics<arbitrary>], iteration_bounds = array<i64: 1, 2, 1>, scalar_prefetch = 0 : i64, scratch_operands = 1 : i64, tpu.core_type = #tpu.core_type<tc>, window_params = [{transform_indices = @transform_0, window_bounds = array<i64: 8, 256>}, {transform_indices = @transform_1, window_bounds = array<i64: 256, 256>}, {transform_indices = @transform_2, window_bounds = array<i64: 1, 256>}, {transform_indices = @transform_3, window_bounds = array<i64: 1, 256>}, {transform_indices = @transform_4, window_bounds = array<i64: 8, 256>}]} {
    %c0_i32 = arith.constant 0 : i32
    %0 = arith.cmpi eq, %arg2, %c0_i32 : i32
    %1 = arith.extui %0 : i1 to i32
    %c0_i32_0 = arith.constant 0 : i32
    %2 = arith.cmpi ne, %1, %c0_i32_0 : i32
    scf.if %2 {
      %cst_10 = arith.constant 0.000000e+00 : f32
      %12 = vector.broadcast %cst_10 : f32 to vector<8x256xf32>
      %c0_11 = arith.constant 0 : index
      %c0_12 = arith.constant 0 : index
      %13 = vector.load %arg8[%c0_11, %c0_12] : memref<8x256xf32, #tpu.memory_space<vmem>>, vector<8x256xf32>
      tpu.vector_store %arg8[%c0_11, %c0_12], %12 {strides = array<i32>} : memref<8x256xf32, #tpu.memory_space<vmem>>, vector<8x256xf32>,
    } else {
    }
    %c0 = arith.constant 0 : index
    %c0_1 = arith.constant 0 : index
    %3 = vector.load %arg8[%c0, %c0_1] : memref<8x256xf32, #tpu.memory_space<vmem>>, vector<8x256xf32>
    %c0_2 = arith.constant 0 : index
    %c0_3 = arith.constant 0 : index
    %4 = vector.load %arg3[%c0_2, %c0_3] : memref<8x256xbf16, #tpu.memory_space<vmem>>, vector<8x256xbf16>
    %c0_4 = arith.constant 0 : index
    %c0_5 = arith.constant 0 : index
    %5 = vector.load %arg4[%c0_4, %c0_5] : memref<256x256xbf16, #tpu.memory_space<vmem>>, vector<256x256xbf16>
    %cst = arith.constant dense<0.000000e+00> : vector<8x256xf32>
    %6 = tpu.matmul %4, %5, %cst {dimension_numbers = #tpu.dot_dimension_numbers<[1], [0], [0], [1], [0, 0, 1, 1], [], []>} : vector<8x256xbf16>, vector<256x256xbf16>, vector<8x256xf32> -> vector<8x256xf32>
    %7 = arith.addf %3, %6 : vector<8x256xf32>
    %c0_6 = arith.constant 0 : index
    %c0_7 = arith.constant 0 : index
    %8 = vector.load %arg8[%c0_6, %c0_7] : memref<8x256xf32, #tpu.memory_space<vmem>>, vector<8x256xf32>
    tpu.vector_store %arg8[%c0_6, %c0_7], %7 {strides = array<i32>} : memref<8x256xf32, #tpu.memory_space<vmem>>, vector<8x256xf32>,
    %c0_i32_8 = arith.constant 0 : i32
    %9 = arith.cmpi eq, %arg2, %c0_i32_8 : i32
    %10 = arith.extui %9 : i1 to i32
    %c0_i32_9 = arith.constant 0 : i32
    %11 = arith.cmpi ne, %10, %c0_i32_9 : i32
    scf.if %11 {
      %c0_10 = arith.constant 0 : index
      %c0_11 = arith.constant 0 : index
      %12 = vector.load %arg8[%c0_10, %c0_11] : memref<8x256xf32, #tpu.memory_space<vmem>>, vector<8x256xf32>
      %c0_12 = arith.constant 0 : index
      %c0_13 = arith.constant 0 : index
      %13 = vector.load %arg5[%c0_12, %c0_13] : memref<1x256xf32, #tpu.memory_space<vmem>>, vector<1x256xf32>
      %14 = vector.broadcast %13 : vector<1x256xf32> to vector<8x256xf32>
      %15 = arith.mulf %12, %14 : vector<8x256xf32>
      %c0_14 = arith.constant 0 : index
      %c0_15 = arith.constant 0 : index
      %16 = vector.load %arg6[%c0_14, %c0_15] : memref<1x256xf32, #tpu.memory_space<vmem>>, vector<1x256xf32>
      %17 = vector.broadcast %16 : vector<1x256xf32> to vector<8x256xf32>
      %18 = arith.addf %15, %17 : vector<8x256xf32>
      %19 = arith.truncf %18 : vector<8x256xf32> to vector<8x256xbf16>
      %c0_16 = arith.constant 0 : index
      %c0_17 = arith.constant 0 : index
      %20 = vector.load %arg7[%c0_16, %c0_17] : memref<8x256xbf16, #tpu.memory_space<vmem>>, vector<8x256xbf16>
      tpu.vector_store %arg7[%c0_16, %c0_17], %19 {strides = array<i32>} : memref<8x256xbf16, #tpu.memory_space<vmem>>, vector<8x256xbf16>,
    } else {
    }
    return
  }
  func.func @transform_0(%arg0: i32, %arg1: i32, %arg2: i32) -> (i32, i32) {
    %c0_i32 = arith.constant 0 : i32
    return %arg0, %arg2 : i32, i32
  }
  func.func @transform_1(%arg0: i32, %arg1: i32, %arg2: i32) -> (i32, i32) {
    %c0_i32 = arith.constant 0 : i32
    return %arg2, %arg1 : i32, i32
  }
  func.func @transform_2(%arg0: i32, %arg1: i32, %arg2: i32) -> (i32, i32) {
    %c0_i32 = arith.constant 0 : i32
    %c0_i32_0 = arith.constant 0 : i32
    return %c0_i32, %arg1 : i32, i32
  }
  func.func @transform_3(%arg0: i32, %arg1: i32, %arg2: i32) -> (i32, i32) {
    %c0_i32 = arith.constant 0 : i32
    %c0_i32_0 = arith.constant 0 : i32
    return %c0_i32, %arg1 : i32, i32
  }
  func.func @transform_4(%arg0: i32, %arg1: i32, %arg2: i32) -> (i32, i32) {
    %c0_i32 = arith.constant 0 : i32
    return %arg0, %arg1 : i32, i32
  }
}

module attributes {stable_mosaic.version = 11 : i64} {
  func.func @_mm_affine_kernel(%arg0: i32, %arg1: i32, %arg2: i32, %arg3: memref<16x256xbf16, #tpu.memory_space<vmem>>, %arg4: memref<256x128xbf16, #tpu.memory_space<vmem>>, %arg5: memref<1x128xf32, #tpu.memory_space<vmem>>, %arg6: memref<1x128xf32, #tpu.memory_space<vmem>>, %arg7: memref<16x128xbf16, #tpu.memory_space<vmem>>, %arg8: memref<16x128xf32, #tpu.memory_space<vmem>>) attributes {dimension_semantics = [#tpu.dimension_semantics<parallel>, #tpu.dimension_semantics<parallel>, #tpu.dimension_semantics<arbitrary>], iteration_bounds = array<i64: 2, 1, 1>, scalar_prefetch = 0 : i64, scratch_operands = 1 : i64, tpu.core_type = #tpu.core_type<tc>, window_params = [{transform_indices = @transform_0, window_bounds = array<i64: 16, 256>}, {transform_indices = @transform_1, window_bounds = array<i64: 256, 128>}, {transform_indices = @transform_2, window_bounds = array<i64: 1, 128>}, {transform_indices = @transform_3, window_bounds = array<i64: 1, 128>}, {transform_indices = @transform_4, window_bounds = array<i64: 16, 128>}]} {
    %c0_i32 = arith.constant 0 : i32
    %0 = arith.cmpi eq, %arg2, %c0_i32 : i32
    %1 = arith.extui %0 : i1 to i32
    %c0_i32_0 = arith.constant 0 : i32
    %2 = arith.cmpi ne, %1, %c0_i32_0 : i32
    scf.if %2 {
      %cst_10 = arith.constant 0.000000e+00 : f32
      %12 = vector.broadcast %cst_10 : f32 to vector<16x128xf32>
      %c0_11 = arith.constant 0 : index
      %c0_12 = arith.constant 0 : index
      %13 = vector.load %arg8[%c0_11, %c0_12] : memref<16x128xf32, #tpu.memory_space<vmem>>, vector<16x128xf32>
      tpu.vector_store %arg8[%c0_11, %c0_12], %12 {strides = array<i32>} : memref<16x128xf32, #tpu.memory_space<vmem>>, vector<16x128xf32>,
    } else {
    }
    %c0 = arith.constant 0 : index
    %c0_1 = arith.constant 0 : index
    %3 = vector.load %arg8[%c0, %c0_1] : memref<16x128xf32, #tpu.memory_space<vmem>>, vector<16x128xf32>
    %c0_2 = arith.constant 0 : index
    %c0_3 = arith.constant 0 : index
    %4 = vector.load %arg3[%c0_2, %c0_3] : memref<16x256xbf16, #tpu.memory_space<vmem>>, vector<16x256xbf16>
    %c0_4 = arith.constant 0 : index
    %c0_5 = arith.constant 0 : index
    %5 = vector.load %arg4[%c0_4, %c0_5] : memref<256x128xbf16, #tpu.memory_space<vmem>>, vector<256x128xbf16>
    %cst = arith.constant dense<0.000000e+00> : vector<16x128xf32>
    %6 = tpu.matmul %4, %5, %cst {dimension_numbers = #tpu.dot_dimension_numbers<[1], [0], [0], [1], [0, 0, 1, 1], [], []>} : vector<16x256xbf16>, vector<256x128xbf16>, vector<16x128xf32> -> vector<16x128xf32>
    %7 = arith.addf %3, %6 : vector<16x128xf32>
    %c0_6 = arith.constant 0 : index
    %c0_7 = arith.constant 0 : index
    %8 = vector.load %arg8[%c0_6, %c0_7] : memref<16x128xf32, #tpu.memory_space<vmem>>, vector<16x128xf32>
    tpu.vector_store %arg8[%c0_6, %c0_7], %7 {strides = array<i32>} : memref<16x128xf32, #tpu.memory_space<vmem>>, vector<16x128xf32>,
    %c0_i32_8 = arith.constant 0 : i32
    %9 = arith.cmpi eq, %arg2, %c0_i32_8 : i32
    %10 = arith.extui %9 : i1 to i32
    %c0_i32_9 = arith.constant 0 : i32
    %11 = arith.cmpi ne, %10, %c0_i32_9 : i32
    scf.if %11 {
      %c0_10 = arith.constant 0 : index
      %c0_11 = arith.constant 0 : index
      %12 = vector.load %arg8[%c0_10, %c0_11] : memref<16x128xf32, #tpu.memory_space<vmem>>, vector<16x128xf32>
      %c0_12 = arith.constant 0 : index
      %c0_13 = arith.constant 0 : index
      %13 = vector.load %arg5[%c0_12, %c0_13] : memref<1x128xf32, #tpu.memory_space<vmem>>, vector<1x128xf32>
      %14 = vector.broadcast %13 : vector<1x128xf32> to vector<16x128xf32>
      %15 = arith.mulf %12, %14 : vector<16x128xf32>
      %c0_14 = arith.constant 0 : index
      %c0_15 = arith.constant 0 : index
      %16 = vector.load %arg6[%c0_14, %c0_15] : memref<1x128xf32, #tpu.memory_space<vmem>>, vector<1x128xf32>
      %17 = vector.broadcast %16 : vector<1x128xf32> to vector<16x128xf32>
      %18 = arith.addf %15, %17 : vector<16x128xf32>
      %cst_16 = arith.constant 0.000000e+00 : f32
      %19 = vector.broadcast %cst_16 : f32 to vector<16x128xf32>
      %20 = arith.maximumf %18, %19 : vector<16x128xf32>
      %21 = arith.truncf %20 : vector<16x128xf32> to vector<16x128xbf16>
      %c0_17 = arith.constant 0 : index
      %c0_18 = arith.constant 0 : index
      %22 = vector.load %arg7[%c0_17, %c0_18] : memref<16x128xbf16, #tpu.memory_space<vmem>>, vector<16x128xbf16>
      tpu.vector_store %arg7[%c0_17, %c0_18], %21 {strides = array<i32>} : memref<16x128xbf16, #tpu.memory_space<vmem>>, vector<16x128xbf16>,
    } else {
    }
    return
  }
  func.func @transform_0(%arg0: i32, %arg1: i32, %arg2: i32) -> (i32, i32) {
    %c0_i32 = arith.constant 0 : i32
    return %arg0, %arg2 : i32, i32
  }
  func.func @transform_1(%arg0: i32, %arg1: i32, %arg2: i32) -> (i32, i32) {
    %c0_i32 = arith.constant 0 : i32
    return %arg2, %arg1 : i32, i32
  }
  func.func @transform_2(%arg0: i32, %arg1: i32, %arg2: i32) -> (i32, i32) {
    %c0_i32 = arith.constant 0 : i32
    %c0_i32_0 = arith.constant 0 : i32
    return %c0_i32, %arg1 : i32, i32
  }
  func.func @transform_3(%arg0: i32, %arg1: i32, %arg2: i32) -> (i32, i32) {
    %c0_i32 = arith.constant 0 : i32
    %c0_i32_0 = arith.constant 0 : i32
    return %c0_i32, %arg1 : i32, i32
  }
  func.func @transform_4(%arg0: i32, %arg1: i32, %arg2: i32) -> (i32, i32) {
    %c0_i32 = arith.constant 0 : i32
    return %arg0, %arg1 : i32, i32
  }
}

module attributes {stable_mosaic.version = 11 : i64} {
  func.func @_mm_affine_res_kernel(%arg0: i32, %arg1: i32, %arg2: i32, %arg3: memref<8x128xbf16, #tpu.memory_space<vmem>>, %arg4: memref<128x256xbf16, #tpu.memory_space<vmem>>, %arg5: memref<1x256xf32, #tpu.memory_space<vmem>>, %arg6: memref<1x256xf32, #tpu.memory_space<vmem>>, %arg7: memref<8x256xbf16, #tpu.memory_space<vmem>>, %arg8: memref<8x256xbf16, #tpu.memory_space<vmem>>, %arg9: memref<8x256xf32, #tpu.memory_space<vmem>>) attributes {dimension_semantics = [#tpu.dimension_semantics<parallel>, #tpu.dimension_semantics<parallel>, #tpu.dimension_semantics<arbitrary>], iteration_bounds = array<i64: 1, 2, 1>, scalar_prefetch = 0 : i64, scratch_operands = 1 : i64, tpu.core_type = #tpu.core_type<tc>, window_params = [{transform_indices = @transform_0, window_bounds = array<i64: 8, 128>}, {transform_indices = @transform_1, window_bounds = array<i64: 128, 256>}, {transform_indices = @transform_2, window_bounds = array<i64: 1, 256>}, {transform_indices = @transform_3, window_bounds = array<i64: 1, 256>}, {transform_indices = @transform_4, window_bounds = array<i64: 8, 256>}, {transform_indices = @transform_5, window_bounds = array<i64: 8, 256>}]} {
    %c0_i32 = arith.constant 0 : i32
    %0 = arith.cmpi eq, %arg2, %c0_i32 : i32
    %1 = arith.extui %0 : i1 to i32
    %c0_i32_0 = arith.constant 0 : i32
    %2 = arith.cmpi ne, %1, %c0_i32_0 : i32
    scf.if %2 {
      %cst_10 = arith.constant 0.000000e+00 : f32
      %12 = vector.broadcast %cst_10 : f32 to vector<8x256xf32>
      %c0_11 = arith.constant 0 : index
      %c0_12 = arith.constant 0 : index
      %13 = vector.load %arg9[%c0_11, %c0_12] : memref<8x256xf32, #tpu.memory_space<vmem>>, vector<8x256xf32>
      tpu.vector_store %arg9[%c0_11, %c0_12], %12 {strides = array<i32>} : memref<8x256xf32, #tpu.memory_space<vmem>>, vector<8x256xf32>,
    } else {
    }
    %c0 = arith.constant 0 : index
    %c0_1 = arith.constant 0 : index
    %3 = vector.load %arg9[%c0, %c0_1] : memref<8x256xf32, #tpu.memory_space<vmem>>, vector<8x256xf32>
    %c0_2 = arith.constant 0 : index
    %c0_3 = arith.constant 0 : index
    %4 = vector.load %arg3[%c0_2, %c0_3] : memref<8x128xbf16, #tpu.memory_space<vmem>>, vector<8x128xbf16>
    %c0_4 = arith.constant 0 : index
    %c0_5 = arith.constant 0 : index
    %5 = vector.load %arg4[%c0_4, %c0_5] : memref<128x256xbf16, #tpu.memory_space<vmem>>, vector<128x256xbf16>
    %cst = arith.constant dense<0.000000e+00> : vector<8x256xf32>
    %6 = tpu.matmul %4, %5, %cst {dimension_numbers = #tpu.dot_dimension_numbers<[1], [0], [0], [1], [0, 0, 1, 1], [], []>} : vector<8x128xbf16>, vector<128x256xbf16>, vector<8x256xf32> -> vector<8x256xf32>
    %7 = arith.addf %3, %6 : vector<8x256xf32>
    %c0_6 = arith.constant 0 : index
    %c0_7 = arith.constant 0 : index
    %8 = vector.load %arg9[%c0_6, %c0_7] : memref<8x256xf32, #tpu.memory_space<vmem>>, vector<8x256xf32>
    tpu.vector_store %arg9[%c0_6, %c0_7], %7 {strides = array<i32>} : memref<8x256xf32, #tpu.memory_space<vmem>>, vector<8x256xf32>,
    %c0_i32_8 = arith.constant 0 : i32
    %9 = arith.cmpi eq, %arg2, %c0_i32_8 : i32
    %10 = arith.extui %9 : i1 to i32
    %c0_i32_9 = arith.constant 0 : i32
    %11 = arith.cmpi ne, %10, %c0_i32_9 : i32
    scf.if %11 {
      %c0_10 = arith.constant 0 : index
      %c0_11 = arith.constant 0 : index
      %12 = vector.load %arg9[%c0_10, %c0_11] : memref<8x256xf32, #tpu.memory_space<vmem>>, vector<8x256xf32>
      %c0_12 = arith.constant 0 : index
      %c0_13 = arith.constant 0 : index
      %13 = vector.load %arg5[%c0_12, %c0_13] : memref<1x256xf32, #tpu.memory_space<vmem>>, vector<1x256xf32>
      %14 = vector.broadcast %13 : vector<1x256xf32> to vector<8x256xf32>
      %15 = arith.mulf %12, %14 : vector<8x256xf32>
      %c0_14 = arith.constant 0 : index
      %c0_15 = arith.constant 0 : index
      %16 = vector.load %arg6[%c0_14, %c0_15] : memref<1x256xf32, #tpu.memory_space<vmem>>, vector<1x256xf32>
      %17 = vector.broadcast %16 : vector<1x256xf32> to vector<8x256xf32>
      %18 = arith.addf %15, %17 : vector<8x256xf32>
      %c0_16 = arith.constant 0 : index
      %c0_17 = arith.constant 0 : index
      %19 = vector.load %arg7[%c0_16, %c0_17] : memref<8x256xbf16, #tpu.memory_space<vmem>>, vector<8x256xbf16>
      %20 = arith.extf %19 : vector<8x256xbf16> to vector<8x256xf32>
      %21 = arith.addf %18, %20 : vector<8x256xf32>
      %cst_18 = arith.constant 0.000000e+00 : f32
      %22 = vector.broadcast %cst_18 : f32 to vector<8x256xf32>
      %23 = arith.maximumf %21, %22 : vector<8x256xf32>
      %24 = arith.truncf %23 : vector<8x256xf32> to vector<8x256xbf16>
      %c0_19 = arith.constant 0 : index
      %c0_20 = arith.constant 0 : index
      %25 = vector.load %arg8[%c0_19, %c0_20] : memref<8x256xbf16, #tpu.memory_space<vmem>>, vector<8x256xbf16>
      tpu.vector_store %arg8[%c0_19, %c0_20], %24 {strides = array<i32>} : memref<8x256xbf16, #tpu.memory_space<vmem>>, vector<8x256xbf16>,
    } else {
    }
    return
  }
  func.func @transform_0(%arg0: i32, %arg1: i32, %arg2: i32) -> (i32, i32) {
    %c0_i32 = arith.constant 0 : i32
    return %arg0, %arg2 : i32, i32
  }
  func.func @transform_1(%arg0: i32, %arg1: i32, %arg2: i32) -> (i32, i32) {
    %c0_i32 = arith.constant 0 : i32
    return %arg2, %arg1 : i32, i32
  }
  func.func @transform_2(%arg0: i32, %arg1: i32, %arg2: i32) -> (i32, i32) {
    %c0_i32 = arith.constant 0 : i32
    %c0_i32_0 = arith.constant 0 : i32
    return %c0_i32, %arg1 : i32, i32
  }
  func.func @transform_3(%arg0: i32, %arg1: i32, %arg2: i32) -> (i32, i32) {
    %c0_i32 = arith.constant 0 : i32
    %c0_i32_0 = arith.constant 0 : i32
    return %c0_i32, %arg1 : i32, i32
  }
  func.func @transform_4(%arg0: i32, %arg1: i32, %arg2: i32) -> (i32, i32) {
    %c0_i32 = arith.constant 0 : i32
    return %arg0, %arg1 : i32, i32
  }
  func.func @transform_5(%arg0: i32, %arg1: i32, %arg2: i32) -> (i32, i32) {
    %c0_i32 = arith.constant 0 : i32
    return %arg0, %arg1 : i32, i32
  }
}

module attributes {stable_mosaic.version = 11 : i64} {
  func.func @_mm_affine_kernel(%arg0: i32, %arg1: i32, %arg2: i32, %arg3: memref<8x128xbf16, #tpu.memory_space<vmem>>, %arg4: memref<128x128xbf16, #tpu.memory_space<vmem>>, %arg5: memref<1x128xf32, #tpu.memory_space<vmem>>, %arg6: memref<1x128xf32, #tpu.memory_space<vmem>>, %arg7: memref<8x128xbf16, #tpu.memory_space<vmem>>, %arg8: memref<8x128xf32, #tpu.memory_space<vmem>>) attributes {dimension_semantics = [#tpu.dimension_semantics<parallel>, #tpu.dimension_semantics<parallel>, #tpu.dimension_semantics<arbitrary>], iteration_bounds = array<i64: 1, 1, 9>, scalar_prefetch = 0 : i64, scratch_operands = 1 : i64, tpu.core_type = #tpu.core_type<tc>, window_params = [{transform_indices = @transform_0, window_bounds = array<i64: 8, 128>}, {transform_indices = @transform_1, window_bounds = array<i64: 128, 128>}, {transform_indices = @transform_2, window_bounds = array<i64: 1, 128>}, {transform_indices = @transform_3, window_bounds = array<i64: 1, 128>}, {transform_indices = @transform_4, window_bounds = array<i64: 8, 128>}]} {
    %c0_i32 = arith.constant 0 : i32
    %0 = arith.cmpi eq, %arg2, %c0_i32 : i32
    %1 = arith.extui %0 : i1 to i32
    %c0_i32_0 = arith.constant 0 : i32
    %2 = arith.cmpi ne, %1, %c0_i32_0 : i32
    scf.if %2 {
      %cst_9 = arith.constant 0.000000e+00 : f32
      %12 = vector.broadcast %cst_9 : f32 to vector<8x128xf32>
      %c0_10 = arith.constant 0 : index
      %c0_11 = arith.constant 0 : index
      %13 = vector.load %arg8[%c0_10, %c0_11] : memref<8x128xf32, #tpu.memory_space<vmem>>, vector<8x128xf32>
      tpu.vector_store %arg8[%c0_10, %c0_11], %12 {strides = array<i32>} : memref<8x128xf32, #tpu.memory_space<vmem>>, vector<8x128xf32>,
    } else {
    }
    %c0 = arith.constant 0 : index
    %c0_1 = arith.constant 0 : index
    %3 = vector.load %arg8[%c0, %c0_1] : memref<8x128xf32, #tpu.memory_space<vmem>>, vector<8x128xf32>
    %c0_2 = arith.constant 0 : index
    %c0_3 = arith.constant 0 : index
    %4 = vector.load %arg3[%c0_2, %c0_3] : memref<8x128xbf16, #tpu.memory_space<vmem>>, vector<8x128xbf16>
    %c0_4 = arith.constant 0 : index
    %c0_5 = arith.constant 0 : index
    %5 = vector.load %arg4[%c0_4, %c0_5] : memref<128x128xbf16, #tpu.memory_space<vmem>>, vector<128x128xbf16>
    %cst = arith.constant dense<0.000000e+00> : vector<8x128xf32>
    %6 = tpu.matmul %4, %5, %cst {dimension_numbers = #tpu.dot_dimension_numbers<[1], [0], [0], [1], [0, 0, 1, 1], [], []>} : vector<8x128xbf16>, vector<128x128xbf16>, vector<8x128xf32> -> vector<8x128xf32>
    %7 = arith.addf %3, %6 : vector<8x128xf32>
    %c0_6 = arith.constant 0 : index
    %c0_7 = arith.constant 0 : index
    %8 = vector.load %arg8[%c0_6, %c0_7] : memref<8x128xf32, #tpu.memory_space<vmem>>, vector<8x128xf32>
    tpu.vector_store %arg8[%c0_6, %c0_7], %7 {strides = array<i32>} : memref<8x128xf32, #tpu.memory_space<vmem>>, vector<8x128xf32>,
    %c8_i32 = arith.constant 8 : i32
    %9 = arith.cmpi eq, %arg2, %c8_i32 : i32
    %10 = arith.extui %9 : i1 to i32
    %c0_i32_8 = arith.constant 0 : i32
    %11 = arith.cmpi ne, %10, %c0_i32_8 : i32
    scf.if %11 {
      %c0_9 = arith.constant 0 : index
      %c0_10 = arith.constant 0 : index
      %12 = vector.load %arg8[%c0_9, %c0_10] : memref<8x128xf32, #tpu.memory_space<vmem>>, vector<8x128xf32>
      %c0_11 = arith.constant 0 : index
      %c0_12 = arith.constant 0 : index
      %13 = vector.load %arg5[%c0_11, %c0_12] : memref<1x128xf32, #tpu.memory_space<vmem>>, vector<1x128xf32>
      %14 = vector.broadcast %13 : vector<1x128xf32> to vector<8x128xf32>
      %15 = arith.mulf %12, %14 : vector<8x128xf32>
      %c0_13 = arith.constant 0 : index
      %c0_14 = arith.constant 0 : index
      %16 = vector.load %arg6[%c0_13, %c0_14] : memref<1x128xf32, #tpu.memory_space<vmem>>, vector<1x128xf32>
      %17 = vector.broadcast %16 : vector<1x128xf32> to vector<8x128xf32>
      %18 = arith.addf %15, %17 : vector<8x128xf32>
      %cst_15 = arith.constant 0.000000e+00 : f32
      %19 = vector.broadcast %cst_15 : f32 to vector<8x128xf32>
      %20 = arith.maximumf %18, %19 : vector<8x128xf32>
      %21 = arith.truncf %20 : vector<8x128xf32> to vector<8x128xbf16>
      %c0_16 = arith.constant 0 : index
      %c0_17 = arith.constant 0 : index
      %22 = vector.load %arg7[%c0_16, %c0_17] : memref<8x128xbf16, #tpu.memory_space<vmem>>, vector<8x128xbf16>
      tpu.vector_store %arg7[%c0_16, %c0_17], %21 {strides = array<i32>} : memref<8x128xbf16, #tpu.memory_space<vmem>>, vector<8x128xbf16>,
    } else {
    }
    return
  }
  func.func @transform_0(%arg0: i32, %arg1: i32, %arg2: i32) -> (i32, i32) {
    %c0_i32 = arith.constant 0 : i32
    return %arg0, %arg2 : i32, i32
  }
  func.func @transform_1(%arg0: i32, %arg1: i32, %arg2: i32) -> (i32, i32) {
    %c0_i32 = arith.constant 0 : i32
    return %arg2, %arg1 : i32, i32
  }
  func.func @transform_2(%arg0: i32, %arg1: i32, %arg2: i32) -> (i32, i32) {
    %c0_i32 = arith.constant 0 : i32
    %c0_i32_0 = arith.constant 0 : i32
    return %c0_i32, %arg1 : i32, i32
  }
  func.func @transform_3(%arg0: i32, %arg1: i32, %arg2: i32) -> (i32, i32) {
    %c0_i32 = arith.constant 0 : i32
    %c0_i32_0 = arith.constant 0 : i32
    return %c0_i32, %arg1 : i32, i32
  }
  func.func @transform_4(%arg0: i32, %arg1: i32, %arg2: i32) -> (i32, i32) {
    %c0_i32 = arith.constant 0 : i32
    return %arg0, %arg1 : i32, i32
  }
}

module attributes {stable_mosaic.version = 11 : i64} {
  func.func @_mm_affine_kernel(%arg0: i32, %arg1: i32, %arg2: i32, %arg3: memref<8x512xbf16, #tpu.memory_space<vmem>>, %arg4: memref<512x128xbf16, #tpu.memory_space<vmem>>, %arg5: memref<1x128xf32, #tpu.memory_space<vmem>>, %arg6: memref<1x128xf32, #tpu.memory_space<vmem>>, %arg7: memref<8x128xbf16, #tpu.memory_space<vmem>>, %arg8: memref<8x128xf32, #tpu.memory_space<vmem>>) attributes {dimension_semantics = [#tpu.dimension_semantics<parallel>, #tpu.dimension_semantics<parallel>, #tpu.dimension_semantics<arbitrary>], iteration_bounds = array<i64: 1, 2, 1>, scalar_prefetch = 0 : i64, scratch_operands = 1 : i64, tpu.core_type = #tpu.core_type<tc>, window_params = [{transform_indices = @transform_0, window_bounds = array<i64: 8, 512>}, {transform_indices = @transform_1, window_bounds = array<i64: 512, 128>}, {transform_indices = @transform_2, window_bounds = array<i64: 1, 128>}, {transform_indices = @transform_3, window_bounds = array<i64: 1, 128>}, {transform_indices = @transform_4, window_bounds = array<i64: 8, 128>}]} {
    %c0_i32 = arith.constant 0 : i32
    %0 = arith.cmpi eq, %arg2, %c0_i32 : i32
    %1 = arith.extui %0 : i1 to i32
    %c0_i32_0 = arith.constant 0 : i32
    %2 = arith.cmpi ne, %1, %c0_i32_0 : i32
    scf.if %2 {
      %cst_10 = arith.constant 0.000000e+00 : f32
      %12 = vector.broadcast %cst_10 : f32 to vector<8x128xf32>
      %c0_11 = arith.constant 0 : index
      %c0_12 = arith.constant 0 : index
      %13 = vector.load %arg8[%c0_11, %c0_12] : memref<8x128xf32, #tpu.memory_space<vmem>>, vector<8x128xf32>
      tpu.vector_store %arg8[%c0_11, %c0_12], %12 {strides = array<i32>} : memref<8x128xf32, #tpu.memory_space<vmem>>, vector<8x128xf32>,
    } else {
    }
    %c0 = arith.constant 0 : index
    %c0_1 = arith.constant 0 : index
    %3 = vector.load %arg8[%c0, %c0_1] : memref<8x128xf32, #tpu.memory_space<vmem>>, vector<8x128xf32>
    %c0_2 = arith.constant 0 : index
    %c0_3 = arith.constant 0 : index
    %4 = vector.load %arg3[%c0_2, %c0_3] : memref<8x512xbf16, #tpu.memory_space<vmem>>, vector<8x512xbf16>
    %c0_4 = arith.constant 0 : index
    %c0_5 = arith.constant 0 : index
    %5 = vector.load %arg4[%c0_4, %c0_5] : memref<512x128xbf16, #tpu.memory_space<vmem>>, vector<512x128xbf16>
    %cst = arith.constant dense<0.000000e+00> : vector<8x128xf32>
    %6 = tpu.matmul %4, %5, %cst {dimension_numbers = #tpu.dot_dimension_numbers<[1], [0], [0], [1], [0, 0, 1, 1], [], []>} : vector<8x512xbf16>, vector<512x128xbf16>, vector<8x128xf32> -> vector<8x128xf32>
    %7 = arith.addf %3, %6 : vector<8x128xf32>
    %c0_6 = arith.constant 0 : index
    %c0_7 = arith.constant 0 : index
    %8 = vector.load %arg8[%c0_6, %c0_7] : memref<8x128xf32, #tpu.memory_space<vmem>>, vector<8x128xf32>
    tpu.vector_store %arg8[%c0_6, %c0_7], %7 {strides = array<i32>} : memref<8x128xf32, #tpu.memory_space<vmem>>, vector<8x128xf32>,
    %c0_i32_8 = arith.constant 0 : i32
    %9 = arith.cmpi eq, %arg2, %c0_i32_8 : i32
    %10 = arith.extui %9 : i1 to i32
    %c0_i32_9 = arith.constant 0 : i32
    %11 = arith.cmpi ne, %10, %c0_i32_9 : i32
    scf.if %11 {
      %c0_10 = arith.constant 0 : index
      %c0_11 = arith.constant 0 : index
      %12 = vector.load %arg8[%c0_10, %c0_11] : memref<8x128xf32, #tpu.memory_space<vmem>>, vector<8x128xf32>
      %c0_12 = arith.constant 0 : index
      %c0_13 = arith.constant 0 : index
      %13 = vector.load %arg5[%c0_12, %c0_13] : memref<1x128xf32, #tpu.memory_space<vmem>>, vector<1x128xf32>
      %14 = vector.broadcast %13 : vector<1x128xf32> to vector<8x128xf32>
      %15 = arith.mulf %12, %14 : vector<8x128xf32>
      %c0_14 = arith.constant 0 : index
      %c0_15 = arith.constant 0 : index
      %16 = vector.load %arg6[%c0_14, %c0_15] : memref<1x128xf32, #tpu.memory_space<vmem>>, vector<1x128xf32>
      %17 = vector.broadcast %16 : vector<1x128xf32> to vector<8x128xf32>
      %18 = arith.addf %15, %17 : vector<8x128xf32>
      %cst_16 = arith.constant 0.000000e+00 : f32
      %19 = vector.broadcast %cst_16 : f32 to vector<8x128xf32>
      %20 = arith.maximumf %18, %19 : vector<8x128xf32>
      %21 = arith.truncf %20 : vector<8x128xf32> to vector<8x128xbf16>
      %c0_17 = arith.constant 0 : index
      %c0_18 = arith.constant 0 : index
      %22 = vector.load %arg7[%c0_17, %c0_18] : memref<8x128xbf16, #tpu.memory_space<vmem>>, vector<8x128xbf16>
      tpu.vector_store %arg7[%c0_17, %c0_18], %21 {strides = array<i32>} : memref<8x128xbf16, #tpu.memory_space<vmem>>, vector<8x128xbf16>,
    } else {
    }
    return
  }
  func.func @transform_0(%arg0: i32, %arg1: i32, %arg2: i32) -> (i32, i32) {
    %c0_i32 = arith.constant 0 : i32
    return %arg0, %arg2 : i32, i32
  }
  func.func @transform_1(%arg0: i32, %arg1: i32, %arg2: i32) -> (i32, i32) {
    %c0_i32 = arith.constant 0 : i32
    return %arg2, %arg1 : i32, i32
  }
  func.func @transform_2(%arg0: i32, %arg1: i32, %arg2: i32) -> (i32, i32) {
    %c0_i32 = arith.constant 0 : i32
    %c0_i32_0 = arith.constant 0 : i32
    return %c0_i32, %arg1 : i32, i32
  }
  func.func @transform_3(%arg0: i32, %arg1: i32, %arg2: i32) -> (i32, i32) {
    %c0_i32 = arith.constant 0 : i32
    %c0_i32_0 = arith.constant 0 : i32
    return %c0_i32, %arg1 : i32, i32
  }
  func.func @transform_4(%arg0: i32, %arg1: i32, %arg2: i32) -> (i32, i32) {
    %c0_i32 = arith.constant 0 : i32
    return %arg0, %arg1 : i32, i32
  }
}

module attributes {stable_mosaic.version = 11 : i64} {
  func.func @_mm_affine_kernel(%arg0: i32, %arg1: i32, %arg2: i32, %arg3: memref<8x256xbf16, #tpu.memory_space<vmem>>, %arg4: memref<256x128xbf16, #tpu.memory_space<vmem>>, %arg5: memref<1x128xf32, #tpu.memory_space<vmem>>, %arg6: memref<1x128xf32, #tpu.memory_space<vmem>>, %arg7: memref<8x128xbf16, #tpu.memory_space<vmem>>, %arg8: memref<8x128xf32, #tpu.memory_space<vmem>>) attributes {dimension_semantics = [#tpu.dimension_semantics<parallel>, #tpu.dimension_semantics<parallel>, #tpu.dimension_semantics<arbitrary>], iteration_bounds = array<i64: 1, 2, 9>, scalar_prefetch = 0 : i64, scratch_operands = 1 : i64, tpu.core_type = #tpu.core_type<tc>, window_params = [{transform_indices = @transform_0, window_bounds = array<i64: 8, 256>}, {transform_indices = @transform_1, window_bounds = array<i64: 256, 128>}, {transform_indices = @transform_2, window_bounds = array<i64: 1, 128>}, {transform_indices = @transform_3, window_bounds = array<i64: 1, 128>}, {transform_indices = @transform_4, window_bounds = array<i64: 8, 128>}]} {
    %c0_i32 = arith.constant 0 : i32
    %0 = arith.cmpi eq, %arg2, %c0_i32 : i32
    %1 = arith.extui %0 : i1 to i32
    %c0_i32_0 = arith.constant 0 : i32
    %2 = arith.cmpi ne, %1, %c0_i32_0 : i32
    scf.if %2 {
      %cst_9 = arith.constant 0.000000e+00 : f32
      %12 = vector.broadcast %cst_9 : f32 to vector<8x128xf32>
      %c0_10 = arith.constant 0 : index
      %c0_11 = arith.constant 0 : index
      %13 = vector.load %arg8[%c0_10, %c0_11] : memref<8x128xf32, #tpu.memory_space<vmem>>, vector<8x128xf32>
      tpu.vector_store %arg8[%c0_10, %c0_11], %12 {strides = array<i32>} : memref<8x128xf32, #tpu.memory_space<vmem>>, vector<8x128xf32>,
    } else {
    }
    %c0 = arith.constant 0 : index
    %c0_1 = arith.constant 0 : index
    %3 = vector.load %arg8[%c0, %c0_1] : memref<8x128xf32, #tpu.memory_space<vmem>>, vector<8x128xf32>
    %c0_2 = arith.constant 0 : index
    %c0_3 = arith.constant 0 : index
    %4 = vector.load %arg3[%c0_2, %c0_3] : memref<8x256xbf16, #tpu.memory_space<vmem>>, vector<8x256xbf16>
    %c0_4 = arith.constant 0 : index
    %c0_5 = arith.constant 0 : index
    %5 = vector.load %arg4[%c0_4, %c0_5] : memref<256x128xbf16, #tpu.memory_space<vmem>>, vector<256x128xbf16>
    %cst = arith.constant dense<0.000000e+00> : vector<8x128xf32>
    %6 = tpu.matmul %4, %5, %cst {dimension_numbers = #tpu.dot_dimension_numbers<[1], [0], [0], [1], [0, 0, 1, 1], [], []>} : vector<8x256xbf16>, vector<256x128xbf16>, vector<8x128xf32> -> vector<8x128xf32>
    %7 = arith.addf %3, %6 : vector<8x128xf32>
    %c0_6 = arith.constant 0 : index
    %c0_7 = arith.constant 0 : index
    %8 = vector.load %arg8[%c0_6, %c0_7] : memref<8x128xf32, #tpu.memory_space<vmem>>, vector<8x128xf32>
    tpu.vector_store %arg8[%c0_6, %c0_7], %7 {strides = array<i32>} : memref<8x128xf32, #tpu.memory_space<vmem>>, vector<8x128xf32>,
    %c8_i32 = arith.constant 8 : i32
    %9 = arith.cmpi eq, %arg2, %c8_i32 : i32
    %10 = arith.extui %9 : i1 to i32
    %c0_i32_8 = arith.constant 0 : i32
    %11 = arith.cmpi ne, %10, %c0_i32_8 : i32
    scf.if %11 {
      %c0_9 = arith.constant 0 : index
      %c0_10 = arith.constant 0 : index
      %12 = vector.load %arg8[%c0_9, %c0_10] : memref<8x128xf32, #tpu.memory_space<vmem>>, vector<8x128xf32>
      %c0_11 = arith.constant 0 : index
      %c0_12 = arith.constant 0 : index
      %13 = vector.load %arg5[%c0_11, %c0_12] : memref<1x128xf32, #tpu.memory_space<vmem>>, vector<1x128xf32>
      %14 = vector.broadcast %13 : vector<1x128xf32> to vector<8x128xf32>
      %15 = arith.mulf %12, %14 : vector<8x128xf32>
      %c0_13 = arith.constant 0 : index
      %c0_14 = arith.constant 0 : index
      %16 = vector.load %arg6[%c0_13, %c0_14] : memref<1x128xf32, #tpu.memory_space<vmem>>, vector<1x128xf32>
      %17 = vector.broadcast %16 : vector<1x128xf32> to vector<8x128xf32>
      %18 = arith.addf %15, %17 : vector<8x128xf32>
      %cst_15 = arith.constant 0.000000e+00 : f32
      %19 = vector.broadcast %cst_15 : f32 to vector<8x128xf32>
      %20 = arith.maximumf %18, %19 : vector<8x128xf32>
      %21 = arith.truncf %20 : vector<8x128xf32> to vector<8x128xbf16>
      %c0_16 = arith.constant 0 : index
      %c0_17 = arith.constant 0 : index
      %22 = vector.load %arg7[%c0_16, %c0_17] : memref<8x128xbf16, #tpu.memory_space<vmem>>, vector<8x128xbf16>
      tpu.vector_store %arg7[%c0_16, %c0_17], %21 {strides = array<i32>} : memref<8x128xbf16, #tpu.memory_space<vmem>>, vector<8x128xbf16>,
    } else {
    }
    return
  }
  func.func @transform_0(%arg0: i32, %arg1: i32, %arg2: i32) -> (i32, i32) {
    %c0_i32 = arith.constant 0 : i32
    return %arg0, %arg2 : i32, i32
  }
  func.func @transform_1(%arg0: i32, %arg1: i32, %arg2: i32) -> (i32, i32) {
    %c0_i32 = arith.constant 0 : i32
    return %arg2, %arg1 : i32, i32
  }
  func.func @transform_2(%arg0: i32, %arg1: i32, %arg2: i32) -> (i32, i32) {
    %c0_i32 = arith.constant 0 : i32
    %c0_i32_0 = arith.constant 0 : i32
    return %c0_i32, %arg1 : i32, i32
  }
  func.func @transform_3(%arg0: i32, %arg1: i32, %arg2: i32) -> (i32, i32) {
    %c0_i32 = arith.constant 0 : i32
    %c0_i32_0 = arith.constant 0 : i32
    return %c0_i32, %arg1 : i32, i32
  }
  func.func @transform_4(%arg0: i32, %arg1: i32, %arg2: i32) -> (i32, i32) {
    %c0_i32 = arith.constant 0 : i32
    return %arg0, %arg1 : i32, i32
  }
}

module attributes {stable_mosaic.version = 11 : i64} {
  func.func @_mm_affine_kernel(%arg0: i32, %arg1: i32, %arg2: i32, %arg3: memref<8x512xbf16, #tpu.memory_space<vmem>>, %arg4: memref<512x256xbf16, #tpu.memory_space<vmem>>, %arg5: memref<1x256xf32, #tpu.memory_space<vmem>>, %arg6: memref<1x256xf32, #tpu.memory_space<vmem>>, %arg7: memref<8x256xbf16, #tpu.memory_space<vmem>>, %arg8: memref<8x256xf32, #tpu.memory_space<vmem>>) attributes {dimension_semantics = [#tpu.dimension_semantics<parallel>, #tpu.dimension_semantics<parallel>, #tpu.dimension_semantics<arbitrary>], iteration_bounds = array<i64: 1, 4, 1>, scalar_prefetch = 0 : i64, scratch_operands = 1 : i64, tpu.core_type = #tpu.core_type<tc>, window_params = [{transform_indices = @transform_0, window_bounds = array<i64: 8, 512>}, {transform_indices = @transform_1, window_bounds = array<i64: 512, 256>}, {transform_indices = @transform_2, window_bounds = array<i64: 1, 256>}, {transform_indices = @transform_3, window_bounds = array<i64: 1, 256>}, {transform_indices = @transform_4, window_bounds = array<i64: 8, 256>}]} {
    %c0_i32 = arith.constant 0 : i32
    %0 = arith.cmpi eq, %arg2, %c0_i32 : i32
    %1 = arith.extui %0 : i1 to i32
    %c0_i32_0 = arith.constant 0 : i32
    %2 = arith.cmpi ne, %1, %c0_i32_0 : i32
    scf.if %2 {
      %cst_10 = arith.constant 0.000000e+00 : f32
      %12 = vector.broadcast %cst_10 : f32 to vector<8x256xf32>
      %c0_11 = arith.constant 0 : index
      %c0_12 = arith.constant 0 : index
      %13 = vector.load %arg8[%c0_11, %c0_12] : memref<8x256xf32, #tpu.memory_space<vmem>>, vector<8x256xf32>
      tpu.vector_store %arg8[%c0_11, %c0_12], %12 {strides = array<i32>} : memref<8x256xf32, #tpu.memory_space<vmem>>, vector<8x256xf32>,
    } else {
    }
    %c0 = arith.constant 0 : index
    %c0_1 = arith.constant 0 : index
    %3 = vector.load %arg8[%c0, %c0_1] : memref<8x256xf32, #tpu.memory_space<vmem>>, vector<8x256xf32>
    %c0_2 = arith.constant 0 : index
    %c0_3 = arith.constant 0 : index
    %4 = vector.load %arg3[%c0_2, %c0_3] : memref<8x512xbf16, #tpu.memory_space<vmem>>, vector<8x512xbf16>
    %c0_4 = arith.constant 0 : index
    %c0_5 = arith.constant 0 : index
    %5 = vector.load %arg4[%c0_4, %c0_5] : memref<512x256xbf16, #tpu.memory_space<vmem>>, vector<512x256xbf16>
    %cst = arith.constant dense<0.000000e+00> : vector<8x256xf32>
    %6 = tpu.matmul %4, %5, %cst {dimension_numbers = #tpu.dot_dimension_numbers<[1], [0], [0], [1], [0, 0, 1, 1], [], []>} : vector<8x512xbf16>, vector<512x256xbf16>, vector<8x256xf32> -> vector<8x256xf32>
    %7 = arith.addf %3, %6 : vector<8x256xf32>
    %c0_6 = arith.constant 0 : index
    %c0_7 = arith.constant 0 : index
    %8 = vector.load %arg8[%c0_6, %c0_7] : memref<8x256xf32, #tpu.memory_space<vmem>>, vector<8x256xf32>
    tpu.vector_store %arg8[%c0_6, %c0_7], %7 {strides = array<i32>} : memref<8x256xf32, #tpu.memory_space<vmem>>, vector<8x256xf32>,
    %c0_i32_8 = arith.constant 0 : i32
    %9 = arith.cmpi eq, %arg2, %c0_i32_8 : i32
    %10 = arith.extui %9 : i1 to i32
    %c0_i32_9 = arith.constant 0 : i32
    %11 = arith.cmpi ne, %10, %c0_i32_9 : i32
    scf.if %11 {
      %c0_10 = arith.constant 0 : index
      %c0_11 = arith.constant 0 : index
      %12 = vector.load %arg8[%c0_10, %c0_11] : memref<8x256xf32, #tpu.memory_space<vmem>>, vector<8x256xf32>
      %c0_12 = arith.constant 0 : index
      %c0_13 = arith.constant 0 : index
      %13 = vector.load %arg5[%c0_12, %c0_13] : memref<1x256xf32, #tpu.memory_space<vmem>>, vector<1x256xf32>
      %14 = vector.broadcast %13 : vector<1x256xf32> to vector<8x256xf32>
      %15 = arith.mulf %12, %14 : vector<8x256xf32>
      %c0_14 = arith.constant 0 : index
      %c0_15 = arith.constant 0 : index
      %16 = vector.load %arg6[%c0_14, %c0_15] : memref<1x256xf32, #tpu.memory_space<vmem>>, vector<1x256xf32>
      %17 = vector.broadcast %16 : vector<1x256xf32> to vector<8x256xf32>
      %18 = arith.addf %15, %17 : vector<8x256xf32>
      %19 = arith.truncf %18 : vector<8x256xf32> to vector<8x256xbf16>
      %c0_16 = arith.constant 0 : index
      %c0_17 = arith.constant 0 : index
      %20 = vector.load %arg7[%c0_16, %c0_17] : memref<8x256xbf16, #tpu.memory_space<vmem>>, vector<8x256xbf16>
      tpu.vector_store %arg7[%c0_16, %c0_17], %19 {strides = array<i32>} : memref<8x256xbf16, #tpu.memory_space<vmem>>, vector<8x256xbf16>,
    } else {
    }
    return
  }
  func.func @transform_0(%arg0: i32, %arg1: i32, %arg2: i32) -> (i32, i32) {
    %c0_i32 = arith.constant 0 : i32
    return %arg0, %arg2 : i32, i32
  }
  func.func @transform_1(%arg0: i32, %arg1: i32, %arg2: i32) -> (i32, i32) {
    %c0_i32 = arith.constant 0 : i32
    return %arg2, %arg1 : i32, i32
  }
  func.func @transform_2(%arg0: i32, %arg1: i32, %arg2: i32) -> (i32, i32) {
    %c0_i32 = arith.constant 0 : i32
    %c0_i32_0 = arith.constant 0 : i32
    return %c0_i32, %arg1 : i32, i32
  }
  func.func @transform_3(%arg0: i32, %arg1: i32, %arg2: i32) -> (i32, i32) {
    %c0_i32 = arith.constant 0 : i32
    %c0_i32_0 = arith.constant 0 : i32
    return %c0_i32, %arg1 : i32, i32
  }
  func.func @transform_4(%arg0: i32, %arg1: i32, %arg2: i32) -> (i32, i32) {
    %c0_i32 = arith.constant 0 : i32
    return %arg0, %arg1 : i32, i32
  }
}

module attributes {stable_mosaic.version = 11 : i64} {
  func.func @_mm_affine_res_kernel(%arg0: i32, %arg1: i32, %arg2: i32, %arg3: memref<8x256xbf16, #tpu.memory_space<vmem>>, %arg4: memref<256x256xbf16, #tpu.memory_space<vmem>>, %arg5: memref<1x256xf32, #tpu.memory_space<vmem>>, %arg6: memref<1x256xf32, #tpu.memory_space<vmem>>, %arg7: memref<8x256xbf16, #tpu.memory_space<vmem>>, %arg8: memref<8x256xbf16, #tpu.memory_space<vmem>>, %arg9: memref<8x256xf32, #tpu.memory_space<vmem>>) attributes {dimension_semantics = [#tpu.dimension_semantics<parallel>, #tpu.dimension_semantics<parallel>, #tpu.dimension_semantics<arbitrary>], iteration_bounds = array<i64: 1, 4, 1>, scalar_prefetch = 0 : i64, scratch_operands = 1 : i64, tpu.core_type = #tpu.core_type<tc>, window_params = [{transform_indices = @transform_0, window_bounds = array<i64: 8, 256>}, {transform_indices = @transform_1, window_bounds = array<i64: 256, 256>}, {transform_indices = @transform_2, window_bounds = array<i64: 1, 256>}, {transform_indices = @transform_3, window_bounds = array<i64: 1, 256>}, {transform_indices = @transform_4, window_bounds = array<i64: 8, 256>}, {transform_indices = @transform_5, window_bounds = array<i64: 8, 256>}]} {
    %c0_i32 = arith.constant 0 : i32
    %0 = arith.cmpi eq, %arg2, %c0_i32 : i32
    %1 = arith.extui %0 : i1 to i32
    %c0_i32_0 = arith.constant 0 : i32
    %2 = arith.cmpi ne, %1, %c0_i32_0 : i32
    scf.if %2 {
      %cst_10 = arith.constant 0.000000e+00 : f32
      %12 = vector.broadcast %cst_10 : f32 to vector<8x256xf32>
      %c0_11 = arith.constant 0 : index
      %c0_12 = arith.constant 0 : index
      %13 = vector.load %arg9[%c0_11, %c0_12] : memref<8x256xf32, #tpu.memory_space<vmem>>, vector<8x256xf32>
      tpu.vector_store %arg9[%c0_11, %c0_12], %12 {strides = array<i32>} : memref<8x256xf32, #tpu.memory_space<vmem>>, vector<8x256xf32>,
    } else {
    }
    %c0 = arith.constant 0 : index
    %c0_1 = arith.constant 0 : index
    %3 = vector.load %arg9[%c0, %c0_1] : memref<8x256xf32, #tpu.memory_space<vmem>>, vector<8x256xf32>
    %c0_2 = arith.constant 0 : index
    %c0_3 = arith.constant 0 : index
    %4 = vector.load %arg3[%c0_2, %c0_3] : memref<8x256xbf16, #tpu.memory_space<vmem>>, vector<8x256xbf16>
    %c0_4 = arith.constant 0 : index
    %c0_5 = arith.constant 0 : index
    %5 = vector.load %arg4[%c0_4, %c0_5] : memref<256x256xbf16, #tpu.memory_space<vmem>>, vector<256x256xbf16>
    %cst = arith.constant dense<0.000000e+00> : vector<8x256xf32>
    %6 = tpu.matmul %4, %5, %cst {dimension_numbers = #tpu.dot_dimension_numbers<[1], [0], [0], [1], [0, 0, 1, 1], [], []>} : vector<8x256xbf16>, vector<256x256xbf16>, vector<8x256xf32> -> vector<8x256xf32>
    %7 = arith.addf %3, %6 : vector<8x256xf32>
    %c0_6 = arith.constant 0 : index
    %c0_7 = arith.constant 0 : index
    %8 = vector.load %arg9[%c0_6, %c0_7] : memref<8x256xf32, #tpu.memory_space<vmem>>, vector<8x256xf32>
    tpu.vector_store %arg9[%c0_6, %c0_7], %7 {strides = array<i32>} : memref<8x256xf32, #tpu.memory_space<vmem>>, vector<8x256xf32>,
    %c0_i32_8 = arith.constant 0 : i32
    %9 = arith.cmpi eq, %arg2, %c0_i32_8 : i32
    %10 = arith.extui %9 : i1 to i32
    %c0_i32_9 = arith.constant 0 : i32
    %11 = arith.cmpi ne, %10, %c0_i32_9 : i32
    scf.if %11 {
      %c0_10 = arith.constant 0 : index
      %c0_11 = arith.constant 0 : index
      %12 = vector.load %arg9[%c0_10, %c0_11] : memref<8x256xf32, #tpu.memory_space<vmem>>, vector<8x256xf32>
      %c0_12 = arith.constant 0 : index
      %c0_13 = arith.constant 0 : index
      %13 = vector.load %arg5[%c0_12, %c0_13] : memref<1x256xf32, #tpu.memory_space<vmem>>, vector<1x256xf32>
      %14 = vector.broadcast %13 : vector<1x256xf32> to vector<8x256xf32>
      %15 = arith.mulf %12, %14 : vector<8x256xf32>
      %c0_14 = arith.constant 0 : index
      %c0_15 = arith.constant 0 : index
      %16 = vector.load %arg6[%c0_14, %c0_15] : memref<1x256xf32, #tpu.memory_space<vmem>>, vector<1x256xf32>
      %17 = vector.broadcast %16 : vector<1x256xf32> to vector<8x256xf32>
      %18 = arith.addf %15, %17 : vector<8x256xf32>
      %c0_16 = arith.constant 0 : index
      %c0_17 = arith.constant 0 : index
      %19 = vector.load %arg7[%c0_16, %c0_17] : memref<8x256xbf16, #tpu.memory_space<vmem>>, vector<8x256xbf16>
      %20 = arith.extf %19 : vector<8x256xbf16> to vector<8x256xf32>
      %21 = arith.addf %18, %20 : vector<8x256xf32>
      %cst_18 = arith.constant 0.000000e+00 : f32
      %22 = vector.broadcast %cst_18 : f32 to vector<8x256xf32>
      %23 = arith.maximumf %21, %22 : vector<8x256xf32>
      %24 = arith.truncf %23 : vector<8x256xf32> to vector<8x256xbf16>
      %c0_19 = arith.constant 0 : index
      %c0_20 = arith.constant 0 : index
      %25 = vector.load %arg8[%c0_19, %c0_20] : memref<8x256xbf16, #tpu.memory_space<vmem>>, vector<8x256xbf16>
      tpu.vector_store %arg8[%c0_19, %c0_20], %24 {strides = array<i32>} : memref<8x256xbf16, #tpu.memory_space<vmem>>, vector<8x256xbf16>,
    } else {
    }
    return
  }
  func.func @transform_0(%arg0: i32, %arg1: i32, %arg2: i32) -> (i32, i32) {
    %c0_i32 = arith.constant 0 : i32
    return %arg0, %arg2 : i32, i32
  }
  func.func @transform_1(%arg0: i32, %arg1: i32, %arg2: i32) -> (i32, i32) {
    %c0_i32 = arith.constant 0 : i32
    return %arg2, %arg1 : i32, i32
  }
  func.func @transform_2(%arg0: i32, %arg1: i32, %arg2: i32) -> (i32, i32) {
    %c0_i32 = arith.constant 0 : i32
    %c0_i32_0 = arith.constant 0 : i32
    return %c0_i32, %arg1 : i32, i32
  }
  func.func @transform_3(%arg0: i32, %arg1: i32, %arg2: i32) -> (i32, i32) {
    %c0_i32 = arith.constant 0 : i32
    %c0_i32_0 = arith.constant 0 : i32
    return %c0_i32, %arg1 : i32, i32
  }
  func.func @transform_4(%arg0: i32, %arg1: i32, %arg2: i32) -> (i32, i32) {
    %c0_i32 = arith.constant 0 : i32
    return %arg0, %arg1 : i32, i32
  }
  func.func @transform_5(%arg0: i32, %arg1: i32, %arg2: i32) -> (i32, i32) {
    %c0_i32 = arith.constant 0 : i32
    return %arg0, %arg1 : i32, i32
  }
}

module attributes {stable_mosaic.version = 11 : i64} {
  func.func @_gap_kernel(%arg0: i32, %arg1: memref<2x8x1024xbf16, #tpu.memory_space<vmem>>, %arg2: memref<2x1024xf32, #tpu.memory_space<vmem>>, %arg3: memref<2x1024xf32, #tpu.memory_space<vmem>>) attributes {dimension_semantics = [#tpu.dimension_semantics<arbitrary>], iteration_bounds = array<i64: 1>, scalar_prefetch = 0 : i64, scratch_operands = 1 : i64, tpu.core_type = #tpu.core_type<tc>, window_params = [{transform_indices = @transform_0, window_bounds = array<i64: 2, 8, 1024>}, {pipeline_mode = #tpu.pipeline_mode<synchronous>, transform_indices = @transform_1, window_bounds = array<i64: 2, 1024>}]} {
    %c0_i32 = arith.constant 0 : i32
    %0 = arith.cmpi eq, %arg0, %c0_i32 : i32
    %1 = arith.extui %0 : i1 to i32
    %c0_i32_0 = arith.constant 0 : i32
    %2 = arith.cmpi ne, %1, %c0_i32_0 : i32
    scf.if %2 {
      %cst_9 = arith.constant 0.000000e+00 : f32
      %12 = vector.broadcast %cst_9 : f32 to vector<2x1024xf32>
      %c0_10 = arith.constant 0 : index
      %c0_11 = arith.constant 0 : index
      %13 = vector.load %arg3[%c0_10, %c0_11] : memref<2x1024xf32, #tpu.memory_space<vmem>>, vector<2x1024xf32>
      tpu.vector_store %arg3[%c0_10, %c0_11], %12 {strides = array<i32>} : memref<2x1024xf32, #tpu.memory_space<vmem>>, vector<2x1024xf32>,
    } else {
    }
    %c0 = arith.constant 0 : index
    %c0_1 = arith.constant 0 : index
    %3 = vector.load %arg3[%c0, %c0_1] : memref<2x1024xf32, #tpu.memory_space<vmem>>, vector<2x1024xf32>
    %c0_2 = arith.constant 0 : index
    %c0_3 = arith.constant 0 : index
    %c0_4 = arith.constant 0 : index
    %4 = vector.load %arg1[%c0_2, %c0_3, %c0_4] : memref<2x8x1024xbf16, #tpu.memory_space<vmem>>, vector<2x8x1024xbf16>
    %5 = arith.extf %4 : vector<2x8x1024xbf16> to vector<2x8x1024xf32>
    %cst = arith.constant dense<0.000000e+00> : vector<2x1024xf32>
    %6 = vector.multi_reduction <add>, %5, %cst [1] : vector<2x8x1024xf32> to vector<2x1024xf32>
    %7 = arith.addf %3, %6 : vector<2x1024xf32>
    %c0_5 = arith.constant 0 : index
    %c0_6 = arith.constant 0 : index
    %8 = vector.load %arg3[%c0_5, %c0_6] : memref<2x1024xf32, #tpu.memory_space<vmem>>, vector<2x1024xf32>
    tpu.vector_store %arg3[%c0_5, %c0_6], %7 {strides = array<i32>} : memref<2x1024xf32, #tpu.memory_space<vmem>>, vector<2x1024xf32>,
    %c0_i32_7 = arith.constant 0 : i32
    %9 = arith.cmpi eq, %arg0, %c0_i32_7 : i32
    %10 = arith.extui %9 : i1 to i32
    %c0_i32_8 = arith.constant 0 : i32
    %11 = arith.cmpi ne, %10, %c0_i32_8 : i32
    scf.if %11 {
      %c0_9 = arith.constant 0 : index
      %c0_10 = arith.constant 0 : index
      %12 = vector.load %arg3[%c0_9, %c0_10] : memref<2x1024xf32, #tpu.memory_space<vmem>>, vector<2x1024xf32>
      %cst_11 = arith.constant 1.000000e+00 : f32
      %13 = vector.broadcast %cst_11 : f32 to vector<2x1024xf32>
      %14 = arith.mulf %12, %13 : vector<2x1024xf32>
      %c0_12 = arith.constant 0 : index
      %c0_13 = arith.constant 0 : index
      %15 = vector.load %arg2[%c0_12, %c0_13] : memref<2x1024xf32, #tpu.memory_space<vmem>>, vector<2x1024xf32>
      tpu.vector_store %arg2[%c0_12, %c0_13], %14 {strides = array<i32>} : memref<2x1024xf32, #tpu.memory_space<vmem>>, vector<2x1024xf32>,
    } else {
    }
    return
  }
  func.func @transform_0(%arg0: i32) -> (i32, i32, i32) {
    %c0_i32 = arith.constant 0 : i32
    %c0_i32_0 = arith.constant 0 : i32
    %c0_i32_1 = arith.constant 0 : i32
    return %c0_i32, %arg0, %c0_i32_0 : i32, i32, i32
  }
  func.func @transform_1(%arg0: i32) -> (i32, i32) {
    %c0_i32 = arith.constant 0 : i32
    %c0_i32_0 = arith.constant 0 : i32
    %c0_i32_1 = arith.constant 0 : i32
    return %c0_i32, %c0_i32_0 : i32, i32
  }
}

module attributes {stable_mosaic.version = 11 : i64} {
  func.func @_head_kernel(%arg0: i32, %arg1: memref<8x1024xbf16, #tpu.memory_space<vmem>>, %arg2: memref<1024x128xbf16, #tpu.memory_space<vmem>>, %arg3: memref<1x128xf32, #tpu.memory_space<vmem>>, %arg4: memref<1x128xf32, #tpu.memory_space<vmem>>, %arg5: memref<128x128xbf16, #tpu.memory_space<vmem>>, %arg6: memref<1x128xf32, #tpu.memory_space<vmem>>, %arg7: memref<1x128xf32, #tpu.memory_space<vmem>>, %arg8: memref<128x128xbf16, #tpu.memory_space<vmem>>, %arg9: memref<1x128xf32, #tpu.memory_space<vmem>>, %arg10: memref<8x128xf32, #tpu.memory_space<vmem>>) attributes {dimension_semantics = [#tpu.dimension_semantics<arbitrary>], iteration_bounds = array<i64: 1>, scalar_prefetch = 0 : i64, scratch_operands = 0 : i64, tpu.core_type = #tpu.core_type<tc>, window_params = [{pipeline_mode = #tpu.pipeline_mode<synchronous>, transform_indices = @transform_0, window_bounds = array<i64: 8, 1024>}, {pipeline_mode = #tpu.pipeline_mode<synchronous>, transform_indices = @transform_1, window_bounds = array<i64: 1024, 128>}, {pipeline_mode = #tpu.pipeline_mode<synchronous>, transform_indices = @transform_2, window_bounds = array<i64: 1, 128>}, {pipeline_mode = #tpu.pipeline_mode<synchronous>, transform_indices = @transform_3, window_bounds = array<i64: 1, 128>}, {pipeline_mode = #tpu.pipeline_mode<synchronous>, transform_indices = @transform_4, window_bounds = array<i64: 128, 128>}, {pipeline_mode = #tpu.pipeline_mode<synchronous>, transform_indices = @transform_5, window_bounds = array<i64: 1, 128>}, {pipeline_mode = #tpu.pipeline_mode<synchronous>, transform_indices = @transform_6, window_bounds = array<i64: 1, 128>}, {pipeline_mode = #tpu.pipeline_mode<synchronous>, transform_indices = @transform_7, window_bounds = array<i64: 128, 128>}, {pipeline_mode = #tpu.pipeline_mode<synchronous>, transform_indices = @transform_8, window_bounds = array<i64: 1, 128>}, {pipeline_mode = #tpu.pipeline_mode<synchronous>, transform_indices = @transform_9, window_bounds = array<i64: 8, 128>}]} {
    %c0 = arith.constant 0 : index
    %c0_0 = arith.constant 0 : index
    %0 = vector.load %arg1[%c0, %c0_0] : memref<8x1024xbf16, #tpu.memory_space<vmem>>, vector<8x1024xbf16>
    %c0_1 = arith.constant 0 : index
    %c0_2 = arith.constant 0 : index
    %1 = vector.load %arg2[%c0_1, %c0_2] : memref<1024x128xbf16, #tpu.memory_space<vmem>>, vector<1024x128xbf16>
    %cst = arith.constant dense<0.000000e+00> : vector<8x128xf32>
    %2 = tpu.matmul %0, %1, %cst {dimension_numbers = #tpu.dot_dimension_numbers<[1], [0], [0], [1], [0, 0, 1, 1], [], []>} : vector<8x1024xbf16>, vector<1024x128xbf16>, vector<8x128xf32> -> vector<8x128xf32>
    %c0_3 = arith.constant 0 : index
    %c0_4 = arith.constant 0 : index
    %3 = vector.load %arg3[%c0_3, %c0_4] : memref<1x128xf32, #tpu.memory_space<vmem>>, vector<1x128xf32>
    %4 = vector.broadcast %3 : vector<1x128xf32> to vector<8x128xf32>
    %5 = arith.mulf %2, %4 : vector<8x128xf32>
    %c0_5 = arith.constant 0 : index
    %c0_6 = arith.constant 0 : index
    %6 = vector.load %arg4[%c0_5, %c0_6] : memref<1x128xf32, #tpu.memory_space<vmem>>, vector<1x128xf32>
    %7 = vector.broadcast %6 : vector<1x128xf32> to vector<8x128xf32>
    %8 = arith.addf %5, %7 : vector<8x128xf32>
    %cst_7 = arith.constant 0.000000e+00 : f32
    %9 = vector.broadcast %cst_7 : f32 to vector<8x128xf32>
    %10 = arith.maximumf %8, %9 : vector<8x128xf32>
    %11 = arith.truncf %10 : vector<8x128xf32> to vector<8x128xbf16>
    %c0_8 = arith.constant 0 : index
    %c0_9 = arith.constant 0 : index
    %12 = vector.load %arg5[%c0_8, %c0_9] : memref<128x128xbf16, #tpu.memory_space<vmem>>, vector<128x128xbf16>
    %cst_10 = arith.constant dense<0.000000e+00> : vector<8x128xf32>
    %13 = tpu.matmul %11, %12, %cst_10 {dimension_numbers = #tpu.dot_dimension_numbers<[1], [0], [0], [1], [0, 0, 1, 1], [], []>} : vector<8x128xbf16>, vector<128x128xbf16>, vector<8x128xf32> -> vector<8x128xf32>
    %c0_11 = arith.constant 0 : index
    %c0_12 = arith.constant 0 : index
    %14 = vector.load %arg6[%c0_11, %c0_12] : memref<1x128xf32, #tpu.memory_space<vmem>>, vector<1x128xf32>
    %15 = vector.broadcast %14 : vector<1x128xf32> to vector<8x128xf32>
    %16 = arith.mulf %13, %15 : vector<8x128xf32>
    %c0_13 = arith.constant 0 : index
    %c0_14 = arith.constant 0 : index
    %17 = vector.load %arg7[%c0_13, %c0_14] : memref<1x128xf32, #tpu.memory_space<vmem>>, vector<1x128xf32>
    %18 = vector.broadcast %17 : vector<1x128xf32> to vector<8x128xf32>
    %19 = arith.addf %16, %18 : vector<8x128xf32>
    %cst_15 = arith.constant 0.000000e+00 : f32
    %20 = vector.broadcast %cst_15 : f32 to vector<8x128xf32>
    %21 = arith.maximumf %19, %20 : vector<8x128xf32>
    %22 = arith.truncf %21 : vector<8x128xf32> to vector<8x128xbf16>
    %c0_16 = arith.constant 0 : index
    %c0_17 = arith.constant 0 : index
    %23 = vector.load %arg8[%c0_16, %c0_17] : memref<128x128xbf16, #tpu.memory_space<vmem>>, vector<128x128xbf16>
    %cst_18 = arith.constant dense<0.000000e+00> : vector<8x128xf32>
    %24 = tpu.matmul %22, %23, %cst_18 {dimension_numbers = #tpu.dot_dimension_numbers<[1], [0], [0], [1], [0, 0, 1, 1], [], []>} : vector<8x128xbf16>, vector<128x128xbf16>, vector<8x128xf32> -> vector<8x128xf32>
    %c0_19 = arith.constant 0 : index
    %c0_20 = arith.constant 0 : index
    %25 = vector.load %arg9[%c0_19, %c0_20] : memref<1x128xf32, #tpu.memory_space<vmem>>, vector<1x128xf32>
    %26 = vector.broadcast %25 : vector<1x128xf32> to vector<8x128xf32>
    %27 = arith.addf %24, %26 : vector<8x128xf32>
    %c0_21 = arith.constant 0 : index
    %c0_22 = arith.constant 0 : index
    %28 = vector.load %arg10[%c0_21, %c0_22] : memref<8x128xf32, #tpu.memory_space<vmem>>, vector<8x128xf32>
    tpu.vector_store %arg10[%c0_21, %c0_22], %27 {strides = array<i32>} : memref<8x128xf32, #tpu.memory_space<vmem>>, vector<8x128xf32>,
    return
  }
  func.func @transform_0(%arg0: i32) -> (i32, i32) {
    %c0_i32 = arith.constant 0 : i32
    %c0_i32_0 = arith.constant 0 : i32
    %c0_i32_1 = arith.constant 0 : i32
    return %c0_i32, %c0_i32_0 : i32, i32
  }
  func.func @transform_1(%arg0: i32) -> (i32, i32) {
    %c0_i32 = arith.constant 0 : i32
    %c0_i32_0 = arith.constant 0 : i32
    %c0_i32_1 = arith.constant 0 : i32
    return %c0_i32, %c0_i32_0 : i32, i32
  }
  func.func @transform_2(%arg0: i32) -> (i32, i32) {
    %c0_i32 = arith.constant 0 : i32
    %c0_i32_0 = arith.constant 0 : i32
    %c0_i32_1 = arith.constant 0 : i32
    return %c0_i32, %c0_i32_0 : i32, i32
  }
  func.func @transform_3(%arg0: i32) -> (i32, i32) {
    %c0_i32 = arith.constant 0 : i32
    %c0_i32_0 = arith.constant 0 : i32
    %c0_i32_1 = arith.constant 0 : i32
    return %c0_i32, %c0_i32_0 : i32, i32
  }
  func.func @transform_4(%arg0: i32) -> (i32, i32) {
    %c0_i32 = arith.constant 0 : i32
    %c0_i32_0 = arith.constant 0 : i32
    %c0_i32_1 = arith.constant 0 : i32
    return %c0_i32, %c0_i32_0 : i32, i32
  }
  func.func @transform_5(%arg0: i32) -> (i32, i32) {
    %c0_i32 = arith.constant 0 : i32
    %c0_i32_0 = arith.constant 0 : i32
    %c0_i32_1 = arith.constant 0 : i32
    return %c0_i32, %c0_i32_0 : i32, i32
  }
  func.func @transform_6(%arg0: i32) -> (i32, i32) {
    %c0_i32 = arith.constant 0 : i32
    %c0_i32_0 = arith.constant 0 : i32
    %c0_i32_1 = arith.constant 0 : i32
    return %c0_i32, %c0_i32_0 : i32, i32
  }
  func.func @transform_7(%arg0: i32) -> (i32, i32) {
    %c0_i32 = arith.constant 0 : i32
    %c0_i32_0 = arith.constant 0 : i32
    %c0_i32_1 = arith.constant 0 : i32
    return %c0_i32, %c0_i32_0 : i32, i32
  }
  func.func @transform_8(%arg0: i32) -> (i32, i32) {
    %c0_i32 = arith.constant 0 : i32
    %c0_i32_0 = arith.constant 0 : i32
    %c0_i32_1 = arith.constant 0 : i32
    return %c0_i32, %c0_i32_0 : i32, i32
  }
  func.func @transform_9(%arg0: i32) -> (i32, i32) {
    %c0_i32 = arith.constant 0 : i32
    %c0_i32_0 = arith.constant 0 : i32
    %c0_i32_1 = arith.constant 0 : i32
    return %c0_i32, %c0_i32_0 : i32, i32
  }
}

</mosaic_0001>

<bundles_post_ra>
// kernel: _lambda_.20
= control target key start
LH: loop header
LB: loop body
LE: loop exit
PB: predicated region body
PF: predicated region fallthrough
CT: control target
= control target key end

     0   :  { %s1843_s15 = smov 0   ;;  %s1845_s16 = smov 0   ;;  %s2054_s0 = inlined_call_operand.vmem [shape: bf16[512,256], index: 0, kind: input, shape index: {}]   ;;  %s2055_s1 = inlined_call_operand.vmem [shape: bf16[256,128], index: 1, kind: input, shape index: {}]   ;;  %s2056_s2 = inlined_call_operand.vmem [shape: f32[1,128], index: 2, kind: input, shape index: {}]   ;;  %s2057_s3 = inlined_call_operand.vmem [shape: f32[1,128], index: 3, kind: input, shape index: {}]   ;;  %s2058_s4 = inlined_call_operand.vmem [shape: bf16[512,128], index: 4, kind: output, shape index: {}]  }
   0x1   :  { %s1847_s17 = smov 0  }
   0x2 LB: > { %s33_s18 = sadd.s32 1, %s1812_s16  ;;  %p1360_p0 = scmp.ge.s32.totalorder %s1816_s17, 1  ;;  %s1816_s17 = sphi %s1847_s17, %s14_s17   ;;  %s1812_s16 = sphi %s1845_s16, %s2060_s16   ;;  %s1808_s15 = sphi %s1843_s15, %s2059_s15  }
   0x3   : > { %p35_p1 = scmp.ge.s32.totalorder %s33_s18, 2  ;;  %p224_p2 = scmp.lt.s32.totalorder %s1816_s17, 3 }
   0x5   : > { %s2062_s18 = smov (%p35_p1, %s33_s18), 0  ;;  %p225_p3 = pnand %p1360_p0, %p224_p2 }
   0x6   : > { %v1730_v0 = vld [vmem:[%s2055_s1 + $0x40] sm:$0xff] (!%p225_p3)   ;;  %s1361_s21 = sshll.u32 (!%p225_p3), %s1808_s15, 5  ;;  %v1732_v2 = vld [vmem:[%s2055_s1 + $0x48] sm:$0xff] (!%p225_p3)   ;;  %v1734_v4 = vld [vmem:[%s2055_s1 + $0x50] sm:$0xff] (!%p225_p3)  }
   0x7   : > { %228 = sbr.rel (%p225_p3) target bundleno = 322 (0x142), region = 36  ;;  %v1731_v1 = vld [vmem:[%s2055_s1] sm:$0xff] (!%p225_p3)   ;;  %1578 = vmatprep.subr.bf16.mxu0 (!%p225_p3), %v1730_v0  ;;  %1690 = vmatprep.subr.bf16.mxu1 (!%p225_p3), %v1730_v0  ;;  %v1733_v3 = vld [vmem:[%s2055_s1 + $0x8] sm:$0xff] (!%p225_p3)   ;;  %p274_p4 = scmp.lt.s32.totalorder (!%p225_p3), %s1361_s21, 63  ;;  %v1735_v5 = vld [vmem:[%s2055_s1 + $0x10] sm:$0xff] (!%p225_p3)  }
   0x8   : > { %1579 = vmatpush3.bf16.msra.mxu0 (!%p225_p3), %v1731_v1  ;;  %1698 = vmatpush3.bf16.msra.mxu1 (!%p225_p3), %v1731_v1  ;;  %v1736_v6 = vld [vmem:[%s2055_s1 + $0x58] sm:$0xff] (!%p225_p3)   ;;  %v1738_v8 = vld [vmem:[%s2055_s1 + $0x60] sm:$0xff] (!%p225_p3)   ;;  %v1740_v10 = vld [vmem:[%s2055_s1 + $0x68] sm:$0xff] (!%p225_p3)  }
   0x9   : > { %1580 = vmatprep.subr.bf16.mxu0 (!%p225_p3), %v1732_v2  ;;  %1691 = vmatprep.subr.bf16.mxu1 (!%p225_p3), %v1732_v2  ;;  %v1737_v7 = vld [vmem:[%s2055_s1 + $0x18] sm:$0xff] (!%p225_p3)   ;;  %v1739_v9 = vld [vmem:[%s2055_s1 + $0x20] sm:$0xff] (!%p225_p3)   ;;  %v1741_v13 = vld [vmem:[%s2055_s1 + $0x28] sm:$0xff] (!%p225_p3)  }
   0xa   : > { %v1742_v14 = vld [vmem:[%s2055_s1 + $0x70] sm:$0xff] (!%p225_p3)   ;;  %v1744_v16 = vld [vmem:[%s2055_s1 + $0x78] sm:$0xff] (!%p225_p3)   ;;  %v1952_v51 = vld [vmem:[%s2056_s2] ss:$0 sm:$0xff] (!%p225_p3) }
   0xb   : > { %v1743_v15 = vld [vmem:[%s2055_s1 + $0x30] sm:$0xff] (!%p225_p3)   ;;  %v1745_v17 = vld [vmem:[%s2055_s1 + $0x38] sm:$0xff] (!%p225_p3)   ;;  %v1957_v57 = vld [vmem:[%s2057_s3] ss:$0 sm:$0xff] (!%p225_p3) }
   0xc   : > { %1581 = vmatpush3.bf16.msra.mxu0 (!%p225_p3), %v1733_v3  ;;  %1699 = vmatpush3.bf16.msra.mxu1 (!%p225_p3), %v1733_v3 }
   0xd   : > { %1582 = vmatprep.subr.bf16.mxu0 (!%p225_p3), %v1734_v4  ;;  %1692 = vmatprep.subr.bf16.mxu1 (!%p225_p3), %v1734_v4 }
   0xe   : > { %s2064_s21 = smov (!%p274_p4, %s1361_s21), 63 }
   0xf   : > { %s1450_s10 = sshll.u32 %s2064_s21, 3  ;;  %s1365_s12 = sshll.u32 %s2064_s21, 2 }
  0x10   : > { %1583 = vmatpush3.bf16.msra.mxu0 %v1735_v5  ;;  %1700 = vmatpush3.bf16.msra.mxu1 %v1735_v5  ;;  %s1894_s15 = scalar_lea.vmem %s2054_s0, %s1450_s10  ;;  %s1971_s21 = scalar_lea.vmem %s2058_s4, %s1365_s12 }
  0x11   : > { %1584 = vmatprep.subr.bf16.mxu0 %v1736_v6  ;;  %1693 = vmatprep.subr.bf16.mxu1 %v1736_v6  ;;  %v1748_v11 = vld [vmem:[%s1894_s15 + $0x4] ss:$8 sps:$4 sm:$0xff]   ;;  %v1746_v18 = vld [vmem:[%s1894_s15] ss:$8 sps:$4 sm:$0xff]   ;;  %v1752_v20 = vld [vmem:[%s1894_s15 + $0x14] ss:$8 sps:$4 sm:$0xff]  }
  0x12   : > { %v1751_v12 = vld [vmem:[%s1894_s15 + $0x84] ss:$8 sps:$4 sm:$0xff]   ;;  %729 = vmatprep.mubr.bf16.mxu0 %v1748_v11  ;;  %v1749_v19 = vld [vmem:[%s1894_s15 + $0x80] ss:$8 sps:$4 sm:$0xff]   ;;  %v1754_v21 = vld [vmem:[%s1894_s15 + $0x94] ss:$8 sps:$4 sm:$0xff]  }
  0x13   : > { %793 = vmatprep.mubr.bf16.mxu1 %v1751_v12  ;;  %v1756_v22 = vld [vmem:[%s1894_s15 + $0x10] ss:$8 sps:$4 sm:$0xff]   ;;  %v1758_v24 = vld [vmem:[%s1894_s15 + $0x24] ss:$8 sps:$4 sm:$0xff]   ;;  %v1762_v26 = vld [vmem:[%s1894_s15 + $0x20] ss:$8 sps:$4 sm:$0xff]  }
  0x14   : > { %1585 = vmatpush3.bf16.msra.mxu0 %v1737_v7  ;;  %1701 = vmatpush3.bf16.msra.mxu1 %v1737_v7  ;;  %v1757_v23 = vld [vmem:[%s1894_s15 + $0x90] ss:$8 sps:$4 sm:$0xff]   ;;  %v1760_v25 = vld [vmem:[%s1894_s15 + $0xa4] ss:$8 sps:$4 sm:$0xff]   ;;  %v1763_v27 = vld [vmem:[%s1894_s15 + $0xa0] ss:$8 sps:$4 sm:$0xff]  }
  0x15   : > { %1586 = vmatprep.subr.bf16.mxu0 %v1738_v8  ;;  %1694 = vmatprep.subr.bf16.mxu1 %v1738_v8  ;;  %v1764_v28 = vld [vmem:[%s1894_s15 + $0x34] ss:$8 sps:$4 sm:$0xff]   ;;  %v1768_v30 = vld [vmem:[%s1894_s15 + $0x30] ss:$8 sps:$4 sm:$0xff]   ;;  %v1770_v32 = vld [vmem:[%s1894_s15 + $0x44] ss:$8 sps:$4 sm:$0xff]  }
  0x16   : > { %v1766_v29 = vld [vmem:[%s1894_s15 + $0xb4] ss:$8 sps:$4 sm:$0xff]   ;;  %v1769_v31 = vld [vmem:[%s1894_s15 + $0xb0] ss:$8 sps:$4 sm:$0xff]   ;;  %v1772_v33 = vld [vmem:[%s1894_s15 + $0xc4] ss:$8 sps:$4 sm:$0xff]  }
  0x17   : > { %v1774_v34 = vld [vmem:[%s1894_s15 + $0x40] ss:$8 sps:$4 sm:$0xff]   ;;  %v1776_v36 = vld [vmem:[%s1894_s15 + $0x54] ss:$8 sps:$4 sm:$0xff]   ;;  %v1780_v38 = vld [vmem:[%s1894_s15 + $0x50] ss:$8 sps:$4 sm:$0xff]  }
  0x18   : > { %1587 = vmatpush3.bf16.msra.mxu0 %v1739_v9  ;;  %1702 = vmatpush3.bf16.msra.mxu1 %v1739_v9  ;;  %v1775_v35 = vld [vmem:[%s1894_s15 + $0xc0] ss:$8 sps:$4 sm:$0xff]   ;;  %v1778_v37 = vld [vmem:[%s1894_s15 + $0xd4] ss:$8 sps:$4 sm:$0xff]   ;;  %v1781_v39 = vld [vmem:[%s1894_s15 + $0xd0] ss:$8 sps:$4 sm:$0xff]  }
  0x19   : > { %1588 = vmatprep.subr.bf16.mxu0 %v1740_v10  ;;  %1695 = vmatprep.subr.bf16.mxu1 %v1740_v10  ;;  %v1782_v40 = vld [vmem:[%s1894_s15 + $0x64] ss:$8 sps:$4 sm:$0xff]   ;;  %v1786_v42 = vld [vmem:[%s1894_s15 + $0x60] ss:$8 sps:$4 sm:$0xff]   ;;  %v1788_v44 = vld [vmem:[%s1894_s15 + $0x74] ss:$8 sps:$4 sm:$0xff]  }
  0x1a   : > { %v1784_v41 = vld [vmem:[%s1894_s15 + $0xe4] ss:$8 sps:$4 sm:$0xff]   ;;  %v1787_v43 = vld [vmem:[%s1894_s15 + $0xe0] ss:$8 sps:$4 sm:$0xff]   ;;  %v1790_v45 = vld [vmem:[%s1894_s15 + $0xf4] ss:$8 sps:$4 sm:$0xff]  }
  0x1b   : > { %v1792_v46 = vld [vmem:[%s1894_s15 + $0x70] ss:$8 sps:$4 sm:$0xff]  }
  0x1c   : > { %1589 = vmatpush3.bf16.msra.mxu0 %v1741_v13  ;;  %1703 = vmatpush3.bf16.msra.mxu1 %v1741_v13  ;;  %v1793_v47 = vld [vmem:[%s1894_s15 + $0xf0] ss:$8 sps:$4 sm:$0xff]  }
  0x1d   : > { %1590 = vmatprep.subr.bf16.mxu0 %v1742_v14  ;;  %1696 = vmatprep.subr.bf16.mxu1 %v1742_v14 }
  0x20   : > { %1591 = vmatpush3.bf16.msra.mxu0 %v1743_v15  ;;  %1704 = vmatpush3.bf16.msra.mxu1 %v1743_v15 }
  0x21   : > { %1592 = vmatprep.subr.bf16.mxu0 %v1744_v16  ;;  %1697 = vmatprep.subr.bf16.mxu1 %v1744_v16 }
  0x24   : > { %1593 = vmatpush3.bf16.msra.mxu0 %v1745_v17  ;;  %1705 = vmatpush3.bf16.msra.mxu1 %v1745_v17 }
  0x27   : > { %730 = vmatmul.mubr.bf16.vlgmr.msra.gmra.mrb[0].mxu0 %v1746_v18  ;;  %794 = vmatmul.mubr.bf16.vlgmr.msra.gmra.mrb[0].mxu1 %v1749_v19 }
  0x28   : > { %737 = vmatprep.mubr.bf16.mxu0 %v1752_v20  ;;  %801 = vmatprep.mubr.bf16.mxu1 %v1754_v21 }
  0x2f   : > { %738 = vmatmul.mubr.bf16.gmra.mrb[4].mxu0 %v1756_v22  ;;  %802 = vmatmul.mubr.bf16.gmra.mrb[4].mxu1 %v1757_v23 }
  0x30   : > { %745 = vmatprep.mubr.bf16.mxu0 %v1758_v24  ;;  %809 = vmatprep.mubr.bf16.mxu1 %v1760_v25 }
  0x37   : > { %746 = vmatmul.mubr.bf16.gmra.mrb[8].mxu0 %v1762_v26  ;;  %810 = vmatmul.mubr.bf16.gmra.mrb[8].mxu1 %v1763_v27 }
  0x38   : > { %753 = vmatprep.mubr.bf16.mxu0 %v1764_v28  ;;  %817 = vmatprep.mubr.bf16.mxu1 %v1766_v29 }
  0x3f   : > { %754 = vmatmul.mubr.bf16.gmra.mrb[12].mxu0 %v1768_v30  ;;  %818 = vmatmul.mubr.bf16.gmra.mrb[12].mxu1 %v1769_v31 }
  0x40   : > { %761 = vmatprep.mubr.bf16.mxu0 %v1770_v32  ;;  %825 = vmatprep.mubr.bf16.mxu1 %v1772_v33 }
  0x47   : > { %762 = vmatmul.mubr.bf16.gmra.mrb[16].mxu0 %v1774_v34  ;;  %826 = vmatmul.mubr.bf16.gmra.mrb[16].mxu1 %v1775_v35 }
  0x48   : > { %769 = vmatprep.mubr.bf16.mxu0 %v1776_v36  ;;  %833 = vmatprep.mubr.bf16.mxu1 %v1778_v37 }
  0x4f   : > { %770 = vmatmul.mubr.bf16.gmra.mrb[20].mxu0 %v1780_v38  ;;  %834 = vmatmul.mubr.bf16.gmra.mrb[20].mxu1 %v1781_v39 }
  0x50   : > { %777 = vmatprep.mubr.bf16.mxu0 %v1782_v40  ;;  %841 = vmatprep.mubr.bf16.mxu1 %v1784_v41 }
  0x57   : > { %778 = vmatmul.mubr.bf16.gmra.mrb[24].mxu0 %v1786_v42  ;;  %842 = vmatmul.mubr.bf16.gmra.mrb[24].mxu1 %v1787_v43 }
  0x58   : > { %785 = vmatprep.mubr.bf16.mxu0 %v1788_v44  ;;  %849 = vmatprep.mubr.bf16.mxu1 %v1790_v45 }
  0x5f   : > { %786 = vmatmul.mubr.bf16.gmra.mrb[28].mxu0 %v1792_v46  ;;  %850 = vmatmul.mubr.bf16.gmra.mrb[28].mxu1 %v1793_v47 }
  0xfa   : > { %v1594_v48 = vpop.f32.mrb[0].mxu0  ;;  %v1642_v49 = vpop.f32.mrb[0].mxu1 }
  0xfb   : > { %v1595_v50 = vpop.f32.mrb[1].mxu0  ;;  %v1643_v52 = vpop.f32.mrb[1].mxu1 }
  0xfc   : > { %v1596_v53 = vadd.f32 %v1595_v50, %v1594_v48  ;;  %v1644_v54 = vadd.f32 %v1643_v52, %v1642_v49  ;;  %v1597_v55 = vpop.f32.mrb[2].mxu0  ;;  %v1645_v56 = vpop.f32.mrb[2].mxu1 }
  0xfd   : > { %v1598_v58 = vpop.f32.mrb[3].mxu0  ;;  %v1646_v59 = vpop.f32.mrb[3].mxu1 }
  0xfe   : > { %v964_v60 = vmul.f32 %v1596_v53, %v1952_v51  ;;  %v980_v61 = vmul.f32 %v1644_v54, %v1952_v51  ;;  %v1599_v62 = vadd.f32 %v1598_v58, %v1597_v55  ;;  %v1647_v63 = vadd.f32 %v1646_v59, %v1645_v56 }
 0x100   : > { %v1003_v0 = vadd.f32 %v1957_v57, %v964_v60  ;;  %v1019_v1 = vadd.f32 %v1957_v57, %v980_v61  ;;  %v965_v2 = vmul.f32 %v1599_v62, %v1952_v51  ;;  %v981_v3 = vmul.f32 %v1647_v63, %v1952_v51 }
 0x102   : > { %v1004_v4 = vadd.f32 %v1957_v57, %v965_v2  ;;  %v1020_v5 = vadd.f32 %v1957_v57, %v981_v3  ;;  %v1600_v6 = vpop.f32.mrb[4].mxu0  ;;  %v1648_v7 = vpop.f32.mrb[4].mxu1  ;;  %v1035_v8 = vmax.f32 %v1003_v0, 0.0  ;;  %v1051_v9 = vmax.f32 %v1019_v1, 0.0 }
 0x103   : > { %v1601_v10 = vpop.f32.mrb[5].mxu0  ;;  %v1649_v11 = vpop.f32.mrb[5].mxu1 }
 0x104   : > { %v1036_v12 = vmax.f32 %v1004_v4, 0.0  ;;  %v1052_v13 = vmax.f32 %v1020_v5, 0.0  ;;  %v1602_v14 = vadd.f32 %v1601_v10, %v1600_v6  ;;  %v1650_v15 = vadd.f32 %v1649_v11, %v1648_v7  ;;  %v1603_v16 = vpop.f32.mrb[6].mxu0  ;;  %v1651_v17 = vpop.f32.mrb[6].mxu1 }
 0x105   : > { %v1604_v18 = vpop.f32.mrb[7].mxu0  ;;  %v1652_v19 = vpop.f32.mrb[7].mxu1 }
 0x106   : > { %v1486_v20 = vpack.c.bf16 %v1036_v12, %v1035_v8  ;;  %v1526_v21 = vpack.c.bf16 %v1052_v13, %v1051_v9  ;;  %v966_v22 = vmul.f32 %v1602_v14, %v1952_v51  ;;  %v982_v23 = vmul.f32 %v1650_v15, %v1952_v51 }
 0x107   : > { %v1605_v24 = vadd.f32 %v1604_v18, %v1603_v16  ;;  %v1653_v25 = vadd.f32 %v1652_v19, %v1651_v17 }
 0x108   : > { %1487 = vst [vmem:[%s1971_s21] sm:$0xff] %v1486_v20   ;;  %1570 = vst [vmem:[%s1971_s21 + $0x40] sm:$0xff] %v1526_v21   ;;  %v1005_v26 = vadd.f32 %v1957_v57, %v966_v22  ;;  %v1021_v27 = vadd.f32 %v1957_v57, %v982_v23 }
 0x109   : > { %v967_v28 = vmul.f32 %v1605_v24, %v1952_v51  ;;  %v983_v29 = vmul.f32 %v1653_v25, %v1952_v51 }
 0x10a   : > { %v1606_v30 = vpop.f32.mrb[8].mxu0  ;;  %v1654_v31 = vpop.f32.mrb[8].mxu1  ;;  %v1037_v40 = vmax.f32 %v1005_v26, 0.0  ;;  %v1053_v41 = vmax.f32 %v1021_v27, 0.0 }
 0x10b   : > { %v1006_v32 = vadd.f32 %v1957_v57, %v967_v28  ;;  %v1022_v33 = vadd.f32 %v1957_v57, %v983_v29  ;;  %v1607_v34 = vpop.f32.mrb[9].mxu0  ;;  %v1655_v35 = vpop.f32.mrb[9].mxu1 }
 0x10c   : > { %v1608_v36 = vadd.f32 %v1607_v34, %v1606_v30  ;;  %v1656_v37 = vadd.f32 %v1655_v35, %v1654_v31  ;;  %v1609_v38 = vpop.f32.mrb[10].mxu0  ;;  %v1657_v39 = vpop.f32.mrb[10].mxu1 }
 0x10d   : > { %v1038_v42 = vmax.f32 %v1006_v32, 0.0  ;;  %v1054_v43 = vmax.f32 %v1022_v33, 0.0  ;;  %v1610_v44 = vpop.f32.mrb[11].mxu0  ;;  %v1658_v45 = vpop.f32.mrb[11].mxu1 }
 0x10e   : > { %v968_v46 = vmul.f32 %v1608_v36, %v1952_v51  ;;  %v984_v47 = vmul.f32 %v1656_v37, %v1952_v51  ;;  %v1611_v48 = vadd.f32 %v1610_v44, %v1609_v38  ;;  %v1659_v49 = vadd.f32 %v1658_v45, %v1657_v39 }
 0x10f   : > { %v1491_v50 = vpack.c.bf16 %v1038_v42, %v1037_v40  ;;  %v1531_v52 = vpack.c.bf16 %v1054_v43, %v1053_v41 }
 0x110   : > { %v1007_v53 = vadd.f32 %v1957_v57, %v968_v46  ;;  %v1023_v54 = vadd.f32 %v1957_v57, %v984_v47  ;;  %v969_v55 = vmul.f32 %v1611_v48, %v1952_v51  ;;  %v985_v56 = vmul.f32 %v1659_v49, %v1952_v51 }
 0x111   : > { %1563 = vst [vmem:[%s1971_s21 + $0x8] sm:$0xff] %v1491_v50   ;;  %1571 = vst [vmem:[%s1971_s21 + $0x48] sm:$0xff] %v1531_v52  }
 0x112   : > { %v1008_v58 = vadd.f32 %v1957_v57, %v969_v55  ;;  %v1024_v59 = vadd.f32 %v1957_v57, %v985_v56  ;;  %v1612_v60 = vpop.f32.mrb[12].mxu0  ;;  %v1660_v61 = vpop.f32.mrb[12].mxu1  ;;  %v1039_v62 = vmax.f32 %v1007_v53, 0.0  ;;  %v1055_v63 = vmax.f32 %v1023_v54, 0.0 }
 0x113   : > { %v1613_v0 = vpop.f32.mrb[13].mxu0  ;;  %v1661_v1 = vpop.f32.mrb[13].mxu1 }
 0x114   : > { %v1040_v2 = vmax.f32 %v1008_v58, 0.0  ;;  %v1056_v3 = vmax.f32 %v1024_v59, 0.0  ;;  %v1614_v4 = vadd.f32 %v1613_v0, %v1612_v60  ;;  %v1662_v5 = vadd.f32 %v1661_v1, %v1660_v61  ;;  %v1615_v6 = vpop.f32.mrb[14].mxu0  ;;  %v1663_v7 = vpop.f32.mrb[14].mxu1 }
 0x115   : > { %v1616_v8 = vpop.f32.mrb[15].mxu0  ;;  %v1664_v9 = vpop.f32.mrb[15].mxu1 }
 0x116   : > { %v1496_v10 = vpack.c.bf16 %v1040_v2, %v1039_v62  ;;  %v1536_v11 = vpack.c.bf16 %v1056_v3, %v1055_v63  ;;  %v970_v12 = vmul.f32 %v1614_v4, %v1952_v51  ;;  %v986_v13 = vmul.f32 %v1662_v5, %v1952_v51 }
 0x117   : > { %v1617_v14 = vadd.f32 %v1616_v8, %v1615_v6  ;;  %v1665_v15 = vadd.f32 %v1664_v9, %v1663_v7 }
 0x118   : > { %1564 = vst [vmem:[%s1971_s21 + $0x10] sm:$0xff] %v1496_v10   ;;  %1572 = vst [vmem:[%s1971_s21 + $0x50] sm:$0xff] %v1536_v11   ;;  %v1009_v16 = vadd.f32 %v1957_v57, %v970_v12  ;;  %v1025_v17 = vadd.f32 %v1957_v57, %v986_v13 }
 0x119   : > { %v971_v18 = vmul.f32 %v1617_v14, %v1952_v51  ;;  %v987_v19 = vmul.f32 %v1665_v15, %v1952_v51 }
 0x11a   : > { %v1618_v20 = vpop.f32.mrb[16].mxu0  ;;  %v1666_v21 = vpop.f32.mrb[16].mxu1  ;;  %v1041_v30 = vmax.f32 %v1009_v16, 0.0  ;;  %v1057_v31 = vmax.f32 %v1025_v17, 0.0 }
 0x11b   : > { %v1010_v22 = vadd.f32 %v1957_v57, %v971_v18  ;;  %v1026_v23 = vadd.f32 %v1957_v57, %v987_v19  ;;  %v1619_v24 = vpop.f32.mrb[17].mxu0  ;;  %v1667_v25 = vpop.f32.mrb[17].mxu1 }
 0x11c   : > { %v1620_v26 = vadd.f32 %v1619_v24, %v1618_v20  ;;  %v1668_v27 = vadd.f32 %v1667_v25, %v1666_v21  ;;  %v1621_v28 = vpop.f32.mrb[18].mxu0  ;;  %v1669_v29 = vpop.f32.mrb[18].mxu1 }
 0x11d   : > { %v1042_v32 = vmax.f32 %v1010_v22, 0.0  ;;  %v1058_v33 = vmax.f32 %v1026_v23, 0.0  ;;  %v1622_v34 = vpop.f32.mrb[19].mxu0  ;;  %v1670_v35 = vpop.f32.mrb[19].mxu1 }
 0x11e   : > { %v972_v36 = vmul.f32 %v1620_v26, %v1952_v51  ;;  %v988_v37 = vmul.f32 %v1668_v27, %v1952_v51  ;;  %v1623_v38 = vadd.f32 %v1622_v34, %v1621_v28  ;;  %v1671_v39 = vadd.f32 %v1670_v35, %v1669_v29 }
 0x11f   : > { %v1501_v40 = vpack.c.bf16 %v1042_v32, %v1041_v30  ;;  %v1541_v41 = vpack.c.bf16 %v1058_v33, %v1057_v31 }
 0x120   : > { %v1011_v42 = vadd.f32 %v1957_v57, %v972_v36  ;;  %v1027_v43 = vadd.f32 %v1957_v57, %v988_v37  ;;  %v973_v44 = vmul.f32 %v1623_v38, %v1952_v51  ;;  %v989_v45 = vmul.f32 %v1671_v39, %v1952_v51 }
 0x121   : > { %1565 = vst [vmem:[%s1971_s21 + $0x18] sm:$0xff] %v1501_v40   ;;  %1573 = vst [vmem:[%s1971_s21 + $0x58] sm:$0xff] %v1541_v41  }
 0x122   : > { %v1012_v46 = vadd.f32 %v1957_v57, %v973_v44  ;;  %v1028_v47 = vadd.f32 %v1957_v57, %v989_v45  ;;  %v1624_v48 = vpop.f32.mrb[20].mxu0  ;;  %v1672_v49 = vpop.f32.mrb[20].mxu1  ;;  %v1043_v50 = vmax.f32 %v1011_v42, 0.0  ;;  %v1059_v52 = vmax.f32 %v1027_v43, 0.0 }
 0x123   : > { %v1625_v53 = vpop.f32.mrb[21].mxu0  ;;  %v1673_v54 = vpop.f32.mrb[21].mxu1 }
 0x124   : > { %v1044_v55 = vmax.f32 %v1012_v46, 0.0  ;;  %v1060_v56 = vmax.f32 %v1028_v47, 0.0  ;;  %v1626_v58 = vadd.f32 %v1625_v53, %v1624_v48  ;;  %v1674_v59 = vadd.f32 %v1673_v54, %v1672_v49  ;;  %v1627_v60 = vpop.f32.mrb[22].mxu0  ;;  %v1675_v61 = vpop.f32.mrb[22].mxu1 }
 0x125   : > { %v1628_v62 = vpop.f32.mrb[23].mxu0  ;;  %v1676_v63 = vpop.f32.mrb[23].mxu1 }
 0x126   : > { %v1506_v0 = vpack.c.bf16 %v1044_v55, %v1043_v50  ;;  %v1546_v1 = vpack.c.bf16 %v1060_v56, %v1059_v52  ;;  %v974_v2 = vmul.f32 %v1626_v58, %v1952_v51  ;;  %v990_v3 = vmul.f32 %v1674_v59, %v1952_v51 }
 0x127   : > { %v1629_v4 = vadd.f32 %v1628_v62, %v1627_v60  ;;  %v1677_v5 = vadd.f32 %v1676_v63, %v1675_v61 }
 0x128   : > { %1566 = vst [vmem:[%s1971_s21 + $0x20] sm:$0xff] %v1506_v0   ;;  %1574 = vst [vmem:[%s1971_s21 + $0x60] sm:$0xff] %v1546_v1   ;;  %v1013_v6 = vadd.f32 %v1957_v57, %v974_v2  ;;  %v1029_v7 = vadd.f32 %v1957_v57, %v990_v3 }
 0x129   : > { %v975_v8 = vmul.f32 %v1629_v4, %v1952_v51  ;;  %v991_v9 = vmul.f32 %v1677_v5, %v1952_v51 }
 0x12a   : > { %v1630_v10 = vpop.f32.mrb[24].mxu0  ;;  %v1678_v11 = vpop.f32.mrb[24].mxu1  ;;  %v1045_v20 = vmax.f32 %v1013_v6, 0.0  ;;  %v1061_v21 = vmax.f32 %v1029_v7, 0.0 }
 0x12b   : > { %v1014_v12 = vadd.f32 %v1957_v57, %v975_v8  ;;  %v1030_v13 = vadd.f32 %v1957_v57, %v991_v9  ;;  %v1631_v14 = vpop.f32.mrb[25].mxu0  ;;  %v1679_v15 = vpop.f32.mrb[25].mxu1 }
 0x12c   : > { %v1632_v16 = vadd.f32 %v1631_v14, %v1630_v10  ;;  %v1680_v17 = vadd.f32 %v1679_v15, %v1678_v11  ;;  %v1633_v18 = vpop.f32.mrb[26].mxu0  ;;  %v1681_v19 = vpop.f32.mrb[26].mxu1 }
 0x12d   : > { %v1046_v22 = vmax.f32 %v1014_v12, 0.0  ;;  %v1062_v23 = vmax.f32 %v1030_v13, 0.0  ;;  %v1634_v24 = vpop.f32.mrb[27].mxu0  ;;  %v1682_v25 = vpop.f32.mrb[27].mxu1 }
 0x12e   : > { %v976_v26 = vmul.f32 %v1632_v16, %v1952_v51  ;;  %v992_v27 = vmul.f32 %v1680_v17, %v1952_v51  ;;  %v1635_v28 = vadd.f32 %v1634_v24, %v1633_v18  ;;  %v1683_v29 = vadd.f32 %v1682_v25, %v1681_v19 }
 0x12f   : > { %v1511_v30 = vpack.c.bf16 %v1046_v22, %v1045_v20  ;;  %v1551_v31 = vpack.c.bf16 %v1062_v23, %v1061_v21 }
 0x130   : > { %v1015_v32 = vadd.f32 %v1957_v57, %v976_v26  ;;  %v1031_v33 = vadd.f32 %v1957_v57, %v992_v27  ;;  %v977_v34 = vmul.f32 %v1635_v28, %v1952_v51  ;;  %v993_v35 = vmul.f32 %v1683_v29, %v1952_v51 }
 0x131   : > { %1567 = vst [vmem:[%s1971_s21 + $0x28] sm:$0xff] %v1511_v30   ;;  %1575 = vst [vmem:[%s1971_s21 + $0x68] sm:$0xff] %v1551_v31  }
 0x132   : > { %v1016_v36 = vadd.f32 %v1957_v57, %v977_v34  ;;  %v1032_v37 = vadd.f32 %v1957_v57, %v993_v35  ;;  %v1636_v38 = vpop.f32.mrb[28].mxu0  ;;  %v1684_v39 = vpop.f32.mrb[28].mxu1  ;;  %v1047_v40 = vmax.f32 %v1015_v32, 0.0  ;;  %v1063_v41 = vmax.f32 %v1031_v33, 0.0 }
 0x133   : > { %v1637_v42 = vpop.f32.mrb[29].mxu0  ;;  %v1685_v43 = vpop.f32.mrb[29].mxu1 }
 0x134   : > { %v1048_v44 = vmax.f32 %v1016_v36, 0.0  ;;  %v1064_v45 = vmax.f32 %v1032_v37, 0.0  ;;  %v1638_v46 = vadd.f32 %v1637_v42, %v1636_v38  ;;  %v1686_v47 = vadd.f32 %v1685_v43, %v1684_v39  ;;  %v1639_v48 = vpop.f32.mrb[30].mxu0  ;;  %v1687_v49 = vpop.f32.mrb[30].mxu1 }
 0x135   : > { %v1640_v50 = vpop.f32.mrb[31].mxu0  ;;  %v1688_v52 = vpop.f32.mrb[31].mxu1 }
 0x136   : > { %v1516_v53 = vpack.c.bf16 %v1048_v44, %v1047_v40  ;;  %v1556_v54 = vpack.c.bf16 %v1064_v45, %v1063_v41  ;;  %v978_v55 = vmul.f32 %v1638_v46, %v1952_v51  ;;  %v994_v56 = vmul.f32 %v1686_v47, %v1952_v51 }
 0x137   : > { %v1641_v58 = vadd.f32 %v1640_v50, %v1639_v48  ;;  %v1689_v59 = vadd.f32 %v1688_v52, %v1687_v49 }
 0x138   : > { %1568 = vst [vmem:[%s1971_s21 + $0x30] sm:$0xff] %v1516_v53   ;;  %1576 = vst [vmem:[%s1971_s21 + $0x70] sm:$0xff] %v1556_v54   ;;  %v1017_v60 = vadd.f32 %v1957_v57, %v978_v55  ;;  %v1033_v61 = vadd.f32 %v1957_v57, %v994_v56 }
 0x139   : > { %v979_v62 = vmul.f32 %v1641_v58, %v1952_v51  ;;  %v995_v63 = vmul.f32 %v1689_v59, %v1952_v51 }
 0x13a   : > { %v1049_v2 = vmax.f32 %v1017_v60, 0.0  ;;  %v1065_v3 = vmax.f32 %v1033_v61, 0.0 }
 0x13b   : > { %v1018_v0 = vadd.f32 %v1957_v57, %v979_v62  ;;  %v1034_v1 = vadd.f32 %v1957_v57, %v995_v63 }
 0x13d   : > { %v1050_v4 = vmax.f32 %v1018_v0, 0.0  ;;  %v1066_v5 = vmax.f32 %v1034_v1, 0.0 }
 0x13f   : > { %v1521_v6 = vpack.c.bf16 %v1050_v4, %v1049_v2  ;;  %v1561_v7 = vpack.c.bf16 %v1066_v5, %v1065_v3 }
 0x141   : > { %1569 = vst [vmem:[%s1971_s21 + $0x38] sm:$0xff] %v1521_v6   ;;  %1577 = vst [vmem:[%s1971_s21 + $0x78] sm:$0xff] %v1561_v7  }
 0x142 PF: > { %s14_s17 = sadd.s32 1, %s1816_s17   ;;  %s2059_s15 = smov %s1812_s16 }
 0x143   : > { %p11_p5 = scmp.ge.s32.totalorder %s14_s17, 4   ;;  %s2060_s16 = smov %s2062_s18 }
 0x145   :  { %13 = sbr.rel (!%p11_p5) target bundleno = 2 (0x2), region = 83 }

// kernel: _lambda_.21
= control target key start
LH: loop header
LB: loop body
LE: loop exit
PB: predicated region body
PF: predicated region fallthrough
CT: control target
= control target key end

     0   :  { %s885_s0 = inlined_call_operand.vmem [shape: bf16[128,128], index: 0, kind: input, shape index: {}]   ;;  %s886_s1 = inlined_call_operand.vmem [shape: bf16[128,128], index: 1, kind: input, shape index: {}]   ;;  %s887_s2 = inlined_call_operand.vmem [shape: bf16[128,128], index: 2, kind: input, shape index: {}]   ;;  %s888_s3 = inlined_call_operand.vmem [shape: bf16[128,128], index: 3, kind: input, shape index: {}]   ;;  %s889_s4 = inlined_call_operand.vmem [shape: bf16[128,128], index: 4, kind: input, shape index: {}]   ;;  %s890_s5 = inlined_call_operand.vmem [shape: bf16[128,128], index: 5, kind: input, shape index: {}]   ;;  %s891_s6 = inlined_call_operand.vmem [shape: bf16[128,128], index: 6, kind: input, shape index: {}]   ;;  %s892_s7 = inlined_call_operand.vmem [shape: bf16[128,128], index: 7, kind: input, shape index: {}]   ;;  %s893_s8 = inlined_call_operand.vmem [shape: bf16[128,128], index: 8, kind: input, shape index: {}]   ;;  %s894_s9 = inlined_call_operand.vmem [shape: bf16[128,128], index: 9, kind: output, shape index: {}]  }
   0x1   :  { %v32_v0 = vld [vmem:[%s885_s0] sm:$0xf]  ;;  %v33_v1 = vld [vmem:[%s885_s0 + $0x4] sm:$0xf]  ;;  %v34_v18 = vld [vmem:[%s885_s0 + $0x8] sm:$0xf] }
   0x2   :  { %v48_v2 = vld [vmem:[%s886_s1] sm:$0xf]  ;;  %v49_v3 = vld [vmem:[%s886_s1 + $0x4] sm:$0xf]  ;;  %v35_v19 = vld [vmem:[%s885_s0 + $0xc] sm:$0xf] }
   0x3   :  { %v64_v4 = vmax.bf16 %v48_v2, %v32_v0  ;;  %v80_v5 = vld [vmem:[%s887_s2] sm:$0xf]  ;;  %v81_v6 = vld [vmem:[%s887_s2 + $0x4] sm:$0xf]  ;;  %v65_v7 = vmax.bf16 %v49_v3, %v33_v1  ;;  %v50_v20 = vld [vmem:[%s886_s1 + $0x8] sm:$0xf] }
   0x4   :  { %v112_v8 = vld [vmem:[%s888_s3] sm:$0xf]  ;;  %v113_v10 = vld [vmem:[%s888_s3 + $0x4] sm:$0xf]  ;;  %v51_v22 = vld [vmem:[%s886_s1 + $0xc] sm:$0xf]  ;;  %v66_v23 = vmax.bf16 %v50_v20, %v34_v18 }
   0x5   :  { %v96_v9 = vmax.bf16 %v80_v5, %v64_v4  ;;  %v97_v11 = vmax.bf16 %v81_v6, %v65_v7  ;;  %v144_v12 = vld [vmem:[%s889_s4] sm:$0xf]  ;;  %v145_v14 = vld [vmem:[%s889_s4 + $0x4] sm:$0xf]  ;;  %v82_v24 = vld [vmem:[%s887_s2 + $0x8] sm:$0xf]  ;;  %v67_v28 = vmax.bf16 %v51_v22, %v35_v19 }
   0x6   :  { %v176_v15 = vld [vmem:[%s890_s5] sm:$0xf]  ;;  %v177_v16 = vld [vmem:[%s890_s5 + $0x4] sm:$0xf]  ;;  %v83_v25 = vld [vmem:[%s887_s2 + $0xc] sm:$0xf]  ;;  %v98_v33 = vmax.bf16 %v82_v24, %v66_v23 }
   0x7   :  { %v128_v13 = vmax.bf16 %v112_v8, %v96_v9  ;;  %v129_v17 = vmax.bf16 %v113_v10, %v97_v11  ;;  %v208_v27 = vld [vmem:[%s891_s6] sm:$0xf]  ;;  %v114_v29 = vld [vmem:[%s888_s3 + $0x8] sm:$0xf]  ;;  %v209_v31 = vld [vmem:[%s891_s6 + $0x4] sm:$0xf]  ;;  %v99_v38 = vmax.bf16 %v83_v25, %v67_v28 }
   0x8   :  { %v240_v32 = vld [vmem:[%s892_s7] sm:$0xf]  ;;  %v115_v34 = vld [vmem:[%s888_s3 + $0xc] sm:$0xf]  ;;  %v241_v36 = vld [vmem:[%s892_s7 + $0x4] sm:$0xf]  ;;  %v130_v42 = vmax.bf16 %v114_v29, %v98_v33 }
   0x9   :  { %v160_v21 = vmax.bf16 %v144_v12, %v128_v13  ;;  %v161_v26 = vmax.bf16 %v145_v14, %v129_v17  ;;  %v272_v37 = vld [vmem:[%s893_s8] sm:$0xf]  ;;  %v146_v39 = vld [vmem:[%s889_s4 + $0x8] sm:$0xf]  ;;  %v273_v41 = vld [vmem:[%s893_s8 + $0x4] sm:$0xf]  ;;  %v131_v47 = vmax.bf16 %v115_v34, %v99_v38 }
   0xa   :  { %v147_v43 = vld [vmem:[%s889_s4 + $0xc] sm:$0xf]  ;;  %v178_v44 = vld [vmem:[%s890_s5 + $0x8] sm:$0xf]  ;;  %v36_v48 = vld [vmem:[%s885_s0 + $0x10] sm:$0xf]  ;;  %v162_v52 = vmax.bf16 %v146_v39, %v130_v42 }
   0xb   :  { %v192_v30 = vmax.bf16 %v176_v15, %v160_v21  ;;  %v193_v35 = vmax.bf16 %v177_v16, %v161_v26  ;;  %v179_v45 = vld [vmem:[%s890_s5 + $0xc] sm:$0xf]  ;;  %v37_v49 = vld [vmem:[%s885_s0 + $0x14] sm:$0xf]  ;;  %v52_v50 = vld [vmem:[%s886_s1 + $0x10] sm:$0xf]  ;;  %v163_v58 = vmax.bf16 %v147_v43, %v131_v47 }
   0xc   :  { %v53_v53 = vld [vmem:[%s886_s1 + $0x14] sm:$0xf]  ;;  %v68_v54 = vmax.bf16 %v52_v50, %v36_v48  ;;  %v84_v55 = vld [vmem:[%s887_s2 + $0x10] sm:$0xf]  ;;  %v210_v59 = vld [vmem:[%s891_s6 + $0x8] sm:$0xf]  ;;  %v194_v63 = vmax.bf16 %v178_v44, %v162_v52 }
   0xd   :  { %v224_v40 = vmax.bf16 %v208_v27, %v192_v30  ;;  %v225_v46 = vmax.bf16 %v209_v31, %v193_v35  ;;  %v85_v56 = vld [vmem:[%s887_s2 + $0x14] sm:$0xf]  ;;  %v69_v60 = vmax.bf16 %v53_v53, %v37_v49  ;;  %v116_v61 = vld [vmem:[%s888_s3 + $0x10] sm:$0xf]  ;;  %v211_v0 = vld [vmem:[%s891_s6 + $0xc] sm:$0xf]  ;;  %v195_v5 = vmax.bf16 %v179_v45, %v163_v58 }
   0xe   :  { %v242_v1 = vld [vmem:[%s892_s7 + $0x8] sm:$0xf]  ;;  %v100_v2 = vmax.bf16 %v84_v55, %v68_v54  ;;  %v117_v3 = vld [vmem:[%s888_s3 + $0x14] sm:$0xf]  ;;  %v243_v6 = vld [vmem:[%s892_s7 + $0xc] sm:$0xf]  ;;  %v226_v10 = vmax.bf16 %v210_v59, %v194_v63 }
   0xf   :  { %v256_v51 = vmax.bf16 %v240_v32, %v224_v40  ;;  %v257_v57 = vmax.bf16 %v241_v36, %v225_v46  ;;  %v274_v7 = vld [vmem:[%s893_s8 + $0x8] sm:$0xf]  ;;  %v101_v8 = vmax.bf16 %v85_v56, %v69_v60  ;;  %v148_v9 = vld [vmem:[%s889_s4 + $0x10] sm:$0xf]  ;;  %v275_v11 = vld [vmem:[%s893_s8 + $0xc] sm:$0xf]  ;;  %v227_v17 = vmax.bf16 %v211_v0, %v195_v5 }
  0x10   :  { %v132_v12 = vmax.bf16 %v116_v61, %v100_v2  ;;  %v149_v13 = vld [vmem:[%s889_s4 + $0x14] sm:$0xf]  ;;  %v180_v14 = vld [vmem:[%s890_s5 + $0x10] sm:$0xf]  ;;  %v38_v19 = vld [vmem:[%s885_s0 + $0x18] sm:$0xf]  ;;  %v258_v22 = vmax.bf16 %v242_v1, %v226_v10 }
  0x11   :  { %v288_v62 = vmax.bf16 %v272_v37, %v256_v51  ;;  %v289_v4 = vmax.bf16 %v273_v41, %v257_v57  ;;  %v181_v15 = vld [vmem:[%s890_s5 + $0x14] sm:$0xf]  ;;  %v133_v18 = vmax.bf16 %v117_v3, %v101_v8  ;;  %v39_v20 = vld [vmem:[%s885_s0 + $0x1c] sm:$0xf]  ;;  %v54_v21 = vld [vmem:[%s886_s1 + $0x18] sm:$0xf]  ;;  %v259_v28 = vmax.bf16 %v243_v6, %v227_v17 }
  0x12   :  { %v164_v23 = vmax.bf16 %v148_v9, %v132_v12  ;;  %v55_v24 = vld [vmem:[%s886_s1 + $0x1c] sm:$0xf]  ;;  %v70_v25 = vmax.bf16 %v54_v21, %v38_v19  ;;  %v86_v26 = vld [vmem:[%s887_s2 + $0x18] sm:$0xf]  ;;  %v212_v30 = vld [vmem:[%s891_s6 + $0x10] sm:$0xf]  ;;  %v290_v33 = vmax.bf16 %v274_v7, %v258_v22 }
  0x13   :  { %v364_v16 = vcombine.low %v288_v62, %v289_v4  ;;  %v87_v27 = vld [vmem:[%s887_s2 + $0x1c] sm:$0xf]  ;;  %v165_v29 = vmax.bf16 %v149_v13, %v133_v18  ;;  %v71_v31 = vmax.bf16 %v55_v24, %v39_v20  ;;  %v118_v32 = vld [vmem:[%s888_s3 + $0x18] sm:$0xf]  ;;  %v213_v35 = vld [vmem:[%s891_s6 + $0x14] sm:$0xf]  ;;  %v291_v39 = vmax.bf16 %v275_v11, %v259_v28 }
  0x14   :  { %v196_v34 = vmax.bf16 %v180_v14, %v164_v23  ;;  %v244_v36 = vld [vmem:[%s892_s7 + $0x10] sm:$0xf]  ;;  %v102_v37 = vmax.bf16 %v86_v26, %v70_v25  ;;  %v119_v38 = vld [vmem:[%s888_s3 + $0x1c] sm:$0xf]  ;;  %v245_v41 = vld [vmem:[%s892_s7 + $0x14] sm:$0xf] }
  0x15   :  { %328 = vst [vmem:[%s894_s9] sm:$0xff] %v364_v16   ;;  %v197_v40 = vmax.bf16 %v181_v15, %v165_v29  ;;  %v276_v42 = vld [vmem:[%s893_s8 + $0x10] sm:$0xf]  ;;  %v103_v43 = vmax.bf16 %v87_v27, %v71_v31  ;;  %v150_v44 = vld [vmem:[%s889_s4 + $0x18] sm:$0xf]  ;;  %v277_v46 = vld [vmem:[%s893_s8 + $0x14] sm:$0xf]  ;;  %v365_v51 = vcombine.low %v290_v33, %v291_v39 }
  0x16   :  { %v228_v45 = vmax.bf16 %v212_v30, %v196_v34  ;;  %v134_v47 = vmax.bf16 %v118_v32, %v102_v37  ;;  %v151_v48 = vld [vmem:[%s889_s4 + $0x1c] sm:$0xf]  ;;  %v182_v49 = vld [vmem:[%s890_s5 + $0x18] sm:$0xf]  ;;  %v40_v54 = vld [vmem:[%s885_s0 + $0x20] sm:$0xf] }
  0x17   :  { %v183_v50 = vld [vmem:[%s890_s5 + $0x1c] sm:$0xf]  ;;  %v229_v52 = vmax.bf16 %v213_v35, %v197_v40  ;;  %v135_v53 = vmax.bf16 %v119_v38, %v103_v43  ;;  %v41_v55 = vld [vmem:[%s885_s0 + $0x24] sm:$0xf]  ;;  %v56_v56 = vld [vmem:[%s886_s1 + $0x20] sm:$0xf] }
  0x18   :  { %v260_v57 = vmax.bf16 %v244_v36, %v228_v45  ;;  %v166_v58 = vmax.bf16 %v150_v44, %v134_v47  ;;  %v57_v59 = vld [vmem:[%s886_s1 + $0x24] sm:$0xf]  ;;  %v72_v60 = vmax.bf16 %v56_v56, %v40_v54  ;;  %v88_v61 = vld [vmem:[%s887_s2 + $0x20] sm:$0xf]  ;;  %366 = vst [vmem:[%s894_s9 + $0x8] sm:$0xff] %v365_v51  }
  0x19   :  { %v89_v62 = vld [vmem:[%s887_s2 + $0x24] sm:$0xf]  ;;  %v261_v63 = vmax.bf16 %v245_v41, %v229_v52  ;;  %v167_v0 = vmax.bf16 %v151_v48, %v135_v53  ;;  %v214_v1 = vld [vmem:[%s891_s6 + $0x18] sm:$0xf]  ;;  %v73_v2 = vmax.bf16 %v57_v59, %v41_v55  ;;  %v120_v3 = vld [vmem:[%s888_s3 + $0x20] sm:$0xf] }
  0x1a   :  { %v292_v4 = vmax.bf16 %v276_v42, %v260_v57  ;;  %v198_v5 = vmax.bf16 %v182_v49, %v166_v58  ;;  %v215_v6 = vld [vmem:[%s891_s6 + $0x1c] sm:$0xf]  ;;  %v246_v7 = vld [vmem:[%s892_s7 + $0x18] sm:$0xf]  ;;  %v104_v8 = vmax.bf16 %v88_v61, %v72_v60  ;;  %v121_v9 = vld [vmem:[%s888_s3 + $0x24] sm:$0xf] }
  0x1b   :  { %v293_v10 = vmax.bf16 %v277_v46, %v261_v63  ;;  %v199_v11 = vmax.bf16 %v183_v50, %v167_v0  ;;  %v247_v12 = vld [vmem:[%s892_s7 + $0x1c] sm:$0xf]  ;;  %v278_v13 = vld [vmem:[%s893_s8 + $0x18] sm:$0xf]  ;;  %v105_v14 = vmax.bf16 %v89_v62, %v73_v2  ;;  %v152_v15 = vld [vmem:[%s889_s4 + $0x20] sm:$0xf] }
  0x1c   :  { %v230_v16 = vmax.bf16 %v214_v1, %v198_v5  ;;  %v279_v17 = vld [vmem:[%s893_s8 + $0x1c] sm:$0xf]  ;;  %v136_v18 = vmax.bf16 %v120_v3, %v104_v8  ;;  %v153_v19 = vld [vmem:[%s889_s4 + $0x24] sm:$0xf]  ;;  %v184_v20 = vld [vmem:[%s890_s5 + $0x20] sm:$0xf] }
  0x1d   :  { %v185_v21 = vld [vmem:[%s890_s5 + $0x24] sm:$0xf]  ;;  %v367_v22 = vcombine.low %v292_v4, %v293_v10  ;;  %v231_v23 = vmax.bf16 %v215_v6, %v199_v11  ;;  %v137_v24 = vmax.bf16 %v121_v9, %v105_v14  ;;  %v42_v25 = vld [vmem:[%s885_s0 + $0x28] sm:$0xf]  ;;  %v43_v26 = vld [vmem:[%s885_s0 + $0x2c] sm:$0xf] }
  0x1e   :  { %v58_v27 = vld [vmem:[%s886_s1 + $0x28] sm:$0xf]  ;;  %v262_v28 = vmax.bf16 %v246_v7, %v230_v16  ;;  %v168_v29 = vmax.bf16 %v152_v15, %v136_v18  ;;  %v59_v30 = vld [vmem:[%s886_s1 + $0x2c] sm:$0xf]  ;;  %v216_v36 = vld [vmem:[%s891_s6 + $0x20] sm:$0xf] }
  0x1f   :  { %v74_v31 = vmax.bf16 %v58_v27, %v42_v25  ;;  %v90_v32 = vld [vmem:[%s887_s2 + $0x28] sm:$0xf]  ;;  %v91_v33 = vld [vmem:[%s887_s2 + $0x2c] sm:$0xf]  ;;  %368 = vst [vmem:[%s894_s9 + $0x10] sm:$0xff] %v367_v22   ;;  %v263_v34 = vmax.bf16 %v247_v12, %v231_v23  ;;  %v169_v35 = vmax.bf16 %v153_v19, %v137_v24  ;;  %v75_v37 = vmax.bf16 %v59_v30, %v43_v26 }
  0x20   :  { %v122_v38 = vld [vmem:[%s888_s3 + $0x28] sm:$0xf]  ;;  %v294_v39 = vmax.bf16 %v278_v13, %v262_v28  ;;  %v200_v40 = vmax.bf16 %v184_v20, %v168_v29  ;;  %v217_v41 = vld [vmem:[%s891_s6 + $0x24] sm:$0xf]  ;;  %v248_v42 = vld [vmem:[%s892_s7 + $0x20] sm:$0xf] }
  0x21   :  { %v106_v43 = vmax.bf16 %v90_v32, %v74_v31  ;;  %v123_v44 = vld [vmem:[%s888_s3 + $0x2c] sm:$0xf]  ;;  %v295_v45 = vmax.bf16 %v279_v17, %v263_v34  ;;  %v201_v46 = vmax.bf16 %v185_v21, %v169_v35  ;;  %v249_v47 = vld [vmem:[%s892_s7 + $0x24] sm:$0xf]  ;;  %v280_v48 = vld [vmem:[%s893_s8 + $0x20] sm:$0xf]  ;;  %v107_v49 = vmax.bf16 %v91_v33, %v75_v37 }
  0x22   :  { %v154_v50 = vld [vmem:[%s889_s4 + $0x28] sm:$0xf]  ;;  %v232_v51 = vmax.bf16 %v216_v36, %v200_v40  ;;  %v281_v52 = vld [vmem:[%s893_s8 + $0x24] sm:$0xf]  ;;  %v155_v54 = vld [vmem:[%s889_s4 + $0x2c] sm:$0xf] }
  0x23   :  { %v138_v53 = vmax.bf16 %v122_v38, %v106_v43  ;;  %v186_v55 = vld [vmem:[%s890_s5 + $0x28] sm:$0xf]  ;;  %v187_v56 = vld [vmem:[%s890_s5 + $0x2c] sm:$0xf]  ;;  %v369_v57 = vcombine.low %v294_v39, %v295_v45  ;;  %v233_v58 = vmax.bf16 %v217_v41, %v201_v46  ;;  %v139_v59 = vmax.bf16 %v123_v44, %v107_v49  ;;  %v44_v60 = vld [vmem:[%s885_s0 + $0x30] sm:$0xf] }
  0x24   :  { %v45_v61 = vld [vmem:[%s885_s0 + $0x34] sm:$0xf]  ;;  %v60_v62 = vld [vmem:[%s886_s1 + $0x30] sm:$0xf]  ;;  %v264_v63 = vmax.bf16 %v248_v42, %v232_v51  ;;  %v218_v7 = vld [vmem:[%s891_s6 + $0x28] sm:$0xf] }
  0x25   :  { %v170_v0 = vmax.bf16 %v154_v50, %v138_v53  ;;  %v61_v1 = vld [vmem:[%s886_s1 + $0x34] sm:$0xf]  ;;  %v76_v2 = vmax.bf16 %v60_v62, %v44_v60  ;;  %v92_v3 = vld [vmem:[%s887_s2 + $0x30] sm:$0xf]  ;;  %370 = vst [vmem:[%s894_s9 + $0x18] sm:$0xff] %v369_v57   ;;  %v265_v5 = vmax.bf16 %v249_v47, %v233_v58  ;;  %v171_v6 = vmax.bf16 %v155_v54, %v139_v59 }
  0x26   :  { %v93_v4 = vld [vmem:[%s887_s2 + $0x34] sm:$0xf]  ;;  %v77_v8 = vmax.bf16 %v61_v1, %v45_v61  ;;  %v124_v9 = vld [vmem:[%s888_s3 + $0x30] sm:$0xf]  ;;  %v296_v10 = vmax.bf16 %v280_v48, %v264_v63  ;;  %v219_v12 = vld [vmem:[%s891_s6 + $0x2c] sm:$0xf] }
  0x27   :  { %v202_v11 = vmax.bf16 %v186_v55, %v170_v0  ;;  %v250_v13 = vld [vmem:[%s892_s7 + $0x28] sm:$0xf]  ;;  %v108_v14 = vmax.bf16 %v92_v3, %v76_v2  ;;  %v125_v15 = vld [vmem:[%s888_s3 + $0x34] sm:$0xf]  ;;  %v297_v16 = vmax.bf16 %v281_v52, %v265_v5  ;;  %v203_v17 = vmax.bf16 %v187_v56, %v171_v6  ;;  %v251_v18 = vld [vmem:[%s892_s7 + $0x2c] sm:$0xf] }
  0x28   :  { %v282_v19 = vld [vmem:[%s893_s8 + $0x28] sm:$0xf]  ;;  %v109_v20 = vmax.bf16 %v93_v4, %v77_v8  ;;  %v156_v21 = vld [vmem:[%s889_s4 + $0x30] sm:$0xf]  ;;  %v283_v23 = vld [vmem:[%s893_s8 + $0x2c] sm:$0xf] }
  0x29   :  { %v234_v22 = vmax.bf16 %v218_v7, %v202_v11  ;;  %v140_v24 = vmax.bf16 %v124_v9, %v108_v14  ;;  %v157_v25 = vld [vmem:[%s889_s4 + $0x34] sm:$0xf]  ;;  %v188_v26 = vld [vmem:[%s890_s5 + $0x30] sm:$0xf]  ;;  %v371_v28 = vcombine.low %v296_v10, %v297_v16  ;;  %v235_v29 = vmax.bf16 %v219_v12, %v203_v17  ;;  %v46_v31 = vld [vmem:[%s885_s0 + $0x38] sm:$0xf] }
  0x2a   :  { %v189_v27 = vld [vmem:[%s890_s5 + $0x34] sm:$0xf]  ;;  %v141_v30 = vmax.bf16 %v125_v15, %v109_v20  ;;  %v47_v32 = vld [vmem:[%s885_s0 + $0x3c] sm:$0xf]  ;;  %v62_v33 = vld [vmem:[%s886_s1 + $0x38] sm:$0xf] }
  0x2b   :  { %v266_v34 = vmax.bf16 %v250_v13, %v234_v22  ;;  %v172_v35 = vmax.bf16 %v156_v21, %v140_v24  ;;  %v63_v36 = vld [vmem:[%s886_s1 + $0x3c] sm:$0xf]  ;;  %v78_v37 = vmax.bf16 %v62_v33, %v46_v31  ;;  %v94_v38 = vld [vmem:[%s887_s2 + $0x38] sm:$0xf]  ;;  %372 = vst [vmem:[%s894_s9 + $0x20] sm:$0xff] %v371_v28   ;;  %v267_v40 = vmax.bf16 %v251_v18, %v235_v29 }
  0x2c   :  { %v95_v39 = vld [vmem:[%s887_s2 + $0x3c] sm:$0xf]  ;;  %v173_v41 = vmax.bf16 %v157_v25, %v141_v30  ;;  %v220_v42 = vld [vmem:[%s891_s6 + $0x30] sm:$0xf]  ;;  %v79_v43 = vmax.bf16 %v63_v36, %v47_v32  ;;  %v126_v44 = vld [vmem:[%s888_s3 + $0x38] sm:$0xf] }
  0x2d   :  { %v298_v45 = vmax.bf16 %v282_v19, %v266_v34  ;;  %v204_v46 = vmax.bf16 %v188_v26, %v172_v35  ;;  %v221_v47 = vld [vmem:[%s891_s6 + $0x34] sm:$0xf]  ;;  %v110_v48 = vmax.bf16 %v94_v38, %v78_v37  ;;  %v127_v49 = vld [vmem:[%s888_s3 + $0x3c] sm:$0xf]  ;;  %v299_v50 = vmax.bf16 %v283_v23, %v267_v40  ;;  %v252_v52 = vld [vmem:[%s892_s7 + $0x30] sm:$0xf] }
  0x2e   :  { %v205_v51 = vmax.bf16 %v189_v27, %v173_v41  ;;  %v111_v53 = vmax.bf16 %v95_v39, %v79_v43  ;;  %v158_v54 = vld [vmem:[%s889_s4 + $0x38] sm:$0xf]  ;;  %v253_v56 = vld [vmem:[%s892_s7 + $0x34] sm:$0xf]  ;;  %v159_v58 = vld [vmem:[%s889_s4 + $0x3c] sm:$0xf] }
  0x2f   :  { %v236_v55 = vmax.bf16 %v220_v42, %v204_v46  ;;  %v142_v57 = vmax.bf16 %v126_v44, %v110_v48  ;;  %v373_v59 = vcombine.low %v298_v45, %v299_v50  ;;  %v284_v61 = vld [vmem:[%s893_s8 + $0x30] sm:$0xf]  ;;  %v190_v63 = vld [vmem:[%s890_s5 + $0x38] sm:$0xf]  ;;  %v285_v1 = vld [vmem:[%s893_s8 + $0x34] sm:$0xf] }
  0x30   :  { %v237_v60 = vmax.bf16 %v221_v47, %v205_v51  ;;  %v143_v62 = vmax.bf16 %v127_v49, %v111_v53  ;;  %v191_v3 = vld [vmem:[%s890_s5 + $0x3c] sm:$0xf]  ;;  %v222_v6 = vld [vmem:[%s891_s6 + $0x38] sm:$0xf] }
  0x31   :  { %v268_v0 = vmax.bf16 %v252_v52, %v236_v55  ;;  %v174_v2 = vmax.bf16 %v158_v54, %v142_v57  ;;  %374 = vst [vmem:[%s894_s9 + $0x28] sm:$0xff] %v373_v59   ;;  %v223_v9 = vld [vmem:[%s891_s6 + $0x3c] sm:$0xf]  ;;  %v254_v12 = vld [vmem:[%s892_s7 + $0x38] sm:$0xf] }
  0x32   :  { %v269_v4 = vmax.bf16 %v253_v56, %v237_v60  ;;  %v175_v5 = vmax.bf16 %v159_v58, %v143_v62  ;;  %v255_v14 = vld [vmem:[%s892_s7 + $0x3c] sm:$0xf]  ;;  %v286_v17 = vld [vmem:[%s893_s8 + $0x38] sm:$0xf] }
  0x33   :  { %v300_v7 = vmax.bf16 %v284_v61, %v268_v0  ;;  %v206_v8 = vmax.bf16 %v190_v63, %v174_v2  ;;  %v287_v19 = vld [vmem:[%s893_s8 + $0x3c] sm:$0xf] }
  0x34   :  { %v301_v10 = vmax.bf16 %v285_v1, %v269_v4  ;;  %v207_v11 = vmax.bf16 %v191_v3, %v175_v5 }
  0x35   :  { %v238_v13 = vmax.bf16 %v222_v6, %v206_v8 }
  0x36   :  { %v375_v15 = vcombine.low %v300_v7, %v301_v10  ;;  %v239_v16 = vmax.bf16 %v223_v9, %v207_v11 }
  0x37   :  { %v270_v18 = vmax.bf16 %v254_v12, %v238_v13 }
  0x38   :  { %376 = vst [vmem:[%s894_s9 + $0x30] sm:$0xff] %v375_v15   ;;  %v271_v20 = vmax.bf16 %v255_v14, %v239_v16 }
  0x39   :  { %v302_v21 = vmax.bf16 %v286_v17, %v270_v18 }
  0x3a   :  { %v303_v22 = vmax.bf16 %v287_v19, %v271_v20 }
  0x3c   :  { %v377_v23 = vcombine.low %v302_v21, %v303_v22 }
  0x3e   :  { %378 = vst [vmem:[%s894_s9 + $0x38] sm:$0xff] %v377_v23  }

// kernel: _lambda_.22
= control target key start
LH: loop header
LB: loop body
LE: loop exit
PB: predicated region body
PF: predicated region fallthrough
CT: control target
= control target key end

     0   :  { %s914_s15 = smov 0   ;;  %s916_s16 = smov 0   ;;  %s990_s0 = inlined_call_operand.vmem [shape: bf16[128,128], index: 0, kind: input, shape index: {}]   ;;  %s991_s1 = inlined_call_operand.vmem [shape: bf16[128,128], index: 1, kind: input, shape index: {}]   ;;  %s992_s2 = inlined_call_operand.vmem [shape: f32[1,128], index: 2, kind: input, shape index: {}]   ;;  %s993_s3 = inlined_call_operand.vmem [shape: f32[1,128], index: 3, kind: input, shape index: {}]   ;;  %s994_s4 = inlined_call_operand.vmem [shape: bf16[128,128], index: 4, kind: output, shape index: {}]  }
   0x1   :  { %s918_s17 = smov 0  }
   0x2 LB: > { %s33_s18 = sadd.s32 1, %s883_s16  ;;  %p717_p0 = scmp.ge.s32.totalorder %s887_s17, 1  ;;  %s887_s17 = sphi %s918_s17, %s14_s17   ;;  %s883_s16 = sphi %s916_s16, %s996_s16   ;;  %s879_s15 = sphi %s914_s15, %s995_s15  }
   0x3   : > { %p35_p1 = scmp.ge.s32.totalorder %s33_s18, 2  ;;  %p221_p2 = scmp.lt.s32.totalorder %s887_s17, 3 }
   0x5   : > { %s998_s18 = smov (%p35_p1, %s33_s18), 0  ;;  %p222_p3 = pnand %p717_p0, %p221_p2 }
   0x6   : > { %v853_v0 = vld [vmem:[%s991_s1] sm:$0xff] (!%p222_p3)   ;;  %s718_s21 = sshll.u32 (!%p222_p3), %s879_s15, 3  ;;  %v854_v1 = vld [vmem:[%s991_s1 + $0x8] sm:$0xff] (!%p222_p3)   ;;  %v855_v2 = vld [vmem:[%s991_s1 + $0x10] sm:$0xff] (!%p222_p3)  }
   0x7   : > { %225 = sbr.rel (%p222_p3) target bundleno = 263 (0x107), region = 36  ;;  %p268_p4 = scmp.lt.s32.totalorder (!%p222_p3), %s718_s21, 15  ;;  %789 = vmatprep.subr.bf16.mxu0 (!%p222_p3), %v853_v0  ;;  %813 = vmatprep.subr.bf16.mxu1 (!%p222_p3), %v853_v0  ;;  %v856_v3 = vld [vmem:[%s991_s1 + $0x18] sm:$0xff] (!%p222_p3)   ;;  %v857_v6 = vld [vmem:[%s991_s1 + $0x20] sm:$0xff] (!%p222_p3)   ;;  %v858_v7 = vld [vmem:[%s991_s1 + $0x28] sm:$0xff] (!%p222_p3)  }
   0x8   : > { %790 = vmatpush3.bf16.msra.mxu0 (!%p222_p3), %v853_v0  ;;  %821 = vmatpush3.bf16.msra.mxu1 (!%p222_p3), %v853_v0  ;;  %v859_v8 = vld [vmem:[%s991_s1 + $0x30] sm:$0xff] (!%p222_p3)   ;;  %v860_v9 = vld [vmem:[%s991_s1 + $0x38] sm:$0xff] (!%p222_p3)   ;;  %v734_v12 = vld [vmem:[%s992_s2] ss:$0 sm:$0xff] (!%p222_p3) }
   0x9   : > { %791 = vmatprep.subr.bf16.mxu0 (!%p222_p3), %v854_v1  ;;  %814 = vmatprep.subr.bf16.mxu1 (!%p222_p3), %v854_v1  ;;  %v735_v14 = vld [vmem:[%s993_s3] ss:$0 sm:$0xff] (!%p222_p3) }
   0xc   : > { %792 = vmatpush3.bf16.msra.mxu0 (!%p222_p3), %v854_v1  ;;  %822 = vmatpush3.bf16.msra.mxu1 (!%p222_p3), %v854_v1 }
   0xd   : > { %793 = vmatprep.subr.bf16.mxu0 (!%p222_p3), %v855_v2  ;;  %815 = vmatprep.subr.bf16.mxu1 (!%p222_p3), %v855_v2 }
   0xe   : > { %s1000_s21 = smov (!%p268_p4, %s718_s21), 15 }
   0xf   : > { %s719_s26 = sshll.u32 %s1000_s21, 2 }
  0x10   : > { %s949_s29 = scalar_lea.vmem %s990_s0, %s719_s26  ;;  %794 = vmatpush3.bf16.msra.mxu0 %v855_v2  ;;  %823 = vmatpush3.bf16.msra.mxu1 %v855_v2  ;;  %s298_s24 = scalar_lea.vmem %s994_s4, %s719_s26 }
  0x11   : > { %v861_v4 = vld [vmem:[%s949_s29] sm:$0xff]   ;;  %v862_v5 = vld [vmem:[%s949_s29 + $0x10] sm:$0xff]   ;;  %795 = vmatprep.subr.bf16.mxu0 %v856_v3  ;;  %816 = vmatprep.subr.bf16.mxu1 %v856_v3  ;;  %v863_v10 = vld [vmem:[%s949_s29 + $0x8] sm:$0xff]  }
  0x12   : > { %805 = vmatprep.mubr.bf16.mxu0 %v861_v4  ;;  %809 = vmatprep.mubr.bf16.mxu1 %v862_v5  ;;  %v864_v11 = vld [vmem:[%s949_s29 + $0x18] sm:$0xff]  }
  0x14   : > { %796 = vmatpush3.bf16.msra.mxu0 %v856_v3  ;;  %824 = vmatpush3.bf16.msra.mxu1 %v856_v3 }
  0x15   : > { %797 = vmatprep.subr.bf16.mxu0 %v857_v6  ;;  %817 = vmatprep.subr.bf16.mxu1 %v857_v6 }
  0x18   : > { %798 = vmatpush3.bf16.msra.mxu0 %v857_v6  ;;  %825 = vmatpush3.bf16.msra.mxu1 %v857_v6 }
  0x19   : > { %799 = vmatprep.subr.bf16.mxu0 %v858_v7  ;;  %818 = vmatprep.subr.bf16.mxu1 %v858_v7 }
  0x1c   : > { %800 = vmatpush3.bf16.msra.mxu0 %v858_v7  ;;  %826 = vmatpush3.bf16.msra.mxu1 %v858_v7 }
  0x1d   : > { %801 = vmatprep.subr.bf16.mxu0 %v859_v8  ;;  %819 = vmatprep.subr.bf16.mxu1 %v859_v8 }
  0x20   : > { %802 = vmatpush3.bf16.msra.mxu0 %v859_v8  ;;  %827 = vmatpush3.bf16.msra.mxu1 %v859_v8 }
  0x21   : > { %803 = vmatprep.subr.bf16.mxu0 %v860_v9  ;;  %820 = vmatprep.subr.bf16.mxu1 %v860_v9 }
  0x24   : > { %804 = vmatpush3.bf16.msra.mxu0 %v860_v9  ;;  %828 = vmatpush3.bf16.msra.mxu1 %v860_v9 }
  0x27   : > { %806 = vmatmul.mubr.bf16.vlgmr.msra.gmra.mrb[0].mxu0 %v863_v10  ;;  %810 = vmatmul.mubr.bf16.vlgmr.msra.gmra.mrb[0].mxu1 %v864_v11 }
  0xfa   : > { %v807_v13 = vpop.f32.mrb[0].mxu0  ;;  %v811_v15 = vpop.f32.mrb[0].mxu1 }
  0xfb   : > { %v518_v16 = vmul.f32 %v807_v13, %v734_v12  ;;  %v522_v17 = vmul.f32 %v811_v15, %v734_v12  ;;  %v451_v18 = vpop.f32.mrb[1].mxu0  ;;  %v467_v19 = vpop.f32.mrb[1].mxu1 }
  0xfc   : > { %v516_v20 = vmul.f32 %v734_v12, %v451_v18  ;;  %v520_v21 = vmul.f32 %v734_v12, %v467_v19  ;;  %v808_v22 = vpop.f32.mrb[2].mxu0  ;;  %v812_v23 = vpop.f32.mrb[2].mxu1 }
  0xfd   : > { %v533_v24 = vadd.f32 %v735_v14, %v518_v16  ;;  %v537_v25 = vadd.f32 %v735_v14, %v522_v17  ;;  %v519_v26 = vmul.f32 %v808_v22, %v734_v12  ;;  %v523_v27 = vmul.f32 %v812_v23, %v734_v12  ;;  %v454_v28 = vpop.f32.mrb[3].mxu0  ;;  %v470_v29 = vpop.f32.mrb[3].mxu1 }
  0xfe   : > { %v531_v30 = vadd.f32 %v735_v14, %v516_v20  ;;  %v535_v31 = vadd.f32 %v735_v14, %v520_v21  ;;  %v517_v32 = vmul.f32 %v734_v12, %v454_v28  ;;  %v521_v33 = vmul.f32 %v734_v12, %v470_v29 }
  0xff   : > { %v534_v34 = vadd.f32 %v735_v14, %v519_v26  ;;  %v538_v35 = vadd.f32 %v735_v14, %v523_v27  ;;  %v541_v38 = vmax.f32 %v533_v24, 0.0  ;;  %v545_v39 = vmax.f32 %v537_v25, 0.0 }
 0x100   : > { %v532_v36 = vadd.f32 %v735_v14, %v517_v32  ;;  %v536_v37 = vadd.f32 %v735_v14, %v521_v33  ;;  %v539_v42 = vmax.f32 %v531_v30, 0.0  ;;  %v543_v43 = vmax.f32 %v535_v31, 0.0 }
 0x101   : > { %v542_v40 = vmax.f32 %v534_v34, 0.0  ;;  %v546_v41 = vmax.f32 %v538_v35, 0.0 }
 0x102   : > { %v540_v44 = vmax.f32 %v532_v36, 0.0  ;;  %v544_v45 = vmax.f32 %v536_v37, 0.0 }
 0x103   : > { %v762_v46 = vpack.c.bf16 %v542_v40, %v541_v38  ;;  %v772_v47 = vpack.c.bf16 %v546_v41, %v545_v39 }
 0x104   : > { %v757_v48 = vpack.c.bf16 %v540_v44, %v539_v42  ;;  %v767_v49 = vpack.c.bf16 %v544_v45, %v543_v43 }
 0x105   : > { %774 = vst [vmem:[%s298_s24 + $0x8] sm:$0xff] %v762_v46   ;;  %776 = vst [vmem:[%s298_s24 + $0x18] sm:$0xff] %v772_v47  }
 0x106   : > { %758 = vst [vmem:[%s298_s24] sm:$0xff] %v757_v48   ;;  %775 = vst [vmem:[%s298_s24 + $0x10] sm:$0xff] %v767_v49  }
 0x107 PF: > { %s14_s17 = sadd.s32 1, %s887_s17   ;;  %s995_s15 = smov %s883_s16 }
 0x108   : > { %p11_p5 = scmp.ge.s32.totalorder %s14_s17, 4   ;;  %s996_s16 = smov %s998_s18 }
 0x10a   :  { %13 = sbr.rel (!%p11_p5) target bundleno = 2 (0x2), region = 83 }

// kernel: _lambda_.23
= control target key start
LH: loop header
LB: loop body
LE: loop exit
PB: predicated region body
PF: predicated region fallthrough
CT: control target
= control target key end

     0   :  { %s1055_s15 = smov 0   ;;  %s1057_s16 = smov 0   ;;  %s1177_s0 = inlined_call_operand.vmem [shape: bf16[128,384], index: 0, kind: input, shape index: {}]   ;;  %s1178_s1 = inlined_call_operand.vmem [shape: bf16[384,128], index: 1, kind: input, shape index: {}]   ;;  %s1179_s2 = inlined_call_operand.vmem [shape: f32[1,128], index: 2, kind: input, shape index: {}]   ;;  %s1180_s3 = inlined_call_operand.vmem [shape: f32[1,128], index: 3, kind: input, shape index: {}]   ;;  %s1181_s4 = inlined_call_operand.vmem [shape: bf16[128,128], index: 4, kind: output, shape index: {}]  }
   0x1   :  { %s1059_s17 = smov 0   ;;  %s1061_s18 = smov 0  }
   0x2   :  { %s1063_s19 = smov 0   ;;  %s1065_s20 = smov 0  }
   0x3   :  { %s1067_s21 = smov 0  }
   0x4 LB: > { %s26_s22 = sadd.s32 1, %s1019_s19  ;;  %s33_s23 = sadd.s32 1, %s1023_s20  ;;  %s1027_s21 = sphi %s1067_s21, %s14_s21   ;;  %s1023_s20 = sphi %s1065_s20, %s1187_s20   ;;  %s1019_s19 = sphi %s1063_s19, %s1186_s19   ;;  %s1015_s18 = sphi %s1061_s18, %s1185_s18   ;;  %s1011_s17 = sphi %s1059_s17, %s1184_s17   ;;  %s1007_s16 = sphi %s1057_s16, %s1183_s16   ;;  %s1003_s15 = sphi %s1055_s15, %s1182_s15  }
   0x5   : > { %p27_p0 = scmp.ge.s32.totalorder %s26_s22, 3  ;;  %p49_p1 = scmp.ne.s32.totalorder %s1007_s16, %s1003_s15 }
   0x6   : > { %p50_p2 = scmp.eq.s32.totalorder %s1027_s21, 0  ;;  %s42_s27 = sadd.s32 1, %s1007_s16 }
   0x7   : > { %s1189_s22 = smov (%p27_p0, %s26_s22), 0  ;;  %s1191_s23 = smov (!%p27_p0, %s33_s23), %s1023_s20 }
   0x8   : > { %p51_p3 = por %p50_p2, %p49_p1  ;;  %p35_p4 = scmp.ge.s32.totalorder %s1191_s23, 2 }
   0x9   : > { %s38_s24 = ssub.s32 %s1019_s19, %s1189_s22  ;;  %p783_p6 = scmp.ge.s32.totalorder %s1027_s21, 6 }
   0xa   : > { %s1193_s23 = smov (%p35_p4, %s1191_s23), 0 }
   0xb   : > { %s37_s25 = ssub.s32 %s1023_s20, %s1193_s23  ;;  %195 = sbr.rel (%p783_p6) target bundleno = 30 (0x1e), region = 24 }
   0xc   : > { %s39_s26 = sor.u32 %s38_s24, %s37_s25 }
   0xd   : > { %p40_p5 = scmp.eq.s32.totalorder %s39_s26, 0 }
   0xf   : > { %s1106_s28 = scalar_select %p40_p5, %s1007_s16, %s42_s27  }
  0x12   : > { %198 = sbr.rel (!%p51_p3) target bundleno = 30 (0x1e), region = 28  ;;  %s200_s29 = sand.u32 (%p51_p3), 1, %s1007_s16  }
  0x13   : > { %s903_s30 = smul.u32 (%p51_p3), 24, %s1023_s20  ;;  %s784_s5 = sshll.u32 (%p51_p3), %s200_s29, 5 }
  0x14   : > { %s202_s11 = scalar_lea.vmem (%p51_p3), [#allocation3], %s784_s5 }
  0x15   : > { %s205_s6 = sadd.s32 (%p51_p3), %s1019_s19, %s903_s30 }
  0x16   : > { %s787_s7 = sshll.u32 (%p51_p3), %s205_s6, 2 }
  0x17   : > { %s207_s10 = scalar_lea.vmem (%p51_p3), %s1177_s0, %s787_s7 }
  0x18   : > { %v223_v0 = vld [vmem:[%s207_s10] sm:$0xf] (%p51_p3)  ;;  %v225_v1 = vld [vmem:[%s207_s10 + $0xc] sm:$0xf] (%p51_p3)  ;;  %v227_v2 = vld [vmem:[%s207_s10 + $0x18] sm:$0xf] (%p51_p3) }
  0x19   : > { %224 = vst [vmem:[%s202_s11] sm:$0xf] %v223_v0  ;;  %226 = vst [vmem:[%s202_s11 + $0x4] sm:$0xf] %v225_v1  ;;  %v229_v3 = vld [vmem:[%s207_s10 + $0x24] sm:$0xf] }
  0x1a   : > { %228 = vst [vmem:[%s202_s11 + $0x8] sm:$0xf] %v227_v2  ;;  %v231_v4 = vld [vmem:[%s207_s10 + $0x30] sm:$0xf]  ;;  %v233_v5 = vld [vmem:[%s207_s10 + $0x3c] sm:$0xf] }
  0x1b   : > { %230 = vst [vmem:[%s202_s11 + $0xc] sm:$0xf] %v229_v3  ;;  %232 = vst [vmem:[%s202_s11 + $0x10] sm:$0xf] %v231_v4  ;;  %v235_v6 = vld [vmem:[%s207_s10 + $0x48] sm:$0xf] }
  0x1c   : > { %234 = vst [vmem:[%s202_s11 + $0x14] sm:$0xf] %v233_v5  ;;  %v237_v7 = vld [vmem:[%s207_s10 + $0x54] sm:$0xf]  ;;  %236 = vst [vmem:[%s202_s11 + $0x18] sm:$0xf] %v235_v6 }
  0x1d   : > { %238 = vst [vmem:[%s202_s11 + $0x1c] sm:$0xf] %v237_v7 }
  0x1e PF: > { %p788_p7 = scmp.ge.s32.totalorder %s1027_s21, 1  ;;  %p288_p8 = scmp.lt.s32.totalorder %s1027_s21, 7 }
  0x20   : > { %p289_p9 = pnand %p788_p7, %p288_p8 }
  0x21   : > { %s295_s12 = sand.u32 (!%p289_p9), 1, %s1003_s15   ;;  %s790_s13 = sshll.u32 (!%p289_p9), %s1011_s17, 4 }
  0x22   : > { %292 = sbr.rel (%p289_p9) target bundleno = 319 (0x13f), region = 73  ;;  %s789_s14 = sshll.u32 (!%p289_p9), %s295_s12, 5 }
  0x23   : > { %p339_p10 = scmp.lt.s32.totalorder (!%p289_p9), %s790_s13, 47  ;;  %s792_s24 = sshll.u32 (!%p289_p9), %s1015_s18, 3 }
  0x24   : > { %p354_p11 = scmp.lt.s32.totalorder (!%p289_p9), %s792_s24, 15  ;;  %s1130_s15 = scalar_lea.vmem (!%p289_p9), [#allocation3], %s789_s14 }
  0x25   : > { %p794_p12 = scmp.ne.s32.totalorder (!%p289_p9), %s1011_s17, 0 }
  0x29   : > { %s1195_s13 = smov (!%p339_p10, %s790_s13), 47  ;;  %s1197_s24 = smov (!%p354_p11, %s792_s24), 15 }
  0x2a   : > { %s791_s25 = sshll.u32 %s1195_s13, 2  ;;  %s793_s30 = sshll.u32 %s1197_s24, 2  ;;  %v1029_v8 = vmov (!%p794_p12), 0.0  }
  0x2b   : > { %s1123_s29 = scalar_lea.vmem %s1178_s1, %s791_s25  ;;  %s1128_s7 = scalar_lea.vmem %s1181_s4, %s793_s30  ;;  %367 = vst [vmem:[#allocation2] sm:$0xff] (!%p794_p12), %v1029_v8  ;;  %368 = vst [vmem:[#allocation2 + $0x8] sm:$0xff] (!%p794_p12), %v1029_v8 }
  0x2c   : > { %366 = sbr.rel (%p794_p12) target bundleno = 51 (0x33), region = 81  ;;  %369 = vst [vmem:[#allocation2 + $0x10] sm:$0xff] (!%p794_p12), %v1029_v8  ;;  %370 = vst [vmem:[#allocation2 + $0x18] sm:$0xff] (!%p794_p12), %v1029_v8 }
  0x2d   : > { %371 = vst [vmem:[#allocation2 + $0x20] sm:$0xff] (!%p794_p12), %v1029_v8  ;;  %372 = vst [vmem:[#allocation2 + $0x28] sm:$0xff] (!%p794_p12), %v1029_v8 }
  0x2e   : > { %373 = vst [vmem:[#allocation2 + $0x30] sm:$0xff] (!%p794_p12), %v1029_v8  ;;  %374 = vst [vmem:[#allocation2 + $0x38] sm:$0xff] (!%p794_p12), %v1029_v8 }
  0x33 PF: > { %v961_v9 = vld [vmem:[%s1123_s29] sm:$0xff]   ;;  %v962_v10 = vld [vmem:[%s1123_s29 + $0x8] sm:$0xff]   ;;  %v963_v11 = vld [vmem:[%s1123_s29 + $0x10] sm:$0xff]   ;;  %p807_p13 = scmp.ne.s32.totalorder %s1011_s17, 2 }
  0x34   : > { %863 = vmatprep.subr.bf16.mxu0 %v961_v9  ;;  %887 = vmatprep.subr.bf16.mxu1 %v961_v9  ;;  %v964_v12 = vld [vmem:[%s1123_s29 + $0x18] sm:$0xff]   ;;  %v969_v13 = vld [vmem:[%s1130_s15] sm:$0xff]   ;;  %v970_v14 = vld [vmem:[%s1130_s15 + $0x10] sm:$0xff]  }
  0x35   : > { %864 = vmatpush3.bf16.msra.mxu0 %v961_v9  ;;  %895 = vmatpush3.bf16.msra.mxu1 %v961_v9  ;;  %v965_v15 = vld [vmem:[%s1123_s29 + $0x20] sm:$0xff]   ;;  %v966_v16 = vld [vmem:[%s1123_s29 + $0x28] sm:$0xff]   ;;  %v967_v17 = vld [vmem:[%s1123_s29 + $0x30] sm:$0xff]  }
  0x36   : > { %865 = vmatprep.subr.bf16.mxu0 %v962_v10  ;;  %888 = vmatprep.subr.bf16.mxu1 %v962_v10  ;;  %v968_v18 = vld [vmem:[%s1123_s29 + $0x38] sm:$0xff]   ;;  %v971_v19 = vld [vmem:[%s1130_s15 + $0x8] sm:$0xff]   ;;  %v377_v21 = vld [vmem:[#allocation2 + $0x10] sm:$0xff] }
  0x37   : > { %879 = vmatprep.mubr.bf16.mxu0 %v969_v13  ;;  %883 = vmatprep.mubr.bf16.mxu1 %v970_v14  ;;  %v972_v20 = vld [vmem:[%s1130_s15 + $0x18] sm:$0xff]   ;;  %v381_v22 = vld [vmem:[#allocation2 + $0x30] sm:$0xff]  ;;  %v375_v23 = vld [vmem:[#allocation2] sm:$0xff] }
  0x38   : > { %v379_v24 = vld [vmem:[#allocation2 + $0x20] sm:$0xff]  ;;  %v378_v27 = vld [vmem:[#allocation2 + $0x18] sm:$0xff]  ;;  %v376_v33 = vld [vmem:[#allocation2 + $0x8] sm:$0xff] }
  0x39   : > { %866 = vmatpush3.bf16.msra.mxu0 %v962_v10  ;;  %896 = vmatpush3.bf16.msra.mxu1 %v962_v10  ;;  %v382_v28 = vld [vmem:[#allocation2 + $0x38] sm:$0xff]  ;;  %v380_v34 = vld [vmem:[#allocation2 + $0x28] sm:$0xff]  ;;  %v808_v47 = vld [vmem:[%s1179_s2] ss:$0 sm:$0xff] (!%p807_p13) }
  0x3a   : > { %867 = vmatprep.subr.bf16.mxu0 %v963_v11  ;;  %889 = vmatprep.subr.bf16.mxu1 %v963_v11  ;;  %v809_v50 = vld [vmem:[%s1180_s3] ss:$0 sm:$0xff] (!%p807_p13) }
  0x3d   : > { %868 = vmatpush3.bf16.msra.mxu0 %v963_v11  ;;  %897 = vmatpush3.bf16.msra.mxu1 %v963_v11 }
  0x3e   : > { %869 = vmatprep.subr.bf16.mxu0 %v964_v12  ;;  %890 = vmatprep.subr.bf16.mxu1 %v964_v12 }
  0x41   : > { %870 = vmatpush3.bf16.msra.mxu0 %v964_v12  ;;  %898 = vmatpush3.bf16.msra.mxu1 %v964_v12 }
  0x42   : > { %871 = vmatprep.subr.bf16.mxu0 %v965_v15  ;;  %891 = vmatprep.subr.bf16.mxu1 %v965_v15 }
  0x45   : > { %872 = vmatpush3.bf16.msra.mxu0 %v965_v15  ;;  %899 = vmatpush3.bf16.msra.mxu1 %v965_v15 }
  0x46   : > { %873 = vmatprep.subr.bf16.mxu0 %v966_v16  ;;  %892 = vmatprep.subr.bf16.mxu1 %v966_v16 }
  0x49   : > { %874 = vmatpush3.bf16.msra.mxu0 %v966_v16  ;;  %900 = vmatpush3.bf16.msra.mxu1 %v966_v16 }
  0x4a   : > { %875 = vmatprep.subr.bf16.mxu0 %v967_v17  ;;  %893 = vmatprep.subr.bf16.mxu1 %v967_v17 }
  0x4d   : > { %876 = vmatpush3.bf16.msra.mxu0 %v967_v17  ;;  %901 = vmatpush3.bf16.msra.mxu1 %v967_v17 }
  0x4e   : > { %877 = vmatprep.subr.bf16.mxu0 %v968_v18  ;;  %894 = vmatprep.subr.bf16.mxu1 %v968_v18 }
  0x51   : > { %878 = vmatpush3.bf16.msra.mxu0 %v968_v18  ;;  %902 = vmatpush3.bf16.msra.mxu1 %v968_v18 }
  0x54   : > { %880 = vmatmul.mubr.bf16.vlgmr.msra.gmra.mrb[0].mxu0 %v971_v19  ;;  %884 = vmatmul.mubr.bf16.vlgmr.msra.gmra.mrb[0].mxu1 %v972_v20 }
 0x127   : > { %v881_v25 = vpop.f32.mrb[0].mxu0  ;;  %v885_v26 = vpop.f32.mrb[0].mxu1  ;;  %563 = sbr.rel (%p807_p13) target bundleno = 319 (0x13f), region = 85 }
 0x128   : > { %v546_v29 = vadd.f32 %v881_v25, %v377_v21  ;;  %v550_v30 = vadd.f32 %v885_v26, %v381_v22  ;;  %v513_v31 = vpop.f32.mrb[1].mxu0  ;;  %v529_v32 = vpop.f32.mrb[1].mxu1 }
 0x129   : > { %v544_v35 = vadd.f32 %v513_v31, %v375_v23  ;;  %v548_v36 = vadd.f32 %v529_v32, %v379_v24  ;;  %v882_v37 = vpop.f32.mrb[2].mxu0  ;;  %v886_v38 = vpop.f32.mrb[2].mxu1 }
 0x12a   : > { %554 = vst [vmem:[#allocation2 + $0x10] sm:$0xff] %v546_v29  ;;  %558 = vst [vmem:[#allocation2 + $0x30] sm:$0xff] %v550_v30  ;;  %v547_v39 = vadd.f32 %v882_v37, %v378_v27  ;;  %v551_v40 = vadd.f32 %v886_v38, %v382_v28  ;;  %v516_v41 = vpop.f32.mrb[3].mxu0  ;;  %v532_v42 = vpop.f32.mrb[3].mxu1 }
 0x12b   : > { %552 = vst [vmem:[#allocation2] sm:$0xff] %v544_v35  ;;  %556 = vst [vmem:[#allocation2 + $0x20] sm:$0xff] %v548_v36  ;;  %v545_v43 = vadd.f32 %v516_v41, %v376_v33  ;;  %v549_v44 = vadd.f32 %v532_v42, %v380_v34 }
 0x12c   : > { %555 = vst [vmem:[#allocation2 + $0x18] sm:$0xff] %v547_v39  ;;  %559 = vst [vmem:[#allocation2 + $0x38] sm:$0xff] %v551_v40 }
 0x12d   : > { %553 = vst [vmem:[#allocation2 + $0x8] sm:$0xff] %v545_v43  ;;  %557 = vst [vmem:[#allocation2 + $0x28] sm:$0xff] %v549_v44 }
 0x131   : > { %v566_v51 = vld [vmem:[#allocation2 + $0x10] sm:$0xff] }
 0x132   : > { %v564_v45 = vld [vmem:[#allocation2] sm:$0xff]  ;;  %v581_v53 = vmul.f32 %v808_v47, %v566_v51  ;;  %v570_v57 = vld [vmem:[#allocation2 + $0x30] sm:$0xff] }
 0x133   : > { %v579_v48 = vmul.f32 %v808_v47, %v564_v45  ;;  %v567_v52 = vld [vmem:[#allocation2 + $0x18] sm:$0xff]  ;;  %v568_v55 = vld [vmem:[#allocation2 + $0x20] sm:$0xff]  ;;  %v585_v1 = vmul.f32 %v808_v47, %v570_v57 }
 0x134   : > { %v565_v46 = vld [vmem:[#allocation2 + $0x8] sm:$0xff]  ;;  %v582_v54 = vmul.f32 %v808_v47, %v567_v52  ;;  %v583_v60 = vmul.f32 %v808_v47, %v568_v55  ;;  %v571_v62 = vld [vmem:[#allocation2 + $0x38] sm:$0xff]  ;;  %v596_v63 = vadd.f32 %v809_v50, %v581_v53 }
 0x135   : > { %v580_v49 = vmul.f32 %v808_v47, %v565_v46  ;;  %v569_v56 = vld [vmem:[#allocation2 + $0x28] sm:$0xff]  ;;  %v594_v58 = vadd.f32 %v809_v50, %v579_v48  ;;  %v586_v2 = vmul.f32 %v808_v47, %v571_v62  ;;  %v600_v9 = vadd.f32 %v809_v50, %v585_v1 }
 0x136   : > { %v584_v61 = vmul.f32 %v808_v47, %v569_v56  ;;  %v597_v0 = vadd.f32 %v809_v50, %v582_v54  ;;  %v598_v5 = vadd.f32 %v809_v50, %v583_v60  ;;  %v604_v7 = vmax.f32 %v596_v63, 0.0 }
 0x137   : > { %v595_v59 = vadd.f32 %v809_v50, %v580_v49  ;;  %v602_v3 = vmax.f32 %v594_v58, 0.0  ;;  %v601_v10 = vadd.f32 %v809_v50, %v586_v2  ;;  %v608_v15 = vmax.f32 %v600_v9, 0.0 }
 0x138   : > { %v599_v6 = vadd.f32 %v809_v50, %v584_v61  ;;  %v605_v8 = vmax.f32 %v597_v0, 0.0  ;;  %v606_v12 = vmax.f32 %v598_v5, 0.0 }
 0x139   : > { %v603_v4 = vmax.f32 %v595_v59, 0.0  ;;  %v609_v16 = vmax.f32 %v601_v10, 0.0 }
 0x13a   : > { %v607_v13 = vmax.f32 %v599_v6, 0.0  ;;  %v836_v14 = vpack.c.bf16 %v605_v8, %v604_v7 }
 0x13b   : > { %v831_v11 = vpack.c.bf16 %v603_v4, %v602_v3  ;;  %v846_v18 = vpack.c.bf16 %v609_v16, %v608_v15 }
 0x13c   : > { %v841_v17 = vpack.c.bf16 %v607_v13, %v606_v12  ;;  %848 = vst [vmem:[%s1128_s7 + $0x8] sm:$0xff] %v836_v14  }
 0x13d   : > { %832 = vst [vmem:[%s1128_s7] sm:$0xff] %v831_v11   ;;  %850 = vst [vmem:[%s1128_s7 + $0x18] sm:$0xff] %v846_v18  }
 0x13e   : > { %849 = vst [vmem:[%s1128_s7 + $0x10] sm:$0xff] %v841_v17  }
 0x13f PF: > { %s14_s21 = sadd.s32 1, %s1027_s21   ;;  %s1182_s15 = smov %s1007_s16 }
 0x140   : > { %p11_p0 = scmp.ge.s32.totalorder %s14_s21, 8   ;;  %s1183_s16 = smov %s1106_s28 }
 0x141   : > { %s1184_s17 = smov %s1019_s19  ;;  %s1185_s18 = smov %s1023_s20 }
 0x142   : > { %s1186_s19 = smov %s1189_s22  ;;  %s1187_s20 = smov %s1193_s23 }
 0x143   :  { %13 = sbr.rel (!%p11_p0) target bundleno = 4 (0x4), region = 129 }

// kernel: _lambda_.24
= control target key start
LH: loop header
LB: loop body
LE: loop exit
PB: predicated region body
PF: predicated region fallthrough
CT: control target
= control target key end

     0   :  { %s906_s15 = smov 0   ;;  %s908_s16 = smov 0   ;;  %s982_s0 = inlined_call_operand.vmem [shape: bf16[128,128], index: 0, kind: input, shape index: {}]   ;;  %s983_s1 = inlined_call_operand.vmem [shape: bf16[128,128], index: 1, kind: input, shape index: {}]   ;;  %s984_s2 = inlined_call_operand.vmem [shape: f32[1,128], index: 2, kind: input, shape index: {}]   ;;  %s985_s3 = inlined_call_operand.vmem [shape: f32[1,128], index: 3, kind: input, shape index: {}]   ;;  %s986_s4 = inlined_call_operand.vmem [shape: bf16[128,128], index: 4, kind: output, shape index: {}]  }
   0x1   :  { %s910_s17 = smov 0  }
   0x2 LB: > { %s33_s18 = sadd.s32 1, %s875_s16  ;;  %p709_p0 = scmp.ge.s32.totalorder %s879_s17, 1  ;;  %s879_s17 = sphi %s910_s17, %s14_s17   ;;  %s875_s16 = sphi %s908_s16, %s988_s16   ;;  %s871_s15 = sphi %s906_s15, %s987_s15  }
   0x3   : > { %p35_p1 = scmp.ge.s32.totalorder %s33_s18, 2  ;;  %p221_p2 = scmp.lt.s32.totalorder %s879_s17, 3 }
   0x5   : > { %s990_s18 = smov (%p35_p1, %s33_s18), 0  ;;  %p222_p3 = pnand %p709_p0, %p221_p2 }
   0x6   : > { %v845_v0 = vld [vmem:[%s983_s1] sm:$0xff] (!%p222_p3)   ;;  %s710_s21 = sshll.u32 (!%p222_p3), %s871_s15, 3  ;;  %v846_v1 = vld [vmem:[%s983_s1 + $0x8] sm:$0xff] (!%p222_p3)   ;;  %v847_v2 = vld [vmem:[%s983_s1 + $0x10] sm:$0xff] (!%p222_p3)  }
   0x7   : > { %225 = sbr.rel (%p222_p3) target bundleno = 261 (0x105), region = 36  ;;  %p268_p4 = scmp.lt.s32.totalorder (!%p222_p3), %s710_s21, 15  ;;  %781 = vmatprep.subr.bf16.mxu0 (!%p222_p3), %v845_v0  ;;  %805 = vmatprep.subr.bf16.mxu1 (!%p222_p3), %v845_v0  ;;  %v848_v3 = vld [vmem:[%s983_s1 + $0x18] sm:$0xff] (!%p222_p3)   ;;  %v849_v6 = vld [vmem:[%s983_s1 + $0x20] sm:$0xff] (!%p222_p3)   ;;  %v850_v7 = vld [vmem:[%s983_s1 + $0x28] sm:$0xff] (!%p222_p3)  }
   0x8   : > { %782 = vmatpush3.bf16.msra.mxu0 (!%p222_p3), %v845_v0  ;;  %813 = vmatpush3.bf16.msra.mxu1 (!%p222_p3), %v845_v0  ;;  %v851_v8 = vld [vmem:[%s983_s1 + $0x30] sm:$0xff] (!%p222_p3)   ;;  %v852_v9 = vld [vmem:[%s983_s1 + $0x38] sm:$0xff] (!%p222_p3)   ;;  %v726_v12 = vld [vmem:[%s984_s2] ss:$0 sm:$0xff] (!%p222_p3) }
   0x9   : > { %783 = vmatprep.subr.bf16.mxu0 (!%p222_p3), %v846_v1  ;;  %806 = vmatprep.subr.bf16.mxu1 (!%p222_p3), %v846_v1  ;;  %v727_v19 = vld [vmem:[%s985_s3] ss:$0 sm:$0xff] (!%p222_p3) }
   0xc   : > { %784 = vmatpush3.bf16.msra.mxu0 (!%p222_p3), %v846_v1  ;;  %814 = vmatpush3.bf16.msra.mxu1 (!%p222_p3), %v846_v1 }
   0xd   : > { %785 = vmatprep.subr.bf16.mxu0 (!%p222_p3), %v847_v2  ;;  %807 = vmatprep.subr.bf16.mxu1 (!%p222_p3), %v847_v2 }
   0xe   : > { %s992_s21 = smov (!%p268_p4, %s710_s21), 15 }
   0xf   : > { %s711_s26 = sshll.u32 %s992_s21, 2 }
  0x10   : > { %s941_s29 = scalar_lea.vmem %s982_s0, %s711_s26  ;;  %786 = vmatpush3.bf16.msra.mxu0 %v847_v2  ;;  %815 = vmatpush3.bf16.msra.mxu1 %v847_v2  ;;  %s298_s24 = scalar_lea.vmem %s986_s4, %s711_s26 }
  0x11   : > { %v853_v4 = vld [vmem:[%s941_s29] sm:$0xff]   ;;  %v854_v5 = vld [vmem:[%s941_s29 + $0x10] sm:$0xff]   ;;  %787 = vmatprep.subr.bf16.mxu0 %v848_v3  ;;  %808 = vmatprep.subr.bf16.mxu1 %v848_v3  ;;  %v855_v10 = vld [vmem:[%s941_s29 + $0x8] sm:$0xff]  }
  0x12   : > { %797 = vmatprep.mubr.bf16.mxu0 %v853_v4  ;;  %801 = vmatprep.mubr.bf16.mxu1 %v854_v5  ;;  %v856_v11 = vld [vmem:[%s941_s29 + $0x18] sm:$0xff]  }
  0x14   : > { %788 = vmatpush3.bf16.msra.mxu0 %v848_v3  ;;  %816 = vmatpush3.bf16.msra.mxu1 %v848_v3 }
  0x15   : > { %789 = vmatprep.subr.bf16.mxu0 %v849_v6  ;;  %809 = vmatprep.subr.bf16.mxu1 %v849_v6 }
  0x18   : > { %790 = vmatpush3.bf16.msra.mxu0 %v849_v6  ;;  %817 = vmatpush3.bf16.msra.mxu1 %v849_v6 }
  0x19   : > { %791 = vmatprep.subr.bf16.mxu0 %v850_v7  ;;  %810 = vmatprep.subr.bf16.mxu1 %v850_v7 }
  0x1c   : > { %792 = vmatpush3.bf16.msra.mxu0 %v850_v7  ;;  %818 = vmatpush3.bf16.msra.mxu1 %v850_v7 }
  0x1d   : > { %793 = vmatprep.subr.bf16.mxu0 %v851_v8  ;;  %811 = vmatprep.subr.bf16.mxu1 %v851_v8 }
  0x20   : > { %794 = vmatpush3.bf16.msra.mxu0 %v851_v8  ;;  %819 = vmatpush3.bf16.msra.mxu1 %v851_v8 }
  0x21   : > { %795 = vmatprep.subr.bf16.mxu0 %v852_v9  ;;  %812 = vmatprep.subr.bf16.mxu1 %v852_v9 }
  0x24   : > { %796 = vmatpush3.bf16.msra.mxu0 %v852_v9  ;;  %820 = vmatpush3.bf16.msra.mxu1 %v852_v9 }
  0x27   : > { %798 = vmatmul.mubr.bf16.vlgmr.msra.gmra.mrb[0].mxu0 %v855_v10  ;;  %802 = vmatmul.mubr.bf16.vlgmr.msra.gmra.mrb[0].mxu1 %v856_v11 }
  0xfa   : > { %v799_v13 = vpop.f32.mrb[0].mxu0  ;;  %v803_v14 = vpop.f32.mrb[0].mxu1 }
  0xfb   : > { %v518_v15 = vmul.f32 %v799_v13, %v726_v12  ;;  %v522_v16 = vmul.f32 %v803_v14, %v726_v12  ;;  %v451_v17 = vpop.f32.mrb[1].mxu0  ;;  %v467_v18 = vpop.f32.mrb[1].mxu1 }
  0xfc   : > { %v516_v20 = vmul.f32 %v726_v12, %v451_v17  ;;  %v520_v21 = vmul.f32 %v726_v12, %v467_v18  ;;  %v800_v22 = vpop.f32.mrb[2].mxu0  ;;  %v804_v23 = vpop.f32.mrb[2].mxu1 }
  0xfd   : > { %v519_v24 = vmul.f32 %v800_v22, %v726_v12  ;;  %v523_v25 = vmul.f32 %v804_v23, %v726_v12  ;;  %v454_v26 = vpop.f32.mrb[3].mxu0  ;;  %v470_v27 = vpop.f32.mrb[3].mxu1  ;;  %v533_v30 = vadd.f32 %v727_v19, %v518_v15  ;;  %v537_v31 = vadd.f32 %v727_v19, %v522_v16 }
  0xfe   : > { %v517_v28 = vmul.f32 %v726_v12, %v454_v26  ;;  %v521_v29 = vmul.f32 %v726_v12, %v470_v27  ;;  %v531_v34 = vadd.f32 %v727_v19, %v516_v20  ;;  %v535_v35 = vadd.f32 %v727_v19, %v520_v21 }
  0xff   : > { %v534_v32 = vadd.f32 %v727_v19, %v519_v24  ;;  %v538_v33 = vadd.f32 %v727_v19, %v523_v25 }
 0x100   : > { %v532_v36 = vadd.f32 %v727_v19, %v517_v28  ;;  %v536_v37 = vadd.f32 %v727_v19, %v521_v29 }
 0x101   : > { %v754_v38 = vpack.c.bf16 %v534_v32, %v533_v30  ;;  %v764_v39 = vpack.c.bf16 %v538_v33, %v537_v31 }
 0x102   : > { %v749_v40 = vpack.c.bf16 %v532_v36, %v531_v34  ;;  %v759_v41 = vpack.c.bf16 %v536_v37, %v535_v35 }
 0x103   : > { %766 = vst [vmem:[%s298_s24 + $0x8] sm:$0xff] %v754_v38   ;;  %768 = vst [vmem:[%s298_s24 + $0x18] sm:$0xff] %v764_v39  }
 0x104   : > { %750 = vst [vmem:[%s298_s24] sm:$0xff] %v749_v40   ;;  %767 = vst [vmem:[%s298_s24 + $0x10] sm:$0xff] %v759_v41  }
 0x105 PF: > { %s14_s17 = sadd.s32 1, %s879_s17   ;;  %s987_s15 = smov %s875_s16 }
 0x106   : > { %p11_p5 = scmp.ge.s32.totalorder %s14_s17, 4   ;;  %s988_s16 = smov %s990_s18 }
 0x108   :  { %13 = sbr.rel (!%p11_p5) target bundleno = 2 (0x2), region = 83 }

// kernel: _lambda_.25
= control target key start
LH: loop header
LB: loop body
LE: loop exit
PB: predicated region body
PF: predicated region fallthrough
CT: control target
= control target key end

     0   :  { %s1039_s18 = smov 0   ;;  %s1041_s19 = smov 0   ;;  %s1116_s0 = inlined_call_operand.vmem [shape: bf16[128,128], index: 0, kind: input, shape index: {}]   ;;  %s1117_s1 = inlined_call_operand.vmem [shape: bf16[128,128], index: 1, kind: input, shape index: {}]   ;;  %s1118_s2 = inlined_call_operand.vmem [shape: f32[1,128], index: 2, kind: input, shape index: {}]   ;;  %s1119_s3 = inlined_call_operand.vmem [shape: f32[1,128], index: 3, kind: input, shape index: {}]   ;;  %s1120_s4 = inlined_call_operand.vmem [shape: bf16[128,128], index: 4, kind: input, shape index: {}]   ;;  %s1121_s5 = inlined_call_operand.vmem [shape: bf16[128,128], index: 5, kind: output, shape index: {}]  }
   0x1   :  { %s1043_s20 = smov 0  }
   0x2 LB: > { %s34_s21 = sadd.s32 1, %s1003_s19  ;;  %p816_p0 = scmp.ge.s32.totalorder %s1007_s20, 1  ;;  %s1007_s20 = sphi %s1043_s20, %s15_s20   ;;  %s1003_s19 = sphi %s1041_s19, %s1123_s19   ;;  %s999_s18 = sphi %s1039_s18, %s1122_s18  }
   0x3   : > { %p36_p1 = scmp.ge.s32.totalorder %s34_s21, 2  ;;  %p262_p2 = scmp.lt.s32.totalorder %s1007_s20, 3 }
   0x5   : > { %s1125_s21 = smov (%p36_p1, %s34_s21), 0  ;;  %p263_p3 = pnand %p816_p0, %p262_p2 }
   0x6   : > { %v973_v0 = vld [vmem:[%s1117_s1] sm:$0xff] (!%p263_p3)   ;;  %s817_s24 = sshll.u32 (!%p263_p3), %s999_s18, 3  ;;  %v974_v1 = vld [vmem:[%s1117_s1 + $0x8] sm:$0xff] (!%p263_p3)   ;;  %v975_v2 = vld [vmem:[%s1117_s1 + $0x10] sm:$0xff] (!%p263_p3)  }
   0x7   : > { %266 = sbr.rel (%p263_p3) target bundleno = 265 (0x109), region = 40  ;;  %p319_p4 = scmp.lt.s32.totalorder (!%p263_p3), %s817_s24, 15  ;;  %909 = vmatprep.subr.bf16.mxu0 (!%p263_p3), %v973_v0  ;;  %933 = vmatprep.subr.bf16.mxu1 (!%p263_p3), %v973_v0  ;;  %v976_v3 = vld [vmem:[%s1117_s1 + $0x18] sm:$0xff] (!%p263_p3)   ;;  %v977_v6 = vld [vmem:[%s1117_s1 + $0x20] sm:$0xff] (!%p263_p3)   ;;  %v978_v7 = vld [vmem:[%s1117_s1 + $0x28] sm:$0xff] (!%p263_p3)  }
   0x8   : > { %910 = vmatpush3.bf16.msra.mxu0 (!%p263_p3), %v973_v0  ;;  %941 = vmatpush3.bf16.msra.mxu1 (!%p263_p3), %v973_v0  ;;  %v979_v8 = vld [vmem:[%s1117_s1 + $0x30] sm:$0xff] (!%p263_p3)   ;;  %v980_v9 = vld [vmem:[%s1117_s1 + $0x38] sm:$0xff] (!%p263_p3)   ;;  %v835_v16 = vld [vmem:[%s1118_s2] ss:$0 sm:$0xff] (!%p263_p3) }
   0x9   : > { %911 = vmatprep.subr.bf16.mxu0 (!%p263_p3), %v974_v1  ;;  %934 = vmatprep.subr.bf16.mxu1 (!%p263_p3), %v974_v1  ;;  %v836_v18 = vld [vmem:[%s1119_s3] ss:$0 sm:$0xff] (!%p263_p3) }
   0xc   : > { %912 = vmatpush3.bf16.msra.mxu0 (!%p263_p3), %v974_v1  ;;  %942 = vmatpush3.bf16.msra.mxu1 (!%p263_p3), %v974_v1 }
   0xd   : > { %913 = vmatprep.subr.bf16.mxu0 (!%p263_p3), %v975_v2  ;;  %935 = vmatprep.subr.bf16.mxu1 (!%p263_p3), %v975_v2 }
   0xe   : > { %s1127_s24 = smov (!%p319_p4, %s817_s24), 15 }
   0xf   : > { %s1066_s29 = sshll.u32 %s1127_s24, 2 }
  0x10   : > { %s1072_s7 = scalar_lea.vmem %s1116_s0, %s1066_s29  ;;  %914 = vmatpush3.bf16.msra.mxu0 %v975_v2  ;;  %943 = vmatpush3.bf16.msra.mxu1 %v975_v2  ;;  %s349_s23 = scalar_lea.vmem %s1120_s4, %s1066_s29 }
  0x11   : > { %v981_v4 = vld [vmem:[%s1072_s7] sm:$0xff]   ;;  %v982_v5 = vld [vmem:[%s1072_s7 + $0x10] sm:$0xff]   ;;  %915 = vmatprep.subr.bf16.mxu0 %v976_v3  ;;  %936 = vmatprep.subr.bf16.mxu1 %v976_v3  ;;  %v983_v10 = vld [vmem:[%s1072_s7 + $0x8] sm:$0xff]   ;;  %s358_s6 = scalar_lea.vmem %s1121_s5, %s1066_s29 }
  0x12   : > { %925 = vmatprep.mubr.bf16.mxu0 %v981_v4  ;;  %929 = vmatprep.mubr.bf16.mxu1 %v982_v5  ;;  %v984_v11 = vld [vmem:[%s1072_s7 + $0x18] sm:$0xff]   ;;  %v891_v12 = vld [vmem:[%s349_s23 + $0x8] sm:$0xff]   ;;  %v856_v14 = vld [vmem:[%s349_s23] sm:$0xff]  }
  0x13   : > { %v893_v13 = vld [vmem:[%s349_s23 + $0x18] sm:$0xff]   ;;  %v892_v15 = vld [vmem:[%s349_s23 + $0x10] sm:$0xff]   ;;  %v861_v19 = vunpack.c.l.bf16 %v891_v12  ;;  %v857_v22 = vunpack.c.l.bf16 %v856_v14  ;;  %v862_v28 = vunpack.c.h.bf16 %v891_v12  ;;  %v858_v34 = vunpack.c.h.bf16 %v856_v14 }
  0x14   : > { %916 = vmatpush3.bf16.msra.mxu0 %v976_v3  ;;  %944 = vmatpush3.bf16.msra.mxu1 %v976_v3  ;;  %v869_v21 = vunpack.c.l.bf16 %v893_v13  ;;  %v865_v23 = vunpack.c.l.bf16 %v892_v15  ;;  %v870_v29 = vunpack.c.h.bf16 %v893_v13  ;;  %v866_v35 = vunpack.c.h.bf16 %v892_v15 }
  0x15   : > { %917 = vmatprep.subr.bf16.mxu0 %v977_v6  ;;  %937 = vmatprep.subr.bf16.mxu1 %v977_v6 }
  0x18   : > { %918 = vmatpush3.bf16.msra.mxu0 %v977_v6  ;;  %945 = vmatpush3.bf16.msra.mxu1 %v977_v6 }
  0x19   : > { %919 = vmatprep.subr.bf16.mxu0 %v978_v7  ;;  %938 = vmatprep.subr.bf16.mxu1 %v978_v7 }
  0x1c   : > { %920 = vmatpush3.bf16.msra.mxu0 %v978_v7  ;;  %946 = vmatpush3.bf16.msra.mxu1 %v978_v7 }
  0x1d   : > { %921 = vmatprep.subr.bf16.mxu0 %v979_v8  ;;  %939 = vmatprep.subr.bf16.mxu1 %v979_v8 }
  0x20   : > { %922 = vmatpush3.bf16.msra.mxu0 %v979_v8  ;;  %947 = vmatpush3.bf16.msra.mxu1 %v979_v8 }
  0x21   : > { %923 = vmatprep.subr.bf16.mxu0 %v980_v9  ;;  %940 = vmatprep.subr.bf16.mxu1 %v980_v9 }
  0x24   : > { %924 = vmatpush3.bf16.msra.mxu0 %v980_v9  ;;  %948 = vmatpush3.bf16.msra.mxu1 %v980_v9 }
  0x27   : > { %926 = vmatmul.mubr.bf16.vlgmr.msra.gmra.mrb[0].mxu0 %v983_v10  ;;  %930 = vmatmul.mubr.bf16.vlgmr.msra.gmra.mrb[0].mxu1 %v984_v11 }
  0xfa   : > { %v927_v17 = vpop.f32.mrb[0].mxu0  ;;  %v931_v20 = vpop.f32.mrb[0].mxu1 }
  0xfb   : > { %v578_v24 = vmul.f32 %v927_v17, %v835_v16  ;;  %v582_v25 = vmul.f32 %v931_v20, %v835_v16  ;;  %v511_v26 = vpop.f32.mrb[1].mxu0  ;;  %v527_v27 = vpop.f32.mrb[1].mxu1 }
  0xfc   : > { %v576_v30 = vmul.f32 %v835_v16, %v511_v26  ;;  %v580_v31 = vmul.f32 %v835_v16, %v527_v27  ;;  %v928_v32 = vpop.f32.mrb[2].mxu0  ;;  %v932_v33 = vpop.f32.mrb[2].mxu1 }
  0xfd   : > { %v593_v36 = vadd.f32 %v836_v18, %v578_v24  ;;  %v597_v37 = vadd.f32 %v836_v18, %v582_v25  ;;  %v579_v38 = vmul.f32 %v928_v32, %v835_v16  ;;  %v583_v39 = vmul.f32 %v932_v33, %v835_v16  ;;  %v514_v40 = vpop.f32.mrb[3].mxu0  ;;  %v530_v41 = vpop.f32.mrb[3].mxu1 }
  0xfe   : > { %v591_v42 = vadd.f32 %v836_v18, %v576_v30  ;;  %v595_v43 = vadd.f32 %v836_v18, %v580_v31  ;;  %v577_v44 = vmul.f32 %v835_v16, %v514_v40  ;;  %v581_v45 = vmul.f32 %v835_v16, %v530_v41 }
  0xff   : > { %v617_v46 = vadd.f32 %v861_v19, %v593_v36  ;;  %v621_v47 = vadd.f32 %v869_v21, %v597_v37  ;;  %v594_v48 = vadd.f32 %v836_v18, %v579_v38  ;;  %v598_v49 = vadd.f32 %v836_v18, %v583_v39 }
 0x100   : > { %v615_v50 = vadd.f32 %v857_v22, %v591_v42  ;;  %v619_v51 = vadd.f32 %v865_v23, %v595_v43  ;;  %v592_v52 = vadd.f32 %v836_v18, %v577_v44  ;;  %v596_v53 = vadd.f32 %v836_v18, %v581_v45 }
 0x101   : > { %v618_v54 = vadd.f32 %v862_v28, %v594_v48  ;;  %v622_v55 = vadd.f32 %v870_v29, %v598_v49  ;;  %v625_v58 = vmax.f32 %v617_v46, 0.0  ;;  %v629_v59 = vmax.f32 %v621_v47, 0.0 }
 0x102   : > { %v616_v56 = vadd.f32 %v858_v34, %v592_v52  ;;  %v620_v57 = vadd.f32 %v866_v35, %v596_v53  ;;  %v623_v62 = vmax.f32 %v615_v50, 0.0  ;;  %v627_v63 = vmax.f32 %v619_v51, 0.0 }
 0x103   : > { %v626_v60 = vmax.f32 %v618_v54, 0.0  ;;  %v630_v61 = vmax.f32 %v622_v55, 0.0 }
 0x104   : > { %v624_v0 = vmax.f32 %v616_v56, 0.0  ;;  %v628_v1 = vmax.f32 %v620_v57, 0.0 }
 0x105   : > { %v879_v2 = vpack.c.bf16 %v626_v60, %v625_v58  ;;  %v889_v3 = vpack.c.bf16 %v630_v61, %v629_v59 }
 0x106   : > { %v874_v4 = vpack.c.bf16 %v624_v0, %v623_v62  ;;  %v884_v5 = vpack.c.bf16 %v628_v1, %v627_v63 }
 0x107   : > { %894 = vst [vmem:[%s358_s6 + $0x8] sm:$0xff] %v879_v2   ;;  %896 = vst [vmem:[%s358_s6 + $0x18] sm:$0xff] %v889_v3  }
 0x108   : > { %875 = vst [vmem:[%s358_s6] sm:$0xff] %v874_v4   ;;  %895 = vst [vmem:[%s358_s6 + $0x10] sm:$0xff] %v884_v5  }
 0x109 PF: > { %s15_s20 = sadd.s32 1, %s1007_s20   ;;  %s1122_s18 = smov %s1003_s19 }
 0x10a   : > { %p12_p5 = scmp.ge.s32.totalorder %s15_s20, 4   ;;  %s1123_s19 = smov %s1125_s21 }
 0x10c   :  { %14 = sbr.rel (!%p12_p5) target bundleno = 2 (0x2), region = 90 }

// kernel: _lambda_.27
= control target key start
LH: loop header
LB: loop body
LE: loop exit
PB: predicated region body
PF: predicated region fallthrough
CT: control target
= control target key end

     0   :  { %s850_s15 = smov 0   ;;  %s852_s16 = smov 0   ;;  %s968_s0 = inlined_call_operand.vmem [shape: bf16[32,640], index: 0, kind: input, shape index: {}]   ;;  %s969_s1 = inlined_call_operand.vmem [shape: bf16[640,128], index: 1, kind: input, shape index: {}]   ;;  %s970_s2 = inlined_call_operand.vmem [shape: f32[1,128], index: 2, kind: input, shape index: {}]   ;;  %s971_s3 = inlined_call_operand.vmem [shape: f32[1,128], index: 3, kind: input, shape index: {}]   ;;  %s972_s4 = inlined_call_operand.vmem [shape: bf16[32,128], index: 4, kind: output, shape index: {}]  }
   0x1   :  { %s854_s17 = smov 0   ;;  %s856_s18 = smov 0  }
   0x2   :  { %s858_s19 = smov 0   ;;  %s860_s20 = smov 0  }
   0x3   :  { %s862_s21 = smov 0  }
   0x4 LB: > { %s26_s22 = sadd.s32 1, %s812_s19  ;;  %s33_s23 = sadd.s32 1, %s816_s20  ;;  %s820_s21 = sphi %s862_s21, %s14_s21   ;;  %s816_s20 = sphi %s860_s20, %s978_s20   ;;  %s812_s19 = sphi %s858_s19, %s977_s19   ;;  %s808_s18 = sphi %s856_s18, %s976_s18   ;;  %s804_s17 = sphi %s854_s17, %s975_s17   ;;  %s800_s16 = sphi %s852_s16, %s974_s16   ;;  %s796_s15 = sphi %s850_s15, %s973_s15  }
   0x5   : > { %p27_p0 = scmp.ge.s32.totalorder %s26_s22, 5  ;;  %p49_p1 = scmp.ne.s32.totalorder %s800_s16, %s796_s15 }
   0x6   : > { %p50_p2 = scmp.eq.s32.totalorder %s820_s21, 0  ;;  %s42_s27 = sadd.s32 1, %s800_s16 }
   0x7   : > { %s980_s22 = smov (%p27_p0, %s26_s22), 0  ;;  %s982_s23 = smov (!%p27_p0, %s33_s23), %s816_s20 }
   0x8   : > { %p51_p3 = por %p50_p2, %p49_p1  ;;  %p35_p4 = scmp.ge.s32.totalorder %s982_s23, 2 }
   0x9   : > { %s38_s24 = ssub.s32 %s812_s19, %s980_s22  ;;  %p633_p6 = scmp.ge.s32.totalorder %s820_s21, 10 }
   0xa   : > { %s984_s23 = smov (%p35_p4, %s982_s23), 0 }
   0xb   : > { %s37_s25 = ssub.s32 %s816_s20, %s984_s23  ;;  %195 = sbr.rel (%p633_p6) target bundleno = 26 (0x1a), region = 24 }
   0xc   : > { %s39_s26 = sor.u32 %s38_s24, %s37_s25 }
   0xd   : > { %p40_p5 = scmp.eq.s32.totalorder %s39_s26, 0 }
   0xf   : > { %s901_s28 = scalar_select %p40_p5, %s800_s16, %s42_s27  }
  0x12   : > { %198 = sbr.rel (!%p51_p3) target bundleno = 26 (0x1a), region = 28  ;;  %s200_s29 = sand.u32 (%p51_p3), 1, %s800_s16  }
  0x13   : > { %s697_s30 = smul.u32 (%p51_p3), 10, %s816_s20  ;;  %s634_s5 = sshll.u32 (%p51_p3), %s200_s29, 3 }
  0x14   : > { %s202_s11 = scalar_lea.vmem (%p51_p3), [#allocation3], %s634_s5 }
  0x15   : > { %s205_s6 = sadd.s32 (%p51_p3), %s812_s19, %s697_s30 }
  0x16   : > { %s637_s7 = sshll.u32 (%p51_p3), %s205_s6, 2 }
  0x17   : > { %s207_s10 = scalar_lea.vmem (%p51_p3), %s968_s0, %s637_s7 }
  0x18   : > { %v223_v0 = vld [vmem:[%s207_s10] sm:$0xf] (%p51_p3)  ;;  %v225_v1 = vld [vmem:[%s207_s10 + $0x14] sm:$0xf] (%p51_p3) }
  0x19   : > { %224 = vst [vmem:[%s202_s11] sm:$0xf] %v223_v0  ;;  %226 = vst [vmem:[%s202_s11 + $0x4] sm:$0xf] %v225_v1 }
  0x1a PF: > { %p638_p7 = scmp.ge.s32.totalorder %s820_s21, 1  ;;  %p264_p8 = scmp.lt.s32.totalorder %s820_s21, 11 }
  0x1c   : > { %p265_p9 = pnand %p638_p7, %p264_p8 }
  0x1d   : > { %s271_s12 = sand.u32 (!%p265_p9), 1, %s796_s15   ;;  %s640_s13 = sshll.u32 (!%p265_p9), %s804_s17, 4 }
  0x1e   : > { %268 = sbr.rel (%p265_p9) target bundleno = 313 (0x139), region = 73  ;;  %s914_s14 = sshll.u32 (!%p265_p9), %s271_s12, 3 }
  0x1f   : > { %p315_p10 = scmp.lt.s32.totalorder (!%p265_p9), %s640_s13, 79  ;;  %s642_s24 = sshll.u32 (!%p265_p9), %s808_s18, 1 }
  0x20   : > { %p330_p11 = scmp.lt.s32.totalorder (!%p265_p9), %s642_s24, 3  ;;  %s273_s7 = scalar_lea.vmem (!%p265_p9), [#allocation3], %s914_s14 }
  0x21   : > { %p644_p12 = scmp.ne.s32.totalorder (!%p265_p9), %s804_s17, 0 }
  0x25   : > { %s986_s13 = smov (!%p315_p10, %s640_s13), 79  ;;  %s988_s24 = smov (!%p330_p11, %s642_s24), 3 }
  0x26   : > { %s641_s25 = sshll.u32 %s986_s13, 2  ;;  %s643_s30 = sshll.u32 %s988_s24, 2  ;;  %v822_v2 = vmov (!%p644_p12), 0.0  }
  0x27   : > { %s920_s29 = scalar_lea.vmem %s969_s1, %s641_s25  ;;  %s925_s15 = scalar_lea.vmem %s972_s4, %s643_s30  ;;  %343 = vst [vmem:[#allocation2] sm:$0xff] (!%p644_p12), %v822_v2  ;;  %344 = vst [vmem:[#allocation2 + $0x8] sm:$0xff] (!%p644_p12), %v822_v2 }
  0x28   : > { %342 = sbr.rel (%p644_p12) target bundleno = 47 (0x2f), region = 81 }
  0x2f PF: > { %v757_v3 = vld [vmem:[%s920_s29] sm:$0xff]   ;;  %v823_v4 = vmov 0.0   ;;  %v758_v5 = vld [vmem:[%s920_s29 + $0x8] sm:$0xff]   ;;  %vm824_vm0 = vmmov 0   ;;  %v759_v6 = vld [vmem:[%s920_s29 + $0x10] sm:$0xff]   ;;  %p654_p13 = scmp.ne.s32.totalorder %s804_s17, 4 }
  0x30   : > { %677 = vmatprep.subr.bf16.mxu0 %v823_v4  ;;  %693 = vmatprep.mubr.msk.bf16.mxu0 %vm824_vm0, %v823_v4  ;;  %v760_v7 = vld [vmem:[%s920_s29 + $0x18] sm:$0xff]   ;;  %v761_v8 = vld [vmem:[%s920_s29 + $0x20] sm:$0xff]   ;;  %v762_v9 = vld [vmem:[%s920_s29 + $0x28] sm:$0xff]  }
  0x31   : > { %678 = vmatpush3.bf16.msra.mxu0 %v757_v3  ;;  %v763_v10 = vld [vmem:[%s920_s29 + $0x30] sm:$0xff]   ;;  %v764_v11 = vld [vmem:[%s920_s29 + $0x38] sm:$0xff]   ;;  %v345_v13 = vld [vmem:[#allocation2] sm:$0xff] }
  0x32   : > { %679 = vmatprep.subr.bf16.mxu0 %v823_v4  ;;  %v765_v12 = vld [vmem:[%s273_s7] sm:$0xff]   ;;  %v346_v15 = vld [vmem:[#allocation2 + $0x8] sm:$0xff]  ;;  %v655_v23 = vld [vmem:[%s970_s2] ss:$0 sm:$0xff] (!%p654_p13) }
  0x33   : > { %v656_v26 = vld [vmem:[%s971_s3] ss:$0 sm:$0xff] (!%p654_p13) }
  0x35   : > { %680 = vmatpush3.bf16.msra.mxu0 %v758_v5 }
  0x36   : > { %681 = vmatprep.subr.bf16.mxu0 %v823_v4 }
  0x39   : > { %682 = vmatpush3.bf16.msra.mxu0 %v759_v6 }
  0x3a   : > { %683 = vmatprep.subr.bf16.mxu0 %v823_v4 }
  0x3d   : > { %684 = vmatpush3.bf16.msra.mxu0 %v760_v7 }
  0x3e   : > { %685 = vmatprep.subr.bf16.mxu0 %v823_v4 }
  0x41   : > { %686 = vmatpush3.bf16.msra.mxu0 %v761_v8 }
  0x42   : > { %687 = vmatprep.subr.bf16.mxu0 %v823_v4 }
  0x45   : > { %688 = vmatpush3.bf16.msra.mxu0 %v762_v9 }
  0x46   : > { %689 = vmatprep.subr.bf16.mxu0 %v823_v4 }
  0x49   : > { %690 = vmatpush3.bf16.msra.mxu0 %v763_v10 }
  0x4a   : > { %691 = vmatprep.subr.bf16.mxu0 %v823_v4 }
  0x4d   : > { %692 = vmatpush3.bf16.msra.mxu0 %v764_v11 }
  0x50   : > { %694 = vmatmul.mubr.bf16.vlgmr.msra.gmra.mrb[0].mxu0 %v765_v12 }
 0x122   : > { %467 = sbr.rel (%p654_p13) target bundleno = 313 (0x139), region = 85 }
 0x123   : > { %v453_v14 = vpop.f32.mrb[0].mxu0 }
 0x124   : > { %v460_v16 = vadd.f32 %v453_v14, %v345_v13  ;;  %v695_v17 = vpop.f32.mrb[1].mxu0 }
 0x125   : > { %v456_v18 = vpop.f32.mrb[2].mxu0 }
 0x126   : > { %462 = vst [vmem:[#allocation2] sm:$0xff] %v460_v16  ;;  %v461_v19 = vadd.f32 %v456_v18, %v346_v15  ;;  %v696_v20 = vpop.f32.mrb[3].mxu0 }
 0x128   : > { %463 = vst [vmem:[#allocation2 + $0x8] sm:$0xff] %v461_v19 }
 0x12d   : > { %v468_v21 = vld [vmem:[#allocation2] sm:$0xff] }
 0x12e   : > { %v477_v24 = vmul.f32 %v655_v23, %v468_v21 }
 0x12f   : > { %v469_v22 = vld [vmem:[#allocation2 + $0x8] sm:$0xff] }
 0x130   : > { %v478_v25 = vmul.f32 %v655_v23, %v469_v22  ;;  %v486_v27 = vadd.f32 %v656_v26, %v477_v24 }
 0x132   : > { %v487_v28 = vadd.f32 %v656_v26, %v478_v25  ;;  %v488_v29 = vmax.f32 %v486_v27, 0.0 }
 0x134   : > { %v489_v30 = vmax.f32 %v487_v28, 0.0 }
 0x136   : > { %v666_v31 = vpack.c.bf16 %v489_v30, %v488_v29 }
 0x138   : > { %667 = vst [vmem:[%s925_s15] sm:$0xff] %v666_v31  }
 0x139 PF: > { %s14_s21 = sadd.s32 1, %s820_s21   ;;  %s973_s15 = smov %s800_s16 }
 0x13a   : > { %p11_p0 = scmp.ge.s32.totalorder %s14_s21, 12   ;;  %s974_s16 = smov %s901_s28 }
 0x13b   : > { %s975_s17 = smov %s812_s19  ;;  %s976_s18 = smov %s816_s20 }
 0x13c   : > { %s977_s19 = smov %s980_s22  ;;  %s978_s20 = smov %s984_s23 }
 0x13d   :  { %13 = sbr.rel (!%p11_p0) target bundleno = 4 (0x4), region = 129 }

// kernel: _lambda_.29
= control target key start
LH: loop header
LB: loop body
LE: loop exit
PB: predicated region body
PF: predicated region fallthrough
CT: control target
= control target key end

     0   :  { %s1101_s18 = smov 0   ;;  %s1103_s19 = smov 0   ;;  %s1226_s0 = inlined_call_operand.vmem [shape: bf16[32,128], index: 0, kind: input, shape index: {}]   ;;  %s1227_s1 = inlined_call_operand.vmem [shape: bf16[128,256], index: 1, kind: input, shape index: {}]   ;;  %s1228_s2 = inlined_call_operand.vmem [shape: f32[1,256], index: 2, kind: input, shape index: {}]   ;;  %s1229_s3 = inlined_call_operand.vmem [shape: f32[1,256], index: 3, kind: input, shape index: {}]   ;;  %s1230_s4 = inlined_call_operand.vmem [shape: bf16[32,256], index: 4, kind: input, shape index: {}]   ;;  %s1231_s5 = inlined_call_operand.vmem [shape: bf16[32,256], index: 5, kind: output, shape index: {}]  }
   0x1   :  { %s1105_s20 = smov 0   ;;  %s1107_s21 = smov 0  }
   0x2   :  { %s1109_s22 = smov 0  }
   0x3 LB: > { %s30_s23 = sadd.s32 1, %s1065_s21  ;;  %s894_s24 = sadd.s32 4294967295, %s1069_s22   ;;  %s1069_s22 = sphi %s1109_s22, %s15_s22   ;;  %s1065_s21 = sphi %s1107_s21, %s1237_s21   ;;  %s1061_s20 = sphi %s1105_s20, %s1236_s20   ;;  %s1057_s19 = sphi %s1103_s19, %s1235_s19   ;;  %s1053_s18 = sphi %s1101_s18, %s1234_s18  }
   0x4   : > { %p32_p0 = scmp.ge.s32.totalorder %s30_s23, 2  ;;  %p78_p1 = scmp.ne.s32.totalorder %s1057_s19, %s1053_s18 }
   0x5   : > { %p79_p2 = scmp.eq.s32.totalorder %s1069_s22, 0  ;;  %p190_p4 = scmp.eq.s32.totalorder %s894_s24, 1 }
   0x6   : > { %s1239_s23 = smov (%p32_p0, %s30_s23), 0  ;;  %s71_s27 = sadd.s32 1, %s1057_s19 }
   0x7   : > { %p1133_p3 = por %p79_p2, %p78_p1  ;;  %s67_s26 = ssub.s32 %s1065_s21, %s1239_s23 }
   0x8   : > { %p69_p5 = scmp.eq.s32.totalorder %s67_s26, 0  ;;  %p1140_p6 = por %p190_p4, %p78_p1 }
   0x9   : > { %p898_p7 = scmp.ge.s32.totalorder %s1069_s22, 2 }
   0xa   : > { %s1145_s29 = scalar_select %p69_p5, %s1057_s19, %s71_s27  }
   0xb   : > { %224 = sbr.rel (%p898_p7) target bundleno = 39 (0x27), region = 20 }
  0x12   : > { %227 = sbr.rel (!%p1133_p3) target bundleno = 32 (0x20), region = 24  ;;  %s229_s30 = sand.u32 (%p1133_p3), 1, %s1057_s19  }
  0x13   : > { %s900_s6 = sshll.u32 (%p1133_p3), %s1065_s21, 2  ;;  %s899_s7 = sshll.u32 (%p1133_p3), %s229_s30, 6 }
  0x14   : > { %s1155_s10 = scalar_lea.vmem (%p1133_p3), %s1227_s1, %s900_s6  ;;  %s231_s11 = scalar_lea.vmem (%p1133_p3), [#allocation3], %s899_s7 }
  0x15   : > { %v252_v0 = vld [vmem:[%s1155_s10] sm:$0xf] (%p1133_p3)  ;;  %v254_v1 = vld [vmem:[%s1155_s10 + $0x8] sm:$0xf] (%p1133_p3)  ;;  %v256_v2 = vld [vmem:[%s1155_s10 + $0x10] sm:$0xf] (%p1133_p3) }
  0x16   : > { %253 = vst [vmem:[%s231_s11] sm:$0xf] (%p1133_p3), %v252_v0  ;;  %255 = vst [vmem:[%s231_s11 + $0x4] sm:$0xf] (%p1133_p3), %v254_v1  ;;  %v258_v3 = vld [vmem:[%s1155_s10 + $0x18] sm:$0xf] (%p1133_p3) }
  0x17   : > { %v260_v4 = vld [vmem:[%s1155_s10 + $0x20] sm:$0xf] (%p1133_p3)  ;;  %257 = vst [vmem:[%s231_s11 + $0x8] sm:$0xf] (%p1133_p3), %v256_v2  ;;  %259 = vst [vmem:[%s231_s11 + $0xc] sm:$0xf] (%p1133_p3), %v258_v3 }
  0x18   : > { %261 = vst [vmem:[%s231_s11 + $0x10] sm:$0xf] (%p1133_p3), %v260_v4  ;;  %v262_v5 = vld [vmem:[%s1155_s10 + $0x28] sm:$0xf] (%p1133_p3)  ;;  %v264_v6 = vld [vmem:[%s1155_s10 + $0x30] sm:$0xf] (%p1133_p3) }
  0x19   : > { %v266_v7 = vld [vmem:[%s1155_s10 + $0x38] sm:$0xf]  ;;  %263 = vst [vmem:[%s231_s11 + $0x14] sm:$0xf] %v262_v5  ;;  %265 = vst [vmem:[%s231_s11 + $0x18] sm:$0xf] %v264_v6 }
  0x1a   : > { %267 = vst [vmem:[%s231_s11 + $0x1c] sm:$0xf] %v266_v7  ;;  %v268_v8 = vld [vmem:[%s1155_s10 + $0x40] sm:$0xf]  ;;  %v270_v9 = vld [vmem:[%s1155_s10 + $0x48] sm:$0xf] }
  0x1b   : > { %v272_v10 = vld [vmem:[%s1155_s10 + $0x50] sm:$0xf]  ;;  %269 = vst [vmem:[%s231_s11 + $0x20] sm:$0xf] %v268_v8  ;;  %271 = vst [vmem:[%s231_s11 + $0x24] sm:$0xf] %v270_v9 }
  0x1c   : > { %273 = vst [vmem:[%s231_s11 + $0x28] sm:$0xf] %v272_v10  ;;  %v274_v11 = vld [vmem:[%s1155_s10 + $0x58] sm:$0xf]  ;;  %v276_v12 = vld [vmem:[%s1155_s10 + $0x60] sm:$0xf] }
  0x1d   : > { %v278_v13 = vld [vmem:[%s1155_s10 + $0x68] sm:$0xf]  ;;  %275 = vst [vmem:[%s231_s11 + $0x2c] sm:$0xf] %v274_v11  ;;  %277 = vst [vmem:[%s231_s11 + $0x30] sm:$0xf] %v276_v12 }
  0x1e   : > { %279 = vst [vmem:[%s231_s11 + $0x34] sm:$0xf] %v278_v13  ;;  %v280_v14 = vld [vmem:[%s1155_s10 + $0x70] sm:$0xf]  ;;  %v282_v15 = vld [vmem:[%s1155_s10 + $0x78] sm:$0xf] }
  0x1f   : > { %281 = vst [vmem:[%s231_s11 + $0x38] sm:$0xf] %v280_v14  ;;  %283 = vst [vmem:[%s231_s11 + $0x3c] sm:$0xf] %v282_v15 }
  0x20 PF: > { %350 = sbr.rel (!%p1133_p3) target bundleno = 39 (0x27), region = 73  ;;  %s352_s12 = sand.u32 (%p1133_p3), 1, %s1057_s19  }
  0x21   : > { %s902_s13 = sshll.u32 (%p1133_p3), %s1065_s21, 2  ;;  %s901_s14 = sshll.u32 (%p1133_p3), %s352_s12, 4 }
  0x22   : > { %s359_s17 = scalar_lea.vmem (%p1133_p3), %s1230_s4, %s902_s13  ;;  %s354_s24 = scalar_lea.vmem (%p1133_p3), [#allocation4], %s901_s14 }
  0x23   : > { %v375_v16 = vld [vmem:[%s359_s17] sm:$0xf] (%p1133_p3)  ;;  %v377_v17 = vld [vmem:[%s359_s17 + $0x8] sm:$0xf] (%p1133_p3)  ;;  %v379_v18 = vld [vmem:[%s359_s17 + $0x10] sm:$0xf] (%p1133_p3) }
  0x24   : > { %376 = vst [vmem:[%s354_s24] sm:$0xf] (%p1133_p3), %v375_v16  ;;  %378 = vst [vmem:[%s354_s24 + $0x4] sm:$0xf] (%p1133_p3), %v377_v17  ;;  %v381_v19 = vld [vmem:[%s359_s17 + $0x18] sm:$0xf] (%p1133_p3) }
  0x25   : > { %380 = vst [vmem:[%s354_s24 + $0x8] sm:$0xf] (%p1133_p3), %v379_v18  ;;  %382 = vst [vmem:[%s354_s24 + $0xc] sm:$0xf] (%p1133_p3), %v381_v19 }
  0x27 PF: > { %p903_p8 = scmp.ge.s32.totalorder %s1069_s22, 1  ;;  %p412_p9 = scmp.lt.s32.totalorder %s1069_s22, 3 }
  0x29   : > { %p413_p10 = pnand %p903_p8, %p412_p9 }
  0x2a   : > { %s419_s25 = sand.u32 (!%p413_p10), 1, %s1053_s18   ;;  %v1029_v20 = vld [vmem:[%s1226_s0] sm:$0xff] (!%p413_p10)   ;;  %v1030_v29 = vld [vmem:[%s1226_s0 + $0x8] sm:$0xff] (!%p413_p10)   ;;  %p480_p11 = scmp.lt.s32.totalorder (!%p413_p10), %s1061_s20, 1 }
  0x2b   : > { %416 = sbr.rel (%p413_p10) target bundleno = 313 (0x139), region = 114  ;;  %s904_s30 = sshll.u32 (!%p413_p10), %s419_s25, 6  ;;  %977 = vmatprep.mubr.bf16.mxu0 (!%p413_p10), %v1029_v20 }
  0x2c   : > { %s421_s6 = scalar_lea.vmem (!%p413_p10), [#allocation3], %s904_s30  ;;  %s1195_s10 = sshll.u32 (!%p413_p10), %s419_s25, 4 }
  0x2d   : > { %v1021_v21 = vld [vmem:[%s421_s6] sm:$0xff] (!%p413_p10)   ;;  %v1022_v22 = vld [vmem:[%s421_s6 + $0x8] sm:$0xff] (!%p413_p10)   ;;  %v1023_v23 = vld [vmem:[%s421_s6 + $0x10] sm:$0xff] (!%p413_p10)   ;;  %s428_s17 = scalar_lea.vmem (!%p413_p10), [#allocation4], %s1195_s10  ;;  %s469_s18 = scalar_lea.vmem (!%p413_p10), [#allocation5], %s1195_s10 }
  0x2e   : > { %961 = vmatprep.subr.bf16.mxu0 (!%p413_p10), %v1021_v21  ;;  %v1024_v24 = vld [vmem:[%s421_s6 + $0x18] sm:$0xff] (!%p413_p10)   ;;  %v1025_v25 = vld [vmem:[%s421_s6 + $0x20] sm:$0xff] (!%p413_p10)   ;;  %v1026_v26 = vld [vmem:[%s421_s6 + $0x28] sm:$0xff] (!%p413_p10)  }
  0x2f   : > { %962 = vmatpush3.bf16.msra.mxu0 (!%p413_p10), %v1021_v21  ;;  %v1027_v27 = vld [vmem:[%s421_s6 + $0x30] sm:$0xff] (!%p413_p10)   ;;  %v1028_v28 = vld [vmem:[%s421_s6 + $0x38] sm:$0xff] (!%p413_p10)  }
  0x30   : > { %963 = vmatprep.subr.bf16.mxu0 (!%p413_p10), %v1022_v22  ;;  %v949_v31 = vld [vmem:[%s428_s17 + $0x8] sm:$0xff] (!%p413_p10)   ;;  %v932_v32 = vld [vmem:[%s428_s17] sm:$0xff] (!%p413_p10)  }
  0x31   : > { %v937_v36 = vunpack.c.l.bf16 (!%p413_p10), %v949_v31  ;;  %v933_v39 = vunpack.c.l.bf16 (!%p413_p10), %v932_v32  ;;  %v938_v43 = vunpack.c.h.bf16 (!%p413_p10), %v949_v31  ;;  %v934_v47 = vunpack.c.h.bf16 (!%p413_p10), %v932_v32 }
  0x32   : > { %s481_s9 = scalar_select %p480_p11, %s1061_s20, 1 }
  0x33   : > { %964 = vmatpush3.bf16.msra.mxu0 %v1022_v22  ;;  %s924_s24 = sshll.u32 (%p1140_p6), %s1061_s20, 2 }
  0x34   : > { %965 = vmatprep.subr.bf16.mxu0 %v1023_v23  ;;  %s482_s13 = scalar_lea.vmem %s1228_s2, %s481_s9  ;;  %s485_s16 = scalar_lea.vmem %s1229_s3, %s481_s9 }
  0x35   : > { %v917_v30 = vld [vmem:[%s482_s13] ss:$0 sm:$0xff]  ;;  %s714_s27 = scalar_lea.vmem (%p1140_p6), %s1231_s5, %s924_s24 }
  0x36   : > { %v918_v34 = vld [vmem:[%s485_s16] ss:$0 sm:$0xff] }
  0x37   : > { %966 = vmatpush3.bf16.msra.mxu0 %v1023_v23 }
  0x38   : > { %967 = vmatprep.subr.bf16.mxu0 %v1024_v24 }
  0x3b   : > { %968 = vmatpush3.bf16.msra.mxu0 %v1024_v24 }
  0x3c   : > { %969 = vmatprep.subr.bf16.mxu0 %v1025_v25 }
  0x3f   : > { %970 = vmatpush3.bf16.msra.mxu0 %v1025_v25 }
  0x40   : > { %971 = vmatprep.subr.bf16.mxu0 %v1026_v26 }
  0x43   : > { %972 = vmatpush3.bf16.msra.mxu0 %v1026_v26 }
  0x44   : > { %973 = vmatprep.subr.bf16.mxu0 %v1027_v27 }
  0x47   : > { %974 = vmatpush3.bf16.msra.mxu0 %v1027_v27 }
  0x48   : > { %975 = vmatprep.subr.bf16.mxu0 %v1028_v28 }
  0x4b   : > { %976 = vmatpush3.bf16.msra.mxu0 %v1028_v28 }
  0x4e   : > { %978 = vmatmul.mubr.bf16.vlgmr.msra.gmra.mrb[0].mxu0 %v1030_v29 }
 0x121   : > { %v979_v33 = vpop.f32.mrb[0].mxu0 }
 0x122   : > { %v654_v35 = vmul.f32 %v979_v33, %v917_v30  ;;  %v615_v37 = vpop.f32.mrb[1].mxu0 }
 0x123   : > { %v652_v38 = vmul.f32 %v917_v30, %v615_v37  ;;  %v980_v40 = vpop.f32.mrb[2].mxu0 }
 0x124   : > { %v665_v41 = vadd.f32 %v918_v34, %v654_v35  ;;  %v655_v42 = vmul.f32 %v980_v40, %v917_v30  ;;  %v618_v44 = vpop.f32.mrb[3].mxu0 }
 0x125   : > { %v663_v45 = vadd.f32 %v918_v34, %v652_v38  ;;  %v653_v46 = vmul.f32 %v917_v30, %v618_v44 }
 0x126   : > { %v677_v48 = vadd.f32 %v937_v36, %v665_v41  ;;  %v666_v49 = vadd.f32 %v918_v34, %v655_v42 }
 0x127   : > { %v675_v50 = vadd.f32 %v933_v39, %v663_v45  ;;  %v664_v51 = vadd.f32 %v918_v34, %v653_v46 }
 0x128   : > { %v678_v52 = vadd.f32 %v938_v43, %v666_v49  ;;  %v681_v54 = vmax.f32 %v677_v48, 0.0 }
 0x129   : > { %v676_v53 = vadd.f32 %v934_v47, %v664_v51  ;;  %v679_v56 = vmax.f32 %v675_v50, 0.0  ;;  %709 = sbr.rel (!%p1140_p6) target bundleno = 313 (0x139), region = 134 }
 0x12a   : > { %v682_v55 = vmax.f32 %v678_v52, 0.0 }
 0x12b   : > { %v680_v57 = vmax.f32 %v676_v53, 0.0 }
 0x12c   : > { %v947_v58 = vpack.c.bf16 %v682_v55, %v681_v54 }
 0x12d   : > { %v942_v59 = vpack.c.bf16 %v680_v57, %v679_v56 }
 0x12e   : > { %950 = vst [vmem:[%s469_s18 + $0x8] sm:$0xff] %v947_v58  }
 0x12f   : > { %943 = vst [vmem:[%s469_s18] sm:$0xff] %v942_v59  }
 0x135   : > { %v734_v62 = vld [vmem:[%s469_s18 + $0x8] sm:$0xf]  ;;  %v736_v63 = vld [vmem:[%s469_s18 + $0xc] sm:$0xf] }
 0x136   : > { %v730_v60 = vld [vmem:[%s469_s18] sm:$0xf]  ;;  %v732_v61 = vld [vmem:[%s469_s18 + $0x4] sm:$0xf]  ;;  %735 = vst [vmem:[%s714_s27 + $0x10] sm:$0xf] %v734_v62 }
 0x137   : > { %731 = vst [vmem:[%s714_s27] sm:$0xf] %v730_v60  ;;  %733 = vst [vmem:[%s714_s27 + $0x8] sm:$0xf] %v732_v61 }
 0x138   : > { %737 = vst [vmem:[%s714_s27 + $0x18] sm:$0xf] %v736_v63 }
 0x139 PF: > { %s15_s22 = sadd.s32 1, %s1069_s22   ;;  %s1234_s18 = smov %s1057_s19 }
 0x13a   : > { %p12_p12 = scmp.ge.s32.totalorder %s15_s22, 4   ;;  %s1235_s19 = smov %s1145_s29 }
 0x13b   : > { %s1236_s20 = smov %s1065_s21  ;;  %s1237_s21 = smov %s1239_s23 }
 0x13c   :  { %14 = sbr.rel (!%p12_p12) target bundleno = 3 (0x3), region = 223 }

// kernel: _lambda_.28
= control target key start
LH: loop header
LB: loop body
LE: loop exit
PB: predicated region body
PF: predicated region fallthrough
CT: control target
= control target key end

     0   :  { %s942_s15 = smov 0   ;;  %s944_s16 = smov 0   ;;  %s1050_s0 = inlined_call_operand.vmem [shape: bf16[32,128], index: 0, kind: input, shape index: {}]   ;;  %s1051_s1 = inlined_call_operand.vmem [shape: bf16[128,256], index: 1, kind: input, shape index: {}]   ;;  %s1052_s2 = inlined_call_operand.vmem [shape: f32[1,256], index: 2, kind: input, shape index: {}]   ;;  %s1053_s3 = inlined_call_operand.vmem [shape: f32[1,256], index: 3, kind: input, shape index: {}]   ;;  %s1054_s4 = inlined_call_operand.vmem [shape: bf16[32,256], index: 4, kind: output, shape index: {}]  }
   0x1   :  { %s946_s17 = smov 0   ;;  %s948_s18 = smov 0  }
   0x2   :  { %s950_s19 = smov 0  }
   0x3 LB: > { %s29_s20 = sadd.s32 1, %s911_s18  ;;  %s752_s21 = sadd.s32 4294967295, %s915_s19   ;;  %s915_s19 = sphi %s950_s19, %s14_s19   ;;  %s911_s18 = sphi %s948_s18, %s1059_s18   ;;  %s907_s17 = sphi %s946_s17, %s1058_s17   ;;  %s903_s16 = sphi %s944_s16, %s1057_s16   ;;  %s899_s15 = sphi %s942_s15, %s1056_s15  }
   0x4   : > { %p31_p0 = scmp.ge.s32.totalorder %s29_s20, 2  ;;  %p77_p1 = scmp.ne.s32.totalorder %s903_s16, %s899_s15 }
   0x5   : > { %p78_p2 = scmp.eq.s32.totalorder %s915_s19, 0  ;;  %p161_p4 = scmp.eq.s32.totalorder %s752_s21, 1 }
   0x6   : > { %s1061_s20 = smov (%p31_p0, %s29_s20), 0  ;;  %s70_s23 = sadd.s32 1, %s903_s16 }
   0x7   : > { %p79_p3 = por %p78_p2, %p77_p1  ;;  %s66_s22 = ssub.s32 %s911_s18, %s1061_s20 }
   0x8   : > { %p68_p5 = scmp.eq.s32.totalorder %s66_s22, 0  ;;  %p977_p6 = por %p161_p4, %p77_p1 }
   0x9   : > { %p756_p7 = scmp.ge.s32.totalorder %s915_s19, 2 }
   0xa   : > { %s982_s25 = scalar_select %p68_p5, %s903_s16, %s70_s23  }
   0xb   : > { %195 = sbr.rel (%p756_p7) target bundleno = 32 (0x20), region = 20 }
  0x12   : > { %198 = sbr.rel (!%p79_p3) target bundleno = 32 (0x20), region = 24  ;;  %s200_s26 = sand.u32 (%p79_p3), 1, %s903_s16  }
  0x13   : > { %s758_s27 = sshll.u32 (%p79_p3), %s911_s18, 2  ;;  %s757_s28 = sshll.u32 (%p79_p3), %s200_s26, 6 }
  0x14   : > { %s990_s5 = scalar_lea.vmem (%p79_p3), %s1051_s1, %s758_s27  ;;  %s202_s6 = scalar_lea.vmem (%p79_p3), [#allocation3], %s757_s28 }
  0x15   : > { %v223_v0 = vld [vmem:[%s990_s5] sm:$0xf] (%p79_p3)  ;;  %v225_v1 = vld [vmem:[%s990_s5 + $0x8] sm:$0xf] (%p79_p3)  ;;  %v227_v2 = vld [vmem:[%s990_s5 + $0x10] sm:$0xf] (%p79_p3) }
  0x16   : > { %224 = vst [vmem:[%s202_s6] sm:$0xf] (%p79_p3), %v223_v0  ;;  %226 = vst [vmem:[%s202_s6 + $0x4] sm:$0xf] (%p79_p3), %v225_v1  ;;  %v229_v3 = vld [vmem:[%s990_s5 + $0x18] sm:$0xf] (%p79_p3) }
  0x17   : > { %v231_v4 = vld [vmem:[%s990_s5 + $0x20] sm:$0xf] (%p79_p3)  ;;  %228 = vst [vmem:[%s202_s6 + $0x8] sm:$0xf] (%p79_p3), %v227_v2  ;;  %230 = vst [vmem:[%s202_s6 + $0xc] sm:$0xf] (%p79_p3), %v229_v3 }
  0x18   : > { %232 = vst [vmem:[%s202_s6 + $0x10] sm:$0xf] (%p79_p3), %v231_v4  ;;  %v233_v5 = vld [vmem:[%s990_s5 + $0x28] sm:$0xf] (%p79_p3)  ;;  %v235_v6 = vld [vmem:[%s990_s5 + $0x30] sm:$0xf] (%p79_p3) }
  0x19   : > { %v237_v7 = vld [vmem:[%s990_s5 + $0x38] sm:$0xf]  ;;  %234 = vst [vmem:[%s202_s6 + $0x14] sm:$0xf] %v233_v5  ;;  %236 = vst [vmem:[%s202_s6 + $0x18] sm:$0xf] %v235_v6 }
  0x1a   : > { %238 = vst [vmem:[%s202_s6 + $0x1c] sm:$0xf] %v237_v7  ;;  %v239_v8 = vld [vmem:[%s990_s5 + $0x40] sm:$0xf]  ;;  %v241_v9 = vld [vmem:[%s990_s5 + $0x48] sm:$0xf] }
  0x1b   : > { %v243_v10 = vld [vmem:[%s990_s5 + $0x50] sm:$0xf]  ;;  %240 = vst [vmem:[%s202_s6 + $0x20] sm:$0xf] %v239_v8  ;;  %242 = vst [vmem:[%s202_s6 + $0x24] sm:$0xf] %v241_v9 }
  0x1c   : > { %244 = vst [vmem:[%s202_s6 + $0x28] sm:$0xf] %v243_v10  ;;  %v245_v11 = vld [vmem:[%s990_s5 + $0x58] sm:$0xf]  ;;  %v247_v12 = vld [vmem:[%s990_s5 + $0x60] sm:$0xf] }
  0x1d   : > { %v249_v13 = vld [vmem:[%s990_s5 + $0x68] sm:$0xf]  ;;  %246 = vst [vmem:[%s202_s6 + $0x2c] sm:$0xf] %v245_v11  ;;  %248 = vst [vmem:[%s202_s6 + $0x30] sm:$0xf] %v247_v12 }
  0x1e   : > { %250 = vst [vmem:[%s202_s6 + $0x34] sm:$0xf] %v249_v13  ;;  %v251_v14 = vld [vmem:[%s990_s5 + $0x70] sm:$0xf]  ;;  %v253_v15 = vld [vmem:[%s990_s5 + $0x78] sm:$0xf] }
  0x1f   : > { %252 = vst [vmem:[%s202_s6 + $0x38] sm:$0xf] %v251_v14  ;;  %254 = vst [vmem:[%s202_s6 + $0x3c] sm:$0xf] %v253_v15 }
  0x20 PF: > { %p759_p8 = scmp.ge.s32.totalorder %s915_s19, 1  ;;  %p320_p9 = scmp.lt.s32.totalorder %s915_s19, 3 }
  0x22   : > { %p321_p10 = pnand %p759_p8, %p320_p9 }
  0x23   : > { %s327_s7 = sand.u32 (!%p321_p10), 1, %s899_s15   ;;  %v875_v16 = vld [vmem:[%s1050_s0] sm:$0xff] (!%p321_p10)   ;;  %v876_v25 = vld [vmem:[%s1050_s0 + $0x8] sm:$0xff] (!%p321_p10)   ;;  %p375_p11 = scmp.lt.s32.totalorder (!%p321_p10), %s907_s17, 1 }
  0x24   : > { %324 = sbr.rel (%p321_p10) target bundleno = 302 (0x12e), region = 73  ;;  %s760_s10 = sshll.u32 (!%p321_p10), %s327_s7, 6  ;;  %823 = vmatprep.mubr.bf16.mxu0 (!%p321_p10), %v875_v16 }
  0x25   : > { %s329_s11 = scalar_lea.vmem (!%p321_p10), [#allocation3], %s760_s10  ;;  %s761_s29 = sshll.u32 (!%p321_p10), %s327_s7, 4 }
  0x26   : > { %v867_v17 = vld [vmem:[%s329_s11] sm:$0xff] (!%p321_p10)   ;;  %v868_v18 = vld [vmem:[%s329_s11 + $0x8] sm:$0xff] (!%p321_p10)   ;;  %v869_v19 = vld [vmem:[%s329_s11 + $0x10] sm:$0xff] (!%p321_p10)   ;;  %s364_s30 = scalar_lea.vmem (!%p321_p10), [#allocation4], %s761_s29 }
  0x27   : > { %807 = vmatprep.subr.bf16.mxu0 (!%p321_p10), %v867_v17  ;;  %v870_v20 = vld [vmem:[%s329_s11 + $0x18] sm:$0xff] (!%p321_p10)   ;;  %v871_v21 = vld [vmem:[%s329_s11 + $0x20] sm:$0xff] (!%p321_p10)   ;;  %v872_v22 = vld [vmem:[%s329_s11 + $0x28] sm:$0xff] (!%p321_p10)  }
  0x28   : > { %808 = vmatpush3.bf16.msra.mxu0 (!%p321_p10), %v867_v17  ;;  %v873_v23 = vld [vmem:[%s329_s11 + $0x30] sm:$0xff] (!%p321_p10)   ;;  %v874_v24 = vld [vmem:[%s329_s11 + $0x38] sm:$0xff] (!%p321_p10)  }
  0x29   : > { %809 = vmatprep.subr.bf16.mxu0 (!%p321_p10), %v868_v18 }
  0x2b   : > { %s376_s14 = scalar_select %p375_p11, %s907_s17, 1 }
  0x2c   : > { %810 = vmatpush3.bf16.msra.mxu0 %v868_v18  ;;  %s779_s5 = sshll.u32 (%p977_p6), %s907_s17, 2 }
  0x2d   : > { %811 = vmatprep.subr.bf16.mxu0 %v869_v19  ;;  %s377_s23 = scalar_lea.vmem %s1052_s2, %s376_s14  ;;  %s380_s28 = scalar_lea.vmem %s1053_s3, %s376_s14 }
  0x2e   : > { %v772_v26 = vld [vmem:[%s377_s23] ss:$0 sm:$0xff]  ;;  %s592_s7 = scalar_lea.vmem (%p977_p6), %s1054_s4, %s779_s5 }
  0x2f   : > { %v773_v30 = vld [vmem:[%s380_s28] ss:$0 sm:$0xff] }
  0x30   : > { %812 = vmatpush3.bf16.msra.mxu0 %v869_v19 }
  0x31   : > { %813 = vmatprep.subr.bf16.mxu0 %v870_v20 }
  0x34   : > { %814 = vmatpush3.bf16.msra.mxu0 %v870_v20 }
  0x35   : > { %815 = vmatprep.subr.bf16.mxu0 %v871_v21 }
  0x38   : > { %816 = vmatpush3.bf16.msra.mxu0 %v871_v21 }
  0x39   : > { %817 = vmatprep.subr.bf16.mxu0 %v872_v22 }
  0x3c   : > { %818 = vmatpush3.bf16.msra.mxu0 %v872_v22 }
  0x3d   : > { %819 = vmatprep.subr.bf16.mxu0 %v873_v23 }
  0x40   : > { %820 = vmatpush3.bf16.msra.mxu0 %v873_v23 }
  0x41   : > { %821 = vmatprep.subr.bf16.mxu0 %v874_v24 }
  0x44   : > { %822 = vmatpush3.bf16.msra.mxu0 %v874_v24 }
  0x47   : > { %824 = vmatmul.mubr.bf16.vlgmr.msra.gmra.mrb[0].mxu0 %v876_v25 }
 0x11a   : > { %v825_v27 = vpop.f32.mrb[0].mxu0 }
 0x11b   : > { %v548_v28 = vmul.f32 %v825_v27, %v772_v26  ;;  %v509_v29 = vpop.f32.mrb[1].mxu0 }
 0x11c   : > { %v546_v31 = vmul.f32 %v772_v26, %v509_v29  ;;  %v826_v32 = vpop.f32.mrb[2].mxu0 }
 0x11d   : > { %v549_v33 = vmul.f32 %v826_v32, %v772_v26  ;;  %v512_v34 = vpop.f32.mrb[3].mxu0  ;;  %v559_v36 = vadd.f32 %v773_v30, %v548_v28 }
 0x11e   : > { %v547_v35 = vmul.f32 %v772_v26, %v512_v34  ;;  %v557_v38 = vadd.f32 %v773_v30, %v546_v31  ;;  %587 = sbr.rel (!%p977_p6) target bundleno = 302 (0x12e), region = 89 }
 0x11f   : > { %v560_v37 = vadd.f32 %v773_v30, %v549_v33 }
 0x120   : > { %v558_v39 = vadd.f32 %v773_v30, %v547_v35 }
 0x121   : > { %v794_v40 = vpack.c.bf16 %v560_v37, %v559_v36 }
 0x122   : > { %v789_v41 = vpack.c.bf16 %v558_v39, %v557_v38 }
 0x123   : > { %796 = vst [vmem:[%s364_s30 + $0x8] sm:$0xff] %v794_v40  }
 0x124   : > { %790 = vst [vmem:[%s364_s30] sm:$0xff] %v789_v41  }
 0x12a   : > { %v612_v44 = vld [vmem:[%s364_s30 + $0x8] sm:$0xf]  ;;  %v614_v45 = vld [vmem:[%s364_s30 + $0xc] sm:$0xf] }
 0x12b   : > { %v608_v42 = vld [vmem:[%s364_s30] sm:$0xf]  ;;  %v610_v43 = vld [vmem:[%s364_s30 + $0x4] sm:$0xf]  ;;  %613 = vst [vmem:[%s592_s7 + $0x10] sm:$0xf] %v612_v44 }
 0x12c   : > { %609 = vst [vmem:[%s592_s7] sm:$0xf] %v608_v42  ;;  %611 = vst [vmem:[%s592_s7 + $0x8] sm:$0xf] %v610_v43 }
 0x12d   : > { %615 = vst [vmem:[%s592_s7 + $0x18] sm:$0xf] %v614_v45 }
 0x12e PF: > { %s14_s19 = sadd.s32 1, %s915_s19   ;;  %s1056_s15 = smov %s903_s16 }
 0x12f   : > { %p11_p12 = scmp.ge.s32.totalorder %s14_s19, 4   ;;  %s1057_s16 = smov %s982_s25 }
 0x130   : > { %s1058_s17 = smov %s911_s18  ;;  %s1059_s18 = smov %s1061_s20 }
 0x131   :  { %13 = sbr.rel (!%p11_p12) target bundleno = 3 (0x3), region = 170 }

// kernel: _lambda_.30
= control target key start
LH: loop header
LB: loop body
LE: loop exit
PB: predicated region body
PF: predicated region fallthrough
CT: control target
= control target key end

     0   :  { %s822_s15 = smov 0   ;;  %s824_s16 = smov 0   ;;  %s913_s0 = inlined_call_operand.vmem [shape: bf16[32,256], index: 0, kind: input, shape index: {}]   ;;  %s914_s1 = inlined_call_operand.vmem [shape: bf16[256,128], index: 1, kind: input, shape index: {}]   ;;  %s915_s2 = inlined_call_operand.vmem [shape: f32[1,128], index: 2, kind: input, shape index: {}]   ;;  %s916_s3 = inlined_call_operand.vmem [shape: f32[1,128], index: 3, kind: input, shape index: {}]   ;;  %s917_s4 = inlined_call_operand.vmem [shape: bf16[32,128], index: 4, kind: output, shape index: {}]  }
   0x1   :  { %s826_s17 = smov 0  }
   0x2 LB: > { %s33_s18 = sadd.s32 1, %s791_s16  ;;  %p670_p0 = scmp.ge.s32.totalorder %s795_s17, 1  ;;  %s795_s17 = sphi %s826_s17, %s14_s17   ;;  %s791_s16 = sphi %s824_s16, %s919_s16   ;;  %s787_s15 = sphi %s822_s15, %s918_s15  }
   0x3   : > { %p35_p1 = scmp.ge.s32.totalorder %s33_s18, 2  ;;  %p224_p2 = scmp.lt.s32.totalorder %s795_s17, 3 }
   0x5   : > { %s921_s18 = smov (%p35_p1, %s33_s18), 0  ;;  %p225_p3 = pnand %p670_p0, %p224_p2 }
   0x6   : > { %v754_v0 = vld [vmem:[%s914_s1 + $0x40] sm:$0xff] (!%p225_p3)   ;;  %s671_s21 = sshll.u32 (!%p225_p3), %s787_s15, 1  ;;  %v756_v2 = vld [vmem:[%s914_s1 + $0x48] sm:$0xff] (!%p225_p3)   ;;  %v758_v4 = vld [vmem:[%s914_s1 + $0x50] sm:$0xff] (!%p225_p3)  }
   0x7   : > { %228 = sbr.rel (%p225_p3) target bundleno = 265 (0x109), region = 36  ;;  %v755_v1 = vld [vmem:[%s914_s1] sm:$0xff] (!%p225_p3)   ;;  %708 = vmatprep.subr.bf16.mxu0 (!%p225_p3), %v754_v0  ;;  %v757_v3 = vld [vmem:[%s914_s1 + $0x8] sm:$0xff] (!%p225_p3)   ;;  %p274_p4 = scmp.lt.s32.totalorder (!%p225_p3), %s671_s21, 3  ;;  %v759_v5 = vld [vmem:[%s914_s1 + $0x10] sm:$0xff] (!%p225_p3)  }
   0x8   : > { %709 = vmatpush3.bf16.msra.mxu0 (!%p225_p3), %v755_v1  ;;  %v760_v6 = vld [vmem:[%s914_s1 + $0x58] sm:$0xff] (!%p225_p3)   ;;  %v762_v8 = vld [vmem:[%s914_s1 + $0x60] sm:$0xff] (!%p225_p3)   ;;  %v764_v10 = vld [vmem:[%s914_s1 + $0x68] sm:$0xff] (!%p225_p3)  }
   0x9   : > { %710 = vmatprep.subr.bf16.mxu0 (!%p225_p3), %v756_v2  ;;  %v761_v7 = vld [vmem:[%s914_s1 + $0x18] sm:$0xff] (!%p225_p3)   ;;  %v763_v9 = vld [vmem:[%s914_s1 + $0x20] sm:$0xff] (!%p225_p3)   ;;  %v765_v12 = vld [vmem:[%s914_s1 + $0x28] sm:$0xff] (!%p225_p3)  }
   0xa   : > { %v766_v13 = vld [vmem:[%s914_s1 + $0x70] sm:$0xff] (!%p225_p3)   ;;  %v768_v15 = vld [vmem:[%s914_s1 + $0x78] sm:$0xff] (!%p225_p3)   ;;  %v694_v20 = vld [vmem:[%s915_s2] ss:$0 sm:$0xff] (!%p225_p3) }
   0xb   : > { %v767_v14 = vld [vmem:[%s914_s1 + $0x30] sm:$0xff] (!%p225_p3)   ;;  %v769_v16 = vld [vmem:[%s914_s1 + $0x38] sm:$0xff] (!%p225_p3)   ;;  %v695_v23 = vld [vmem:[%s916_s3] ss:$0 sm:$0xff] (!%p225_p3) }
   0xc   : > { %711 = vmatpush3.bf16.msra.mxu0 (!%p225_p3), %v757_v3 }
   0xd   : > { %712 = vmatprep.subr.bf16.mxu0 (!%p225_p3), %v758_v4 }
   0xe   : > { %s923_s21 = smov (!%p274_p4, %s671_s21), 3 }
   0xf   : > { %s700_s10 = sshll.u32 %s923_s21, 3  ;;  %s675_s12 = sshll.u32 %s923_s21, 2 }
  0x10   : > { %713 = vmatpush3.bf16.msra.mxu0 %v759_v5  ;;  %s281_s15 = scalar_lea.vmem %s913_s0, %s700_s10 }
  0x11   : > { %714 = vmatprep.subr.bf16.mxu0 %v760_v6  ;;  %v772_v11 = vld [vmem:[%s281_s15 + $0x4] ss:$8 sps:$4 sm:$0xff]   ;;  %v770_v17 = vld [vmem:[%s281_s15] ss:$8 sps:$4 sm:$0xff]   ;;  %s306_s15 = scalar_lea.vmem %s917_s4, %s675_s12 }
  0x12   : > { %489 = vmatprep.mubr.bf16.mxu0 %v772_v11 }
  0x14   : > { %715 = vmatpush3.bf16.msra.mxu0 %v761_v7 }
  0x15   : > { %716 = vmatprep.subr.bf16.mxu0 %v762_v8 }
  0x18   : > { %717 = vmatpush3.bf16.msra.mxu0 %v763_v9 }
  0x19   : > { %718 = vmatprep.subr.bf16.mxu0 %v764_v10 }
  0x1c   : > { %719 = vmatpush3.bf16.msra.mxu0 %v765_v12 }
  0x1d   : > { %720 = vmatprep.subr.bf16.mxu0 %v766_v13 }
  0x20   : > { %721 = vmatpush3.bf16.msra.mxu0 %v767_v14 }
  0x21   : > { %722 = vmatprep.subr.bf16.mxu0 %v768_v15 }
  0x24   : > { %723 = vmatpush3.bf16.msra.mxu0 %v769_v16 }
  0x27   : > { %490 = vmatmul.mubr.bf16.vlgmr.msra.gmra.mrb[0].mxu0 %v770_v17 }
  0xfa   : > { %v724_v18 = vpop.f32.mrb[0].mxu0 }
  0xfb   : > { %v725_v19 = vpop.f32.mrb[1].mxu0 }
  0xfc   : > { %v726_v21 = vadd.f32 %v725_v19, %v724_v18  ;;  %v727_v22 = vpop.f32.mrb[2].mxu0 }
  0xfd   : > { %v728_v24 = vpop.f32.mrb[3].mxu0 }
  0xfe   : > { %v514_v25 = vmul.f32 %v726_v21, %v694_v20  ;;  %v729_v26 = vadd.f32 %v728_v24, %v727_v22 }
 0x100   : > { %v523_v27 = vadd.f32 %v695_v23, %v514_v25  ;;  %v515_v28 = vmul.f32 %v729_v26, %v694_v20 }
 0x102   : > { %v524_v29 = vadd.f32 %v695_v23, %v515_v28  ;;  %v525_v30 = vmax.f32 %v523_v27, 0.0 }
 0x104   : > { %v526_v31 = vmax.f32 %v524_v29, 0.0 }
 0x106   : > { %v706_v32 = vpack.c.bf16 %v526_v31, %v525_v30 }
 0x108   : > { %707 = vst [vmem:[%s306_s15] sm:$0xff] %v706_v32  }
 0x109 PF: > { %s14_s17 = sadd.s32 1, %s795_s17   ;;  %s918_s15 = smov %s791_s16 }
 0x10a   : > { %p11_p5 = scmp.ge.s32.totalorder %s14_s17, 4   ;;  %s919_s16 = smov %s921_s18 }
 0x10c   :  { %13 = sbr.rel (!%p11_p5) target bundleno = 2 (0x2), region = 83 }

// kernel: _lambda_.32
= control target key start
LH: loop header
LB: loop body
LE: loop exit
PB: predicated region body
PF: predicated region fallthrough
CT: control target
= control target key end

     0   :  { %s1103_s15 = smov 0   ;;  %s1105_s16 = smov 0   ;;  %s1285_s0 = inlined_call_operand.vmem [shape: bf16[8,256], index: 0, kind: input, shape index: {}]   ;;  %s1286_s1 = inlined_call_operand.vmem [shape: bf16[256,512], index: 1, kind: input, shape index: {}]   ;;  %s1287_s2 = inlined_call_operand.vmem [shape: f32[1,512], index: 2, kind: input, shape index: {}]   ;;  %s1288_s3 = inlined_call_operand.vmem [shape: f32[1,512], index: 3, kind: input, shape index: {}]   ;;  %s1289_s4 = inlined_call_operand.vmem [shape: bf16[8,512], index: 4, kind: output, shape index: {}]  }
   0x1   :  { %s1107_s17 = smov 0   ;;  %s1109_s18 = smov 0  }
   0x2   :  { %s1111_s19 = smov 0  }
   0x3 LB: > { %s29_s20 = sadd.s32 1, %s1072_s18  ;;  %p77_p1 = scmp.ne.s32.totalorder %s1064_s16, %s1060_s15  ;;  %s1076_s19 = sphi %s1111_s19, %s14_s19   ;;  %s1072_s18 = sphi %s1109_s18, %s1293_s18   ;;  %s1068_s17 = sphi %s1107_s17, %s1292_s17   ;;  %s1064_s16 = sphi %s1105_s16, %s1291_s16   ;;  %s1060_s15 = sphi %s1103_s15, %s1290_s15  }
   0x4   : > { %p31_p0 = scmp.ge.s32.totalorder %s29_s20, 2  ;;  %p78_p2 = scmp.eq.s32.totalorder %s1076_s19, 0 }
   0x5   : > { %s70_s22 = sadd.s32 1, %s1064_s16  ;;  %p899_p5 = scmp.ge.s32.totalorder %s1076_s19, 2 }
   0x6   : > { %s1295_s20 = smov (%p31_p0, %s29_s20), 0  ;;  %p79_p3 = por %p78_p2, %p77_p1 }
   0x7   : > { %s66_s21 = ssub.s32 %s1072_s18, %s1295_s20  ;;  %196 = sbr.rel (%p899_p5) target bundleno = 34 (0x22), region = 20 }
   0x8   : > { %p68_p4 = scmp.eq.s32.totalorder %s66_s21, 0 }
   0xa   : > { %s1138_s23 = scalar_select %p68_p4, %s1064_s16, %s70_s22  }
   0xe   : > { %199 = sbr.rel (!%p79_p3) target bundleno = 34 (0x22), region = 24  ;;  %s201_s24 = sand.u32 (%p79_p3), 1, %s1064_s16  }
   0xf   : > { %s946_s25 = sshll.u32 (%p79_p3), %s1072_s18, 3  ;;  %s900_s26 = sshll.u32 (%p79_p3), %s201_s24, 8 }
  0x10   : > { %s1146_s29 = scalar_lea.vmem (%p79_p3), %s1286_s1, %s946_s25  ;;  %s1151_s30 = scalar_lea.vmem (%p79_p3), [#allocation3], %s900_s26 }
  0x11   : > { %v299_v0 = vld [vmem:[%s1146_s29] sm:$0xff] (%p79_p3)  ;;  %v301_v1 = vld [vmem:[%s1146_s29 + $0x10] sm:$0xff] (%p79_p3) }
  0x12   : > { %v303_v2 = vld [vmem:[%s1146_s29 + $0x20] sm:$0xff] (%p79_p3)  ;;  %300 = vst [vmem:[%s1151_s30] sm:$0xff] (%p79_p3), %v299_v0  ;;  %302 = vst [vmem:[%s1151_s30 + $0x8] sm:$0xff] (%p79_p3), %v301_v1  ;;  %v305_v3 = vld [vmem:[%s1146_s29 + $0x30] sm:$0xff] (%p79_p3) }
  0x13   : > { %304 = vst [vmem:[%s1151_s30 + $0x10] sm:$0xff] (%p79_p3), %v303_v2  ;;  %v307_v4 = vld [vmem:[%s1146_s29 + $0x40] sm:$0xff] (%p79_p3)  ;;  %v309_v5 = vld [vmem:[%s1146_s29 + $0x50] sm:$0xff] (%p79_p3)  ;;  %306 = vst [vmem:[%s1151_s30 + $0x18] sm:$0xff] (%p79_p3), %v305_v3 }
  0x14   : > { %308 = vst [vmem:[%s1151_s30 + $0x20] sm:$0xff] (%p79_p3), %v307_v4  ;;  %310 = vst [vmem:[%s1151_s30 + $0x28] sm:$0xff] (%p79_p3), %v309_v5  ;;  %v311_v6 = vld [vmem:[%s1146_s29 + $0x60] sm:$0xff] (%p79_p3)  ;;  %v313_v7 = vld [vmem:[%s1146_s29 + $0x70] sm:$0xff] (%p79_p3) }
  0x15   : > { %v315_v8 = vld [vmem:[%s1146_s29 + $0x80] sm:$0xff]  ;;  %312 = vst [vmem:[%s1151_s30 + $0x30] sm:$0xff] %v311_v6  ;;  %314 = vst [vmem:[%s1151_s30 + $0x38] sm:$0xff] %v313_v7  ;;  %v317_v9 = vld [vmem:[%s1146_s29 + $0x90] sm:$0xff] }
  0x16   : > { %316 = vst [vmem:[%s1151_s30 + $0x40] sm:$0xff] %v315_v8  ;;  %v319_v10 = vld [vmem:[%s1146_s29 + $0xa0] sm:$0xff]  ;;  %v321_v11 = vld [vmem:[%s1146_s29 + $0xb0] sm:$0xff]  ;;  %318 = vst [vmem:[%s1151_s30 + $0x48] sm:$0xff] %v317_v9 }
  0x17   : > { %320 = vst [vmem:[%s1151_s30 + $0x50] sm:$0xff] %v319_v10  ;;  %322 = vst [vmem:[%s1151_s30 + $0x58] sm:$0xff] %v321_v11  ;;  %v323_v12 = vld [vmem:[%s1146_s29 + $0xc0] sm:$0xff]  ;;  %v325_v13 = vld [vmem:[%s1146_s29 + $0xd0] sm:$0xff] }
  0x18   : > { %v327_v14 = vld [vmem:[%s1146_s29 + $0xe0] sm:$0xff]  ;;  %324 = vst [vmem:[%s1151_s30 + $0x60] sm:$0xff] %v323_v12  ;;  %326 = vst [vmem:[%s1151_s30 + $0x68] sm:$0xff] %v325_v13  ;;  %v329_v15 = vld [vmem:[%s1146_s29 + $0xf0] sm:$0xff] }
  0x19   : > { %328 = vst [vmem:[%s1151_s30 + $0x70] sm:$0xff] %v327_v14  ;;  %v331_v16 = vld [vmem:[%s1146_s29 + $0x100] sm:$0xff]  ;;  %v333_v17 = vld [vmem:[%s1146_s29 + $0x110] sm:$0xff]  ;;  %330 = vst [vmem:[%s1151_s30 + $0x78] sm:$0xff] %v329_v15 }
  0x1a   : > { %332 = vst [vmem:[%s1151_s30 + $0x80] sm:$0xff] %v331_v16  ;;  %334 = vst [vmem:[%s1151_s30 + $0x88] sm:$0xff] %v333_v17  ;;  %v335_v18 = vld [vmem:[%s1146_s29 + $0x120] sm:$0xff]  ;;  %v337_v19 = vld [vmem:[%s1146_s29 + $0x130] sm:$0xff] }
  0x1b   : > { %v339_v20 = vld [vmem:[%s1146_s29 + $0x140] sm:$0xff]  ;;  %336 = vst [vmem:[%s1151_s30 + $0x90] sm:$0xff] %v335_v18  ;;  %338 = vst [vmem:[%s1151_s30 + $0x98] sm:$0xff] %v337_v19  ;;  %v341_v21 = vld [vmem:[%s1146_s29 + $0x150] sm:$0xff] }
  0x1c   : > { %340 = vst [vmem:[%s1151_s30 + $0xa0] sm:$0xff] %v339_v20  ;;  %v343_v22 = vld [vmem:[%s1146_s29 + $0x160] sm:$0xff]  ;;  %v345_v23 = vld [vmem:[%s1146_s29 + $0x170] sm:$0xff]  ;;  %342 = vst [vmem:[%s1151_s30 + $0xa8] sm:$0xff] %v341_v21 }
  0x1d   : > { %344 = vst [vmem:[%s1151_s30 + $0xb0] sm:$0xff] %v343_v22  ;;  %346 = vst [vmem:[%s1151_s30 + $0xb8] sm:$0xff] %v345_v23  ;;  %v347_v24 = vld [vmem:[%s1146_s29 + $0x180] sm:$0xff]  ;;  %v349_v25 = vld [vmem:[%s1146_s29 + $0x190] sm:$0xff] }
  0x1e   : > { %v351_v26 = vld [vmem:[%s1146_s29 + $0x1a0] sm:$0xff]  ;;  %348 = vst [vmem:[%s1151_s30 + $0xc0] sm:$0xff] %v347_v24  ;;  %350 = vst [vmem:[%s1151_s30 + $0xc8] sm:$0xff] %v349_v25  ;;  %v353_v27 = vld [vmem:[%s1146_s29 + $0x1b0] sm:$0xff] }
  0x1f   : > { %352 = vst [vmem:[%s1151_s30 + $0xd0] sm:$0xff] %v351_v26  ;;  %v355_v28 = vld [vmem:[%s1146_s29 + $0x1c0] sm:$0xff]  ;;  %v357_v29 = vld [vmem:[%s1146_s29 + $0x1d0] sm:$0xff]  ;;  %354 = vst [vmem:[%s1151_s30 + $0xd8] sm:$0xff] %v353_v27 }
  0x20   : > { %356 = vst [vmem:[%s1151_s30 + $0xe0] sm:$0xff] %v355_v28  ;;  %358 = vst [vmem:[%s1151_s30 + $0xe8] sm:$0xff] %v357_v29  ;;  %v359_v30 = vld [vmem:[%s1146_s29 + $0x1e0] sm:$0xff]  ;;  %v361_v31 = vld [vmem:[%s1146_s29 + $0x1f0] sm:$0xff] }
  0x21   : > { %360 = vst [vmem:[%s1151_s30 + $0xf0] sm:$0xff] %v359_v30  ;;  %362 = vst [vmem:[%s1151_s30 + $0xf8] sm:$0xff] %v361_v31 }
  0x22 PF: > { %p903_p6 = scmp.ge.s32.totalorder %s1076_s19, 1  ;;  %p383_p7 = scmp.lt.s32.totalorder %s1076_s19, 3 }
  0x24   : > { %p384_p8 = pnand %p903_p6, %p383_p7 }
  0x25   : > { %s390_s5 = sand.u32 (!%p384_p8), 1, %s1060_s15   ;;  %v1220_v32 = vld [vmem:[%s1285_s0] sm:$0xff] (!%p384_p8)  ;;  %s905_s10 = sshll.u32 (!%p384_p8), %s1068_s17, 1  ;;  %v728_v3 = vlaneseq (!%p384_p8) }
  0x26   : > { %387 = sbr.rel (%p384_p8) target bundleno = 325 (0x145), region = 70  ;;  %s904_s8 = sshll.u32 (!%p384_p8), %s390_s5, 8  ;;  %v910_v33 = vcombine.high (!%p384_p8), %v1220_v32, %v1220_v32  ;;  %v909_v2 = vcombine.low (!%p384_p8), %v1220_v32, %v1220_v32 }
  0x27   : > { %s1224_s9 = scalar_lea.vmem (!%p384_p8), [#allocation3], %s904_s8  ;;  %p449_p9 = scmp.lt.s32.totalorder (!%p384_p8), %s905_s10, 3  ;;  %v729_v4 = vshrl.u32 (!%p384_p8), %v728_v3, 7 }
  0x28   : > { %v988_v34 = vld [vmem:[%s1224_s9 + $0x4] ss:$8 sps:$4 sm:$0xff] (!%p384_p8)   ;;  %708 = vmatprep.mubr.bf16.mxu0 (!%p384_p8), %v910_v33  ;;  %v990_v35 = vld [vmem:[%s1224_s9] ss:$8 sps:$4 sm:$0xff] (!%p384_p8)   ;;  %v991_v36 = vld [vmem:[%s1224_s9 + $0x14] ss:$8 sps:$4 sm:$0xff] (!%p384_p8)  }
  0x29   : > { %676 = vmatprep.subr.bf16.mxu0 (!%p384_p8), %v988_v34  ;;  %v993_v37 = vld [vmem:[%s1224_s9 + $0x10] ss:$8 sps:$4 sm:$0xff] (!%p384_p8)   ;;  %v994_v38 = vld [vmem:[%s1224_s9 + $0x24] ss:$8 sps:$4 sm:$0xff] (!%p384_p8)   ;;  %v996_v39 = vld [vmem:[%s1224_s9 + $0x20] ss:$8 sps:$4 sm:$0xff] (!%p384_p8)  }
  0x2a   : > { %677 = vmatpush1.bf16.msra.mxu0 (!%p384_p8), %v990_v35  ;;  %v997_v40 = vld [vmem:[%s1224_s9 + $0x34] ss:$8 sps:$4 sm:$0xff] (!%p384_p8)   ;;  %v999_v41 = vld [vmem:[%s1224_s9 + $0x30] ss:$8 sps:$4 sm:$0xff] (!%p384_p8)   ;;  %v1000_v42 = vld [vmem:[%s1224_s9 + $0x44] ss:$8 sps:$4 sm:$0xff] (!%p384_p8)  }
  0x2b   : > { %678 = vmatprep.subr.bf16.mxu0 (!%p384_p8), %v991_v36  ;;  %v1002_v43 = vld [vmem:[%s1224_s9 + $0x40] ss:$8 sps:$4 sm:$0xff] (!%p384_p8)   ;;  %v1003_v44 = vld [vmem:[%s1224_s9 + $0x54] ss:$8 sps:$4 sm:$0xff] (!%p384_p8)   ;;  %v1005_v45 = vld [vmem:[%s1224_s9 + $0x50] ss:$8 sps:$4 sm:$0xff] (!%p384_p8)  }
  0x2c   : > { %v1006_v46 = vld [vmem:[%s1224_s9 + $0x64] ss:$8 sps:$4 sm:$0xff] (!%p384_p8)   ;;  %v1008_v47 = vld [vmem:[%s1224_s9 + $0x60] ss:$8 sps:$4 sm:$0xff] (!%p384_p8)   ;;  %v1009_v48 = vld [vmem:[%s1224_s9 + $0x74] ss:$8 sps:$4 sm:$0xff] (!%p384_p8)  }
  0x2d   : > { %v1011_v49 = vld [vmem:[%s1224_s9 + $0x70] ss:$8 sps:$4 sm:$0xff]   ;;  %v1012_v50 = vld [vmem:[%s1224_s9 + $0x84] ss:$8 sps:$4 sm:$0xff]   ;;  %v1014_v51 = vld [vmem:[%s1224_s9 + $0x80] ss:$8 sps:$4 sm:$0xff]  }
  0x2e   : > { %679 = vmatpush1.bf16.msra.mxu0 %v993_v37  ;;  %v1015_v52 = vld [vmem:[%s1224_s9 + $0x94] ss:$8 sps:$4 sm:$0xff]   ;;  %v1017_v53 = vld [vmem:[%s1224_s9 + $0x90] ss:$8 sps:$4 sm:$0xff]   ;;  %v1018_v54 = vld [vmem:[%s1224_s9 + $0xa4] ss:$8 sps:$4 sm:$0xff]  }
  0x2f   : > { %680 = vmatprep.subr.bf16.mxu0 %v994_v38  ;;  %v1020_v55 = vld [vmem:[%s1224_s9 + $0xa0] ss:$8 sps:$4 sm:$0xff]   ;;  %v1021_v56 = vld [vmem:[%s1224_s9 + $0xb4] ss:$8 sps:$4 sm:$0xff]   ;;  %v1023_v57 = vld [vmem:[%s1224_s9 + $0xb0] ss:$8 sps:$4 sm:$0xff]  }
  0x30   : > { %v1024_v58 = vld [vmem:[%s1224_s9 + $0xc4] ss:$8 sps:$4 sm:$0xff]   ;;  %v1026_v59 = vld [vmem:[%s1224_s9 + $0xc0] ss:$8 sps:$4 sm:$0xff]   ;;  %v1027_v60 = vld [vmem:[%s1224_s9 + $0xd4] ss:$8 sps:$4 sm:$0xff]  }
  0x31   : > { %v1029_v61 = vld [vmem:[%s1224_s9 + $0xd0] ss:$8 sps:$4 sm:$0xff]   ;;  %v1030_v62 = vld [vmem:[%s1224_s9 + $0xe4] ss:$8 sps:$4 sm:$0xff]   ;;  %v1032_v63 = vld [vmem:[%s1224_s9 + $0xe0] ss:$8 sps:$4 sm:$0xff]  }
  0x32   : > { %681 = vmatpush1.bf16.msra.mxu0 %v996_v39  ;;  %v1033_v0 = vld [vmem:[%s1224_s9 + $0xf4] ss:$8 sps:$4 sm:$0xff]   ;;  %v1035_v1 = vld [vmem:[%s1224_s9 + $0xf0] ss:$8 sps:$4 sm:$0xff]   ;;  %s1297_s10 = smov (!%p449_p9, %s905_s10), 3  ;;  %v730_v5 = vsub.s32 0, %v729_v4 }
  0x33   : > { %682 = vmatprep.subr.bf16.mxu0 %v997_v40  ;;  %s451_s13 = scalar_lea.vmem %s1287_s2, %s1297_s10  ;;  %s456_s21 = scalar_lea.vmem %s1288_s3, %s1297_s10  ;;  %v734_v7 = vsub.s32 1, %v729_v4 }
  0x34   : > { %v726_v6 = vld [vmem:[%s451_s13] sm:$0x3]  ;;  %s908_s17 = sshll.u32 %s1297_s10, 2 }
  0x35   : > { %v740_v8 = vld [vmem:[%s456_s21] sm:$0x3]  ;;  %v731_v9 = vrot.slane %v726_v6, %v730_v5  ;;  %v735_v10 = vrot.slane %v726_v6, %v734_v7  ;;  %s466_s25 = scalar_lea.vmem %s1289_s4, %s908_s17 }
  0x36   : > { %683 = vmatpush1.bf16.msra.mxu0 %v999_v41  ;;  %v745_v11 = vrot.slane %v740_v8, %v730_v5  ;;  %v749_v13 = vrot.slane %v740_v8, %v734_v7 }
  0x37   : > { %684 = vmatprep.subr.bf16.mxu0 %v1000_v42 }
  0x3a   : > { %685 = vmatpush1.bf16.msra.mxu0 %v1002_v43 }
  0x3b   : > { %686 = vmatprep.subr.bf16.mxu0 %v1003_v44 }
  0x3e   : > { %687 = vmatpush1.bf16.msra.mxu0 %v1005_v45 }
  0x3f   : > { %688 = vmatprep.subr.bf16.mxu0 %v1006_v46 }
  0x42   : > { %689 = vmatpush1.bf16.msra.mxu0 %v1008_v47 }
  0x43   : > { %690 = vmatprep.subr.bf16.mxu0 %v1009_v48 }
  0x46   : > { %691 = vmatpush1.bf16.msra.mxu0 %v1011_v49 }
  0x47   : > { %692 = vmatprep.subr.bf16.mxu0 %v1012_v50 }
  0x4a   : > { %693 = vmatpush1.bf16.msra.mxu0 %v1014_v51 }
  0x4b   : > { %694 = vmatprep.subr.bf16.mxu0 %v1015_v52 }
  0x4e   : > { %695 = vmatpush1.bf16.msra.mxu0 %v1017_v53 }
  0x4f   : > { %696 = vmatprep.subr.bf16.mxu0 %v1018_v54 }
  0x52   : > { %697 = vmatpush1.bf16.msra.mxu0 %v1020_v55 }
  0x53   : > { %698 = vmatprep.subr.bf16.mxu0 %v1021_v56 }
  0x56   : > { %699 = vmatpush1.bf16.msra.mxu0 %v1023_v57 }
  0x57   : > { %700 = vmatprep.subr.bf16.mxu0 %v1024_v58 }
  0x5a   : > { %701 = vmatpush1.bf16.msra.mxu0 %v1026_v59 }
  0x5b   : > { %702 = vmatprep.subr.bf16.mxu0 %v1027_v60 }
  0x5e   : > { %703 = vmatpush1.bf16.msra.mxu0 %v1029_v61 }
  0x5f   : > { %704 = vmatprep.subr.bf16.mxu0 %v1030_v62 }
  0x62   : > { %705 = vmatpush1.bf16.msra.mxu0 %v1032_v63 }
  0x63   : > { %706 = vmatprep.subr.bf16.mxu0 %v1033_v0 }
  0x66   : > { %707 = vmatpush1.bf16.msra.mxu0 %v1035_v1 }
  0x69   : > { %709 = vmatmul.mubr.bf16.vlgmr.msra.gmra.mrb[0].mxu0 %v909_v2 }
 0x13c   : > { %v710_v12 = vpop.f32.mrb[0].mxu0 }
 0x13d   : > { %v738_v14 = vmul.f32 %v731_v9, %v710_v12  ;;  %v712_v15 = vpop.f32.mrb[1].mxu0 }
 0x13e   : > { %v739_v16 = vmul.f32 %v735_v10, %v712_v15  ;;  %v714_v17 = vpop.f32.mrb[2].mxu0 }
 0x13f   : > { %v752_v18 = vadd.f32 %v745_v11, %v738_v14  ;;  %v715_v19 = vpop.f32.mrb[3].mxu0 }
 0x140   : > { %v753_v20 = vadd.f32 %v749_v13, %v739_v16 }
 0x142   : > { %v947_v21 = vpack.c.bf16 %v753_v20, %v752_v18 }
 0x144   : > { %762 = vst [vmem:[%s466_s25] sm:$0xff] %v947_v21 }
 0x145 PF: > { %s14_s19 = sadd.s32 1, %s1076_s19   ;;  %s1290_s15 = smov %s1064_s16 }
 0x146   : > { %p11_p10 = scmp.ge.s32.totalorder %s14_s19, 4   ;;  %s1291_s16 = smov %s1138_s23 }
 0x147   : > { %s1292_s17 = smov %s1072_s18  ;;  %s1293_s18 = smov %s1295_s20 }
 0x148   :  { %13 = sbr.rel (!%p11_p10) target bundleno = 3 (0x3), region = 126 }

// kernel: _lambda_.33
= control target key start
LH: loop header
LB: loop body
LE: loop exit
PB: predicated region body
PF: predicated region fallthrough
CT: control target
= control target key end

     0   :  { %s979_s18 = smov 0   ;;  %s981_s19 = smov 0   ;;  %s1079_s0 = inlined_call_operand.vmem [shape: bf16[8,128], index: 0, kind: input, shape index: {}]   ;;  %s1080_s1 = inlined_call_operand.vmem [shape: bf16[128,512], index: 1, kind: input, shape index: {}]   ;;  %s1081_s2 = inlined_call_operand.vmem [shape: f32[1,512], index: 2, kind: input, shape index: {}]   ;;  %s1082_s3 = inlined_call_operand.vmem [shape: f32[1,512], index: 3, kind: input, shape index: {}]   ;;  %s1083_s4 = inlined_call_operand.vmem [shape: bf16[8,512], index: 4, kind: input, shape index: {}]   ;;  %s1084_s5 = inlined_call_operand.vmem [shape: bf16[8,512], index: 5, kind: output, shape index: {}]  }
   0x1   :  { %s983_s20 = smov 0   ;;  %s985_s21 = smov 0  }
   0x2   :  { %s987_s22 = smov 0  }
   0x3 LB: > { %s30_s23 = sadd.s32 1, %s942_s21  ;;  %p78_p1 = scmp.ne.s32.totalorder %s934_s19, %s930_s18  ;;  %s946_s22 = sphi %s987_s22, %s15_s22   ;;  %s942_s21 = sphi %s985_s21, %s1088_s21   ;;  %s938_s20 = sphi %s983_s20, %s1087_s20   ;;  %s934_s19 = sphi %s981_s19, %s1086_s19   ;;  %s930_s18 = sphi %s979_s18, %s1085_s18  }
   0x4   : > { %p32_p0 = scmp.ge.s32.totalorder %s30_s23, 2  ;;  %p79_p2 = scmp.eq.s32.totalorder %s946_s22, 0 }
   0x5   : > { %s71_s25 = sadd.s32 1, %s934_s19  ;;  %p810_p5 = scmp.ge.s32.totalorder %s946_s22, 2 }
   0x6   : > { %s1090_s23 = smov (%p32_p0, %s30_s23), 0  ;;  %p80_p3 = por %p79_p2, %p78_p1 }
   0x7   : > { %s67_s24 = ssub.s32 %s942_s21, %s1090_s23  ;;  %222 = sbr.rel (%p810_p5) target bundleno = 26 (0x1a), region = 20 }
   0x8   : > { %p69_p4 = scmp.eq.s32.totalorder %s67_s24, 0 }
   0xa   : > { %s1014_s26 = scalar_select %p69_p4, %s934_s19, %s71_s25  }
   0xe   : > { %225 = sbr.rel (!%p80_p3) target bundleno = 26 (0x1a), region = 24  ;;  %s227_s27 = sand.u32 (%p80_p3), 1, %s934_s19  }
   0xf   : > { %s841_s28 = sshll.u32 (%p80_p3), %s942_s21, 3  ;;  %s811_s29 = sshll.u32 (%p80_p3), %s227_s27, 7 }
  0x10   : > { %s1022_s7 = scalar_lea.vmem (%p80_p3), %s1080_s1, %s841_s28  ;;  %s229_s8 = scalar_lea.vmem (%p80_p3), [#allocation3], %s811_s29 }
  0x11   : > { %v293_v0 = vld [vmem:[%s1022_s7] sm:$0xff] (%p80_p3)  ;;  %v295_v1 = vld [vmem:[%s1022_s7 + $0x10] sm:$0xff] (%p80_p3) }
  0x12   : > { %v297_v2 = vld [vmem:[%s1022_s7 + $0x20] sm:$0xff] (%p80_p3)  ;;  %294 = vst [vmem:[%s229_s8] sm:$0xff] (%p80_p3), %v293_v0  ;;  %296 = vst [vmem:[%s229_s8 + $0x8] sm:$0xff] (%p80_p3), %v295_v1  ;;  %v299_v3 = vld [vmem:[%s1022_s7 + $0x30] sm:$0xff] (%p80_p3) }
  0x13   : > { %298 = vst [vmem:[%s229_s8 + $0x10] sm:$0xff] (%p80_p3), %v297_v2  ;;  %v301_v4 = vld [vmem:[%s1022_s7 + $0x40] sm:$0xff] (%p80_p3)  ;;  %v303_v5 = vld [vmem:[%s1022_s7 + $0x50] sm:$0xff] (%p80_p3)  ;;  %300 = vst [vmem:[%s229_s8 + $0x18] sm:$0xff] (%p80_p3), %v299_v3 }
  0x14   : > { %302 = vst [vmem:[%s229_s8 + $0x20] sm:$0xff] (%p80_p3), %v301_v4  ;;  %304 = vst [vmem:[%s229_s8 + $0x28] sm:$0xff] (%p80_p3), %v303_v5  ;;  %v305_v6 = vld [vmem:[%s1022_s7 + $0x60] sm:$0xff] (%p80_p3)  ;;  %v307_v7 = vld [vmem:[%s1022_s7 + $0x70] sm:$0xff] (%p80_p3) }
  0x15   : > { %v309_v8 = vld [vmem:[%s1022_s7 + $0x80] sm:$0xff]  ;;  %306 = vst [vmem:[%s229_s8 + $0x30] sm:$0xff] %v305_v6  ;;  %308 = vst [vmem:[%s229_s8 + $0x38] sm:$0xff] %v307_v7  ;;  %v311_v9 = vld [vmem:[%s1022_s7 + $0x90] sm:$0xff] }
  0x16   : > { %310 = vst [vmem:[%s229_s8 + $0x40] sm:$0xff] %v309_v8  ;;  %v313_v10 = vld [vmem:[%s1022_s7 + $0xa0] sm:$0xff]  ;;  %v315_v11 = vld [vmem:[%s1022_s7 + $0xb0] sm:$0xff]  ;;  %312 = vst [vmem:[%s229_s8 + $0x48] sm:$0xff] %v311_v9 }
  0x17   : > { %314 = vst [vmem:[%s229_s8 + $0x50] sm:$0xff] %v313_v10  ;;  %316 = vst [vmem:[%s229_s8 + $0x58] sm:$0xff] %v315_v11  ;;  %v317_v12 = vld [vmem:[%s1022_s7 + $0xc0] sm:$0xff]  ;;  %v319_v13 = vld [vmem:[%s1022_s7 + $0xd0] sm:$0xff] }
  0x18   : > { %v321_v14 = vld [vmem:[%s1022_s7 + $0xe0] sm:$0xff]  ;;  %318 = vst [vmem:[%s229_s8 + $0x60] sm:$0xff] %v317_v12  ;;  %320 = vst [vmem:[%s229_s8 + $0x68] sm:$0xff] %v319_v13  ;;  %v323_v15 = vld [vmem:[%s1022_s7 + $0xf0] sm:$0xff] }
  0x19   : > { %322 = vst [vmem:[%s229_s8 + $0x70] sm:$0xff] %v321_v14  ;;  %324 = vst [vmem:[%s229_s8 + $0x78] sm:$0xff] %v323_v15 }
  0x1a PF: > { %p814_p6 = scmp.ge.s32.totalorder %s946_s22, 1  ;;  %p358_p7 = scmp.lt.s32.totalorder %s946_s22, 3 }
  0x1c   : > { %p359_p8 = pnand %p814_p6, %p358_p7 }
  0x1d   : > { %s365_s9 = sand.u32 (!%p359_p8), 1, %s930_s18   ;;  %v948_v16 = vmov (!%p359_p8), 0   ;;  %v468_v33 = vld [vmem:[%s1079_s0] sm:$0xf] (!%p359_p8)  ;;  %s816_s14 = sshll.u32 (!%p359_p8), %s938_s20, 1  ;;  %v617_v34 = vlaneseq (!%p359_p8) }
  0x1e   : > { %362 = sbr.rel (%p359_p8) target bundleno = 289 (0x121), region = 74  ;;  %s815_s10 = sshll.u32 (!%p359_p8), %s365_s9, 7  ;;  %597 = vmatprep.mubr.bf16.mxu0 (!%p359_p8), %v948_v16 }
  0x1f   : > { %s367_s11 = scalar_lea.vmem (!%p359_p8), [#allocation3], %s815_s10  ;;  %p430_p9 = scmp.lt.s32.totalorder (!%p359_p8), %s816_s14, 3  ;;  %v618_v35 = vshrl.u32 (!%p359_p8), %v617_v34, 7 }
  0x20   : > { %v884_v17 = vld [vmem:[%s367_s11 + $0x4] ss:$8 sps:$4 sm:$0xff] (!%p359_p8)   ;;  %v886_v18 = vld [vmem:[%s367_s11] ss:$8 sps:$4 sm:$0xff] (!%p359_p8)   ;;  %v887_v19 = vld [vmem:[%s367_s11 + $0x14] ss:$8 sps:$4 sm:$0xff] (!%p359_p8)  }
  0x21   : > { %565 = vmatprep.subr.bf16.mxu0 (!%p359_p8), %v884_v17  ;;  %v889_v20 = vld [vmem:[%s367_s11 + $0x10] ss:$8 sps:$4 sm:$0xff] (!%p359_p8)   ;;  %v890_v21 = vld [vmem:[%s367_s11 + $0x24] ss:$8 sps:$4 sm:$0xff] (!%p359_p8)   ;;  %v892_v22 = vld [vmem:[%s367_s11 + $0x20] ss:$8 sps:$4 sm:$0xff] (!%p359_p8)  }
  0x22   : > { %566 = vmatpush1.bf16.msra.mxu0 (!%p359_p8), %v886_v18  ;;  %v893_v23 = vld [vmem:[%s367_s11 + $0x34] ss:$8 sps:$4 sm:$0xff] (!%p359_p8)   ;;  %v895_v24 = vld [vmem:[%s367_s11 + $0x30] ss:$8 sps:$4 sm:$0xff] (!%p359_p8)   ;;  %v896_v25 = vld [vmem:[%s367_s11 + $0x44] ss:$8 sps:$4 sm:$0xff] (!%p359_p8)  }
  0x23   : > { %567 = vmatprep.subr.bf16.mxu0 (!%p359_p8), %v887_v19  ;;  %v898_v26 = vld [vmem:[%s367_s11 + $0x40] ss:$8 sps:$4 sm:$0xff] (!%p359_p8)   ;;  %v899_v27 = vld [vmem:[%s367_s11 + $0x54] ss:$8 sps:$4 sm:$0xff] (!%p359_p8)   ;;  %v901_v28 = vld [vmem:[%s367_s11 + $0x50] ss:$8 sps:$4 sm:$0xff] (!%p359_p8)  }
  0x24   : > { %v902_v29 = vld [vmem:[%s367_s11 + $0x64] ss:$8 sps:$4 sm:$0xff] (!%p359_p8)   ;;  %v904_v30 = vld [vmem:[%s367_s11 + $0x60] ss:$8 sps:$4 sm:$0xff] (!%p359_p8)   ;;  %v905_v31 = vld [vmem:[%s367_s11 + $0x74] ss:$8 sps:$4 sm:$0xff] (!%p359_p8)  }
  0x25   : > { %v907_v32 = vld [vmem:[%s367_s11 + $0x70] ss:$8 sps:$4 sm:$0xff]   ;;  %s1092_s14 = smov (!%p430_p9, %s816_s14), 3  ;;  %v619_v36 = vsub.s32 0, %v618_v35  ;;  %v623_v38 = vsub.s32 1, %v618_v35 }
  0x26   : > { %568 = vmatpush1.bf16.msra.mxu0 %v889_v20  ;;  %s432_s17 = scalar_lea.vmem %s1081_s2, %s1092_s14  ;;  %s819_s18 = sshll.u32 %s1092_s14, 2 }
  0x27   : > { %569 = vmatprep.subr.bf16.mxu0 %v890_v21  ;;  %s437_s27 = scalar_lea.vmem %s1082_s3, %s1092_s14  ;;  %v615_v37 = vld [vmem:[%s432_s17] sm:$0x3]  ;;  %s447_s29 = scalar_lea.vmem %s1083_s4, %s819_s18 }
  0x28   : > { %v629_v39 = vld [vmem:[%s437_s27] sm:$0x3]  ;;  %v620_v40 = vrot.slane %v615_v37, %v619_v36  ;;  %v624_v42 = vrot.slane %v615_v37, %v623_v38  ;;  %s457_s7 = scalar_lea.vmem %s1084_s5, %s819_s18 }
  0x29   : > { %v643_v41 = vld [vmem:[%s447_s29] sm:$0xff]  ;;  %v634_v43 = vrot.slane %v629_v39, %v619_v36  ;;  %v638_v45 = vrot.slane %v629_v39, %v623_v38 }
  0x2a   : > { %570 = vmatpush1.bf16.msra.mxu0 %v892_v22  ;;  %v644_v47 = vunpack.c.l.bf16 %v643_v41  ;;  %v645_v50 = vunpack.c.h.bf16 %v643_v41 }
  0x2b   : > { %571 = vmatprep.subr.bf16.mxu0 %v893_v23 }
  0x2e   : > { %572 = vmatpush1.bf16.msra.mxu0 %v895_v24 }
  0x2f   : > { %573 = vmatprep.subr.bf16.mxu0 %v896_v25 }
  0x32   : > { %574 = vmatpush1.bf16.msra.mxu0 %v898_v26 }
  0x33   : > { %575 = vmatprep.subr.bf16.mxu0 %v899_v27 }
  0x36   : > { %576 = vmatpush1.bf16.msra.mxu0 %v901_v28 }
  0x37   : > { %577 = vmatprep.subr.bf16.mxu0 %v902_v29 }
  0x3a   : > { %578 = vmatpush1.bf16.msra.mxu0 %v904_v30 }
  0x3b   : > { %579 = vmatprep.subr.bf16.mxu0 %v905_v31 }
  0x3e   : > { %580 = vmatpush1.bf16.msra.mxu0 %v907_v32 }
  0x41   : > { %598 = vmatmul.mubr.bf16.vlgmr.msra.gmra.mrb[0].mxu0 %v468_v33 }
 0x114   : > { %v599_v44 = vpop.f32.mrb[0].mxu0 }
 0x115   : > { %v627_v46 = vmul.f32 %v620_v40, %v599_v44  ;;  %v601_v48 = vpop.f32.mrb[1].mxu0 }
 0x116   : > { %v628_v49 = vmul.f32 %v624_v42, %v601_v48  ;;  %v603_v51 = vpop.f32.mrb[2].mxu0 }
 0x117   : > { %v641_v52 = vadd.f32 %v634_v43, %v627_v46  ;;  %v604_v53 = vpop.f32.mrb[3].mxu0 }
 0x118   : > { %v642_v54 = vadd.f32 %v638_v45, %v628_v49 }
 0x119   : > { %v646_v55 = vadd.f32 %v644_v47, %v641_v52 }
 0x11a   : > { %v647_v56 = vadd.f32 %v645_v50, %v642_v54 }
 0x11b   : > { %v648_v57 = vmax.f32 %v646_v55, 0.0 }
 0x11c   : > { %v649_v58 = vmax.f32 %v647_v56, 0.0 }
 0x11e   : > { %v842_v59 = vpack.c.bf16 %v649_v58, %v648_v57 }
 0x120   : > { %658 = vst [vmem:[%s457_s7] sm:$0xff] %v842_v59 }
 0x121 PF: > { %s15_s22 = sadd.s32 1, %s946_s22   ;;  %s1085_s18 = smov %s934_s19 }
 0x122   : > { %p12_p10 = scmp.ge.s32.totalorder %s15_s22, 4   ;;  %s1086_s19 = smov %s1014_s26 }
 0x123   : > { %s1087_s20 = smov %s942_s21  ;;  %s1088_s21 = smov %s1090_s23 }
 0x124   :  { %14 = sbr.rel (!%p12_p10) target bundleno = 3 (0x3), region = 133 }

// kernel: _lambda_.31
= control target key start
LH: loop header
LB: loop body
LE: loop exit
PB: predicated region body
PF: predicated region fallthrough
CT: control target
= control target key end

     0   :  { %s690_s15 = smov 0   ;;  %s692_s16 = smov 0   ;;  %s742_s0 = inlined_call_operand.vmem [shape: bf16[8,1152], index: 0, kind: input, shape index: {}]   ;;  %s743_s1 = inlined_call_operand.vmem [shape: bf16[1152,128], index: 1, kind: input, shape index: {}]   ;;  %s744_s2 = inlined_call_operand.vmem [shape: f32[1,128], index: 2, kind: input, shape index: {}]   ;;  %s745_s3 = inlined_call_operand.vmem [shape: f32[1,128], index: 3, kind: input, shape index: {}]   ;;  %s746_s4 = inlined_call_operand.vmem [shape: bf16[8,128], index: 4, kind: output, shape index: {}]  }
   0x1   :  { %s694_s17 = smov 0  }
   0x2 LB: > { %s26_s18 = sadd.s32 1, %s656_s16  ;;  %p555_p0 = scmp.ge.s32.totalorder %s660_s17, 1  ;;  %s660_s17 = sphi %s694_s17, %s14_s17   ;;  %s656_s16 = sphi %s692_s16, %s748_s16   ;;  %s652_s15 = sphi %s690_s15, %s747_s15  }
   0x3   : > { %p27_p1 = scmp.ge.s32.totalorder %s26_s18, 9  ;;  %p220_p2 = scmp.lt.s32.totalorder %s660_s17, 10 }
   0x5   : > { %s750_s18 = smov (%p27_p1, %s26_s18), 0  ;;  %p221_p3 = pnand %p555_p0, %p220_p2 }
   0x6   : > { %p267_p4 = scmp.lt.s32.totalorder (!%p221_p3), %s652_s15, 8  ;;  %s557_s19 = sshll.u32 (!%p221_p3), %s652_s15, 4 }
   0x7   : > { %224 = sbr.rel (%p221_p3) target bundleno = 286 (0x11e), region = 36  ;;  %p274_p5 = scmp.lt.s32.totalorder (!%p221_p3), %s557_s19, 143 }
   0x8   : > { %p559_p6 = scmp.ne.s32.totalorder (!%p221_p3), %s652_s15, 0 }
   0xe   : > { %s268_s20 = scalar_select %p267_p4, %s652_s15, 8 }
   0xf   : > { %s752_s19 = smov (!%p274_p5, %s557_s19), 143  ;;  %299 = sbr.rel (%p559_p6) target bundleno = 22 (0x16), region = 40 }
  0x10   : > { %s556_s21 = sshll.u32 %s268_s20, 2  ;;  %s558_s25 = sshll.u32 %s752_s19, 2  ;;  %v662_v0 = vmov (!%p559_p6), 0.0  }
  0x11   : > { %s716_s24 = scalar_lea.vmem %s742_s0, %s556_s21  ;;  %s280_s28 = scalar_lea.vmem %s743_s1, %s558_s25  ;;  %300 = vst [vmem:[#allocation2] sm:$0xff] (!%p559_p6), %v662_v0 }
  0x16 PF: > { %v630_v1 = vld [vmem:[%s280_s28] sm:$0xff]   ;;  %v663_v2 = vmov 0.0   ;;  %v631_v3 = vld [vmem:[%s280_s28 + $0x8] sm:$0xff]   ;;  %vm664_vm0 = vmmov 0   ;;  %v632_v4 = vld [vmem:[%s280_s28 + $0x10] sm:$0xff]   ;;  %p568_p7 = scmp.ne.s32.totalorder %s652_s15, 8 }
  0x17   : > { %583 = vmatprep.subr.bf16.mxu0 %v663_v2  ;;  %599 = vmatprep.mubr.msk.bf16.mxu0 %vm664_vm0, %v663_v2  ;;  %v633_v5 = vld [vmem:[%s280_s28 + $0x18] sm:$0xff]   ;;  %v634_v6 = vld [vmem:[%s280_s28 + $0x20] sm:$0xff]   ;;  %v635_v7 = vld [vmem:[%s280_s28 + $0x28] sm:$0xff]  }
  0x18   : > { %584 = vmatpush3.bf16.msra.mxu0 %v630_v1  ;;  %v636_v8 = vld [vmem:[%s280_s28 + $0x30] sm:$0xff]   ;;  %v637_v9 = vld [vmem:[%s280_s28 + $0x38] sm:$0xff]   ;;  %v302_v10 = vld [vmem:[%s716_s24] sm:$0xf] }
  0x19   : > { %585 = vmatprep.subr.bf16.mxu0 %v663_v2  ;;  %v301_v11 = vld [vmem:[#allocation2] sm:$0xff] }
  0x1a   : > { %v569_v18 = vld [vmem:[%s744_s2] ss:$0 sm:$0xff] (!%p568_p7) }
  0x1b   : > { %v570_v19 = vld [vmem:[%s745_s3] ss:$0 sm:$0xff] (!%p568_p7) }
  0x1c   : > { %586 = vmatpush3.bf16.msra.mxu0 %v631_v3 }
  0x1d   : > { %587 = vmatprep.subr.bf16.mxu0 %v663_v2 }
  0x20   : > { %588 = vmatpush3.bf16.msra.mxu0 %v632_v4 }
  0x21   : > { %589 = vmatprep.subr.bf16.mxu0 %v663_v2 }
  0x24   : > { %590 = vmatpush3.bf16.msra.mxu0 %v633_v5 }
  0x25   : > { %591 = vmatprep.subr.bf16.mxu0 %v663_v2 }
  0x28   : > { %592 = vmatpush3.bf16.msra.mxu0 %v634_v6 }
  0x29   : > { %593 = vmatprep.subr.bf16.mxu0 %v663_v2 }
  0x2c   : > { %594 = vmatpush3.bf16.msra.mxu0 %v635_v7 }
  0x2d   : > { %595 = vmatprep.subr.bf16.mxu0 %v663_v2 }
  0x30   : > { %596 = vmatpush3.bf16.msra.mxu0 %v636_v8 }
  0x31   : > { %597 = vmatprep.subr.bf16.mxu0 %v663_v2 }
  0x34   : > { %598 = vmatpush3.bf16.msra.mxu0 %v637_v9 }
  0x37   : > { %600 = vmatmul.mubr.bf16.vlgmr.msra.gmra.mrb[0].mxu0 %v302_v10 }
 0x107   : > { %412 = sbr.rel (%p568_p7) target bundleno = 286 (0x11e), region = 44 }
 0x10a   : > { %v401_v12 = vpop.f32.mrb[0].mxu0 }
 0x10b   : > { %v407_v13 = vadd.f32 %v401_v12, %v301_v11  ;;  %v601_v14 = vpop.f32.mrb[1].mxu0 }
 0x10c   : > { %v404_v15 = vpop.f32.mrb[2].mxu0 }
 0x10d   : > { %408 = vst [vmem:[#allocation2] sm:$0xff] %v407_v13  ;;  %v602_v16 = vpop.f32.mrb[3].mxu0 }
 0x114   : > { %v413_v17 = vld [vmem:[#allocation2] sm:$0xff] }
 0x115   : > { %v421_v20 = vmul.f32 %v569_v18, %v413_v17 }
 0x117   : > { %v429_v21 = vadd.f32 %v570_v19, %v421_v20 }
 0x119   : > { %v430_v22 = vmax.f32 %v429_v21, 0.0 }
 0x11b   : > { %v431_v23 = vpack.c.bf16 %v430_v22, %v430_v22 }
 0x11d   : > { %432 = vst [vmem:[%s746_s4] sm:$0xf] %v431_v23 }
 0x11e PF: > { %s14_s17 = sadd.s32 1, %s660_s17   ;;  %s747_s15 = smov %s656_s16 }
 0x11f   : > { %p11_p8 = scmp.ge.s32.totalorder %s14_s17, 11   ;;  %s748_s16 = smov %s750_s18 }
 0x121   :  { %13 = sbr.rel (!%p11_p8) target bundleno = 2 (0x2), region = 83 }

// kernel: _lambda_.34
= control target key start
LH: loop header
LB: loop body
LE: loop exit
PB: predicated region body
PF: predicated region fallthrough
CT: control target
= control target key end

     0   :  { %s1335_s15 = smov 0   ;;  %s1337_s16 = smov 0   ;;  %s1591_s0 = inlined_call_operand.vmem [shape: bf16[8,512], index: 0, kind: input, shape index: {}]   ;;  %s1592_s1 = inlined_call_operand.vmem [shape: bf16[512,256], index: 1, kind: input, shape index: {}]   ;;  %s1593_s2 = inlined_call_operand.vmem [shape: f32[1,256], index: 2, kind: input, shape index: {}]   ;;  %s1594_s3 = inlined_call_operand.vmem [shape: f32[1,256], index: 3, kind: input, shape index: {}]   ;;  %s1595_s4 = inlined_call_operand.vmem [shape: bf16[8,256], index: 4, kind: output, shape index: {}]  }
   0x1   :  { %s1339_s17 = smov 0   ;;  %s1341_s18 = smov 0  }
   0x2   :  { %s1343_s19 = smov 0  }
   0x3 LB: > { %s29_s20 = sadd.s32 1, %s1304_s18  ;;  %p77_p1 = scmp.ne.s32.totalorder %s1296_s16, %s1292_s15  ;;  %s1308_s19 = sphi %s1343_s19, %s14_s19   ;;  %s1304_s18 = sphi %s1341_s18, %s1599_s18   ;;  %s1300_s17 = sphi %s1339_s17, %s1598_s17   ;;  %s1296_s16 = sphi %s1337_s16, %s1597_s16   ;;  %s1292_s15 = sphi %s1335_s15, %s1596_s15  }
   0x4   : > { %p31_p0 = scmp.ge.s32.totalorder %s29_s20, 2  ;;  %p78_p2 = scmp.eq.s32.totalorder %s1308_s19, 0 }
   0x5   : > { %s70_s22 = sadd.s32 1, %s1296_s16  ;;  %p1104_p5 = scmp.ge.s32.totalorder %s1308_s19, 2 }
   0x6   : > { %s1601_s20 = smov (%p31_p0, %s29_s20), 0  ;;  %p79_p3 = por %p78_p2, %p77_p1 }
   0x7   : > { %s66_s21 = ssub.s32 %s1304_s18, %s1601_s20  ;;  %196 = sbr.rel (%p1104_p5) target bundleno = 60 (0x3c), region = 20 }
   0x8   : > { %p68_p4 = scmp.eq.s32.totalorder %s66_s21, 0 }
   0xa   : > { %s1370_s23 = scalar_select %p68_p4, %s1296_s16, %s70_s22  }
   0xe   : > { %199 = sbr.rel (!%p79_p3) target bundleno = 60 (0x3c), region = 24  ;;  %s201_s24 = sand.u32 (%p79_p3), 1, %s1296_s16  }
   0xf   : > { %s1106_s25 = sshll.u32 (%p79_p3), %s1304_s18, 2  ;;  %s1105_s26 = sshll.u32 (%p79_p3), %s201_s24, 8 }
  0x10   : > { %s1378_s29 = scalar_lea.vmem (%p79_p3), %s1592_s1, %s1106_s25  ;;  %s1382_s30 = scalar_lea.vmem (%p79_p3), [#allocation3], %s1105_s26 }
  0x11   : > { %v224_v0 = vld [vmem:[%s1378_s29] sm:$0xf] (%p79_p3)  ;;  %v226_v1 = vld [vmem:[%s1378_s29 + $0x8] sm:$0xf] (%p79_p3)  ;;  %v228_v2 = vld [vmem:[%s1378_s29 + $0x10] sm:$0xf] (%p79_p3) }
  0x12   : > { %225 = vst [vmem:[%s1382_s30] sm:$0xf] (%p79_p3), %v224_v0  ;;  %227 = vst [vmem:[%s1382_s30 + $0x4] sm:$0xf] (%p79_p3), %v226_v1  ;;  %v230_v3 = vld [vmem:[%s1378_s29 + $0x18] sm:$0xf] (%p79_p3) }
  0x13   : > { %v232_v4 = vld [vmem:[%s1378_s29 + $0x20] sm:$0xf] (%p79_p3)  ;;  %229 = vst [vmem:[%s1382_s30 + $0x8] sm:$0xf] (%p79_p3), %v228_v2  ;;  %231 = vst [vmem:[%s1382_s30 + $0xc] sm:$0xf] (%p79_p3), %v230_v3 }
  0x14   : > { %233 = vst [vmem:[%s1382_s30 + $0x10] sm:$0xf] (%p79_p3), %v232_v4  ;;  %v234_v5 = vld [vmem:[%s1378_s29 + $0x28] sm:$0xf] (%p79_p3)  ;;  %v236_v6 = vld [vmem:[%s1378_s29 + $0x30] sm:$0xf] (%p79_p3) }
  0x15   : > { %v238_v7 = vld [vmem:[%s1378_s29 + $0x38] sm:$0xf]  ;;  %235 = vst [vmem:[%s1382_s30 + $0x14] sm:$0xf] %v234_v5  ;;  %237 = vst [vmem:[%s1382_s30 + $0x18] sm:$0xf] %v236_v6 }
  0x16   : > { %239 = vst [vmem:[%s1382_s30 + $0x1c] sm:$0xf] %v238_v7  ;;  %v240_v8 = vld [vmem:[%s1378_s29 + $0x40] sm:$0xf]  ;;  %v242_v9 = vld [vmem:[%s1378_s29 + $0x48] sm:$0xf] }
  0x17   : > { %v244_v10 = vld [vmem:[%s1378_s29 + $0x50] sm:$0xf]  ;;  %241 = vst [vmem:[%s1382_s30 + $0x20] sm:$0xf] %v240_v8  ;;  %243 = vst [vmem:[%s1382_s30 + $0x24] sm:$0xf] %v242_v9 }
  0x18   : > { %245 = vst [vmem:[%s1382_s30 + $0x28] sm:$0xf] %v244_v10  ;;  %v246_v11 = vld [vmem:[%s1378_s29 + $0x58] sm:$0xf]  ;;  %v248_v12 = vld [vmem:[%s1378_s29 + $0x60] sm:$0xf] }
  0x19   : > { %v250_v13 = vld [vmem:[%s1378_s29 + $0x68] sm:$0xf]  ;;  %247 = vst [vmem:[%s1382_s30 + $0x2c] sm:$0xf] %v246_v11  ;;  %249 = vst [vmem:[%s1382_s30 + $0x30] sm:$0xf] %v248_v12 }
  0x1a   : > { %251 = vst [vmem:[%s1382_s30 + $0x34] sm:$0xf] %v250_v13  ;;  %v252_v14 = vld [vmem:[%s1378_s29 + $0x70] sm:$0xf]  ;;  %v254_v15 = vld [vmem:[%s1378_s29 + $0x78] sm:$0xf] }
  0x1b   : > { %v256_v16 = vld [vmem:[%s1378_s29 + $0x80] sm:$0xf]  ;;  %253 = vst [vmem:[%s1382_s30 + $0x38] sm:$0xf] %v252_v14  ;;  %255 = vst [vmem:[%s1382_s30 + $0x3c] sm:$0xf] %v254_v15 }
  0x1c   : > { %257 = vst [vmem:[%s1382_s30 + $0x40] sm:$0xf] %v256_v16  ;;  %v258_v17 = vld [vmem:[%s1378_s29 + $0x88] sm:$0xf]  ;;  %v260_v18 = vld [vmem:[%s1378_s29 + $0x90] sm:$0xf] }
  0x1d   : > { %v262_v19 = vld [vmem:[%s1378_s29 + $0x98] sm:$0xf]  ;;  %259 = vst [vmem:[%s1382_s30 + $0x44] sm:$0xf] %v258_v17  ;;  %261 = vst [vmem:[%s1382_s30 + $0x48] sm:$0xf] %v260_v18 }
  0x1e   : > { %263 = vst [vmem:[%s1382_s30 + $0x4c] sm:$0xf] %v262_v19  ;;  %v264_v20 = vld [vmem:[%s1378_s29 + $0xa0] sm:$0xf]  ;;  %v266_v21 = vld [vmem:[%s1378_s29 + $0xa8] sm:$0xf] }
  0x1f   : > { %v268_v22 = vld [vmem:[%s1378_s29 + $0xb0] sm:$0xf]  ;;  %265 = vst [vmem:[%s1382_s30 + $0x50] sm:$0xf] %v264_v20  ;;  %267 = vst [vmem:[%s1382_s30 + $0x54] sm:$0xf] %v266_v21 }
  0x20   : > { %269 = vst [vmem:[%s1382_s30 + $0x58] sm:$0xf] %v268_v22  ;;  %v270_v23 = vld [vmem:[%s1378_s29 + $0xb8] sm:$0xf]  ;;  %v272_v24 = vld [vmem:[%s1378_s29 + $0xc0] sm:$0xf] }
  0x21   : > { %v274_v25 = vld [vmem:[%s1378_s29 + $0xc8] sm:$0xf]  ;;  %271 = vst [vmem:[%s1382_s30 + $0x5c] sm:$0xf] %v270_v23  ;;  %273 = vst [vmem:[%s1382_s30 + $0x60] sm:$0xf] %v272_v24 }
  0x22   : > { %275 = vst [vmem:[%s1382_s30 + $0x64] sm:$0xf] %v274_v25  ;;  %v276_v26 = vld [vmem:[%s1378_s29 + $0xd0] sm:$0xf]  ;;  %v278_v27 = vld [vmem:[%s1378_s29 + $0xd8] sm:$0xf] }
  0x23   : > { %v280_v28 = vld [vmem:[%s1378_s29 + $0xe0] sm:$0xf]  ;;  %277 = vst [vmem:[%s1382_s30 + $0x68] sm:$0xf] %v276_v26  ;;  %279 = vst [vmem:[%s1382_s30 + $0x6c] sm:$0xf] %v278_v27 }
  0x24   : > { %281 = vst [vmem:[%s1382_s30 + $0x70] sm:$0xf] %v280_v28  ;;  %v282_v29 = vld [vmem:[%s1378_s29 + $0xe8] sm:$0xf]  ;;  %v284_v30 = vld [vmem:[%s1378_s29 + $0xf0] sm:$0xf] }
  0x25   : > { %v286_v31 = vld [vmem:[%s1378_s29 + $0xf8] sm:$0xf]  ;;  %283 = vst [vmem:[%s1382_s30 + $0x74] sm:$0xf] %v282_v29  ;;  %285 = vst [vmem:[%s1382_s30 + $0x78] sm:$0xf] %v284_v30 }
  0x26   : > { %287 = vst [vmem:[%s1382_s30 + $0x7c] sm:$0xf] %v286_v31  ;;  %v288_v32 = vld [vmem:[%s1378_s29 + $0x100] sm:$0xf]  ;;  %v290_v33 = vld [vmem:[%s1378_s29 + $0x108] sm:$0xf] }
  0x27   : > { %v292_v34 = vld [vmem:[%s1378_s29 + $0x110] sm:$0xf]  ;;  %289 = vst [vmem:[%s1382_s30 + $0x80] sm:$0xf] %v288_v32  ;;  %291 = vst [vmem:[%s1382_s30 + $0x84] sm:$0xf] %v290_v33 }
  0x28   : > { %293 = vst [vmem:[%s1382_s30 + $0x88] sm:$0xf] %v292_v34  ;;  %v294_v35 = vld [vmem:[%s1378_s29 + $0x118] sm:$0xf]  ;;  %v296_v36 = vld [vmem:[%s1378_s29 + $0x120] sm:$0xf] }
  0x29   : > { %v298_v37 = vld [vmem:[%s1378_s29 + $0x128] sm:$0xf]  ;;  %295 = vst [vmem:[%s1382_s30 + $0x8c] sm:$0xf] %v294_v35  ;;  %297 = vst [vmem:[%s1382_s30 + $0x90] sm:$0xf] %v296_v36 }
  0x2a   : > { %299 = vst [vmem:[%s1382_s30 + $0x94] sm:$0xf] %v298_v37  ;;  %v300_v38 = vld [vmem:[%s1378_s29 + $0x130] sm:$0xf]  ;;  %v302_v39 = vld [vmem:[%s1378_s29 + $0x138] sm:$0xf] }
  0x2b   : > { %v304_v40 = vld [vmem:[%s1378_s29 + $0x140] sm:$0xf]  ;;  %301 = vst [vmem:[%s1382_s30 + $0x98] sm:$0xf] %v300_v38  ;;  %303 = vst [vmem:[%s1382_s30 + $0x9c] sm:$0xf] %v302_v39 }
  0x2c   : > { %305 = vst [vmem:[%s1382_s30 + $0xa0] sm:$0xf] %v304_v40  ;;  %v306_v41 = vld [vmem:[%s1378_s29 + $0x148] sm:$0xf]  ;;  %v308_v42 = vld [vmem:[%s1378_s29 + $0x150] sm:$0xf] }
  0x2d   : > { %v310_v43 = vld [vmem:[%s1378_s29 + $0x158] sm:$0xf]  ;;  %307 = vst [vmem:[%s1382_s30 + $0xa4] sm:$0xf] %v306_v41  ;;  %309 = vst [vmem:[%s1382_s30 + $0xa8] sm:$0xf] %v308_v42 }
  0x2e   : > { %311 = vst [vmem:[%s1382_s30 + $0xac] sm:$0xf] %v310_v43  ;;  %v312_v44 = vld [vmem:[%s1378_s29 + $0x160] sm:$0xf]  ;;  %v314_v45 = vld [vmem:[%s1378_s29 + $0x168] sm:$0xf] }
  0x2f   : > { %v316_v46 = vld [vmem:[%s1378_s29 + $0x170] sm:$0xf]  ;;  %313 = vst [vmem:[%s1382_s30 + $0xb0] sm:$0xf] %v312_v44  ;;  %315 = vst [vmem:[%s1382_s30 + $0xb4] sm:$0xf] %v314_v45 }
  0x30   : > { %317 = vst [vmem:[%s1382_s30 + $0xb8] sm:$0xf] %v316_v46  ;;  %v318_v47 = vld [vmem:[%s1378_s29 + $0x178] sm:$0xf]  ;;  %v320_v48 = vld [vmem:[%s1378_s29 + $0x180] sm:$0xf] }
  0x31   : > { %v322_v49 = vld [vmem:[%s1378_s29 + $0x188] sm:$0xf]  ;;  %319 = vst [vmem:[%s1382_s30 + $0xbc] sm:$0xf] %v318_v47  ;;  %321 = vst [vmem:[%s1382_s30 + $0xc0] sm:$0xf] %v320_v48 }
  0x32   : > { %323 = vst [vmem:[%s1382_s30 + $0xc4] sm:$0xf] %v322_v49  ;;  %v324_v50 = vld [vmem:[%s1378_s29 + $0x190] sm:$0xf]  ;;  %v326_v51 = vld [vmem:[%s1378_s29 + $0x198] sm:$0xf] }
  0x33   : > { %v328_v52 = vld [vmem:[%s1378_s29 + $0x1a0] sm:$0xf]  ;;  %325 = vst [vmem:[%s1382_s30 + $0xc8] sm:$0xf] %v324_v50  ;;  %327 = vst [vmem:[%s1382_s30 + $0xcc] sm:$0xf] %v326_v51 }
  0x34   : > { %329 = vst [vmem:[%s1382_s30 + $0xd0] sm:$0xf] %v328_v52  ;;  %v330_v53 = vld [vmem:[%s1378_s29 + $0x1a8] sm:$0xf]  ;;  %v332_v54 = vld [vmem:[%s1378_s29 + $0x1b0] sm:$0xf] }
  0x35   : > { %v334_v55 = vld [vmem:[%s1378_s29 + $0x1b8] sm:$0xf]  ;;  %331 = vst [vmem:[%s1382_s30 + $0xd4] sm:$0xf] %v330_v53  ;;  %333 = vst [vmem:[%s1382_s30 + $0xd8] sm:$0xf] %v332_v54 }
  0x36   : > { %335 = vst [vmem:[%s1382_s30 + $0xdc] sm:$0xf] %v334_v55  ;;  %v336_v56 = vld [vmem:[%s1378_s29 + $0x1c0] sm:$0xf]  ;;  %v338_v57 = vld [vmem:[%s1378_s29 + $0x1c8] sm:$0xf] }
  0x37   : > { %v340_v58 = vld [vmem:[%s1378_s29 + $0x1d0] sm:$0xf]  ;;  %337 = vst [vmem:[%s1382_s30 + $0xe0] sm:$0xf] %v336_v56  ;;  %339 = vst [vmem:[%s1382_s30 + $0xe4] sm:$0xf] %v338_v57 }
  0x38   : > { %341 = vst [vmem:[%s1382_s30 + $0xe8] sm:$0xf] %v340_v58  ;;  %v342_v59 = vld [vmem:[%s1378_s29 + $0x1d8] sm:$0xf]  ;;  %v344_v60 = vld [vmem:[%s1378_s29 + $0x1e0] sm:$0xf] }
  0x39   : > { %v346_v61 = vld [vmem:[%s1378_s29 + $0x1e8] sm:$0xf]  ;;  %343 = vst [vmem:[%s1382_s30 + $0xec] sm:$0xf] %v342_v59  ;;  %345 = vst [vmem:[%s1382_s30 + $0xf0] sm:$0xf] %v344_v60 }
  0x3a   : > { %347 = vst [vmem:[%s1382_s30 + $0xf4] sm:$0xf] %v346_v61  ;;  %v348_v62 = vld [vmem:[%s1378_s29 + $0x1f0] sm:$0xf]  ;;  %v350_v63 = vld [vmem:[%s1378_s29 + $0x1f8] sm:$0xf] }
  0x3b   : > { %349 = vst [vmem:[%s1382_s30 + $0xf8] sm:$0xf] %v348_v62  ;;  %351 = vst [vmem:[%s1382_s30 + $0xfc] sm:$0xf] %v350_v63 }
  0x3c PF: > { %p1107_p6 = scmp.ge.s32.totalorder %s1308_s19, 1  ;;  %p513_p7 = scmp.lt.s32.totalorder %s1308_s19, 3 }
  0x3e   : > { %p514_p8 = pnand %p1107_p6, %p513_p7 }
  0x3f   : > { %s520_s5 = sand.u32 (!%p514_p8), 1, %s1292_s15   ;;  %v1516_v0 = vld [vmem:[%s1591_s0] sm:$0xff] (!%p514_p8)  ;;  %v1521_v1 = vld [vmem:[%s1591_s0 + $0x8] sm:$0xff] (!%p514_p8)  ;;  %p574_p9 = scmp.lt.s32.totalorder (!%p514_p8), %s1300_s17, 1 }
  0x40   : > { %517 = sbr.rel (%p514_p8) target bundleno = 327 (0x147), region = 73  ;;  %s1108_s10 = sshll.u32 (!%p514_p8), %s520_s5, 8  ;;  %v1111_v2 = vcombine.high (!%p514_p8), %v1516_v0, %v1516_v0  ;;  %v1113_v3 = vcombine.high (!%p514_p8), %v1521_v1, %v1521_v1  ;;  %v1110_v36 = vcombine.low (!%p514_p8), %v1516_v0, %v1516_v0  ;;  %v1112_v37 = vcombine.low (!%p514_p8), %v1521_v1, %v1521_v1 }
  0x41   : > { %s1527_s11 = scalar_lea.vmem (!%p514_p8), [#allocation3], %s1108_s10 }
  0x42   : > { %v1234_v4 = vld [vmem:[%s1527_s11 + $0x40] sm:$0xff] (!%p514_p8)   ;;  %899 = vmatprep.mubr.bf16.mxu0 (!%p514_p8), %v1111_v2  ;;  %939 = vmatprep.mubr.bf16.mxu1 (!%p514_p8), %v1113_v3  ;;  %v1238_v8 = vld [vmem:[%s1527_s11 + $0x48] sm:$0xff] (!%p514_p8)   ;;  %v1242_v12 = vld [vmem:[%s1527_s11 + $0x50] sm:$0xff] (!%p514_p8)  }
  0x43   : > { %v1235_v5 = vld [vmem:[%s1527_s11 + $0xc0] sm:$0xff] (!%p514_p8)   ;;  %1150 = vmatprep.subr.bf16.mxu0 (!%p514_p8), %v1234_v4  ;;  %v1239_v9 = vld [vmem:[%s1527_s11 + $0xc8] sm:$0xff] (!%p514_p8)   ;;  %v1243_v13 = vld [vmem:[%s1527_s11 + $0xd0] sm:$0xff] (!%p514_p8)  }
  0x44   : > { %v1236_v6 = vld [vmem:[%s1527_s11] sm:$0xff] (!%p514_p8)   ;;  %1172 = vmatprep.subr.bf16.mxu1 (!%p514_p8), %v1235_v5  ;;  %v1240_v10 = vld [vmem:[%s1527_s11 + $0x8] sm:$0xff] (!%p514_p8)   ;;  %v1244_v14 = vld [vmem:[%s1527_s11 + $0x10] sm:$0xff] (!%p514_p8)  }
  0x45   : > { %v1237_v7 = vld [vmem:[%s1527_s11 + $0x80] sm:$0xff] (!%p514_p8)   ;;  %1151 = vmatpush3.bf16.msra.mxu0 (!%p514_p8), %v1236_v6  ;;  %v1241_v11 = vld [vmem:[%s1527_s11 + $0x88] sm:$0xff] (!%p514_p8)   ;;  %v1245_v15 = vld [vmem:[%s1527_s11 + $0x90] sm:$0xff] (!%p514_p8)  }
  0x46   : > { %1173 = vmatpush3.bf16.msra.mxu1 (!%p514_p8), %v1237_v7  ;;  %1152 = vmatprep.subr.bf16.mxu0 (!%p514_p8), %v1238_v8  ;;  %v1246_v16 = vld [vmem:[%s1527_s11 + $0x58] sm:$0xff] (!%p514_p8)   ;;  %v1250_v20 = vld [vmem:[%s1527_s11 + $0x60] sm:$0xff] (!%p514_p8)   ;;  %v1254_v24 = vld [vmem:[%s1527_s11 + $0x68] sm:$0xff] (!%p514_p8)  }
  0x47   : > { %1174 = vmatprep.subr.bf16.mxu1 %v1239_v9  ;;  %v1247_v17 = vld [vmem:[%s1527_s11 + $0xd8] sm:$0xff]   ;;  %v1251_v21 = vld [vmem:[%s1527_s11 + $0xe0] sm:$0xff]   ;;  %v1255_v25 = vld [vmem:[%s1527_s11 + $0xe8] sm:$0xff]   ;;  %s1603_s17 = smov (!%p574_p9, %s1300_s17), 1 }
  0x48   : > { %v1248_v18 = vld [vmem:[%s1527_s11 + $0x18] sm:$0xff]   ;;  %v1252_v22 = vld [vmem:[%s1527_s11 + $0x20] sm:$0xff]   ;;  %v1256_v26 = vld [vmem:[%s1527_s11 + $0x28] sm:$0xff]   ;;  %s576_s14 = scalar_lea.vmem %s1593_s2, %s1603_s17  ;;  %s579_s22 = scalar_lea.vmem %s1594_s3, %s1603_s17 }
  0x49   : > { %1153 = vmatpush3.bf16.msra.mxu0 %v1240_v10  ;;  %v1249_v19 = vld [vmem:[%s1527_s11 + $0x98] sm:$0xff]   ;;  %v1253_v23 = vld [vmem:[%s1527_s11 + $0xa0] sm:$0xff]   ;;  %v1257_v27 = vld [vmem:[%s1527_s11 + $0xa8] sm:$0xff]   ;;  %s1109_s24 = sshll.u32 %s1603_s17, 2 }
  0x4a   : > { %1175 = vmatpush3.bf16.msra.mxu1 %v1241_v11  ;;  %1154 = vmatprep.subr.bf16.mxu0 %v1242_v12  ;;  %v1258_v28 = vld [vmem:[%s1527_s11 + $0x70] sm:$0xff]   ;;  %v1262_v32 = vld [vmem:[%s1527_s11 + $0x78] sm:$0xff]   ;;  %v1146_v47 = vld [vmem:[%s576_s14] ss:$0 sm:$0xff]  ;;  %s587_s27 = scalar_lea.vmem %s1595_s4, %s1109_s24 }
  0x4b   : > { %1176 = vmatprep.subr.bf16.mxu1 %v1243_v13  ;;  %v1259_v29 = vld [vmem:[%s1527_s11 + $0xf0] sm:$0xff]   ;;  %v1263_v33 = vld [vmem:[%s1527_s11 + $0xf8] sm:$0xff]   ;;  %v1147_v50 = vld [vmem:[%s579_s22] ss:$0 sm:$0xff] }
  0x4c   : > { %v1260_v30 = vld [vmem:[%s1527_s11 + $0x30] sm:$0xff]   ;;  %v1264_v34 = vld [vmem:[%s1527_s11 + $0x38] sm:$0xff]  }
  0x4d   : > { %1155 = vmatpush3.bf16.msra.mxu0 %v1244_v14  ;;  %v1261_v31 = vld [vmem:[%s1527_s11 + $0xb0] sm:$0xff]   ;;  %v1265_v35 = vld [vmem:[%s1527_s11 + $0xb8] sm:$0xff]  }
  0x4e   : > { %1177 = vmatpush3.bf16.msra.mxu1 %v1245_v15  ;;  %1156 = vmatprep.subr.bf16.mxu0 %v1246_v16 }
  0x4f   : > { %1178 = vmatprep.subr.bf16.mxu1 %v1247_v17 }
  0x51   : > { %1157 = vmatpush3.bf16.msra.mxu0 %v1248_v18 }
  0x52   : > { %1179 = vmatpush3.bf16.msra.mxu1 %v1249_v19  ;;  %1158 = vmatprep.subr.bf16.mxu0 %v1250_v20 }
  0x53   : > { %1180 = vmatprep.subr.bf16.mxu1 %v1251_v21 }
  0x55   : > { %1159 = vmatpush3.bf16.msra.mxu0 %v1252_v22 }
  0x56   : > { %1181 = vmatpush3.bf16.msra.mxu1 %v1253_v23  ;;  %1160 = vmatprep.subr.bf16.mxu0 %v1254_v24 }
  0x57   : > { %1182 = vmatprep.subr.bf16.mxu1 %v1255_v25 }
  0x59   : > { %1161 = vmatpush3.bf16.msra.mxu0 %v1256_v26 }
  0x5a   : > { %1183 = vmatpush3.bf16.msra.mxu1 %v1257_v27  ;;  %1162 = vmatprep.subr.bf16.mxu0 %v1258_v28 }
  0x5b   : > { %1184 = vmatprep.subr.bf16.mxu1 %v1259_v29 }
  0x5d   : > { %1163 = vmatpush3.bf16.msra.mxu0 %v1260_v30 }
  0x5e   : > { %1185 = vmatpush3.bf16.msra.mxu1 %v1261_v31  ;;  %1164 = vmatprep.subr.bf16.mxu0 %v1262_v32 }
  0x5f   : > { %1186 = vmatprep.subr.bf16.mxu1 %v1263_v33 }
  0x61   : > { %1165 = vmatpush3.bf16.msra.mxu0 %v1264_v34 }
  0x62   : > { %1187 = vmatpush3.bf16.msra.mxu1 %v1265_v35 }
  0x64   : > { %900 = vmatmul.mubr.bf16.vlgmr.msra.gmra.mrb[0].mxu0 %v1110_v36 }
  0x65   : > { %940 = vmatmul.mubr.bf16.vlgmr.msra.gmra.mrb[0].mxu1 %v1112_v37 }
 0x137   : > { %v1166_v38 = vpop.f32.mrb[0].mxu0 }
 0x138   : > { %v1188_v39 = vpop.f32.mrb[0].mxu1  ;;  %v1167_v40 = vpop.f32.mrb[1].mxu0 }
 0x139   : > { %v1168_v41 = vadd.f32 %v1167_v40, %v1166_v38  ;;  %v1189_v42 = vpop.f32.mrb[1].mxu1  ;;  %v1169_v43 = vpop.f32.mrb[2].mxu0 }
 0x13a   : > { %v1190_v44 = vadd.f32 %v1189_v42, %v1188_v39  ;;  %v1191_v45 = vpop.f32.mrb[2].mxu1  ;;  %v1170_v46 = vpop.f32.mrb[3].mxu0 }
 0x13b   : > { %v1192_v48 = vpop.f32.mrb[3].mxu1 }
 0x13c   : > { %v942_v49 = vadd.f32 %v1190_v44, %v1168_v41 }
 0x13e   : > { %v960_v51 = vmul.f32 %v1146_v47, %v942_v49 }
 0x140   : > { %v968_v52 = vadd.f32 %v1147_v50, %v960_v51 }
 0x142   : > { %v969_v53 = vmax.f32 %v968_v52, 0.0 }
 0x144   : > { %v970_v54 = vpack.c.bf16 %v969_v53, %v969_v53 }
 0x146   : > { %971 = vst [vmem:[%s587_s27] sm:$0xf] %v970_v54 }
 0x147 PF: > { %s14_s19 = sadd.s32 1, %s1308_s19   ;;  %s1596_s15 = smov %s1296_s16 }
 0x148   : > { %p11_p10 = scmp.ge.s32.totalorder %s14_s19, 4   ;;  %s1597_s16 = smov %s1370_s23 }
 0x149   : > { %s1598_s17 = smov %s1304_s18  ;;  %s1599_s18 = smov %s1601_s20 }
 0x14a   :  { %13 = sbr.rel (!%p11_p10) target bundleno = 3 (0x3), region = 129 }

// kernel: _lambda_.35
= control target key start
LH: loop header
LB: loop body
LE: loop exit
PB: predicated region body
PF: predicated region fallthrough
CT: control target
= control target key end

     0   :  { %s1013_s15 = smov 0   ;;  %s1015_s16 = smov 0   ;;  %s1221_s0 = inlined_call_operand.vmem [shape: bf16[8,2304], index: 0, kind: input, shape index: {}]   ;;  %s1222_s1 = inlined_call_operand.vmem [shape: bf16[2304,256], index: 1, kind: input, shape index: {}]   ;;  %s1223_s2 = inlined_call_operand.vmem [shape: f32[1,256], index: 2, kind: input, shape index: {}]   ;;  %s1224_s3 = inlined_call_operand.vmem [shape: f32[1,256], index: 3, kind: input, shape index: {}]   ;;  %s1225_s4 = inlined_call_operand.vmem [shape: bf16[8,256], index: 4, kind: output, shape index: {}]  }
   0x1   :  { %s1017_s17 = smov 0   ;;  %s1019_s18 = smov 0  }
   0x2   :  { %s1021_s19 = smov 0   ;;  %s1023_s20 = smov 0  }
   0x3   :  { %s1025_s21 = smov 0  }
   0x4 LB: > { %s26_s22 = sadd.s32 1, %s977_s19  ;;  %s29_s23 = sadd.s32 1, %s981_s20  ;;  %s985_s21 = sphi %s1025_s21, %s14_s21   ;;  %s981_s20 = sphi %s1023_s20, %s1231_s20   ;;  %s977_s19 = sphi %s1021_s19, %s1230_s19   ;;  %s973_s18 = sphi %s1019_s18, %s1229_s18   ;;  %s969_s17 = sphi %s1017_s17, %s1228_s17   ;;  %s965_s16 = sphi %s1015_s16, %s1227_s16   ;;  %s961_s15 = sphi %s1013_s15, %s1226_s15  }
   0x5   : > { %p27_p0 = scmp.ge.s32.totalorder %s26_s22, 9  ;;  %p77_p1 = scmp.ne.s32.totalorder %s965_s16, %s961_s15 }
   0x6   : > { %p78_p2 = scmp.eq.s32.totalorder %s985_s21, 0  ;;  %s70_s27 = sadd.s32 1, %s965_s16 }
   0x7   : > { %s1233_s22 = smov (%p27_p0, %s26_s22), 0  ;;  %s1235_s23 = smov (!%p27_p0, %s29_s23), %s981_s20 }
   0x8   : > { %p79_p3 = por %p78_p2, %p77_p1  ;;  %p31_p4 = scmp.ge.s32.totalorder %s1235_s23, 2 }
   0x9   : > { %s65_s24 = ssub.s32 %s977_s19, %s1233_s22  ;;  %p799_p6 = scmp.ge.s32.totalorder %s985_s21, 18 }
   0xa   : > { %s1237_s23 = smov (%p31_p4, %s1235_s23), 0 }
   0xb   : > { %s66_s25 = ssub.s32 %s981_s20, %s1237_s23  ;;  %183 = sbr.rel (%p799_p6) target bundleno = 45 (0x2d), region = 16 }
   0xc   : > { %s67_s26 = sor.u32 %s66_s25, %s65_s24 }
   0xd   : > { %p68_p5 = scmp.eq.s32.totalorder %s67_s26, 0 }
   0xf   : > { %s1064_s28 = scalar_select %p68_p5, %s965_s16, %s70_s27  }
  0x12   : > { %199 = sbr.rel (!%p79_p3) target bundleno = 45 (0x2d), region = 24  ;;  %s201_s29 = sand.u32 (%p79_p3), 1, %s965_s16  }
  0x13   : > { %s833_s30 = sshll.u32 (%p79_p3), %s977_s19, 6  ;;  %s800_s5 = sshll.u32 (%p79_p3), %s201_s29, 7 }
  0x14   : > { %s206_s6 = sadd.s32 (%p79_p3), %s981_s20, %s833_s30  ;;  %s1078_s11 = scalar_lea.vmem (%p79_p3), [#allocation3], %s800_s5 }
  0x15   : > { %s803_s7 = sshll.u32 (%p79_p3), %s206_s6, 2 }
  0x16   : > { %s1073_s10 = scalar_lea.vmem (%p79_p3), %s1222_s1, %s803_s7 }
  0x17   : > { %v224_v0 = vld [vmem:[%s1073_s10] sm:$0xf] (%p79_p3)  ;;  %v226_v1 = vld [vmem:[%s1073_s10 + $0x8] sm:$0xf] (%p79_p3)  ;;  %v228_v2 = vld [vmem:[%s1073_s10 + $0x10] sm:$0xf] (%p79_p3) }
  0x18   : > { %225 = vst [vmem:[%s1078_s11] sm:$0xf] (%p79_p3), %v224_v0  ;;  %227 = vst [vmem:[%s1078_s11 + $0x4] sm:$0xf] (%p79_p3), %v226_v1  ;;  %v230_v3 = vld [vmem:[%s1073_s10 + $0x18] sm:$0xf] (%p79_p3) }
  0x19   : > { %229 = vst [vmem:[%s1078_s11 + $0x8] sm:$0xf] %v228_v2  ;;  %v232_v4 = vld [vmem:[%s1073_s10 + $0x20] sm:$0xf]  ;;  %v234_v5 = vld [vmem:[%s1073_s10 + $0x28] sm:$0xf] }
  0x1a   : > { %231 = vst [vmem:[%s1078_s11 + $0xc] sm:$0xf] %v230_v3  ;;  %233 = vst [vmem:[%s1078_s11 + $0x10] sm:$0xf] %v232_v4  ;;  %v236_v6 = vld [vmem:[%s1073_s10 + $0x30] sm:$0xf] }
  0x1b   : > { %235 = vst [vmem:[%s1078_s11 + $0x14] sm:$0xf] %v234_v5  ;;  %v238_v7 = vld [vmem:[%s1073_s10 + $0x38] sm:$0xf]  ;;  %v240_v8 = vld [vmem:[%s1073_s10 + $0x40] sm:$0xf] }
  0x1c   : > { %237 = vst [vmem:[%s1078_s11 + $0x18] sm:$0xf] %v236_v6  ;;  %239 = vst [vmem:[%s1078_s11 + $0x1c] sm:$0xf] %v238_v7  ;;  %v242_v9 = vld [vmem:[%s1073_s10 + $0x48] sm:$0xf] }
  0x1d   : > { %241 = vst [vmem:[%s1078_s11 + $0x20] sm:$0xf] %v240_v8  ;;  %v244_v10 = vld [vmem:[%s1073_s10 + $0x50] sm:$0xf]  ;;  %v246_v11 = vld [vmem:[%s1073_s10 + $0x58] sm:$0xf] }
  0x1e   : > { %243 = vst [vmem:[%s1078_s11 + $0x24] sm:$0xf] %v242_v9  ;;  %245 = vst [vmem:[%s1078_s11 + $0x28] sm:$0xf] %v244_v10  ;;  %v248_v12 = vld [vmem:[%s1073_s10 + $0x60] sm:$0xf] }
  0x1f   : > { %247 = vst [vmem:[%s1078_s11 + $0x2c] sm:$0xf] %v246_v11  ;;  %v250_v13 = vld [vmem:[%s1073_s10 + $0x68] sm:$0xf]  ;;  %v252_v14 = vld [vmem:[%s1073_s10 + $0x70] sm:$0xf] }
  0x20   : > { %249 = vst [vmem:[%s1078_s11 + $0x30] sm:$0xf] %v248_v12  ;;  %251 = vst [vmem:[%s1078_s11 + $0x34] sm:$0xf] %v250_v13  ;;  %v254_v15 = vld [vmem:[%s1073_s10 + $0x78] sm:$0xf] }
  0x21   : > { %253 = vst [vmem:[%s1078_s11 + $0x38] sm:$0xf] %v252_v14  ;;  %v256_v16 = vld [vmem:[%s1073_s10 + $0x80] sm:$0xf]  ;;  %v258_v17 = vld [vmem:[%s1073_s10 + $0x88] sm:$0xf] }
  0x22   : > { %255 = vst [vmem:[%s1078_s11 + $0x3c] sm:$0xf] %v254_v15  ;;  %257 = vst [vmem:[%s1078_s11 + $0x40] sm:$0xf] %v256_v16  ;;  %v260_v18 = vld [vmem:[%s1073_s10 + $0x90] sm:$0xf] }
  0x23   : > { %259 = vst [vmem:[%s1078_s11 + $0x44] sm:$0xf] %v258_v17  ;;  %v262_v19 = vld [vmem:[%s1073_s10 + $0x98] sm:$0xf]  ;;  %v264_v20 = vld [vmem:[%s1073_s10 + $0xa0] sm:$0xf] }
  0x24   : > { %261 = vst [vmem:[%s1078_s11 + $0x48] sm:$0xf] %v260_v18  ;;  %263 = vst [vmem:[%s1078_s11 + $0x4c] sm:$0xf] %v262_v19  ;;  %v266_v21 = vld [vmem:[%s1073_s10 + $0xa8] sm:$0xf] }
  0x25   : > { %265 = vst [vmem:[%s1078_s11 + $0x50] sm:$0xf] %v264_v20  ;;  %v268_v22 = vld [vmem:[%s1073_s10 + $0xb0] sm:$0xf]  ;;  %v270_v23 = vld [vmem:[%s1073_s10 + $0xb8] sm:$0xf] }
  0x26   : > { %267 = vst [vmem:[%s1078_s11 + $0x54] sm:$0xf] %v266_v21  ;;  %269 = vst [vmem:[%s1078_s11 + $0x58] sm:$0xf] %v268_v22  ;;  %v272_v24 = vld [vmem:[%s1073_s10 + $0xc0] sm:$0xf] }
  0x27   : > { %271 = vst [vmem:[%s1078_s11 + $0x5c] sm:$0xf] %v270_v23  ;;  %v274_v25 = vld [vmem:[%s1073_s10 + $0xc8] sm:$0xf]  ;;  %v276_v26 = vld [vmem:[%s1073_s10 + $0xd0] sm:$0xf] }
  0x28   : > { %273 = vst [vmem:[%s1078_s11 + $0x60] sm:$0xf] %v272_v24  ;;  %275 = vst [vmem:[%s1078_s11 + $0x64] sm:$0xf] %v274_v25  ;;  %v278_v27 = vld [vmem:[%s1073_s10 + $0xd8] sm:$0xf] }
  0x29   : > { %277 = vst [vmem:[%s1078_s11 + $0x68] sm:$0xf] %v276_v26  ;;  %v280_v28 = vld [vmem:[%s1073_s10 + $0xe0] sm:$0xf]  ;;  %v282_v29 = vld [vmem:[%s1073_s10 + $0xe8] sm:$0xf] }
  0x2a   : > { %279 = vst [vmem:[%s1078_s11 + $0x6c] sm:$0xf] %v278_v27  ;;  %281 = vst [vmem:[%s1078_s11 + $0x70] sm:$0xf] %v280_v28  ;;  %v284_v30 = vld [vmem:[%s1073_s10 + $0xf0] sm:$0xf] }
  0x2b   : > { %283 = vst [vmem:[%s1078_s11 + $0x74] sm:$0xf] %v282_v29  ;;  %v286_v31 = vld [vmem:[%s1073_s10 + $0xf8] sm:$0xf]  ;;  %285 = vst [vmem:[%s1078_s11 + $0x78] sm:$0xf] %v284_v30 }
  0x2c   : > { %287 = vst [vmem:[%s1078_s11 + $0x7c] sm:$0xf] %v286_v31 }
  0x2d PF: > { %p804_p7 = scmp.ge.s32.totalorder %s985_s21, 1  ;;  %p385_p8 = scmp.lt.s32.totalorder %s985_s21, 19 }
  0x2f   : > { %p386_p9 = pnand %p804_p7, %p385_p8 }
  0x30   : > { %s392_s12 = sand.u32 (!%p386_p9), 1, %s961_s15   ;;  %s806_s13 = sshll.u32 (!%p386_p9), %s969_s17, 1 }
  0x31   : > { %389 = sbr.rel (%p386_p9) target bundleno = 333 (0x14d), region = 73  ;;  %s805_s14 = sshll.u32 (!%p386_p9), %s392_s12, 7 }
  0x32   : > { %p438_p10 = scmp.lt.s32.totalorder (!%p386_p9), %s806_s13, 17  ;;  %p446_p11 = scmp.lt.s32.totalorder (!%p386_p9), %s973_s18, 1 }
  0x33   : > { %s1168_s12 = scalar_lea.vmem (!%p386_p9), [#allocation3], %s805_s14  ;;  %p809_p12 = scmp.ne.s32.totalorder (!%p386_p9), %s969_s17, 0 }
  0x38   : > { %s1239_s13 = smov (!%p438_p10, %s806_s13), 17  ;;  %s1241_s18 = smov (!%p446_p11, %s973_s18), 1 }
  0x39   : > { %s807_s24 = sshll.u32 %s1239_s13, 2  ;;  %s448_s15 = scalar_lea.vmem %s1223_s2, %s1241_s18  ;;  %v987_v32 = vmov (!%p809_p12), 0.0  }
  0x3a   : > { %s1152_s27 = scalar_lea.vmem %s1221_s0, %s807_s24  ;;  %s451_s7 = scalar_lea.vmem %s1224_s3, %s1241_s18  ;;  %465 = vst [vmem:[#allocation2] sm:$0xff] (!%p809_p12), %v987_v32 }
  0x3b   : > { %s808_s8 = sshll.u32 %s1241_s18, 2  ;;  %464 = sbr.rel (%p809_p12) target bundleno = 66 (0x42), region = 81 }
  0x3c   : > { %s1166_s11 = scalar_lea.vmem %s1225_s4, %s808_s8 }
  0x42 PF: > { %v913_v33 = vld [vmem:[%s1168_s12 + $0x40] sm:$0xff]   ;;  %v915_v35 = vld [vmem:[%s1168_s12 + $0x48] sm:$0xff]   ;;  %v917_v37 = vld [vmem:[%s1168_s12 + $0x50] sm:$0xff]   ;;  %p828_p13 = scmp.ne.s32.totalorder %s969_s17, 8 }
  0x43   : > { %v914_v34 = vld [vmem:[%s1168_s12] sm:$0xff]   ;;  %834 = vmatprep.subr.bf16.mxu0 %v913_v33  ;;  %v916_v36 = vld [vmem:[%s1168_s12 + $0x8] sm:$0xff]   ;;  %v918_v38 = vld [vmem:[%s1168_s12 + $0x10] sm:$0xff]  }
  0x44   : > { %835 = vmatpush3.bf16.msra.mxu0 %v914_v34  ;;  %v919_v39 = vld [vmem:[%s1168_s12 + $0x58] sm:$0xff]   ;;  %v921_v41 = vld [vmem:[%s1168_s12 + $0x60] sm:$0xff]   ;;  %v923_v43 = vld [vmem:[%s1168_s12 + $0x68] sm:$0xff]  }
  0x45   : > { %836 = vmatprep.subr.bf16.mxu0 %v915_v35  ;;  %v920_v40 = vld [vmem:[%s1168_s12 + $0x18] sm:$0xff]   ;;  %v922_v42 = vld [vmem:[%s1168_s12 + $0x20] sm:$0xff]   ;;  %v924_v46 = vld [vmem:[%s1168_s12 + $0x28] sm:$0xff]  }
  0x46   : > { %v467_v44 = vld [vmem:[%s1152_s27] sm:$0xff]  ;;  %v925_v47 = vld [vmem:[%s1168_s12 + $0x70] sm:$0xff]  }
  0x47   : > { %v811_v45 = vcombine.high %v467_v44, %v467_v44  ;;  %v926_v48 = vld [vmem:[%s1168_s12 + $0x30] sm:$0xff]   ;;  %v927_v49 = vld [vmem:[%s1168_s12 + $0x78] sm:$0xff]   ;;  %v810_v51 = vcombine.low %v467_v44, %v467_v44 }
  0x48   : > { %837 = vmatpush3.bf16.msra.mxu0 %v916_v36  ;;  %v928_v50 = vld [vmem:[%s1168_s12 + $0x38] sm:$0xff]  }
  0x49   : > { %838 = vmatprep.subr.bf16.mxu0 %v917_v37  ;;  %635 = vmatprep.mubr.bf16.mxu0 %v811_v45  ;;  %v466_v53 = vld [vmem:[#allocation2] sm:$0xff] }
  0x4a   : > { %v829_v60 = vld [vmem:[%s448_s15] ss:$0 sm:$0xff] (!%p828_p13) }
  0x4b   : > { %v830_v61 = vld [vmem:[%s451_s7] ss:$0 sm:$0xff] (!%p828_p13) }
  0x4c   : > { %839 = vmatpush3.bf16.msra.mxu0 %v918_v38 }
  0x4d   : > { %840 = vmatprep.subr.bf16.mxu0 %v919_v39 }
  0x50   : > { %841 = vmatpush3.bf16.msra.mxu0 %v920_v40 }
  0x51   : > { %842 = vmatprep.subr.bf16.mxu0 %v921_v41 }
  0x54   : > { %843 = vmatpush3.bf16.msra.mxu0 %v922_v42 }
  0x55   : > { %844 = vmatprep.subr.bf16.mxu0 %v923_v43 }
  0x58   : > { %845 = vmatpush3.bf16.msra.mxu0 %v924_v46 }
  0x59   : > { %846 = vmatprep.subr.bf16.mxu0 %v925_v47 }
  0x5c   : > { %847 = vmatpush3.bf16.msra.mxu0 %v926_v48 }
  0x5d   : > { %848 = vmatprep.subr.bf16.mxu0 %v927_v49 }
  0x60   : > { %849 = vmatpush3.bf16.msra.mxu0 %v928_v50 }
  0x63   : > { %636 = vmatmul.mubr.bf16.vlgmr.msra.gmra.mrb[0].mxu0 %v810_v51 }
 0x136   : > { %v850_v52 = vpop.f32.mrb[0].mxu0  ;;  %648 = sbr.rel (%p828_p13) target bundleno = 333 (0x14d), region = 85 }
 0x137   : > { %v851_v54 = vpop.f32.mrb[1].mxu0 }
 0x138   : > { %v852_v55 = vadd.f32 %v851_v54, %v850_v52  ;;  %v853_v56 = vpop.f32.mrb[2].mxu0 }
 0x139   : > { %v854_v57 = vpop.f32.mrb[3].mxu0 }
 0x13a   : > { %v643_v58 = vadd.f32 %v852_v55, %v466_v53 }
 0x13c   : > { %644 = vst [vmem:[#allocation2] sm:$0xff] %v643_v58 }
 0x143   : > { %v649_v59 = vld [vmem:[#allocation2] sm:$0xff] }
 0x144   : > { %v657_v62 = vmul.f32 %v829_v60, %v649_v59 }
 0x146   : > { %v665_v63 = vadd.f32 %v830_v61, %v657_v62 }
 0x148   : > { %v666_v0 = vmax.f32 %v665_v63, 0.0 }
 0x14a   : > { %v667_v1 = vpack.c.bf16 %v666_v0, %v666_v0 }
 0x14c   : > { %668 = vst [vmem:[%s1166_s11] sm:$0xf] %v667_v1 }
 0x14d PF: > { %s14_s21 = sadd.s32 1, %s985_s21   ;;  %s1226_s15 = smov %s965_s16 }
 0x14e   : > { %p11_p0 = scmp.ge.s32.totalorder %s14_s21, 20   ;;  %s1227_s16 = smov %s1064_s28 }
 0x14f   : > { %s1228_s17 = smov %s977_s19  ;;  %s1229_s18 = smov %s981_s20 }
 0x150   : > { %s1230_s19 = smov %s1233_s22  ;;  %s1231_s20 = smov %s1237_s23 }
 0x151   :  { %13 = sbr.rel (!%p11_p0) target bundleno = 4 (0x4), region = 129 }

// kernel: _lambda_.36
= control target key start
LH: loop header
LB: loop body
LE: loop exit
PB: predicated region body
PF: predicated region fallthrough
CT: control target
= control target key end

     0   :  { %s1558_s15 = smov 0   ;;  %s1560_s16 = smov 0   ;;  %s1845_s0 = inlined_call_operand.vmem [shape: bf16[8,512], index: 0, kind: input, shape index: {}]   ;;  %s1846_s1 = inlined_call_operand.vmem [shape: bf16[512,1024], index: 1, kind: input, shape index: {}]   ;;  %s1847_s2 = inlined_call_operand.vmem [shape: f32[1,1024], index: 2, kind: input, shape index: {}]   ;;  %s1848_s3 = inlined_call_operand.vmem [shape: f32[1,1024], index: 3, kind: input, shape index: {}]   ;;  %s1849_s4 = inlined_call_operand.vmem [shape: bf16[8,1024], index: 4, kind: output, shape index: {}]  }
   0x1   :  { %s1562_s17 = smov 0   ;;  %s1564_s18 = smov 0  }
   0x2   :  { %s1566_s19 = smov 0  }
   0x3 LB: > { %s29_s20 = sadd.s32 1, %s1527_s18  ;;  %p77_p1 = scmp.ne.s32.totalorder %s1519_s16, %s1515_s15  ;;  %s1531_s19 = sphi %s1566_s19, %s14_s19   ;;  %s1527_s18 = sphi %s1564_s18, %s1853_s18   ;;  %s1523_s17 = sphi %s1562_s17, %s1852_s17   ;;  %s1519_s16 = sphi %s1560_s16, %s1851_s16   ;;  %s1515_s15 = sphi %s1558_s15, %s1850_s15  }
   0x4   : > { %p31_p0 = scmp.ge.s32.totalorder %s29_s20, 4  ;;  %p78_p2 = scmp.eq.s32.totalorder %s1531_s19, 0 }
   0x5   : > { %s70_s22 = sadd.s32 1, %s1519_s16  ;;  %p1268_p5 = scmp.ge.s32.totalorder %s1531_s19, 4 }
   0x6   : > { %s1855_s20 = smov (%p31_p0, %s29_s20), 0  ;;  %p79_p3 = por %p78_p2, %p77_p1 }
   0x7   : > { %s66_s21 = ssub.s32 %s1527_s18, %s1855_s20  ;;  %196 = sbr.rel (%p1268_p5) target bundleno = 82 (0x52), region = 20 }
   0x8   : > { %p68_p4 = scmp.eq.s32.totalorder %s66_s21, 0 }
   0xa   : > { %s1593_s23 = scalar_select %p68_p4, %s1519_s16, %s70_s22  }
   0xe   : > { %199 = sbr.rel (!%p79_p3) target bundleno = 82 (0x52), region = 24  ;;  %s201_s24 = sand.u32 (%p79_p3), 1, %s1519_s16  }
   0xf   : > { %s1349_s25 = sshll.u32 (%p79_p3), %s1527_s18, 3  ;;  %s1269_s26 = sshll.u32 (%p79_p3), %s201_s24, 9 }
  0x10   : > { %s1601_s29 = scalar_lea.vmem (%p79_p3), %s1846_s1, %s1349_s25  ;;  %s1606_s30 = scalar_lea.vmem (%p79_p3), [#allocation3], %s1269_s26 }
  0x11   : > { %v363_v0 = vld [vmem:[%s1601_s29] sm:$0xff] (%p79_p3) }
  0x12   : > { %v365_v1 = vld [vmem:[%s1601_s29 + $0x20] sm:$0xff] (%p79_p3)  ;;  %364 = vst [vmem:[%s1606_s30] sm:$0xff] (%p79_p3), %v363_v0 }
  0x13   : > { %v367_v2 = vld [vmem:[%s1601_s29 + $0x40] sm:$0xff] (%p79_p3)  ;;  %366 = vst [vmem:[%s1606_s30 + $0x8] sm:$0xff] (%p79_p3), %v365_v1 }
  0x14   : > { %368 = vst [vmem:[%s1606_s30 + $0x10] sm:$0xff] (%p79_p3), %v367_v2  ;;  %v369_v3 = vld [vmem:[%s1601_s29 + $0x60] sm:$0xff] (%p79_p3) }
  0x15   : > { %v371_v4 = vld [vmem:[%s1601_s29 + $0x80] sm:$0xff]  ;;  %370 = vst [vmem:[%s1606_s30 + $0x18] sm:$0xff] %v369_v3 }
  0x16   : > { %v373_v5 = vld [vmem:[%s1601_s29 + $0xa0] sm:$0xff]  ;;  %372 = vst [vmem:[%s1606_s30 + $0x20] sm:$0xff] %v371_v4 }
  0x17   : > { %374 = vst [vmem:[%s1606_s30 + $0x28] sm:$0xff] %v373_v5  ;;  %v375_v6 = vld [vmem:[%s1601_s29 + $0xc0] sm:$0xff] }
  0x18   : > { %v377_v7 = vld [vmem:[%s1601_s29 + $0xe0] sm:$0xff]  ;;  %376 = vst [vmem:[%s1606_s30 + $0x30] sm:$0xff] %v375_v6 }
  0x19   : > { %v379_v8 = vld [vmem:[%s1601_s29 + $0x100] sm:$0xff]  ;;  %378 = vst [vmem:[%s1606_s30 + $0x38] sm:$0xff] %v377_v7 }
  0x1a   : > { %380 = vst [vmem:[%s1606_s30 + $0x40] sm:$0xff] %v379_v8  ;;  %v381_v9 = vld [vmem:[%s1601_s29 + $0x120] sm:$0xff] }
  0x1b   : > { %v383_v10 = vld [vmem:[%s1601_s29 + $0x140] sm:$0xff]  ;;  %382 = vst [vmem:[%s1606_s30 + $0x48] sm:$0xff] %v381_v9 }
  0x1c   : > { %v385_v11 = vld [vmem:[%s1601_s29 + $0x160] sm:$0xff]  ;;  %384 = vst [vmem:[%s1606_s30 + $0x50] sm:$0xff] %v383_v10 }
  0x1d   : > { %386 = vst [vmem:[%s1606_s30 + $0x58] sm:$0xff] %v385_v11  ;;  %v387_v12 = vld [vmem:[%s1601_s29 + $0x180] sm:$0xff] }
  0x1e   : > { %v389_v13 = vld [vmem:[%s1601_s29 + $0x1a0] sm:$0xff]  ;;  %388 = vst [vmem:[%s1606_s30 + $0x60] sm:$0xff] %v387_v12 }
  0x1f   : > { %v391_v14 = vld [vmem:[%s1601_s29 + $0x1c0] sm:$0xff]  ;;  %390 = vst [vmem:[%s1606_s30 + $0x68] sm:$0xff] %v389_v13 }
  0x20   : > { %392 = vst [vmem:[%s1606_s30 + $0x70] sm:$0xff] %v391_v14  ;;  %v393_v15 = vld [vmem:[%s1601_s29 + $0x1e0] sm:$0xff] }
  0x21   : > { %v395_v16 = vld [vmem:[%s1601_s29 + $0x200] sm:$0xff]  ;;  %394 = vst [vmem:[%s1606_s30 + $0x78] sm:$0xff] %v393_v15 }
  0x22   : > { %v397_v17 = vld [vmem:[%s1601_s29 + $0x220] sm:$0xff]  ;;  %396 = vst [vmem:[%s1606_s30 + $0x80] sm:$0xff] %v395_v16 }
  0x23   : > { %398 = vst [vmem:[%s1606_s30 + $0x88] sm:$0xff] %v397_v17  ;;  %v399_v18 = vld [vmem:[%s1601_s29 + $0x240] sm:$0xff] }
  0x24   : > { %v401_v19 = vld [vmem:[%s1601_s29 + $0x260] sm:$0xff]  ;;  %400 = vst [vmem:[%s1606_s30 + $0x90] sm:$0xff] %v399_v18 }
  0x25   : > { %v403_v20 = vld [vmem:[%s1601_s29 + $0x280] sm:$0xff]  ;;  %402 = vst [vmem:[%s1606_s30 + $0x98] sm:$0xff] %v401_v19 }
  0x26   : > { %404 = vst [vmem:[%s1606_s30 + $0xa0] sm:$0xff] %v403_v20  ;;  %v405_v21 = vld [vmem:[%s1601_s29 + $0x2a0] sm:$0xff] }
  0x27   : > { %v407_v22 = vld [vmem:[%s1601_s29 + $0x2c0] sm:$0xff]  ;;  %406 = vst [vmem:[%s1606_s30 + $0xa8] sm:$0xff] %v405_v21 }
  0x28   : > { %v409_v23 = vld [vmem:[%s1601_s29 + $0x2e0] sm:$0xff]  ;;  %408 = vst [vmem:[%s1606_s30 + $0xb0] sm:$0xff] %v407_v22 }
  0x29   : > { %410 = vst [vmem:[%s1606_s30 + $0xb8] sm:$0xff] %v409_v23  ;;  %v411_v24 = vld [vmem:[%s1601_s29 + $0x300] sm:$0xff] }
  0x2a   : > { %v413_v25 = vld [vmem:[%s1601_s29 + $0x320] sm:$0xff]  ;;  %412 = vst [vmem:[%s1606_s30 + $0xc0] sm:$0xff] %v411_v24 }
  0x2b   : > { %v415_v26 = vld [vmem:[%s1601_s29 + $0x340] sm:$0xff]  ;;  %414 = vst [vmem:[%s1606_s30 + $0xc8] sm:$0xff] %v413_v25 }
  0x2c   : > { %416 = vst [vmem:[%s1606_s30 + $0xd0] sm:$0xff] %v415_v26  ;;  %v417_v27 = vld [vmem:[%s1601_s29 + $0x360] sm:$0xff] }
  0x2d   : > { %v419_v28 = vld [vmem:[%s1601_s29 + $0x380] sm:$0xff]  ;;  %418 = vst [vmem:[%s1606_s30 + $0xd8] sm:$0xff] %v417_v27 }
  0x2e   : > { %v421_v29 = vld [vmem:[%s1601_s29 + $0x3a0] sm:$0xff]  ;;  %420 = vst [vmem:[%s1606_s30 + $0xe0] sm:$0xff] %v419_v28 }
  0x2f   : > { %422 = vst [vmem:[%s1606_s30 + $0xe8] sm:$0xff] %v421_v29  ;;  %v423_v30 = vld [vmem:[%s1601_s29 + $0x3c0] sm:$0xff] }
  0x30   : > { %v425_v31 = vld [vmem:[%s1601_s29 + $0x3e0] sm:$0xff]  ;;  %424 = vst [vmem:[%s1606_s30 + $0xf0] sm:$0xff] %v423_v30 }
  0x31   : > { %v427_v32 = vld [vmem:[%s1601_s29 + $0x400] sm:$0xff]  ;;  %426 = vst [vmem:[%s1606_s30 + $0xf8] sm:$0xff] %v425_v31 }
  0x32   : > { %428 = vst [vmem:[%s1606_s30 + $0x100] sm:$0xff] %v427_v32  ;;  %v429_v33 = vld [vmem:[%s1601_s29 + $0x420] sm:$0xff] }
  0x33   : > { %v431_v34 = vld [vmem:[%s1601_s29 + $0x440] sm:$0xff]  ;;  %430 = vst [vmem:[%s1606_s30 + $0x108] sm:$0xff] %v429_v33 }
  0x34   : > { %v433_v35 = vld [vmem:[%s1601_s29 + $0x460] sm:$0xff]  ;;  %432 = vst [vmem:[%s1606_s30 + $0x110] sm:$0xff] %v431_v34 }
  0x35   : > { %434 = vst [vmem:[%s1606_s30 + $0x118] sm:$0xff] %v433_v35  ;;  %v435_v36 = vld [vmem:[%s1601_s29 + $0x480] sm:$0xff] }
  0x36   : > { %v437_v37 = vld [vmem:[%s1601_s29 + $0x4a0] sm:$0xff]  ;;  %436 = vst [vmem:[%s1606_s30 + $0x120] sm:$0xff] %v435_v36 }
  0x37   : > { %v439_v38 = vld [vmem:[%s1601_s29 + $0x4c0] sm:$0xff]  ;;  %438 = vst [vmem:[%s1606_s30 + $0x128] sm:$0xff] %v437_v37 }
  0x38   : > { %440 = vst [vmem:[%s1606_s30 + $0x130] sm:$0xff] %v439_v38  ;;  %v441_v39 = vld [vmem:[%s1601_s29 + $0x4e0] sm:$0xff] }
  0x39   : > { %v443_v40 = vld [vmem:[%s1601_s29 + $0x500] sm:$0xff]  ;;  %442 = vst [vmem:[%s1606_s30 + $0x138] sm:$0xff] %v441_v39 }
  0x3a   : > { %v445_v41 = vld [vmem:[%s1601_s29 + $0x520] sm:$0xff]  ;;  %444 = vst [vmem:[%s1606_s30 + $0x140] sm:$0xff] %v443_v40 }
  0x3b   : > { %446 = vst [vmem:[%s1606_s30 + $0x148] sm:$0xff] %v445_v41  ;;  %v447_v42 = vld [vmem:[%s1601_s29 + $0x540] sm:$0xff] }
  0x3c   : > { %v449_v43 = vld [vmem:[%s1601_s29 + $0x560] sm:$0xff]  ;;  %448 = vst [vmem:[%s1606_s30 + $0x150] sm:$0xff] %v447_v42 }
  0x3d   : > { %v451_v44 = vld [vmem:[%s1601_s29 + $0x580] sm:$0xff]  ;;  %450 = vst [vmem:[%s1606_s30 + $0x158] sm:$0xff] %v449_v43 }
  0x3e   : > { %452 = vst [vmem:[%s1606_s30 + $0x160] sm:$0xff] %v451_v44  ;;  %v453_v45 = vld [vmem:[%s1601_s29 + $0x5a0] sm:$0xff] }
  0x3f   : > { %v455_v46 = vld [vmem:[%s1601_s29 + $0x5c0] sm:$0xff]  ;;  %454 = vst [vmem:[%s1606_s30 + $0x168] sm:$0xff] %v453_v45 }
  0x40   : > { %v457_v47 = vld [vmem:[%s1601_s29 + $0x5e0] sm:$0xff]  ;;  %456 = vst [vmem:[%s1606_s30 + $0x170] sm:$0xff] %v455_v46 }
  0x41   : > { %458 = vst [vmem:[%s1606_s30 + $0x178] sm:$0xff] %v457_v47  ;;  %v459_v48 = vld [vmem:[%s1601_s29 + $0x600] sm:$0xff] }
  0x42   : > { %v461_v49 = vld [vmem:[%s1601_s29 + $0x620] sm:$0xff]  ;;  %460 = vst [vmem:[%s1606_s30 + $0x180] sm:$0xff] %v459_v48 }
  0x43   : > { %v463_v50 = vld [vmem:[%s1601_s29 + $0x640] sm:$0xff]  ;;  %462 = vst [vmem:[%s1606_s30 + $0x188] sm:$0xff] %v461_v49 }
  0x44   : > { %464 = vst [vmem:[%s1606_s30 + $0x190] sm:$0xff] %v463_v50  ;;  %v465_v51 = vld [vmem:[%s1601_s29 + $0x660] sm:$0xff] }
  0x45   : > { %v467_v52 = vld [vmem:[%s1601_s29 + $0x680] sm:$0xff]  ;;  %466 = vst [vmem:[%s1606_s30 + $0x198] sm:$0xff] %v465_v51 }
  0x46   : > { %v469_v53 = vld [vmem:[%s1601_s29 + $0x6a0] sm:$0xff]  ;;  %468 = vst [vmem:[%s1606_s30 + $0x1a0] sm:$0xff] %v467_v52 }
  0x47   : > { %470 = vst [vmem:[%s1606_s30 + $0x1a8] sm:$0xff] %v469_v53  ;;  %v471_v54 = vld [vmem:[%s1601_s29 + $0x6c0] sm:$0xff] }
  0x48   : > { %v473_v55 = vld [vmem:[%s1601_s29 + $0x6e0] sm:$0xff]  ;;  %472 = vst [vmem:[%s1606_s30 + $0x1b0] sm:$0xff] %v471_v54 }
  0x49   : > { %v475_v56 = vld [vmem:[%s1601_s29 + $0x700] sm:$0xff]  ;;  %474 = vst [vmem:[%s1606_s30 + $0x1b8] sm:$0xff] %v473_v55 }
  0x4a   : > { %476 = vst [vmem:[%s1606_s30 + $0x1c0] sm:$0xff] %v475_v56  ;;  %v477_v57 = vld [vmem:[%s1601_s29 + $0x720] sm:$0xff] }
  0x4b   : > { %v479_v58 = vld [vmem:[%s1601_s29 + $0x740] sm:$0xff]  ;;  %478 = vst [vmem:[%s1606_s30 + $0x1c8] sm:$0xff] %v477_v57 }
  0x4c   : > { %v481_v59 = vld [vmem:[%s1601_s29 + $0x760] sm:$0xff]  ;;  %480 = vst [vmem:[%s1606_s30 + $0x1d0] sm:$0xff] %v479_v58 }
  0x4d   : > { %482 = vst [vmem:[%s1606_s30 + $0x1d8] sm:$0xff] %v481_v59  ;;  %v483_v60 = vld [vmem:[%s1601_s29 + $0x780] sm:$0xff] }
  0x4e   : > { %v485_v61 = vld [vmem:[%s1601_s29 + $0x7a0] sm:$0xff]  ;;  %484 = vst [vmem:[%s1606_s30 + $0x1e0] sm:$0xff] %v483_v60 }
  0x4f   : > { %v487_v62 = vld [vmem:[%s1601_s29 + $0x7c0] sm:$0xff]  ;;  %486 = vst [vmem:[%s1606_s30 + $0x1e8] sm:$0xff] %v485_v61 }
  0x50   : > { %488 = vst [vmem:[%s1606_s30 + $0x1f0] sm:$0xff] %v487_v62  ;;  %v489_v63 = vld [vmem:[%s1601_s29 + $0x7e0] sm:$0xff] }
  0x51   : > { %490 = vst [vmem:[%s1606_s30 + $0x1f8] sm:$0xff] %v489_v63 }
  0x52 PF: > { %p1272_p6 = scmp.ge.s32.totalorder %s1531_s19, 1  ;;  %p511_p7 = scmp.lt.s32.totalorder %s1531_s19, 5 }
  0x54   : > { %p512_p8 = pnand %p1272_p6, %p511_p7 }
  0x55   : > { %s518_s5 = sand.u32 (!%p512_p8), 1, %s1515_s15   ;;  %v1739_v0 = vld [vmem:[%s1845_s0] sm:$0xff] (!%p512_p8)  ;;  %v1744_v1 = vld [vmem:[%s1845_s0 + $0x8] sm:$0xff] (!%p512_p8)  ;;  %s1274_s12 = sshll.u32 (!%p512_p8), %s1523_s17, 1 }
  0x56   : > { %515 = sbr.rel (%p512_p8) target bundleno = 376 (0x178), region = 70  ;;  %s1273_s10 = sshll.u32 (!%p512_p8), %s518_s5, 9  ;;  %v1279_v2 = vcombine.high (!%p512_p8), %v1739_v0, %v1739_v0  ;;  %v1281_v3 = vcombine.high (!%p512_p8), %v1744_v1, %v1744_v1 }
  0x57   : > { %s1750_s11 = scalar_lea.vmem (!%p512_p8), [#allocation3], %s1273_s10  ;;  %p577_p9 = scmp.lt.s32.totalorder (!%p512_p8), %s1274_s12, 7 }
  0x58   : > { %v1393_v4 = vld [vmem:[%s1750_s11 + $0x4] ss:$8 sps:$4 sm:$0xff] (!%p512_p8)   ;;  %1036 = vmatprep.mubr.bf16.mxu1 (!%p512_p8), %v1279_v2  ;;  %1077 = vmatprep.mubr.bf16.mxu0 (!%p512_p8), %v1281_v3  ;;  %v1397_v6 = vld [vmem:[%s1750_s11] ss:$8 sps:$4 sm:$0xff] (!%p512_p8)   ;;  %v1399_v8 = vld [vmem:[%s1750_s11 + $0x14] ss:$8 sps:$4 sm:$0xff] (!%p512_p8)  }
  0x59   : > { %v1395_v5 = vld [vmem:[%s1750_s11 + $0x104] ss:$8 sps:$4 sm:$0xff] (!%p512_p8)   ;;  %1004 = vmatprep.subr.bf16.mxu1 (!%p512_p8), %v1393_v4  ;;  %v1398_v7 = vld [vmem:[%s1750_s11 + $0x100] ss:$8 sps:$4 sm:$0xff] (!%p512_p8)   ;;  %v1401_v9 = vld [vmem:[%s1750_s11 + $0x114] ss:$8 sps:$4 sm:$0xff] (!%p512_p8)  }
  0x5a   : > { %1045 = vmatprep.subr.bf16.mxu0 (!%p512_p8), %v1395_v5  ;;  %1005 = vmatpush1.bf16.msra.mxu1 (!%p512_p8), %v1397_v6  ;;  %v1403_v10 = vld [vmem:[%s1750_s11 + $0x10] ss:$8 sps:$4 sm:$0xff] (!%p512_p8)   ;;  %v1405_v12 = vld [vmem:[%s1750_s11 + $0x24] ss:$8 sps:$4 sm:$0xff] (!%p512_p8)   ;;  %v1409_v14 = vld [vmem:[%s1750_s11 + $0x20] ss:$8 sps:$4 sm:$0xff] (!%p512_p8)   ;;  %v1278_v6 = vcombine.low (!%p512_p8), %v1739_v0, %v1739_v0 }
  0x5b   : > { %1046 = vmatpush1.bf16.msra.mxu0 (!%p512_p8), %v1398_v7  ;;  %1006 = vmatprep.subr.bf16.mxu1 (!%p512_p8), %v1399_v8  ;;  %v1404_v11 = vld [vmem:[%s1750_s11 + $0x110] ss:$8 sps:$4 sm:$0xff] (!%p512_p8)   ;;  %v1407_v13 = vld [vmem:[%s1750_s11 + $0x124] ss:$8 sps:$4 sm:$0xff] (!%p512_p8)   ;;  %v1410_v15 = vld [vmem:[%s1750_s11 + $0x120] ss:$8 sps:$4 sm:$0xff] (!%p512_p8)   ;;  %v1280_v7 = vcombine.low (!%p512_p8), %v1744_v1, %v1744_v1  ;;  %v1097_v8 = vlaneseq (!%p512_p8) }
  0x5c   : > { %1047 = vmatprep.subr.bf16.mxu0 (!%p512_p8), %v1401_v9  ;;  %v1411_v16 = vld [vmem:[%s1750_s11 + $0x34] ss:$8 sps:$4 sm:$0xff] (!%p512_p8)   ;;  %v1415_v18 = vld [vmem:[%s1750_s11 + $0x30] ss:$8 sps:$4 sm:$0xff] (!%p512_p8)   ;;  %v1417_v20 = vld [vmem:[%s1750_s11 + $0x44] ss:$8 sps:$4 sm:$0xff] (!%p512_p8)  }
  0x5d   : > { %v1413_v17 = vld [vmem:[%s1750_s11 + $0x134] ss:$8 sps:$4 sm:$0xff]   ;;  %v1416_v19 = vld [vmem:[%s1750_s11 + $0x130] ss:$8 sps:$4 sm:$0xff]   ;;  %v1419_v21 = vld [vmem:[%s1750_s11 + $0x144] ss:$8 sps:$4 sm:$0xff]  }
  0x5e   : > { %1007 = vmatpush1.bf16.msra.mxu1 %v1403_v10  ;;  %v1421_v22 = vld [vmem:[%s1750_s11 + $0x40] ss:$8 sps:$4 sm:$0xff]   ;;  %v1423_v24 = vld [vmem:[%s1750_s11 + $0x54] ss:$8 sps:$4 sm:$0xff]   ;;  %v1427_v26 = vld [vmem:[%s1750_s11 + $0x50] ss:$8 sps:$4 sm:$0xff]  }
  0x5f   : > { %1048 = vmatpush1.bf16.msra.mxu0 %v1404_v11  ;;  %1008 = vmatprep.subr.bf16.mxu1 %v1405_v12  ;;  %v1422_v23 = vld [vmem:[%s1750_s11 + $0x140] ss:$8 sps:$4 sm:$0xff]   ;;  %v1425_v25 = vld [vmem:[%s1750_s11 + $0x154] ss:$8 sps:$4 sm:$0xff]   ;;  %v1428_v27 = vld [vmem:[%s1750_s11 + $0x150] ss:$8 sps:$4 sm:$0xff]  }
  0x60   : > { %1049 = vmatprep.subr.bf16.mxu0 %v1407_v13  ;;  %v1429_v28 = vld [vmem:[%s1750_s11 + $0x64] ss:$8 sps:$4 sm:$0xff]   ;;  %v1433_v30 = vld [vmem:[%s1750_s11 + $0x60] ss:$8 sps:$4 sm:$0xff]   ;;  %v1435_v32 = vld [vmem:[%s1750_s11 + $0x74] ss:$8 sps:$4 sm:$0xff]  }
  0x61   : > { %v1431_v29 = vld [vmem:[%s1750_s11 + $0x164] ss:$8 sps:$4 sm:$0xff]   ;;  %v1434_v31 = vld [vmem:[%s1750_s11 + $0x160] ss:$8 sps:$4 sm:$0xff]   ;;  %v1437_v33 = vld [vmem:[%s1750_s11 + $0x174] ss:$8 sps:$4 sm:$0xff]  }
  0x62   : > { %1009 = vmatpush1.bf16.msra.mxu1 %v1409_v14  ;;  %v1439_v34 = vld [vmem:[%s1750_s11 + $0x70] ss:$8 sps:$4 sm:$0xff]   ;;  %v1441_v36 = vld [vmem:[%s1750_s11 + $0x84] ss:$8 sps:$4 sm:$0xff]   ;;  %v1445_v38 = vld [vmem:[%s1750_s11 + $0x80] ss:$8 sps:$4 sm:$0xff]  }
  0x63   : > { %1050 = vmatpush1.bf16.msra.mxu0 %v1410_v15  ;;  %1010 = vmatprep.subr.bf16.mxu1 %v1411_v16  ;;  %v1440_v35 = vld [vmem:[%s1750_s11 + $0x170] ss:$8 sps:$4 sm:$0xff]   ;;  %v1443_v37 = vld [vmem:[%s1750_s11 + $0x184] ss:$8 sps:$4 sm:$0xff]   ;;  %v1446_v39 = vld [vmem:[%s1750_s11 + $0x180] ss:$8 sps:$4 sm:$0xff]  }
  0x64   : > { %1051 = vmatprep.subr.bf16.mxu0 %v1413_v17  ;;  %v1447_v40 = vld [vmem:[%s1750_s11 + $0x94] ss:$8 sps:$4 sm:$0xff]   ;;  %v1451_v42 = vld [vmem:[%s1750_s11 + $0x90] ss:$8 sps:$4 sm:$0xff]   ;;  %v1453_v44 = vld [vmem:[%s1750_s11 + $0xa4] ss:$8 sps:$4 sm:$0xff]  }
  0x65   : > { %v1449_v41 = vld [vmem:[%s1750_s11 + $0x194] ss:$8 sps:$4 sm:$0xff]   ;;  %v1452_v43 = vld [vmem:[%s1750_s11 + $0x190] ss:$8 sps:$4 sm:$0xff]   ;;  %v1455_v45 = vld [vmem:[%s1750_s11 + $0x1a4] ss:$8 sps:$4 sm:$0xff]  }
  0x66   : > { %1011 = vmatpush1.bf16.msra.mxu1 %v1415_v18  ;;  %v1457_v46 = vld [vmem:[%s1750_s11 + $0xa0] ss:$8 sps:$4 sm:$0xff]   ;;  %v1459_v48 = vld [vmem:[%s1750_s11 + $0xb4] ss:$8 sps:$4 sm:$0xff]   ;;  %v1463_v50 = vld [vmem:[%s1750_s11 + $0xb0] ss:$8 sps:$4 sm:$0xff]  }
  0x67   : > { %1052 = vmatpush1.bf16.msra.mxu0 %v1416_v19  ;;  %1012 = vmatprep.subr.bf16.mxu1 %v1417_v20  ;;  %v1458_v47 = vld [vmem:[%s1750_s11 + $0x1a0] ss:$8 sps:$4 sm:$0xff]   ;;  %v1461_v49 = vld [vmem:[%s1750_s11 + $0x1b4] ss:$8 sps:$4 sm:$0xff]   ;;  %v1464_v51 = vld [vmem:[%s1750_s11 + $0x1b0] ss:$8 sps:$4 sm:$0xff]  }
  0x68   : > { %1053 = vmatprep.subr.bf16.mxu0 %v1419_v21  ;;  %v1465_v52 = vld [vmem:[%s1750_s11 + $0xc4] ss:$8 sps:$4 sm:$0xff]   ;;  %v1469_v54 = vld [vmem:[%s1750_s11 + $0xc0] ss:$8 sps:$4 sm:$0xff]   ;;  %v1471_v56 = vld [vmem:[%s1750_s11 + $0xd4] ss:$8 sps:$4 sm:$0xff]  }
  0x69   : > { %v1467_v53 = vld [vmem:[%s1750_s11 + $0x1c4] ss:$8 sps:$4 sm:$0xff]   ;;  %v1470_v55 = vld [vmem:[%s1750_s11 + $0x1c0] ss:$8 sps:$4 sm:$0xff]   ;;  %v1473_v57 = vld [vmem:[%s1750_s11 + $0x1d4] ss:$8 sps:$4 sm:$0xff]  }
  0x6a   : > { %1013 = vmatpush1.bf16.msra.mxu1 %v1421_v22  ;;  %v1475_v58 = vld [vmem:[%s1750_s11 + $0xd0] ss:$8 sps:$4 sm:$0xff]   ;;  %v1477_v60 = vld [vmem:[%s1750_s11 + $0xe4] ss:$8 sps:$4 sm:$0xff]   ;;  %v1481_v62 = vld [vmem:[%s1750_s11 + $0xe0] ss:$8 sps:$4 sm:$0xff]  }
  0x6b   : > { %1054 = vmatpush1.bf16.msra.mxu0 %v1422_v23  ;;  %1014 = vmatprep.subr.bf16.mxu1 %v1423_v24  ;;  %v1476_v59 = vld [vmem:[%s1750_s11 + $0x1d0] ss:$8 sps:$4 sm:$0xff]   ;;  %v1479_v61 = vld [vmem:[%s1750_s11 + $0x1e4] ss:$8 sps:$4 sm:$0xff]   ;;  %v1482_v63 = vld [vmem:[%s1750_s11 + $0x1e0] ss:$8 sps:$4 sm:$0xff]  }
  0x6c   : > { %1055 = vmatprep.subr.bf16.mxu0 %v1425_v25  ;;  %v1483_v2 = vld [vmem:[%s1750_s11 + $0xf4] ss:$8 sps:$4 sm:$0xff]   ;;  %v1487_v4 = vld [vmem:[%s1750_s11 + $0xf0] ss:$8 sps:$4 sm:$0xff]   ;;  %s1857_s12 = smov (!%p577_p9, %s1274_s12), 7  ;;  %v1098_v9 = vshrl.u32 %v1097_v8, 7 }
  0x6d   : > { %v1485_v3 = vld [vmem:[%s1750_s11 + $0x1f4] ss:$8 sps:$4 sm:$0xff]   ;;  %v1488_v5 = vld [vmem:[%s1750_s11 + $0x1f0] ss:$8 sps:$4 sm:$0xff]   ;;  %s579_s15 = scalar_lea.vmem %s1847_s2, %s1857_s12  ;;  %s584_s24 = scalar_lea.vmem %s1848_s3, %s1857_s12 }
  0x6e   : > { %1015 = vmatpush1.bf16.msra.mxu1 %v1427_v26  ;;  %v1099_v0 = vsub.s32 0, %v1098_v9  ;;  %v1095_v10 = vld [vmem:[%s579_s15] sm:$0x3]  ;;  %v1103_v1 = vsub.s32 1, %v1098_v9  ;;  %s1277_s17 = sshll.u32 %s1857_s12, 2 }
  0x6f   : > { %1056 = vmatpush1.bf16.msra.mxu0 %v1428_v27  ;;  %1016 = vmatprep.subr.bf16.mxu1 %v1429_v28  ;;  %v1109_v11 = vld [vmem:[%s584_s24] sm:$0x3]  ;;  %s594_s27 = scalar_lea.vmem %s1849_s4, %s1277_s17 }
  0x70   : > { %1057 = vmatprep.subr.bf16.mxu0 %v1431_v29  ;;  %v1100_v12 = vrot.slane %v1095_v10, %v1099_v0  ;;  %v1104_v15 = vrot.slane %v1095_v10, %v1103_v1  ;;  %v1114_v17 = vrot.slane %v1109_v11, %v1099_v0  ;;  %v1118_v21 = vrot.slane %v1109_v11, %v1103_v1 }
  0x72   : > { %1017 = vmatpush1.bf16.msra.mxu1 %v1433_v30 }
  0x73   : > { %1058 = vmatpush1.bf16.msra.mxu0 %v1434_v31  ;;  %1018 = vmatprep.subr.bf16.mxu1 %v1435_v32 }
  0x74   : > { %1059 = vmatprep.subr.bf16.mxu0 %v1437_v33 }
  0x76   : > { %1019 = vmatpush1.bf16.msra.mxu1 %v1439_v34 }
  0x77   : > { %1060 = vmatpush1.bf16.msra.mxu0 %v1440_v35  ;;  %1020 = vmatprep.subr.bf16.mxu1 %v1441_v36 }
  0x78   : > { %1061 = vmatprep.subr.bf16.mxu0 %v1443_v37 }
  0x7a   : > { %1021 = vmatpush1.bf16.msra.mxu1 %v1445_v38 }
  0x7b   : > { %1062 = vmatpush1.bf16.msra.mxu0 %v1446_v39  ;;  %1022 = vmatprep.subr.bf16.mxu1 %v1447_v40 }
  0x7c   : > { %1063 = vmatprep.subr.bf16.mxu0 %v1449_v41 }
  0x7e   : > { %1023 = vmatpush1.bf16.msra.mxu1 %v1451_v42 }
  0x7f   : > { %1064 = vmatpush1.bf16.msra.mxu0 %v1452_v43  ;;  %1024 = vmatprep.subr.bf16.mxu1 %v1453_v44 }
  0x80   : > { %1065 = vmatprep.subr.bf16.mxu0 %v1455_v45 }
  0x82   : > { %1025 = vmatpush1.bf16.msra.mxu1 %v1457_v46 }
  0x83   : > { %1066 = vmatpush1.bf16.msra.mxu0 %v1458_v47  ;;  %1026 = vmatprep.subr.bf16.mxu1 %v1459_v48 }
  0x84   : > { %1067 = vmatprep.subr.bf16.mxu0 %v1461_v49 }
  0x86   : > { %1027 = vmatpush1.bf16.msra.mxu1 %v1463_v50 }
  0x87   : > { %1068 = vmatpush1.bf16.msra.mxu0 %v1464_v51  ;;  %1028 = vmatprep.subr.bf16.mxu1 %v1465_v52 }
  0x88   : > { %1069 = vmatprep.subr.bf16.mxu0 %v1467_v53 }
  0x8a   : > { %1029 = vmatpush1.bf16.msra.mxu1 %v1469_v54 }
  0x8b   : > { %1070 = vmatpush1.bf16.msra.mxu0 %v1470_v55  ;;  %1030 = vmatprep.subr.bf16.mxu1 %v1471_v56 }
  0x8c   : > { %1071 = vmatprep.subr.bf16.mxu0 %v1473_v57 }
  0x8e   : > { %1031 = vmatpush1.bf16.msra.mxu1 %v1475_v58 }
  0x8f   : > { %1072 = vmatpush1.bf16.msra.mxu0 %v1476_v59  ;;  %1032 = vmatprep.subr.bf16.mxu1 %v1477_v60 }
  0x90   : > { %1073 = vmatprep.subr.bf16.mxu0 %v1479_v61 }
  0x92   : > { %1033 = vmatpush1.bf16.msra.mxu1 %v1481_v62 }
  0x93   : > { %1074 = vmatpush1.bf16.msra.mxu0 %v1482_v63  ;;  %1034 = vmatprep.subr.bf16.mxu1 %v1483_v2 }
  0x94   : > { %1075 = vmatprep.subr.bf16.mxu0 %v1485_v3 }
  0x96   : > { %1035 = vmatpush1.bf16.msra.mxu1 %v1487_v4 }
  0x97   : > { %1076 = vmatpush1.bf16.msra.mxu0 %v1488_v5 }
  0x99   : > { %1037 = vmatmul.mubr.bf16.vlgmr.msra.gmra.mrb[0].mxu1 %v1278_v6 }
  0x9a   : > { %1078 = vmatmul.mubr.bf16.vlgmr.msra.gmra.mrb[0].mxu0 %v1280_v7 }
 0x16c   : > { %v1038_v13 = vpop.f32.mrb[0].mxu1 }
 0x16d   : > { %v1079_v14 = vpop.f32.mrb[0].mxu0  ;;  %v1040_v18 = vpop.f32.mrb[1].mxu1 }
 0x16e   : > { %v1080_v16 = vadd.f32 %v1079_v14, %v1038_v13  ;;  %v1081_v19 = vpop.f32.mrb[1].mxu0  ;;  %v1042_v22 = vpop.f32.mrb[2].mxu1 }
 0x16f   : > { %v1082_v20 = vadd.f32 %v1081_v19, %v1040_v18  ;;  %v1083_v23 = vpop.f32.mrb[2].mxu0  ;;  %v1043_v25 = vpop.f32.mrb[3].mxu1 }
 0x170   : > { %v1107_v24 = vmul.f32 %v1100_v12, %v1080_v16  ;;  %v1084_v26 = vpop.f32.mrb[3].mxu0 }
 0x171   : > { %v1108_v27 = vmul.f32 %v1104_v15, %v1082_v20 }
 0x172   : > { %v1121_v28 = vadd.f32 %v1114_v17, %v1107_v24 }
 0x173   : > { %v1122_v29 = vadd.f32 %v1118_v21, %v1108_v27 }
 0x175   : > { %v1350_v30 = vpack.c.bf16 %v1122_v29, %v1121_v28 }
 0x177   : > { %1131 = vst [vmem:[%s594_s27] sm:$0xff] %v1350_v30 }
 0x178 PF: > { %s14_s19 = sadd.s32 1, %s1531_s19   ;;  %s1850_s15 = smov %s1519_s16 }
 0x179   : > { %p11_p10 = scmp.ge.s32.totalorder %s14_s19, 6   ;;  %s1851_s16 = smov %s1593_s23 }
 0x17a   : > { %s1852_s17 = smov %s1527_s18  ;;  %s1853_s18 = smov %s1855_s20 }
 0x17b   :  { %13 = sbr.rel (!%p11_p10) target bundleno = 3 (0x3), region = 126 }

// kernel: mul.1
= control target key start
LH: loop header
LB: loop body
LE: loop exit
PB: predicated region body
PF: predicated region fallthrough
CT: control target
= control target key end

     0   :  { %s20_s0 = inlined_call_operand.<no memory space> [shape: f32[], index: 0, kind: input, shape index: {}]   ;;  %s21_s1 = inlined_call_operand.vmem [shape: f32[32], index: 1, kind: output, shape index: {}]  }
   0x1   :  { %v2_v0 = vstv %s20_s0 }
   0x2   :  { %3 = vst [vmem:[%s21_s1] sm:$0x1] %v2_v0 }

// kernel: _lambda_.37
= control target key start
LH: loop header
LB: loop body
LE: loop exit
PB: predicated region body
PF: predicated region fallthrough
CT: control target
= control target key end

     0   :  { %s1198_s18 = smov 0   ;;  %s1200_s19 = smov 0   ;;  %s1388_s0 = inlined_call_operand.vmem [shape: bf16[8,256], index: 0, kind: input, shape index: {}]   ;;  %s1389_s1 = inlined_call_operand.vmem [shape: bf16[256,1024], index: 1, kind: input, shape index: {}]   ;;  %s1390_s2 = inlined_call_operand.vmem [shape: f32[1,1024], index: 2, kind: input, shape index: {}]   ;;  %s1391_s3 = inlined_call_operand.vmem [shape: f32[1,1024], index: 3, kind: input, shape index: {}]   ;;  %s1392_s4 = inlined_call_operand.vmem [shape: bf16[8,1024], index: 4, kind: input, shape index: {}]   ;;  %s1393_s5 = inlined_call_operand.vmem [shape: bf16[8,1024], index: 5, kind: output, shape index: {}]  }
   0x1   :  { %s1202_s20 = smov 0   ;;  %s1204_s21 = smov 0  }
   0x2   :  { %s1206_s22 = smov 0  }
   0x3 LB: > { %s30_s23 = sadd.s32 1, %s1162_s21  ;;  %p78_p1 = scmp.ne.s32.totalorder %s1154_s19, %s1150_s18  ;;  %s1166_s22 = sphi %s1206_s22, %s15_s22   ;;  %s1162_s21 = sphi %s1204_s21, %s1397_s21   ;;  %s1158_s20 = sphi %s1202_s20, %s1396_s20   ;;  %s1154_s19 = sphi %s1200_s19, %s1395_s19   ;;  %s1150_s18 = sphi %s1198_s18, %s1394_s18  }
   0x4   : > { %p32_p0 = scmp.ge.s32.totalorder %s30_s23, 4  ;;  %p79_p2 = scmp.eq.s32.totalorder %s1166_s22, 0 }
   0x5   : > { %s71_s25 = sadd.s32 1, %s1154_s19  ;;  %p987_p5 = scmp.ge.s32.totalorder %s1166_s22, 4 }
   0x6   : > { %s1399_s23 = smov (%p32_p0, %s30_s23), 0  ;;  %p80_p3 = por %p79_p2, %p78_p1 }
   0x7   : > { %s67_s24 = ssub.s32 %s1162_s21, %s1399_s23  ;;  %225 = sbr.rel (%p987_p5) target bundleno = 50 (0x32), region = 20 }
   0x8   : > { %p69_p4 = scmp.eq.s32.totalorder %s67_s24, 0 }
   0xa   : > { %s1233_s26 = scalar_select %p69_p4, %s1154_s19, %s71_s25  }
   0xe   : > { %228 = sbr.rel (!%p80_p3) target bundleno = 50 (0x32), region = 24  ;;  %s230_s27 = sand.u32 (%p80_p3), 1, %s1154_s19  }
   0xf   : > { %s1036_s28 = sshll.u32 (%p80_p3), %s1162_s21, 3  ;;  %s988_s29 = sshll.u32 (%p80_p3), %s230_s27, 8 }
  0x10   : > { %s1241_s7 = scalar_lea.vmem (%p80_p3), %s1389_s1, %s1036_s28  ;;  %s1246_s8 = scalar_lea.vmem (%p80_p3), [#allocation3], %s988_s29 }
  0x11   : > { %v328_v0 = vld [vmem:[%s1241_s7] sm:$0xff] (%p80_p3) }
  0x12   : > { %v330_v1 = vld [vmem:[%s1241_s7 + $0x20] sm:$0xff] (%p80_p3)  ;;  %329 = vst [vmem:[%s1246_s8] sm:$0xff] (%p80_p3), %v328_v0 }
  0x13   : > { %v332_v2 = vld [vmem:[%s1241_s7 + $0x40] sm:$0xff] (%p80_p3)  ;;  %331 = vst [vmem:[%s1246_s8 + $0x8] sm:$0xff] (%p80_p3), %v330_v1 }
  0x14   : > { %333 = vst [vmem:[%s1246_s8 + $0x10] sm:$0xff] (%p80_p3), %v332_v2  ;;  %v334_v3 = vld [vmem:[%s1241_s7 + $0x60] sm:$0xff] (%p80_p3) }
  0x15   : > { %v336_v4 = vld [vmem:[%s1241_s7 + $0x80] sm:$0xff]  ;;  %335 = vst [vmem:[%s1246_s8 + $0x18] sm:$0xff] %v334_v3 }
  0x16   : > { %v338_v5 = vld [vmem:[%s1241_s7 + $0xa0] sm:$0xff]  ;;  %337 = vst [vmem:[%s1246_s8 + $0x20] sm:$0xff] %v336_v4 }
  0x17   : > { %339 = vst [vmem:[%s1246_s8 + $0x28] sm:$0xff] %v338_v5  ;;  %v340_v6 = vld [vmem:[%s1241_s7 + $0xc0] sm:$0xff] }
  0x18   : > { %v342_v7 = vld [vmem:[%s1241_s7 + $0xe0] sm:$0xff]  ;;  %341 = vst [vmem:[%s1246_s8 + $0x30] sm:$0xff] %v340_v6 }
  0x19   : > { %v344_v8 = vld [vmem:[%s1241_s7 + $0x100] sm:$0xff]  ;;  %343 = vst [vmem:[%s1246_s8 + $0x38] sm:$0xff] %v342_v7 }
  0x1a   : > { %345 = vst [vmem:[%s1246_s8 + $0x40] sm:$0xff] %v344_v8  ;;  %v346_v9 = vld [vmem:[%s1241_s7 + $0x120] sm:$0xff] }
  0x1b   : > { %v348_v10 = vld [vmem:[%s1241_s7 + $0x140] sm:$0xff]  ;;  %347 = vst [vmem:[%s1246_s8 + $0x48] sm:$0xff] %v346_v9 }
  0x1c   : > { %v350_v11 = vld [vmem:[%s1241_s7 + $0x160] sm:$0xff]  ;;  %349 = vst [vmem:[%s1246_s8 + $0x50] sm:$0xff] %v348_v10 }
  0x1d   : > { %351 = vst [vmem:[%s1246_s8 + $0x58] sm:$0xff] %v350_v11  ;;  %v352_v12 = vld [vmem:[%s1241_s7 + $0x180] sm:$0xff] }
  0x1e   : > { %v354_v13 = vld [vmem:[%s1241_s7 + $0x1a0] sm:$0xff]  ;;  %353 = vst [vmem:[%s1246_s8 + $0x60] sm:$0xff] %v352_v12 }
  0x1f   : > { %v356_v14 = vld [vmem:[%s1241_s7 + $0x1c0] sm:$0xff]  ;;  %355 = vst [vmem:[%s1246_s8 + $0x68] sm:$0xff] %v354_v13 }
  0x20   : > { %357 = vst [vmem:[%s1246_s8 + $0x70] sm:$0xff] %v356_v14  ;;  %v358_v15 = vld [vmem:[%s1241_s7 + $0x1e0] sm:$0xff] }
  0x21   : > { %v360_v16 = vld [vmem:[%s1241_s7 + $0x200] sm:$0xff]  ;;  %359 = vst [vmem:[%s1246_s8 + $0x78] sm:$0xff] %v358_v15 }
  0x22   : > { %v362_v17 = vld [vmem:[%s1241_s7 + $0x220] sm:$0xff]  ;;  %361 = vst [vmem:[%s1246_s8 + $0x80] sm:$0xff] %v360_v16 }
  0x23   : > { %363 = vst [vmem:[%s1246_s8 + $0x88] sm:$0xff] %v362_v17  ;;  %v364_v18 = vld [vmem:[%s1241_s7 + $0x240] sm:$0xff] }
  0x24   : > { %v366_v19 = vld [vmem:[%s1241_s7 + $0x260] sm:$0xff]  ;;  %365 = vst [vmem:[%s1246_s8 + $0x90] sm:$0xff] %v364_v18 }
  0x25   : > { %v368_v20 = vld [vmem:[%s1241_s7 + $0x280] sm:$0xff]  ;;  %367 = vst [vmem:[%s1246_s8 + $0x98] sm:$0xff] %v366_v19 }
  0x26   : > { %369 = vst [vmem:[%s1246_s8 + $0xa0] sm:$0xff] %v368_v20  ;;  %v370_v21 = vld [vmem:[%s1241_s7 + $0x2a0] sm:$0xff] }
  0x27   : > { %v372_v22 = vld [vmem:[%s1241_s7 + $0x2c0] sm:$0xff]  ;;  %371 = vst [vmem:[%s1246_s8 + $0xa8] sm:$0xff] %v370_v21 }
  0x28   : > { %v374_v23 = vld [vmem:[%s1241_s7 + $0x2e0] sm:$0xff]  ;;  %373 = vst [vmem:[%s1246_s8 + $0xb0] sm:$0xff] %v372_v22 }
  0x29   : > { %375 = vst [vmem:[%s1246_s8 + $0xb8] sm:$0xff] %v374_v23  ;;  %v376_v24 = vld [vmem:[%s1241_s7 + $0x300] sm:$0xff] }
  0x2a   : > { %v378_v25 = vld [vmem:[%s1241_s7 + $0x320] sm:$0xff]  ;;  %377 = vst [vmem:[%s1246_s8 + $0xc0] sm:$0xff] %v376_v24 }
  0x2b   : > { %v380_v26 = vld [vmem:[%s1241_s7 + $0x340] sm:$0xff]  ;;  %379 = vst [vmem:[%s1246_s8 + $0xc8] sm:$0xff] %v378_v25 }
  0x2c   : > { %381 = vst [vmem:[%s1246_s8 + $0xd0] sm:$0xff] %v380_v26  ;;  %v382_v27 = vld [vmem:[%s1241_s7 + $0x360] sm:$0xff] }
  0x2d   : > { %v384_v28 = vld [vmem:[%s1241_s7 + $0x380] sm:$0xff]  ;;  %383 = vst [vmem:[%s1246_s8 + $0xd8] sm:$0xff] %v382_v27 }
  0x2e   : > { %v386_v29 = vld [vmem:[%s1241_s7 + $0x3a0] sm:$0xff]  ;;  %385 = vst [vmem:[%s1246_s8 + $0xe0] sm:$0xff] %v384_v28 }
  0x2f   : > { %387 = vst [vmem:[%s1246_s8 + $0xe8] sm:$0xff] %v386_v29  ;;  %v388_v30 = vld [vmem:[%s1241_s7 + $0x3c0] sm:$0xff] }
  0x30   : > { %v390_v31 = vld [vmem:[%s1241_s7 + $0x3e0] sm:$0xff]  ;;  %389 = vst [vmem:[%s1246_s8 + $0xf0] sm:$0xff] %v388_v30 }
  0x31   : > { %391 = vst [vmem:[%s1246_s8 + $0xf8] sm:$0xff] %v390_v31 }
  0x32 PF: > { %p991_p6 = scmp.ge.s32.totalorder %s1166_s22, 1  ;;  %p425_p7 = scmp.lt.s32.totalorder %s1166_s22, 5 }
  0x34   : > { %p426_p8 = pnand %p991_p6, %p425_p7 }
  0x35   : > { %s432_s9 = sand.u32 (!%p426_p8), 1, %s1150_s18   ;;  %v1315_v32 = vld [vmem:[%s1388_s0] sm:$0xff] (!%p426_p8)  ;;  %s993_s14 = sshll.u32 (!%p426_p8), %s1158_s20, 1  ;;  %v791_v3 = vlaneseq (!%p426_p8) }
  0x36   : > { %429 = sbr.rel (%p426_p8) target bundleno = 345 (0x159), region = 74  ;;  %s992_s12 = sshll.u32 (!%p426_p8), %s432_s9, 8  ;;  %v1000_v33 = vcombine.high (!%p426_p8), %v1315_v32, %v1315_v32  ;;  %v999_v2 = vcombine.low (!%p426_p8), %v1315_v32, %v1315_v32 }
  0x37   : > { %s1319_s13 = scalar_lea.vmem (!%p426_p8), [#allocation3], %s992_s12  ;;  %p502_p9 = scmp.lt.s32.totalorder (!%p426_p8), %s993_s14, 7  ;;  %v792_v4 = vshrl.u32 (!%p426_p8), %v791_v3, 7 }
  0x38   : > { %v1078_v34 = vld [vmem:[%s1319_s13 + $0x4] ss:$8 sps:$4 sm:$0xff] (!%p426_p8)   ;;  %771 = vmatprep.mubr.bf16.mxu0 (!%p426_p8), %v1000_v33  ;;  %v1080_v35 = vld [vmem:[%s1319_s13] ss:$8 sps:$4 sm:$0xff] (!%p426_p8)   ;;  %v1081_v36 = vld [vmem:[%s1319_s13 + $0x14] ss:$8 sps:$4 sm:$0xff] (!%p426_p8)  }
  0x39   : > { %739 = vmatprep.subr.bf16.mxu0 (!%p426_p8), %v1078_v34  ;;  %v1083_v37 = vld [vmem:[%s1319_s13 + $0x10] ss:$8 sps:$4 sm:$0xff] (!%p426_p8)   ;;  %v1084_v38 = vld [vmem:[%s1319_s13 + $0x24] ss:$8 sps:$4 sm:$0xff] (!%p426_p8)   ;;  %v1086_v39 = vld [vmem:[%s1319_s13 + $0x20] ss:$8 sps:$4 sm:$0xff] (!%p426_p8)  }
  0x3a   : > { %740 = vmatpush1.bf16.msra.mxu0 (!%p426_p8), %v1080_v35  ;;  %v1087_v40 = vld [vmem:[%s1319_s13 + $0x34] ss:$8 sps:$4 sm:$0xff] (!%p426_p8)   ;;  %v1089_v41 = vld [vmem:[%s1319_s13 + $0x30] ss:$8 sps:$4 sm:$0xff] (!%p426_p8)   ;;  %v1090_v42 = vld [vmem:[%s1319_s13 + $0x44] ss:$8 sps:$4 sm:$0xff] (!%p426_p8)  }
  0x3b   : > { %741 = vmatprep.subr.bf16.mxu0 (!%p426_p8), %v1081_v36  ;;  %v1092_v43 = vld [vmem:[%s1319_s13 + $0x40] ss:$8 sps:$4 sm:$0xff] (!%p426_p8)   ;;  %v1093_v44 = vld [vmem:[%s1319_s13 + $0x54] ss:$8 sps:$4 sm:$0xff] (!%p426_p8)   ;;  %v1095_v45 = vld [vmem:[%s1319_s13 + $0x50] ss:$8 sps:$4 sm:$0xff] (!%p426_p8)  }
  0x3c   : > { %v1096_v46 = vld [vmem:[%s1319_s13 + $0x64] ss:$8 sps:$4 sm:$0xff] (!%p426_p8)   ;;  %v1098_v47 = vld [vmem:[%s1319_s13 + $0x60] ss:$8 sps:$4 sm:$0xff] (!%p426_p8)   ;;  %v1099_v48 = vld [vmem:[%s1319_s13 + $0x74] ss:$8 sps:$4 sm:$0xff] (!%p426_p8)  }
  0x3d   : > { %v1101_v49 = vld [vmem:[%s1319_s13 + $0x70] ss:$8 sps:$4 sm:$0xff]   ;;  %v1102_v50 = vld [vmem:[%s1319_s13 + $0x84] ss:$8 sps:$4 sm:$0xff]   ;;  %v1104_v51 = vld [vmem:[%s1319_s13 + $0x80] ss:$8 sps:$4 sm:$0xff]  }
  0x3e   : > { %742 = vmatpush1.bf16.msra.mxu0 %v1083_v37  ;;  %v1105_v52 = vld [vmem:[%s1319_s13 + $0x94] ss:$8 sps:$4 sm:$0xff]   ;;  %v1107_v53 = vld [vmem:[%s1319_s13 + $0x90] ss:$8 sps:$4 sm:$0xff]   ;;  %v1108_v54 = vld [vmem:[%s1319_s13 + $0xa4] ss:$8 sps:$4 sm:$0xff]  }
  0x3f   : > { %743 = vmatprep.subr.bf16.mxu0 %v1084_v38  ;;  %v1110_v55 = vld [vmem:[%s1319_s13 + $0xa0] ss:$8 sps:$4 sm:$0xff]   ;;  %v1111_v56 = vld [vmem:[%s1319_s13 + $0xb4] ss:$8 sps:$4 sm:$0xff]   ;;  %v1113_v57 = vld [vmem:[%s1319_s13 + $0xb0] ss:$8 sps:$4 sm:$0xff]  }
  0x40   : > { %v1114_v58 = vld [vmem:[%s1319_s13 + $0xc4] ss:$8 sps:$4 sm:$0xff]   ;;  %v1116_v59 = vld [vmem:[%s1319_s13 + $0xc0] ss:$8 sps:$4 sm:$0xff]   ;;  %v1117_v60 = vld [vmem:[%s1319_s13 + $0xd4] ss:$8 sps:$4 sm:$0xff]  }
  0x41   : > { %v1119_v61 = vld [vmem:[%s1319_s13 + $0xd0] ss:$8 sps:$4 sm:$0xff]   ;;  %v1120_v62 = vld [vmem:[%s1319_s13 + $0xe4] ss:$8 sps:$4 sm:$0xff]   ;;  %v1122_v63 = vld [vmem:[%s1319_s13 + $0xe0] ss:$8 sps:$4 sm:$0xff]  }
  0x42   : > { %744 = vmatpush1.bf16.msra.mxu0 %v1086_v39  ;;  %v1123_v0 = vld [vmem:[%s1319_s13 + $0xf4] ss:$8 sps:$4 sm:$0xff]   ;;  %v1125_v1 = vld [vmem:[%s1319_s13 + $0xf0] ss:$8 sps:$4 sm:$0xff]   ;;  %s1401_s14 = smov (!%p502_p9, %s993_s14), 7  ;;  %v793_v5 = vsub.s32 0, %v792_v4 }
  0x43   : > { %745 = vmatprep.subr.bf16.mxu0 %v1087_v40  ;;  %s504_s17 = scalar_lea.vmem %s1390_s2, %s1401_s14  ;;  %s996_s18 = sshll.u32 %s1401_s14, 2  ;;  %v797_v7 = vsub.s32 1, %v792_v4 }
  0x44   : > { %s509_s27 = scalar_lea.vmem %s1391_s3, %s1401_s14  ;;  %v789_v6 = vld [vmem:[%s504_s17] sm:$0x3]  ;;  %s519_s29 = scalar_lea.vmem %s1392_s4, %s996_s18 }
  0x45   : > { %v803_v8 = vld [vmem:[%s509_s27] sm:$0x3]  ;;  %v794_v9 = vrot.slane %v789_v6, %v793_v5  ;;  %v798_v11 = vrot.slane %v789_v6, %v797_v7  ;;  %s529_s7 = scalar_lea.vmem %s1393_s5, %s996_s18 }
  0x46   : > { %746 = vmatpush1.bf16.msra.mxu0 %v1089_v41  ;;  %v817_v10 = vld [vmem:[%s519_s29] sm:$0xff]  ;;  %v808_v12 = vrot.slane %v803_v8, %v793_v5  ;;  %v812_v14 = vrot.slane %v803_v8, %v797_v7 }
  0x47   : > { %747 = vmatprep.subr.bf16.mxu0 %v1090_v42  ;;  %v818_v16 = vunpack.c.l.bf16 %v817_v10  ;;  %v819_v19 = vunpack.c.h.bf16 %v817_v10 }
  0x4a   : > { %748 = vmatpush1.bf16.msra.mxu0 %v1092_v43 }
  0x4b   : > { %749 = vmatprep.subr.bf16.mxu0 %v1093_v44 }
  0x4e   : > { %750 = vmatpush1.bf16.msra.mxu0 %v1095_v45 }
  0x4f   : > { %751 = vmatprep.subr.bf16.mxu0 %v1096_v46 }
  0x52   : > { %752 = vmatpush1.bf16.msra.mxu0 %v1098_v47 }
  0x53   : > { %753 = vmatprep.subr.bf16.mxu0 %v1099_v48 }
  0x56   : > { %754 = vmatpush1.bf16.msra.mxu0 %v1101_v49 }
  0x57   : > { %755 = vmatprep.subr.bf16.mxu0 %v1102_v50 }
  0x5a   : > { %756 = vmatpush1.bf16.msra.mxu0 %v1104_v51 }
  0x5b   : > { %757 = vmatprep.subr.bf16.mxu0 %v1105_v52 }
  0x5e   : > { %758 = vmatpush1.bf16.msra.mxu0 %v1107_v53 }
  0x5f   : > { %759 = vmatprep.subr.bf16.mxu0 %v1108_v54 }
  0x62   : > { %760 = vmatpush1.bf16.msra.mxu0 %v1110_v55 }
  0x63   : > { %761 = vmatprep.subr.bf16.mxu0 %v1111_v56 }
  0x66   : > { %762 = vmatpush1.bf16.msra.mxu0 %v1113_v57 }
  0x67   : > { %763 = vmatprep.subr.bf16.mxu0 %v1114_v58 }
  0x6a   : > { %764 = vmatpush1.bf16.msra.mxu0 %v1116_v59 }
  0x6b   : > { %765 = vmatprep.subr.bf16.mxu0 %v1117_v60 }
  0x6e   : > { %766 = vmatpush1.bf16.msra.mxu0 %v1119_v61 }
  0x6f   : > { %767 = vmatprep.subr.bf16.mxu0 %v1120_v62 }
  0x72   : > { %768 = vmatpush1.bf16.msra.mxu0 %v1122_v63 }
  0x73   : > { %769 = vmatprep.subr.bf16.mxu0 %v1123_v0 }
  0x76   : > { %770 = vmatpush1.bf16.msra.mxu0 %v1125_v1 }
  0x79   : > { %772 = vmatmul.mubr.bf16.vlgmr.msra.gmra.mrb[0].mxu0 %v999_v2 }
 0x14c   : > { %v773_v13 = vpop.f32.mrb[0].mxu0 }
 0x14d   : > { %v801_v15 = vmul.f32 %v794_v9, %v773_v13  ;;  %v775_v17 = vpop.f32.mrb[1].mxu0 }
 0x14e   : > { %v802_v18 = vmul.f32 %v798_v11, %v775_v17  ;;  %v777_v20 = vpop.f32.mrb[2].mxu0 }
 0x14f   : > { %v815_v21 = vadd.f32 %v808_v12, %v801_v15  ;;  %v778_v22 = vpop.f32.mrb[3].mxu0 }
 0x150   : > { %v816_v23 = vadd.f32 %v812_v14, %v802_v18 }
 0x151   : > { %v820_v24 = vadd.f32 %v818_v16, %v815_v21 }
 0x152   : > { %v821_v25 = vadd.f32 %v819_v19, %v816_v23 }
 0x153   : > { %v822_v26 = vmax.f32 %v820_v24, 0.0 }
 0x154   : > { %v823_v27 = vmax.f32 %v821_v25, 0.0 }
 0x156   : > { %v1037_v28 = vpack.c.bf16 %v823_v27, %v822_v26 }
 0x158   : > { %832 = vst [vmem:[%s529_s7] sm:$0xff] %v1037_v28 }
 0x159 PF: > { %s15_s22 = sadd.s32 1, %s1166_s22   ;;  %s1394_s18 = smov %s1154_s19 }
 0x15a   : > { %p12_p10 = scmp.ge.s32.totalorder %s15_s22, 6   ;;  %s1395_s19 = smov %s1233_s26 }
 0x15b   : > { %s1396_s20 = smov %s1162_s21  ;;  %s1397_s21 = smov %s1399_s23 }
 0x15c   :  { %14 = sbr.rel (!%p12_p10) target bundleno = 3 (0x3), region = 133 }

// kernel: _lambda_.38
= control target key start
LH: loop header
LB: loop body
LE: loop exit
PB: predicated region body
PF: predicated region fallthrough
CT: control target
= control target key end

     0   :  { %v258_v3 = vmov 1983009808   ;;  %v157_v5 = vlaneseq  ;;  %vm225_vm0 = vcmask 1041409   ;;  %vm227_vm1 = vcmask 1043459   ;;  %s375_s0 = inlined_call_operand.vmem [shape: bf16[2,8,1024], index: 0, kind: input, shape index: {}]   ;;  %s376_s1 = inlined_call_operand.vmem [shape: f32[2,1024], index: 1, kind: output, shape index: {}]  }
   0x1   :  { %v16_v0 = vld [vmem:[%s375_s0] sm:$0xff]  ;;  %v17_v1 = vld [vmem:[%s375_s0 + $0x8] sm:$0xff]  ;;  %v18_v2 = vld [vmem:[%s375_s0 + $0x10] sm:$0xff]  ;;  %v278_v4 = vunpack.c.l.s4 %v258_v3  ;;  %vm229_vm2 = vcmask 1045509   ;;  %vm231_vm3 = vcmask 1047559  }
   0x2   :  { %v19_v6 = vld [vmem:[%s375_s0 + $0x18] sm:$0xff]  ;;  %v286_v7 = vld [vmem:[%s375_s0 + $0x20] sm:$0xff]  ;;  %v291_v8 = vld [vmem:[%s375_s0 + $0x28] sm:$0xff]  ;;  %v24_v9 = vunpack.c.l.bf16 %v16_v0  ;;  %v25_v10 = vunpack.c.h.bf16 %v16_v0  ;;  %v26_v11 = vunpack.c.l.bf16 %v17_v1  ;;  %v27_v12 = vunpack.c.h.bf16 %v17_v1 }
   0x3   :  { %v296_v13 = vld [vmem:[%s375_s0 + $0x30] sm:$0xff]  ;;  %v301_v14 = vld [vmem:[%s375_s0 + $0x38] sm:$0xff]  ;;  %v28_v15 = vunpack.c.l.bf16 %v18_v2  ;;  %v29_v16 = vunpack.c.h.bf16 %v18_v2  ;;  %v30_v17 = vunpack.c.l.bf16 %v19_v6  ;;  %v31_v18 = vunpack.c.h.bf16 %v19_v6 }
   0x4   :  { %v32_v19 = vunpack.c.l.bf16 %v286_v7  ;;  %v33_v20 = vunpack.c.h.bf16 %v286_v7  ;;  %v34_v21 = vunpack.c.l.bf16 %v291_v8  ;;  %v35_v22 = vunpack.c.h.bf16 %v291_v8 }
   0x5   :  { %v36_v23 = vunpack.c.l.bf16 %v296_v13  ;;  %v37_v24 = vunpack.c.h.bf16 %v296_v13  ;;  %v38_v25 = vunpack.c.l.bf16 %v301_v14  ;;  %v39_v26 = vunpack.c.h.bf16 %v301_v14 }
   0x6   :  { %v40_v27 = vrot.slane %v24_v9, 4  ;;  %v46_v28 = vrot.slane %v25_v10, 4  ;;  %v52_v29 = vrot.slane %v26_v11, 4  ;;  %v58_v30 = vrot.slane %v27_v12, 4 }
   0x7   :  { %v64_v31 = vrot.slane %v28_v15, 4  ;;  %v70_v32 = vrot.slane %v29_v16, 4  ;;  %v76_v33 = vrot.slane %v30_v17, 4  ;;  %v82_v34 = vrot.slane %v31_v18, 4 }
   0x8   :  { %v41_v35 = vadd.f32 %v40_v27, %v24_v9  ;;  %v47_v36 = vadd.f32 %v46_v28, %v25_v10  ;;  %v53_v37 = vadd.f32 %v52_v29, %v26_v11  ;;  %v59_v38 = vadd.f32 %v58_v30, %v27_v12 }
   0x9   :  { %v65_v39 = vadd.f32 %v64_v31, %v28_v15  ;;  %v71_v40 = vadd.f32 %v70_v32, %v29_v16  ;;  %v77_v41 = vadd.f32 %v76_v33, %v30_v17  ;;  %v83_v42 = vadd.f32 %v82_v34, %v31_v18 }
   0xa   :  { %v42_v43 = vrot.slane %v41_v35, 2  ;;  %v48_v44 = vrot.slane %v47_v36, 2  ;;  %v54_v45 = vrot.slane %v53_v37, 2  ;;  %v60_v46 = vrot.slane %v59_v38, 2 }
   0xb   :  { %v66_v47 = vrot.slane %v65_v39, 2  ;;  %v72_v48 = vrot.slane %v71_v40, 2  ;;  %v78_v49 = vrot.slane %v77_v41, 2  ;;  %v84_v50 = vrot.slane %v83_v42, 2 }
   0xc   :  { %v43_v51 = vadd.f32 %v42_v43, %v41_v35  ;;  %v49_v52 = vadd.f32 %v48_v44, %v47_v36  ;;  %v55_v53 = vadd.f32 %v54_v45, %v53_v37  ;;  %v61_v54 = vadd.f32 %v60_v46, %v59_v38 }
   0xd   :  { %v67_v55 = vadd.f32 %v66_v47, %v65_v39  ;;  %v73_v56 = vadd.f32 %v72_v48, %v71_v40  ;;  %v79_v57 = vadd.f32 %v78_v49, %v77_v41  ;;  %v85_v58 = vadd.f32 %v84_v50, %v83_v42 }
   0xe   :  { %v44_v59 = vrot.slane %v43_v51, 1  ;;  %v50_v60 = vrot.slane %v49_v52, 1  ;;  %v56_v61 = vrot.slane %v55_v53, 1  ;;  %v62_v62 = vrot.slane %v61_v54, 1 }
   0xf   :  { %v68_v63 = vrot.slane %v67_v55, 1  ;;  %v74_v0 = vrot.slane %v73_v56, 1  ;;  %v80_v1 = vrot.slane %v79_v57, 1  ;;  %v86_v2 = vrot.slane %v85_v58, 1 }
  0x10   :  { %v311_v3 = vadd.f32 %v44_v59, %v43_v51  ;;  %v313_v6 = vadd.f32 %v50_v60, %v49_v52  ;;  %v315_v9 = vadd.f32 %v56_v61, %v55_v53  ;;  %v317_v10 = vadd.f32 %v62_v62, %v61_v54 }
  0x11   :  { %v319_v11 = vadd.f32 %v68_v63, %v67_v55  ;;  %v321_v12 = vadd.f32 %v74_v0, %v73_v56  ;;  %v323_v15 = vadd.f32 %v80_v1, %v79_v57  ;;  %v325_v16 = vadd.f32 %v86_v2, %v85_v58 }
  0x12   :  { %v88_v17 = vrot.slane %v32_v19, 4  ;;  %v94_v18 = vrot.slane %v33_v20, 4  ;;  %v100_v27 = vrot.slane %v34_v21, 4  ;;  %v106_v28 = vrot.slane %v35_v22, 4 }
  0x13   :  { %v112_v29 = vrot.slane %v36_v23, 4  ;;  %v118_v30 = vrot.slane %v37_v24, 4  ;;  %v124_v31 = vrot.slane %v38_v25, 4  ;;  %v130_v32 = vrot.slane %v39_v26, 4 }
  0x14   :  { %v89_v33 = vadd.f32 %v88_v17, %v32_v19  ;;  %v95_v34 = vadd.f32 %v94_v18, %v33_v20  ;;  %v101_v35 = vadd.f32 %v100_v27, %v34_v21  ;;  %v107_v36 = vadd.f32 %v106_v28, %v35_v22 }
  0x15   :  { %v113_v37 = vadd.f32 %v112_v29, %v36_v23  ;;  %v119_v38 = vadd.f32 %v118_v30, %v37_v24  ;;  %v125_v39 = vadd.f32 %v124_v31, %v38_v25  ;;  %v131_v19 = vadd.f32 %v130_v32, %v39_v26 }
  0x16   :  { %v90_v7 = vrot.slane %v89_v33, 2  ;;  %v96_v20 = vrot.slane %v95_v34, 2  ;;  %v102_v40 = vrot.slane %v101_v35, 2  ;;  %v108_v41 = vrot.slane %v107_v36, 2 }
  0x17   :  { %v114_v21 = vrot.slane %v113_v37, 2  ;;  %v120_v42 = vrot.slane %v119_v38, 2  ;;  %v126_v8 = vrot.slane %v125_v39, 2  ;;  %v132_v22 = vrot.slane %v131_v19, 2 }
  0x18   :  { %v91_v43 = vadd.f32 %v90_v7, %v89_v33  ;;  %v97_v44 = vadd.f32 %v96_v20, %v95_v34  ;;  %v103_v23 = vadd.f32 %v102_v40, %v101_v35  ;;  %v109_v45 = vadd.f32 %v108_v41, %v107_v36 }
  0x19   :  { %v115_v13 = vadd.f32 %v114_v21, %v113_v37  ;;  %v121_v24 = vadd.f32 %v120_v42, %v119_v38  ;;  %v127_v46 = vadd.f32 %v126_v8, %v125_v39  ;;  %v133_v47 = vadd.f32 %v132_v22, %v131_v19 }
  0x1a   :  { %v92_v25 = vrot.slane %v91_v43, 1  ;;  %v98_v48 = vrot.slane %v97_v44, 1  ;;  %v104_v14 = vrot.slane %v103_v23, 1  ;;  %v110_v26 = vrot.slane %v109_v45, 1 }
  0x1b   :  { %v116_v49 = vrot.slane %v115_v13, 1  ;;  %v122_v50 = vrot.slane %v121_v24, 1  ;;  %v128_v51 = vrot.slane %v127_v46, 1  ;;  %v134_v52 = vrot.slane %v133_v47, 1 }
  0x1c   :  { %v93_v53 = vadd.f32 %v92_v25, %v91_v43  ;;  %v99_v54 = vadd.f32 %v98_v48, %v97_v44  ;;  %v105_v55 = vadd.f32 %v104_v14, %v103_v23  ;;  %v111_v56 = vadd.f32 %v110_v26, %v109_v45 }
  0x1d   :  { %v117_v57 = vadd.f32 %v116_v49, %v115_v13  ;;  %v123_v58 = vadd.f32 %v122_v50, %v121_v24  ;;  %v129_v59 = vadd.f32 %v128_v51, %v127_v46  ;;  %v135_v60 = vadd.f32 %v134_v52, %v133_v47 }
  0x1e   :  { %v152_v61 = vcombine.low %v311_v3, %v313_v6  ;;  %v153_v62 = vcombine.low %v315_v9, %v317_v10  ;;  %v156_v63 = vunpack.c.0.s8 %v278_v4  ;;  %v158_v0 = vshrl.u32 %v157_v5, 7 }
  0x1f   :  { %v169_v1 = vcombine.low %v319_v11, %v321_v12  ;;  %v170_v2 = vcombine.low %v323_v15, %v325_v16  ;;  %v186_v17 = vcombine.low %v93_v53, %v99_v54  ;;  %v187_v18 = vcombine.low %v105_v55, %v111_v56 }
  0x20   :  { %v159_v27 = vsub.s32 %v156_v63, %v158_v0  ;;  %v203_v28 = vcombine.low %v117_v57, %v123_v58  ;;  %v204_v29 = vcombine.low %v129_v59, %v135_v60 }
  0x22   :  { %v160_v30 = vrot.slane %v152_v61, %v159_v27  ;;  %v167_v3 = vrot.slane %v153_v62, %v159_v27  ;;  %v177_v6 = vrot.slane %v169_v1, %v159_v27  ;;  %v184_v31 = vrot.slane %v170_v2, %v159_v27 }
  0x23   :  { %v194_v9 = vrot.slane %v186_v17, %v159_v27  ;;  %v201_v10 = vrot.slane %v187_v18, %v159_v27  ;;  %v211_v4 = vrot.slane %v203_v28, %v159_v27  ;;  %v218_v32 = vrot.slane %v204_v29, %v159_v27 }
  0x24   :  { %v168_v5 = vcombine.low %v160_v30, %v167_v3  ;;  %v185_v33 = vcombine.low %v177_v6, %v184_v31 }
  0x25   :  { %v202_v34 = vcombine.low %v194_v9, %v201_v10  ;;  %v219_v11 = vcombine.low %v211_v4, %v218_v32 }
  0x27   :  { %v224_v12 = vrot.slane %v202_v34, 7  ;;  %v235_v15 = vrot.slane %v219_v11, 7 }
  0x29   :  { %v226_v16 = vsel %vm225_vm0, %v224_v12, %v168_v5  ;;  %v236_v35 = vsel %vm225_vm0, %v235_v15, %v185_v33 }
  0x2a   :  { %v228_v36 = vsel %vm227_vm1, %v224_v12, %v226_v16  ;;  %v237_v37 = vsel %vm227_vm1, %v235_v15, %v236_v35 }
  0x2b   :  { %v230_v38 = vsel %vm229_vm2, %v224_v12, %v228_v36  ;;  %v238_v39 = vsel %vm229_vm2, %v235_v15, %v237_v37 }
  0x2c   :  { %v232_v19 = vsel %vm231_vm3, %v224_v12, %v230_v38  ;;  %v239_v7 = vsel %vm231_vm3, %v235_v15, %v238_v39 }
  0x2d   :  { %251 = vst [vmem:[%s376_s1] sm:$0xff] %v232_v19  ;;  %252 = vst [vmem:[%s376_s1 + $0x8] sm:$0xff] %v239_v7 }

// kernel: _lambda_.39
= control target key start
LH: loop header
LB: loop body
LE: loop exit
PB: predicated region body
PF: predicated region fallthrough
CT: control target
= control target key end

     0   :  { %vm1323_vm0 = vmmov 0   ;;  %s1662_s1 = inlined_call_operand.vmem [shape: bf16[1024,128], index: 1, kind: input, shape index: {}]   ;;  %s1663_s0 = inlined_call_operand.vmem [shape: bf16[8,1024], index: 0, kind: input, shape index: {}]   ;;  %s1664_s4 = inlined_call_operand.vmem [shape: bf16[128,128], index: 4, kind: input, shape index: {}]   ;;  %s1665_s7 = inlined_call_operand.vmem [shape: bf16[128,128], index: 7, kind: input, shape index: {}]   ;;  %s1666_s2 = inlined_call_operand.vmem [shape: f32[1,128], index: 2, kind: input, shape index: {}]   ;;  %s1667_s3 = inlined_call_operand.vmem [shape: f32[1,128], index: 3, kind: input, shape index: {}]   ;;  %s1668_s5 = inlined_call_operand.vmem [shape: f32[1,128], index: 5, kind: input, shape index: {}]   ;;  %s1669_s6 = inlined_call_operand.vmem [shape: f32[1,128], index: 6, kind: input, shape index: {}]   ;;  %s1670_s8 = inlined_call_operand.vmem [shape: f32[1,128], index: 8, kind: input, shape index: {}]   ;;  %s1671_s9 = inlined_call_operand.vmem [shape: f32[8,128], index: 9, kind: output, shape index: {}]  }
   0x1   :  { %v1234_v0 = vld [vmem:[%s1662_s1 + $0x40] sm:$0xff]   ;;  %v1238_v4 = vld [vmem:[%s1662_s1 + $0x48] sm:$0xff]   ;;  %v1242_v8 = vld [vmem:[%s1662_s1 + $0x50] sm:$0xff]  }
   0x2   :  { %v1235_v1 = vld [vmem:[%s1662_s1 + $0xc0] sm:$0xff]   ;;  %1086 = vmatprep.subr.bf16.mxu0 %v1234_v0  ;;  %v1239_v5 = vld [vmem:[%s1662_s1 + $0xc8] sm:$0xff]   ;;  %v1243_v9 = vld [vmem:[%s1662_s1 + $0xd0] sm:$0xff]  }
   0x3   :  { %v1236_v2 = vld [vmem:[%s1662_s1] sm:$0xff]   ;;  %1108 = vmatprep.subr.bf16.mxu1 %v1235_v1  ;;  %v1240_v6 = vld [vmem:[%s1662_s1 + $0x8] sm:$0xff]   ;;  %v1244_v10 = vld [vmem:[%s1662_s1 + $0x10] sm:$0xff]  }
   0x4   :  { %v1237_v3 = vld [vmem:[%s1662_s1 + $0x80] sm:$0xff]   ;;  %1087 = vmatpush3.bf16.msra.mxu0 %v1236_v2  ;;  %v1241_v7 = vld [vmem:[%s1662_s1 + $0x88] sm:$0xff]   ;;  %v1245_v11 = vld [vmem:[%s1662_s1 + $0x90] sm:$0xff]  }
   0x5   :  { %1109 = vmatpush3.bf16.msra.mxu1 %v1237_v3  ;;  %1088 = vmatprep.subr.bf16.mxu0 %v1238_v4  ;;  %v1246_v12 = vld [vmem:[%s1662_s1 + $0x58] sm:$0xff]   ;;  %v1250_v16 = vld [vmem:[%s1662_s1 + $0x60] sm:$0xff]   ;;  %v1254_v20 = vld [vmem:[%s1662_s1 + $0x68] sm:$0xff]  }
   0x6   :  { %1110 = vmatprep.subr.bf16.mxu1 %v1239_v5  ;;  %v1247_v13 = vld [vmem:[%s1662_s1 + $0xd8] sm:$0xff]   ;;  %v1251_v17 = vld [vmem:[%s1662_s1 + $0xe0] sm:$0xff]   ;;  %v1255_v21 = vld [vmem:[%s1662_s1 + $0xe8] sm:$0xff]  }
   0x7   :  { %v1248_v14 = vld [vmem:[%s1662_s1 + $0x18] sm:$0xff]   ;;  %v1252_v18 = vld [vmem:[%s1662_s1 + $0x20] sm:$0xff]   ;;  %v1256_v22 = vld [vmem:[%s1662_s1 + $0x28] sm:$0xff]  }
   0x8   :  { %1089 = vmatpush3.bf16.msra.mxu0 %v1240_v6  ;;  %v1249_v15 = vld [vmem:[%s1662_s1 + $0x98] sm:$0xff]   ;;  %v1253_v19 = vld [vmem:[%s1662_s1 + $0xa0] sm:$0xff]   ;;  %v1257_v23 = vld [vmem:[%s1662_s1 + $0xa8] sm:$0xff]  }
   0x9   :  { %1111 = vmatpush3.bf16.msra.mxu1 %v1241_v7  ;;  %1090 = vmatprep.subr.bf16.mxu0 %v1242_v8  ;;  %v1258_v24 = vld [vmem:[%s1662_s1 + $0x70] sm:$0xff]   ;;  %v1262_v28 = vld [vmem:[%s1662_s1 + $0x78] sm:$0xff]   ;;  %v33_v32 = vld [vmem:[%s1663_s0] sm:$0xff] }
   0xa   :  { %1112 = vmatprep.subr.bf16.mxu1 %v1243_v9  ;;  %v1259_v25 = vld [vmem:[%s1662_s1 + $0xf0] sm:$0xff]   ;;  %v1263_v29 = vld [vmem:[%s1662_s1 + $0xf8] sm:$0xff]   ;;  %v34_v33 = vld [vmem:[%s1663_s0 + $0x8] sm:$0xff]  ;;  %v993_v34 = vcombine.low %v33_v32, %v33_v32  ;;  %v994_v35 = vcombine.high %v33_v32, %v33_v32 }
   0xb   :  { %v1260_v26 = vld [vmem:[%s1662_s1 + $0x30] sm:$0xff]   ;;  %v1264_v30 = vld [vmem:[%s1662_s1 + $0x38] sm:$0xff]   ;;  %v995_v36 = vcombine.low %v34_v33, %v34_v33  ;;  %v996_v37 = vcombine.high %v34_v33, %v34_v33  ;;  %v1270_v38 = vld [vmem:[%s1662_s1 + $0x140] sm:$0xff]  }
   0xc   :  { %1091 = vmatpush3.bf16.msra.mxu0 %v1244_v10  ;;  %v1261_v27 = vld [vmem:[%s1662_s1 + $0xb0] sm:$0xff]   ;;  %v1265_v31 = vld [vmem:[%s1662_s1 + $0xb8] sm:$0xff]   ;;  %v1271_v39 = vld [vmem:[%s1662_s1 + $0x1c0] sm:$0xff]   ;;  %609 = vmatprep.mubr.bf16.mxu0 %v994_v35 }
   0xd   :  { %1113 = vmatpush3.bf16.msra.mxu1 %v1245_v11  ;;  %1092 = vmatprep.subr.bf16.mxu0 %v1246_v12  ;;  %v1272_v40 = vld [vmem:[%s1662_s1 + $0x100] sm:$0xff]   ;;  %v1274_v42 = vld [vmem:[%s1662_s1 + $0x148] sm:$0xff]   ;;  %v1278_v46 = vld [vmem:[%s1662_s1 + $0x150] sm:$0xff]   ;;  %v1322_v12 = vmov 0.0  }
   0xe   :  { %1114 = vmatprep.subr.bf16.mxu1 %v1247_v13  ;;  %649 = vmatprep.mubr.bf16.mxu1 %v996_v37  ;;  %v1273_v41 = vld [vmem:[%s1662_s1 + $0x180] sm:$0xff]   ;;  %v1275_v43 = vld [vmem:[%s1662_s1 + $0x1c8] sm:$0xff]   ;;  %v1279_v47 = vld [vmem:[%s1662_s1 + $0x1d0] sm:$0xff]  }
   0xf   :  { %v1276_v44 = vld [vmem:[%s1662_s1 + $0x108] sm:$0xff]   ;;  %v1280_v48 = vld [vmem:[%s1662_s1 + $0x110] sm:$0xff]   ;;  %v1282_v50 = vld [vmem:[%s1662_s1 + $0x158] sm:$0xff]  }
  0x10   :  { %1093 = vmatpush3.bf16.msra.mxu0 %v1248_v14  ;;  %v1277_v45 = vld [vmem:[%s1662_s1 + $0x188] sm:$0xff]   ;;  %v1281_v49 = vld [vmem:[%s1662_s1 + $0x190] sm:$0xff]   ;;  %v1283_v51 = vld [vmem:[%s1662_s1 + $0x1d8] sm:$0xff]  }
  0x11   :  { %1115 = vmatpush3.bf16.msra.mxu1 %v1249_v15  ;;  %1094 = vmatprep.subr.bf16.mxu0 %v1250_v16  ;;  %v1284_v52 = vld [vmem:[%s1662_s1 + $0x118] sm:$0xff]   ;;  %v1286_v54 = vld [vmem:[%s1662_s1 + $0x160] sm:$0xff]   ;;  %v1290_v58 = vld [vmem:[%s1662_s1 + $0x168] sm:$0xff]  }
  0x12   :  { %1116 = vmatprep.subr.bf16.mxu1 %v1251_v17  ;;  %v1285_v53 = vld [vmem:[%s1662_s1 + $0x198] sm:$0xff]   ;;  %v1287_v55 = vld [vmem:[%s1662_s1 + $0x1e0] sm:$0xff]   ;;  %v1291_v59 = vld [vmem:[%s1662_s1 + $0x1e8] sm:$0xff]  }
  0x13   :  { %v1288_v56 = vld [vmem:[%s1662_s1 + $0x120] sm:$0xff]   ;;  %v1292_v60 = vld [vmem:[%s1662_s1 + $0x128] sm:$0xff]   ;;  %v1294_v62 = vld [vmem:[%s1662_s1 + $0x170] sm:$0xff]  }
  0x14   :  { %1095 = vmatpush3.bf16.msra.mxu0 %v1252_v18  ;;  %v1289_v57 = vld [vmem:[%s1662_s1 + $0x1a0] sm:$0xff]   ;;  %v1293_v61 = vld [vmem:[%s1662_s1 + $0x1a8] sm:$0xff]   ;;  %v1295_v63 = vld [vmem:[%s1662_s1 + $0x1f0] sm:$0xff]  }
  0x15   :  { %1117 = vmatpush3.bf16.msra.mxu1 %v1253_v19  ;;  %1096 = vmatprep.subr.bf16.mxu0 %v1254_v20  ;;  %v1296_v0 = vld [vmem:[%s1662_s1 + $0x130] sm:$0xff]   ;;  %v1298_v2 = vld [vmem:[%s1662_s1 + $0x178] sm:$0xff]   ;;  %v1306_v13 = vld [vmem:[%s1664_s4] sm:$0xff]  }
  0x16   :  { %1118 = vmatprep.subr.bf16.mxu1 %v1255_v21  ;;  %v1297_v1 = vld [vmem:[%s1662_s1 + $0x1b0] sm:$0xff]   ;;  %v1299_v3 = vld [vmem:[%s1662_s1 + $0x1f8] sm:$0xff]   ;;  %v1307_v14 = vld [vmem:[%s1664_s4 + $0x8] sm:$0xff]  }
  0x17   :  { %v1300_v4 = vld [vmem:[%s1662_s1 + $0x138] sm:$0xff]   ;;  %v35_v6 = vld [vmem:[%s1663_s0 + $0x10] sm:$0xff]  ;;  %v1310_v17 = vld [vmem:[%s1664_s4 + $0x20] sm:$0xff]  }
  0x18   :  { %1097 = vmatpush3.bf16.msra.mxu0 %v1256_v22  ;;  %v1301_v5 = vld [vmem:[%s1662_s1 + $0x1b8] sm:$0xff]   ;;  %v997_v7 = vcombine.low %v35_v6, %v35_v6  ;;  %v998_v8 = vcombine.high %v35_v6, %v35_v6  ;;  %v1308_v15 = vld [vmem:[%s1664_s4 + $0x10] sm:$0xff]   ;;  %v1311_v18 = vld [vmem:[%s1664_s4 + $0x28] sm:$0xff]  }
  0x19   :  { %1119 = vmatpush3.bf16.msra.mxu1 %v1257_v23  ;;  %1098 = vmatprep.subr.bf16.mxu0 %v1258_v24  ;;  %v36_v9 = vld [vmem:[%s1663_s0 + $0x18] sm:$0xff]  ;;  %v1312_v19 = vld [vmem:[%s1664_s4 + $0x30] sm:$0xff]   ;;  %v1314_v21 = vld [vmem:[%s1665_s7] sm:$0xff]  }
  0x1a   :  { %1120 = vmatprep.subr.bf16.mxu1 %v1259_v25  ;;  %v999_v10 = vcombine.low %v36_v9, %v36_v9  ;;  %v1000_v11 = vcombine.high %v36_v9, %v36_v9  ;;  %v1309_v16 = vld [vmem:[%s1664_s4 + $0x18] sm:$0xff]   ;;  %v1315_v22 = vld [vmem:[%s1665_s7 + $0x8] sm:$0xff]   ;;  %v1316_v23 = vld [vmem:[%s1665_s7 + $0x10] sm:$0xff]  }
  0x1b   :  { %v1313_v20 = vld [vmem:[%s1664_s4 + $0x38] sm:$0xff]   ;;  %v1318_v25 = vld [vmem:[%s1665_s7 + $0x20] sm:$0xff]  }
  0x1c   :  { %1099 = vmatpush3.bf16.msra.mxu0 %v1260_v26  ;;  %v1317_v24 = vld [vmem:[%s1665_s7 + $0x18] sm:$0xff]   ;;  %v1319_v26 = vld [vmem:[%s1665_s7 + $0x28] sm:$0xff]  }
  0x1d   :  { %1121 = vmatpush3.bf16.msra.mxu1 %v1261_v27  ;;  %1100 = vmatprep.subr.bf16.mxu0 %v1262_v28 }
  0x1e   :  { %1122 = vmatprep.subr.bf16.mxu1 %v1263_v29 }
  0x20   :  { %1101 = vmatpush3.bf16.msra.mxu0 %v1264_v30 }
  0x21   :  { %1123 = vmatpush3.bf16.msra.mxu1 %v1265_v31  ;;  %1130 = vmatprep.subr.bf16.mxu0 %v1270_v38 }
  0x22   :  { %1152 = vmatprep.subr.bf16.mxu1 %v1271_v39 }
  0x23   :  { %610 = vmatmul.mubr.bf16.vlgmr.msra.gmra.mrb[0].mxu0 %v993_v34 }
  0x24   :  { %650 = vmatmul.mubr.bf16.vlgmr.msra.gmra.mrb[0].mxu1 %v995_v36  ;;  %1131 = vmatpush3.bf16.msra.mxu0 %v1272_v40 }
  0x25   :  { %1153 = vmatpush3.bf16.msra.mxu1 %v1273_v41  ;;  %1132 = vmatprep.subr.bf16.mxu0 %v1274_v42 }
  0x26   :  { %1154 = vmatprep.subr.bf16.mxu1 %v1275_v43  ;;  %689 = vmatprep.mubr.bf16.mxu0 %v998_v8 }
  0x27   :  { %729 = vmatprep.mubr.bf16.mxu1 %v1000_v11 }
  0x28   :  { %1133 = vmatpush3.bf16.msra.mxu0 %v1276_v44 }
  0x29   :  { %1155 = vmatpush3.bf16.msra.mxu1 %v1277_v45  ;;  %1134 = vmatprep.subr.bf16.mxu0 %v1278_v46 }
  0x2a   :  { %1156 = vmatprep.subr.bf16.mxu1 %v1279_v47 }
  0x2c   :  { %1135 = vmatpush3.bf16.msra.mxu0 %v1280_v48 }
  0x2d   :  { %1157 = vmatpush3.bf16.msra.mxu1 %v1281_v49  ;;  %1136 = vmatprep.subr.bf16.mxu0 %v1282_v50  ;;  %v1065_v49 = vld [vmem:[%s1666_s2] ss:$0 sm:$0xff] }
  0x2e   :  { %1158 = vmatprep.subr.bf16.mxu1 %v1283_v51  ;;  %v1066_v51 = vld [vmem:[%s1667_s3] ss:$0 sm:$0xff] }
  0x30   :  { %1137 = vmatpush3.bf16.msra.mxu0 %v1284_v52 }
  0x31   :  { %1159 = vmatpush3.bf16.msra.mxu1 %v1285_v53  ;;  %1138 = vmatprep.subr.bf16.mxu0 %v1286_v54 }
  0x32   :  { %1160 = vmatprep.subr.bf16.mxu1 %v1287_v55 }
  0x34   :  { %1139 = vmatpush3.bf16.msra.mxu0 %v1288_v56  ;;  %v1320_v56 = vld [vmem:[%s1665_s7 + $0x30] sm:$0xff]  }
  0x35   :  { %1161 = vmatpush3.bf16.msra.mxu1 %v1289_v57  ;;  %1140 = vmatprep.subr.bf16.mxu0 %v1290_v58  ;;  %v1321_v57 = vld [vmem:[%s1665_s7 + $0x38] sm:$0xff]   ;;  %v1075_v58 = vld [vmem:[%s1668_s5] ss:$0 sm:$0xff] }
  0x36   :  { %1162 = vmatprep.subr.bf16.mxu1 %v1291_v59 }
  0x38   :  { %1141 = vmatpush3.bf16.msra.mxu0 %v1292_v60  ;;  %v1076_v60 = vld [vmem:[%s1669_s6] ss:$0 sm:$0xff] }
  0x39   :  { %1163 = vmatpush3.bf16.msra.mxu1 %v1293_v61  ;;  %1142 = vmatprep.subr.bf16.mxu0 %v1294_v62 }
  0x3a   :  { %1164 = vmatprep.subr.bf16.mxu1 %v1295_v63 }
  0x3c   :  { %1143 = vmatpush3.bf16.msra.mxu0 %v1296_v0 }
  0x3d   :  { %1165 = vmatpush3.bf16.msra.mxu1 %v1297_v1  ;;  %1144 = vmatprep.subr.bf16.mxu0 %v1298_v2 }
  0x3e   :  { %1166 = vmatprep.subr.bf16.mxu1 %v1299_v3 }
  0x40   :  { %1145 = vmatpush3.bf16.msra.mxu0 %v1300_v4  ;;  %v1077_v4 = vld [vmem:[%s1670_s8] ss:$0 sm:$0xff] }
  0x41   :  { %1167 = vmatpush3.bf16.msra.mxu1 %v1301_v5  ;;  %1192 = vmatprep.subr.bf16.mxu0 %v1322_v12 }
  0x42   :  { %1212 = vmatprep.subr.bf16.mxu1 %v1322_v12 }
  0x43   :  { %690 = vmatmul.mubr.bf16.vlgmr.msra.gmra.mrb[4].mxu0 %v997_v7 }
  0x44   :  { %730 = vmatmul.mubr.bf16.vlgmr.msra.gmra.mrb[4].mxu1 %v999_v10  ;;  %1193 = vmatpush3.bf16.msra.mxu0 %v1306_v13 }
  0x45   :  { %1194 = vmatprep.subr.bf16.mxu0 %v1322_v12  ;;  %1208 = vmatprep.mubr.msk.bf16.mxu0 %vm1323_vm0, %v1322_v12 }
  0x46   :  { %1228 = vmatprep.mubr.msk.bf16.mxu1 %vm1323_vm0, %v1322_v12  ;;  %1213 = vmatpush3.bf16.msra.mxu1 %v1314_v21 }
  0x47   :  { %1214 = vmatprep.subr.bf16.mxu1 %v1322_v12 }
  0x48   :  { %1195 = vmatpush3.bf16.msra.mxu0 %v1307_v14 }
  0x49   :  { %1196 = vmatprep.subr.bf16.mxu0 %v1322_v12 }
  0x4a   :  { %1215 = vmatpush3.bf16.msra.mxu1 %v1315_v22 }
  0x4b   :  { %1216 = vmatprep.subr.bf16.mxu1 %v1322_v12 }
  0x4c   :  { %1197 = vmatpush3.bf16.msra.mxu0 %v1308_v15 }
  0x4d   :  { %1198 = vmatprep.subr.bf16.mxu0 %v1322_v12 }
  0x4e   :  { %1217 = vmatpush3.bf16.msra.mxu1 %v1316_v23 }
  0x4f   :  { %1218 = vmatprep.subr.bf16.mxu1 %v1322_v12 }
  0x50   :  { %1199 = vmatpush3.bf16.msra.mxu0 %v1309_v16 }
  0x51   :  { %1200 = vmatprep.subr.bf16.mxu0 %v1322_v12 }
  0x52   :  { %1219 = vmatpush3.bf16.msra.mxu1 %v1317_v24 }
  0x53   :  { %1220 = vmatprep.subr.bf16.mxu1 %v1322_v12 }
  0x54   :  { %1201 = vmatpush3.bf16.msra.mxu0 %v1310_v17 }
  0x55   :  { %1202 = vmatprep.subr.bf16.mxu0 %v1322_v12 }
  0x56   :  { %1221 = vmatpush3.bf16.msra.mxu1 %v1318_v25 }
  0x57   :  { %1222 = vmatprep.subr.bf16.mxu1 %v1322_v12 }
  0x58   :  { %1203 = vmatpush3.bf16.msra.mxu0 %v1311_v18 }
  0x59   :  { %1204 = vmatprep.subr.bf16.mxu0 %v1322_v12 }
  0x5a   :  { %1223 = vmatpush3.bf16.msra.mxu1 %v1319_v26 }
  0x5b   :  { %1224 = vmatprep.subr.bf16.mxu1 %v1322_v12 }
  0x5c   :  { %1205 = vmatpush3.bf16.msra.mxu0 %v1312_v19 }
  0x5d   :  { %1206 = vmatprep.subr.bf16.mxu0 %v1322_v12 }
  0x5e   :  { %1225 = vmatpush3.bf16.msra.mxu1 %v1320_v56 }
  0x5f   :  { %1226 = vmatprep.subr.bf16.mxu1 %v1322_v12 }
  0x60   :  { %1207 = vmatpush3.bf16.msra.mxu0 %v1313_v20 }
  0x62   :  { %1227 = vmatpush3.bf16.msra.mxu1 %v1321_v57 }
  0xf6   :  { %v1102_v27 = vpop.f32.mrb[0].mxu0 }
  0xf7   :  { %v1124_v28 = vpop.f32.mrb[0].mxu1  ;;  %v1103_v29 = vpop.f32.mrb[1].mxu0 }
  0xf8   :  { %v1125_v30 = vpop.f32.mrb[1].mxu1  ;;  %v1104_v31 = vadd.f32 %v1103_v29, %v1102_v27  ;;  %v1105_v33 = vpop.f32.mrb[2].mxu0 }
  0xf9   :  { %v1126_v32 = vadd.f32 %v1125_v30, %v1124_v28  ;;  %v1127_v34 = vpop.f32.mrb[2].mxu1  ;;  %v1106_v35 = vpop.f32.mrb[3].mxu0 }
  0xfa   :  { %v1128_v36 = vpop.f32.mrb[3].mxu1 }
  0xfb   :  { %v652_v37 = vadd.f32 %v1126_v32, %v1104_v31 }
 0x116   :  { %v1146_v38 = vpop.f32.mrb[4].mxu0 }
 0x117   :  { %v1168_v39 = vpop.f32.mrb[4].mxu1  ;;  %v1147_v40 = vpop.f32.mrb[5].mxu0 }
 0x118   :  { %v1169_v41 = vpop.f32.mrb[5].mxu1  ;;  %v1148_v42 = vadd.f32 %v1147_v40, %v1146_v38  ;;  %v1149_v44 = vpop.f32.mrb[6].mxu0 }
 0x119   :  { %v1170_v43 = vadd.f32 %v1169_v41, %v1168_v39  ;;  %v1171_v45 = vpop.f32.mrb[6].mxu1  ;;  %v1150_v46 = vpop.f32.mrb[7].mxu0 }
 0x11a   :  { %v1172_v47 = vpop.f32.mrb[7].mxu1  ;;  %v692_v48 = vadd.f32 %v1148_v42, %v652_v37 }
 0x11c   :  { %v732_v50 = vadd.f32 %v1170_v43, %v692_v48 }
 0x11e   :  { %v744_v52 = vmul.f32 %v1065_v49, %v732_v50 }
 0x120   :  { %v752_v53 = vadd.f32 %v1066_v51, %v744_v52 }
 0x122   :  { %v753_v54 = vmax.f32 %v752_v53, 0.0 }
 0x124   :  { %v754_v55 = vpack.c.bf16 %v753_v54, %v753_v54 }
 0x126   :  { %1209 = vmatmul.mubr.bf16.vlgmr.msra.gmra.mrb[8].mxu0 %v754_v55 }
 0x1f9   :  { %v853_v59 = vpop.f32.mrb[8].mxu0 }
 0x1fa   :  { %v866_v61 = vmul.f32 %v1075_v58, %v853_v59  ;;  %v1210_v62 = vpop.f32.mrb[9].mxu0 }
 0x1fb   :  { %v856_v63 = vpop.f32.mrb[10].mxu0 }
 0x1fc   :  { %v874_v0 = vadd.f32 %v1076_v60, %v866_v61  ;;  %v1211_v1 = vpop.f32.mrb[11].mxu0 }
 0x1fe   :  { %v875_v2 = vmax.f32 %v874_v0, 0.0 }
 0x200   :  { %v876_v3 = vpack.c.bf16 %v875_v2, %v875_v2 }
 0x202   :  { %1229 = vmatmul.mubr.bf16.vlgmr.msra.gmra.mrb[8].mxu1 %v876_v3 }
 0x2d5   :  { %v982_v5 = vpop.f32.mrb[8].mxu1 }
 0x2d6   :  { %v983_v6 = vadd.f32 %v1077_v4, %v982_v5  ;;  %v1230_v7 = vpop.f32.mrb[9].mxu1 }
 0x2d7   :  { %v985_v8 = vpop.f32.mrb[10].mxu1 }
 0x2d8   :  { %988 = vst [vmem:[%s1671_s9] sm:$0xff] %v983_v6  ;;  %v1231_v9 = vpop.f32.mrb[11].mxu1 }

</bundles_post_ra>
